<compile_context>
chip_gen: v6e
topology: v6e:2x2x1
jax: 0.10.0
libtpu: 0.0.40
codegen_flags: <defaults>
</compile_context>

<pallas_src>
import jax
import jax.numpy as jnp
from jax.experimental import pallas as pl
from jax.experimental.pallas import tpu as pltpu

# ----------------------------- config (synthetic) ---------------------------
BATCH = 2
NUM_CHANNELS = 3
IMAGE_SHAPE = 32            # required so that flatten_shape == 256*4*4
NUM_CLASSES = 4
NUM_TASKS = 3
HIDDEN = 128

C1, C2, C3 = 64, 128, 256
SP = IMAGE_SHAPE // 8                       # final spatial size after 3 pools (= 4)
FLATTEN_SHAPE = C3 * SP * SP                # 4096
K1 = 32                                     # conv1 im2col K: 9*3 = 27, zero-padded


# ------------------------------ in-kernel helpers ----------------------------
def _im2col_patches(xpad_ref, H, W, cin):
    """Implicit-im2col LHS for a 3x3 / stride-1 conv: read the 9 shifted taps
    from the replication-padded f32 VMEM scratch, reshape each to (H*W, cin),
    cast to bf16 and lane-concatenate them into one (H*W, 9*cin) patch matrix
    so the whole conv is a single MXU matmul (K = 9*cin)."""
    taps = []
    for kh in range(3):
        for kw in range(3):
            t = xpad_ref[kh:kh + H, kw:kw + W, :]
            taps.append(t.reshape(H * W, cin).astype(jnp.bfloat16))
    return jnp.concatenate(taps, axis=-1)


def _pool_pad_store(y, H, W, C, dst_ref):
    """ReLU'd conv output `y` ((H*W, C) f32, rows in (h, w) order): 2x2
    max-pool and write the pooled map plus its 1-pixel replication border into
    the next block's padded VMEM scratch `dst_ref` ((H//2+2, W//2+2, C) f32).
    H-direction pool is one wide max; the left/right border columns are folded
    into the first/last pooled-column stores via a sublane broadcast."""
    Hh, Wh = H // 2, W // 2
    y = y.reshape(Hh, 2, W, C)                      # tile-aligned sublane split
    yh = jnp.maximum(y[:, 0], y[:, 1])              # (Hh, W, C): pool over H
    for w in range(Wh):                             # pool over W, column pairs
        m = jnp.maximum(yh[:, 2 * w:2 * w + 1, :], yh[:, 2 * w + 1:2 * w + 2, :])
        m = m.astype(dst_ref.dtype)
        if w == 0:                                  # left border + first column
            dst_ref[1:Hh + 1, 0:2, :] = jnp.broadcast_to(m, (Hh, 2, C))
        elif w == Wh - 1:                           # last column + right border
            dst_ref[1:Hh + 1, Wh:Wh + 2, :] = jnp.broadcast_to(m, (Hh, 2, C))
        else:
            dst_ref[1:Hh + 1, w + 1:w + 2, :] = m
    # top / bottom replication rows (corners already included)
    dst_ref[0:1, :, :] = dst_ref[1:2, :, :]
    dst_ref[Hh + 1:Hh + 2, :, :] = dst_ref[Hh:Hh + 1, :, :]


# ------------------------------ fused kernel --------------------------------
def _network_kernel(p1_ref, w1_ref, w2_ref, w3_ref,
                    fw1_ref, fb1_ref, fw2_ref, fb2_ref,
                    o_ref,
                    xpad2, xpad3):
    # ---- block 1: conv1 as ONE matmul on the pre-built lane-dense patches ---
    y1 = jnp.dot(p1_ref[0], w1_ref[...], preferred_element_type=jnp.float32)
    y1 = jnp.maximum(y1, 0.0)                                   # (1024, 64)
    _pool_pad_store(y1, IMAGE_SHAPE, IMAGE_SHAPE, C1, xpad2)    # -> (18,18,64)

    # ---- block 2: (16,16,64) -> conv (one dot, K=576) -> relu -> pool -------
    p2 = _im2col_patches(xpad2, 16, 16, C1)                     # (256, 576) bf16
    y2 = jnp.dot(p2, w2_ref[...], preferred_element_type=jnp.float32)
    y2 = jnp.maximum(y2, 0.0)                                   # (256, 128)
    _pool_pad_store(y2, 16, 16, C2, xpad3)                      # -> (10,10,128)

    # ---- block 3: (8,8,128) -> conv (one dot, K=1152) -> relu -> pool -------
    p3 = _im2col_patches(xpad3, 8, 8, C2)                       # (64, 1152) bf16
    y3 = jnp.dot(p3, w3_ref[...], preferred_element_type=jnp.float32)
    y3 = jnp.maximum(y3, 0.0)                                   # (64, 256)
    y3 = y3.reshape(SP, 2, 2 * SP, C3)
    yh3 = jnp.maximum(y3[:, 0], y3[:, 1])                       # (4, 8, 256)

    # pooled flat features assembled in registers by lane concatenation,
    # in (h, w, c) order (fc1 rows are permuted at prep time to match torch's
    # NCHW flatten) -- no flat scratch, no narrow stores.
    pieces = []
    for h in range(SP):
        for w in range(SP):
            m = jnp.maximum(yh3[h:h + 1, 2 * w:2 * w + 1, :],
                            yh3[h:h + 1, 2 * w + 1:2 * w + 2, :])   # (1,1,256)
            pieces.append(m.reshape(1, C3))
    flat = jnp.concatenate(pieces, axis=-1).astype(jnp.bfloat16)    # (1, 4096)

    # ---- fused task heads: concatenated fc1 + block-diagonal fc2 ------------
    h1 = jnp.dot(flat, fw1_ref[...],
                 preferred_element_type=jnp.float32) + fb1_ref[...]
    h1 = jnp.maximum(h1, 0.0).astype(jnp.bfloat16)              # (1, 384)
    out = jnp.dot(h1, fw2_ref[...],
                  preferred_element_type=jnp.float32) + fb2_ref[...]
    o_ref[...] = out.reshape(1, 1, NUM_TASKS * NUM_CLASSES)


# ------------------------------ parameters -----------------------------------
def init_params(key):
    """Synthetic PyTorch-layout f32 parameters (same structure as the module)."""
    params = {}
    k = key

    def nkey():
        nonlocal k
        k, sub = jax.random.split(k)
        return sub

    def conv_w(cout, cin):
        fan_in = cin * 9
        return jax.random.normal(nkey(), (cout, cin, 3, 3), jnp.float32) / jnp.sqrt(fan_in)

    params["c1"] = conv_w(C1, NUM_CHANNELS)
    params["c2"] = conv_w(C2, C1)
    params["c3"] = conv_w(C3, C2)

    def linear(in_f, out_f):
        w = jax.random.normal(nkey(), (in_f, out_f), jnp.float32) / jnp.sqrt(in_f)
        b = jax.random.normal(nkey(), (out_f,), jnp.float32) * 0.01
        return w, b

    fcs = []
    for _ in range(NUM_TASKS):
        w1, b1 = linear(FLATTEN_SHAPE, HIDDEN)
        w2, b2 = linear(HIDDEN, NUM_CLASSES)
        fcs.append({"w1": w1, "b1": b1, "w2": w2, "b2": b2})
    params["fc"] = fcs
    return params


def prepare_fused_params(params):
    """One-time transform of torch-layout params into the fused bf16 layout."""
    def prep_conv(w, k_pad=None):
        cout, cin = w.shape[0], w.shape[1]
        # row index = kh*(3*cin) + kw*cin + c, matching the im2col tap order
        wt = jnp.transpose(w, (2, 3, 1, 0)).reshape(9 * cin, cout)
        if k_pad is not None and k_pad > 9 * cin:
            wt = jnp.pad(wt, ((0, k_pad - 9 * cin), (0, 0)))
        return wt.astype(jnp.bfloat16)

    # Row permutation so the in-kernel (h, w, c) flatten matches torch's NCHW
    # `features.view(B, -1)` (c, h, w) flatten exactly.
    j = jnp.arange(FLATTEN_SHAPE)
    perm = (j % C3) * (SP * SP) + (j // C3)

    fcs = params["fc"]
    fw1 = jnp.concatenate([fc["w1"][perm, :] for fc in fcs], axis=1).astype(jnp.bfloat16)
    fb1 = jnp.concatenate([fc["b1"] for fc in fcs]).reshape(1, -1).astype(jnp.float32)

    fw2 = jnp.zeros((NUM_TASKS * HIDDEN, NUM_TASKS * NUM_CLASSES), jnp.float32)
    for i, fc in enumerate(fcs):
        fw2 = fw2.at[i * HIDDEN:(i + 1) * HIDDEN,
                     i * NUM_CLASSES:(i + 1) * NUM_CLASSES].set(fc["w2"])
    fb2 = jnp.concatenate([fc["b2"] for fc in fcs]).reshape(1, -1).astype(jnp.float32)

    return {
        "c1": prep_conv(params["c1"], K1),
        "c2": prep_conv(params["c2"]),
        "c3": prep_conv(params["c3"]),
        "fw1": fw1, "fb1": fb1, "fw2": fw2.astype(jnp.bfloat16), "fb2": fb2,
    }


# ------------------------------ forward pass ---------------------------------
def _conv1_patches(x_nhwc):
    """Wrapper-side replication-pad + im2col for conv1 so the kernel's conv1
    LHS is lane-dense: (B, 32, 32, 3) f32 -> (B, 1024, K1) bf16 (K1 = 32)."""
    B = x_nhwc.shape[0]
    xp = jnp.pad(x_nhwc, ((0, 0), (1, 1), (1, 1), (0, 0)), mode="edge")
    cols = [xp[:, kh:kh + IMAGE_SHAPE, kw:kw + IMAGE_SHAPE, :]
            for kh in range(3) for kw in range(3)]
    p = jnp.concatenate(cols, axis=-1)                              # (B,32,32,27)
    p = p.reshape(B, IMAGE_SHAPE * IMAGE_SHAPE, 9 * NUM_CHANNELS)
    p = jnp.pad(p, ((0, 0), (0, 0), (0, K1 - 9 * NUM_CHANNELS)))
    return p.astype(jnp.bfloat16)


def network_forward(x_nchw, prep):
    """Reproduces Network.forward for pretext_task == 'label_augmentation'.
    x_nchw: (B, C, H, W) f32.  Returns list of NUM_TASKS arrays (B, NUM_CLASSES).
    Matmul operands are bf16 (f32 accumulation on the MXU)."""
    B = x_nchw.shape[0]
    x = jnp.transpose(x_nchw, (0, 2, 3, 1))                         # NHWC
    p1 = _conv1_patches(x)

    out = pl.pallas_call(
        _network_kernel,
        out_shape=jax.ShapeDtypeStruct((B, 1, NUM_TASKS * NUM_CLASSES), jnp.float32),
        grid=(B,),
        in_specs=[
            pl.BlockSpec((1, IMAGE_SHAPE * IMAGE_SHAPE, K1), lambda b: (b, 0, 0)),
            pl.BlockSpec((K1, C1), lambda b: (0, 0)),
            pl.BlockSpec((9 * C1, C2), lambda b: (0, 0)),
            pl.BlockSpec((9 * C2, C3), lambda b: (0, 0)),
            pl.BlockSpec((FLATTEN_SHAPE, NUM_TASKS * HIDDEN), lambda b: (0, 0)),
            pl.BlockSpec((1, NUM_TASKS * HIDDEN), lambda b: (0, 0)),
            pl.BlockSpec((NUM_TASKS * HIDDEN, NUM_TASKS * NUM_CLASSES),
                         lambda b: (0, 0)),
            pl.BlockSpec((1, NUM_TASKS * NUM_CLASSES), lambda b: (0, 0)),
        ],
        out_specs=pl.BlockSpec((1, 1, NUM_TASKS * NUM_CLASSES),
                               lambda b: (b, 0, 0)),
        scratch_shapes=[
            pltpu.VMEM((18, 18, C1), jnp.float32),    # padded pooled block-1 map
            pltpu.VMEM((10, 10, C2), jnp.float32),    # padded pooled block-2 map
        ],
        compiler_params=pltpu.CompilerParams(
            dimension_semantics=("parallel",),
            vmem_limit_bytes=32 * 1024 * 1024),
    )(p1, prep["c1"], prep["c2"], prep["c3"],
      prep["fw1"], prep["fb1"], prep["fw2"], prep["fb2"])

    out = out.reshape(B, NUM_TASKS * NUM_CLASSES)
    return [out[:, i * NUM_CLASSES:(i + 1) * NUM_CLASSES] for i in range(NUM_TASKS)]


# ------------------------------ pure-JAX reference ---------------------------
def reference_forward(x_nchw, params):
    """f32 reference replicating OWM_ConvNet_3 + the task heads."""
    x = jnp.transpose(x_nchw, (0, 2, 3, 1))                         # NHWC

    def block(x, w):
        xp = jnp.pad(x, ((0, 0), (1, 1), (1, 1), (0, 0)), mode="edge")
        wt = jnp.transpose(w, (2, 3, 1, 0))                         # HWIO
        y = jax.lax.conv_general_dilated(
            xp, wt, window_strides=(1, 1), padding="VALID",
            dimension_numbers=("NHWC", "HWIO", "NHWC"))
        y = jnp.maximum(y, 0.0)
        return jax.lax.reduce_window(y, -jnp.inf, jax.lax.max,
                                     (1, 2, 2, 1), (1, 2, 2, 1), "VALID")

    x = block(x, params["c1"])
    x = block(x, params["c2"])
    x = block(x, params["c3"])                                      # (B, 4, 4, 256)
    feats = jnp.transpose(x, (0, 3, 1, 2)).reshape(x.shape[0], -1)  # torch NCHW flatten
    outs = []
    for fc in params["fc"]:
        h = jnp.maximum(feats @ fc["w1"] + fc["b1"], 0.0)
        outs.append(h @ fc["w2"] + fc["b2"])
    return outs


# TODO(synk): Dropout(0.2) is implemented as inference-mode identity (no RNG
# masking); training-mode stochastic dropout is not reproduced.


if __name__ == "__main__":
    key = jax.random.PRNGKey(0)
    pkey, xkey = jax.random.split(key)
    params = init_params(pkey)
    prep = prepare_fused_params(params)
    x = jax.random.normal(xkey, (BATCH, NUM_CHANNELS, IMAGE_SHAPE, IMAGE_SHAPE),
                          jnp.float32)

    fwd = jax.jit(network_forward)
    preds = jax.block_until_ready(fwd(x, prep))

    assert len(preds) == NUM_TASKS
    for p in preds:
        assert p.shape == (BATCH, NUM_CLASSES), p.shape
        assert bool(jnp.all(jnp.isfinite(p)))

    # Loose-tolerance check against the f32 reference (kernel matmuls run with
    # bf16 operands and f32 accumulation).
    refs = jax.jit(reference_forward)(x, params)
    for p, r in zip(preds, refs):
        err = float(jnp.max(jnp.abs(p - r)))
        assert err < 0.3, err

    print("KERNEL_OK")
</pallas_src>

<mosaic_0001>
module attributes {stable_mosaic.version = 11 : i64} {
  func.func @_network_kernel(%arg0: i32, %arg1: memref<1x1024x32xbf16, #tpu.memory_space<vmem>>, %arg2: memref<32x64xbf16, #tpu.memory_space<vmem>>, %arg3: memref<576x128xbf16, #tpu.memory_space<vmem>>, %arg4: memref<1152x256xbf16, #tpu.memory_space<vmem>>, %arg5: memref<4096x384xbf16, #tpu.memory_space<vmem>>, %arg6: memref<1x384xf32, #tpu.memory_space<vmem>>, %arg7: memref<384x12xbf16, #tpu.memory_space<vmem>>, %arg8: memref<1x12xf32, #tpu.memory_space<vmem>>, %arg9: memref<1x1x12xf32, #tpu.memory_space<vmem>>, %arg10: memref<18x18x64xf32, #tpu.memory_space<vmem>>, %arg11: memref<10x10x128xf32, #tpu.memory_space<vmem>>) attributes {dimension_semantics = [#tpu.dimension_semantics<parallel>], iteration_bounds = array<i64: 2>, scalar_prefetch = 0 : i64, scratch_operands = 2 : i64, tpu.core_type = #tpu.core_type<tc>, window_params = [{transform_indices = @transform_0, window_bounds = array<i64: 1, 1024, 32>}, {pipeline_mode = #tpu.pipeline_mode<synchronous>, transform_indices = @transform_1, window_bounds = array<i64: 32, 64>}, {pipeline_mode = #tpu.pipeline_mode<synchronous>, transform_indices = @transform_2, window_bounds = array<i64: 576, 128>}, {pipeline_mode = #tpu.pipeline_mode<synchronous>, transform_indices = @transform_3, window_bounds = array<i64: 1152, 256>}, {pipeline_mode = #tpu.pipeline_mode<synchronous>, transform_indices = @transform_4, window_bounds = array<i64: 4096, 384>}, {pipeline_mode = #tpu.pipeline_mode<synchronous>, transform_indices = @transform_5, window_bounds = array<i64: 1, 384>}, {pipeline_mode = #tpu.pipeline_mode<synchronous>, transform_indices = @transform_6, window_bounds = array<i64: 384, 12>}, {pipeline_mode = #tpu.pipeline_mode<synchronous>, transform_indices = @transform_7, window_bounds = array<i64: 1, 12>}, {transform_indices = @transform_8, window_bounds = array<i64: 1, 1, 12>}]} {
    %c0 = arith.constant 0 : index
    %c0_0 = arith.constant 0 : index
    %c0_1 = arith.constant 0 : index
    %0 = vector.load %arg1[%c0, %c0_0, %c0_1] : memref<1x1024x32xbf16, #tpu.memory_space<vmem>>, vector<1x1024x32xbf16>
    %1 = vector.shape_cast %0 : vector<1x1024x32xbf16> to vector<1024x32xbf16>
    %c0_2 = arith.constant 0 : index
    %c0_3 = arith.constant 0 : index
    %2 = vector.load %arg2[%c0_2, %c0_3] : memref<32x64xbf16, #tpu.memory_space<vmem>>, vector<32x64xbf16>
    %cst = arith.constant dense<0.000000e+00> : vector<1024x64xf32>
    %3 = tpu.matmul %1, %2, %cst {dimension_numbers = #tpu.dot_dimension_numbers<[1], [0], [0], [1], [0, 0, 1, 1], [], []>} : vector<1024x32xbf16>, vector<32x64xbf16>, vector<1024x64xf32> -> vector<1024x64xf32>
    %cst_4 = arith.constant 0.000000e+00 : f32
    %4 = vector.broadcast %cst_4 : f32 to vector<1024x64xf32>
    %5 = arith.maximumf %3, %4 : vector<1024x64xf32>
    %6 = vector.shape_cast %5 : vector<1024x64xf32> to vector<16x2x32x64xf32>
    %7 = vector.extract_strided_slice %6 {offsets = [0, 0, 0, 0], sizes = [16, 1, 32, 64], strides = [1, 1, 1, 1]} : vector<16x2x32x64xf32> to vector<16x1x32x64xf32>
    %8 = vector.shape_cast %7 : vector<16x1x32x64xf32> to vector<16x32x64xf32>
    %9 = vector.extract_strided_slice %6 {offsets = [0, 1, 0, 0], sizes = [16, 1, 32, 64], strides = [1, 1, 1, 1]} : vector<16x2x32x64xf32> to vector<16x1x32x64xf32>
    %10 = vector.shape_cast %9 : vector<16x1x32x64xf32> to vector<16x32x64xf32>
    %11 = arith.maximumf %8, %10 : vector<16x32x64xf32>
    %12 = vector.extract_strided_slice %11 {offsets = [0, 0, 0], sizes = [16, 1, 64], strides = [1, 1, 1]} : vector<16x32x64xf32> to vector<16x1x64xf32>
    %13 = vector.extract_strided_slice %11 {offsets = [0, 1, 0], sizes = [16, 1, 64], strides = [1, 1, 1]} : vector<16x32x64xf32> to vector<16x1x64xf32>
    %14 = arith.maximumf %12, %13 : vector<16x1x64xf32>
    %15 = vector.shape_cast %14 : vector<16x1x64xf32> to vector<16x1x64xf32>
    %16 = vector.broadcast %15 : vector<16x1x64xf32> to vector<16x2x64xf32>
    %c1 = arith.constant 1 : index
    %c0_5 = arith.constant 0 : index
    %c0_6 = arith.constant 0 : index
    %17 = vector.load %arg10[%c1, %c0_5, %c0_6] : memref<18x18x64xf32, #tpu.memory_space<vmem>>, vector<16x2x64xf32>
    tpu.vector_store %arg10[%c1, %c0_5, %c0_6], %16 {strides = array<i32>} : memref<18x18x64xf32, #tpu.memory_space<vmem>>, vector<16x2x64xf32>,
    %18 = vector.extract_strided_slice %11 {offsets = [0, 2, 0], sizes = [16, 1, 64], strides = [1, 1, 1]} : vector<16x32x64xf32> to vector<16x1x64xf32>
    %19 = vector.extract_strided_slice %11 {offsets = [0, 3, 0], sizes = [16, 1, 64], strides = [1, 1, 1]} : vector<16x32x64xf32> to vector<16x1x64xf32>
    %20 = arith.maximumf %18, %19 : vector<16x1x64xf32>
    %c1_7 = arith.constant 1 : index
    %c2 = arith.constant 2 : index
    %c0_8 = arith.constant 0 : index
    %21 = vector.load %arg10[%c1_7, %c2, %c0_8] : memref<18x18x64xf32, #tpu.memory_space<vmem>>, vector<16x1x64xf32>
    tpu.vector_store %arg10[%c1_7, %c2, %c0_8], %20 {strides = array<i32>} : memref<18x18x64xf32, #tpu.memory_space<vmem>>, vector<16x1x64xf32>,
    %22 = vector.extract_strided_slice %11 {offsets = [0, 4, 0], sizes = [16, 1, 64], strides = [1, 1, 1]} : vector<16x32x64xf32> to vector<16x1x64xf32>
    %23 = vector.extract_strided_slice %11 {offsets = [0, 5, 0], sizes = [16, 1, 64], strides = [1, 1, 1]} : vector<16x32x64xf32> to vector<16x1x64xf32>
    %24 = arith.maximumf %22, %23 : vector<16x1x64xf32>
    %c1_9 = arith.constant 1 : index
    %c3 = arith.constant 3 : index
    %c0_10 = arith.constant 0 : index
    %25 = vector.load %arg10[%c1_9, %c3, %c0_10] : memref<18x18x64xf32, #tpu.memory_space<vmem>>, vector<16x1x64xf32>
    tpu.vector_store %arg10[%c1_9, %c3, %c0_10], %24 {strides = array<i32>} : memref<18x18x64xf32, #tpu.memory_space<vmem>>, vector<16x1x64xf32>,
    %26 = vector.extract_strided_slice %11 {offsets = [0, 6, 0], sizes = [16, 1, 64], strides = [1, 1, 1]} : vector<16x32x64xf32> to vector<16x1x64xf32>
    %27 = vector.extract_strided_slice %11 {offsets = [0, 7, 0], sizes = [16, 1, 64], strides = [1, 1, 1]} : vector<16x32x64xf32> to vector<16x1x64xf32>
    %28 = arith.maximumf %26, %27 : vector<16x1x64xf32>
    %c1_11 = arith.constant 1 : index
    %c4 = arith.constant 4 : index
    %c0_12 = arith.constant 0 : index
    %29 = vector.load %arg10[%c1_11, %c4, %c0_12] : memref<18x18x64xf32, #tpu.memory_space<vmem>>, vector<16x1x64xf32>
    tpu.vector_store %arg10[%c1_11, %c4, %c0_12], %28 {strides = array<i32>} : memref<18x18x64xf32, #tpu.memory_space<vmem>>, vector<16x1x64xf32>,
    %30 = vector.extract_strided_slice %11 {offsets = [0, 8, 0], sizes = [16, 1, 64], strides = [1, 1, 1]} : vector<16x32x64xf32> to vector<16x1x64xf32>
    %31 = vector.extract_strided_slice %11 {offsets = [0, 9, 0], sizes = [16, 1, 64], strides = [1, 1, 1]} : vector<16x32x64xf32> to vector<16x1x64xf32>
    %32 = arith.maximumf %30, %31 : vector<16x1x64xf32>
    %c1_13 = arith.constant 1 : index
    %c5 = arith.constant 5 : index
    %c0_14 = arith.constant 0 : index
    %33 = vector.load %arg10[%c1_13, %c5, %c0_14] : memref<18x18x64xf32, #tpu.memory_space<vmem>>, vector<16x1x64xf32>
    tpu.vector_store %arg10[%c1_13, %c5, %c0_14], %32 {strides = array<i32>} : memref<18x18x64xf32, #tpu.memory_space<vmem>>, vector<16x1x64xf32>,
    %34 = vector.extract_strided_slice %11 {offsets = [0, 10, 0], sizes = [16, 1, 64], strides = [1, 1, 1]} : vector<16x32x64xf32> to vector<16x1x64xf32>
    %35 = vector.extract_strided_slice %11 {offsets = [0, 11, 0], sizes = [16, 1, 64], strides = [1, 1, 1]} : vector<16x32x64xf32> to vector<16x1x64xf32>
    %36 = arith.maximumf %34, %35 : vector<16x1x64xf32>
    %c1_15 = arith.constant 1 : index
    %c6 = arith.constant 6 : index
    %c0_16 = arith.constant 0 : index
    %37 = vector.load %arg10[%c1_15, %c6, %c0_16] : memref<18x18x64xf32, #tpu.memory_space<vmem>>, vector<16x1x64xf32>
    tpu.vector_store %arg10[%c1_15, %c6, %c0_16], %36 {strides = array<i32>} : memref<18x18x64xf32, #tpu.memory_space<vmem>>, vector<16x1x64xf32>,
    %38 = vector.extract_strided_slice %11 {offsets = [0, 12, 0], sizes = [16, 1, 64], strides = [1, 1, 1]} : vector<16x32x64xf32> to vector<16x1x64xf32>
    %39 = vector.extract_strided_slice %11 {offsets = [0, 13, 0], sizes = [16, 1, 64], strides = [1, 1, 1]} : vector<16x32x64xf32> to vector<16x1x64xf32>
    %40 = arith.maximumf %38, %39 : vector<16x1x64xf32>
    %c1_17 = arith.constant 1 : index
    %c7 = arith.constant 7 : index
    %c0_18 = arith.constant 0 : index
    %41 = vector.load %arg10[%c1_17, %c7, %c0_18] : memref<18x18x64xf32, #tpu.memory_space<vmem>>, vector<16x1x64xf32>
    tpu.vector_store %arg10[%c1_17, %c7, %c0_18], %40 {strides = array<i32>} : memref<18x18x64xf32, #tpu.memory_space<vmem>>, vector<16x1x64xf32>,
    %42 = vector.extract_strided_slice %11 {offsets = [0, 14, 0], sizes = [16, 1, 64], strides = [1, 1, 1]} : vector<16x32x64xf32> to vector<16x1x64xf32>
    %43 = vector.extract_strided_slice %11 {offsets = [0, 15, 0], sizes = [16, 1, 64], strides = [1, 1, 1]} : vector<16x32x64xf32> to vector<16x1x64xf32>
    %44 = arith.maximumf %42, %43 : vector<16x1x64xf32>
    %c1_19 = arith.constant 1 : index
    %c8 = arith.constant 8 : index
    %c0_20 = arith.constant 0 : index
    %45 = vector.load %arg10[%c1_19, %c8, %c0_20] : memref<18x18x64xf32, #tpu.memory_space<vmem>>, vector<16x1x64xf32>
    tpu.vector_store %arg10[%c1_19, %c8, %c0_20], %44 {strides = array<i32>} : memref<18x18x64xf32, #tpu.memory_space<vmem>>, vector<16x1x64xf32>,
    %46 = vector.extract_strided_slice %11 {offsets = [0, 16, 0], sizes = [16, 1, 64], strides = [1, 1, 1]} : vector<16x32x64xf32> to vector<16x1x64xf32>
    %47 = vector.extract_strided_slice %11 {offsets = [0, 17, 0], sizes = [16, 1, 64], strides = [1, 1, 1]} : vector<16x32x64xf32> to vector<16x1x64xf32>
    %48 = arith.maximumf %46, %47 : vector<16x1x64xf32>
    %c1_21 = arith.constant 1 : index
    %c9 = arith.constant 9 : index
    %c0_22 = arith.constant 0 : index
    %49 = vector.load %arg10[%c1_21, %c9, %c0_22] : memref<18x18x64xf32, #tpu.memory_space<vmem>>, vector<16x1x64xf32>
    tpu.vector_store %arg10[%c1_21, %c9, %c0_22], %48 {strides = array<i32>} : memref<18x18x64xf32, #tpu.memory_space<vmem>>, vector<16x1x64xf32>,
    %50 = vector.extract_strided_slice %11 {offsets = [0, 18, 0], sizes = [16, 1, 64], strides = [1, 1, 1]} : vector<16x32x64xf32> to vector<16x1x64xf32>
    %51 = vector.extract_strided_slice %11 {offsets = [0, 19, 0], sizes = [16, 1, 64], strides = [1, 1, 1]} : vector<16x32x64xf32> to vector<16x1x64xf32>
    %52 = arith.maximumf %50, %51 : vector<16x1x64xf32>
    %c1_23 = arith.constant 1 : index
    %c10 = arith.constant 10 : index
    %c0_24 = arith.constant 0 : index
    %53 = vector.load %arg10[%c1_23, %c10, %c0_24] : memref<18x18x64xf32, #tpu.memory_space<vmem>>, vector<16x1x64xf32>
    tpu.vector_store %arg10[%c1_23, %c10, %c0_24], %52 {strides = array<i32>} : memref<18x18x64xf32, #tpu.memory_space<vmem>>, vector<16x1x64xf32>,
    %54 = vector.extract_strided_slice %11 {offsets = [0, 20, 0], sizes = [16, 1, 64], strides = [1, 1, 1]} : vector<16x32x64xf32> to vector<16x1x64xf32>
    %55 = vector.extract_strided_slice %11 {offsets = [0, 21, 0], sizes = [16, 1, 64], strides = [1, 1, 1]} : vector<16x32x64xf32> to vector<16x1x64xf32>
    %56 = arith.maximumf %54, %55 : vector<16x1x64xf32>
    %c1_25 = arith.constant 1 : index
    %c11 = arith.constant 11 : index
    %c0_26 = arith.constant 0 : index
    %57 = vector.load %arg10[%c1_25, %c11, %c0_26] : memref<18x18x64xf32, #tpu.memory_space<vmem>>, vector<16x1x64xf32>
    tpu.vector_store %arg10[%c1_25, %c11, %c0_26], %56 {strides = array<i32>} : memref<18x18x64xf32, #tpu.memory_space<vmem>>, vector<16x1x64xf32>,
    %58 = vector.extract_strided_slice %11 {offsets = [0, 22, 0], sizes = [16, 1, 64], strides = [1, 1, 1]} : vector<16x32x64xf32> to vector<16x1x64xf32>
    %59 = vector.extract_strided_slice %11 {offsets = [0, 23, 0], sizes = [16, 1, 64], strides = [1, 1, 1]} : vector<16x32x64xf32> to vector<16x1x64xf32>
    %60 = arith.maximumf %58, %59 : vector<16x1x64xf32>
    %c1_27 = arith.constant 1 : index
    %c12 = arith.constant 12 : index
    %c0_28 = arith.constant 0 : index
    %61 = vector.load %arg10[%c1_27, %c12, %c0_28] : memref<18x18x64xf32, #tpu.memory_space<vmem>>, vector<16x1x64xf32>
    tpu.vector_store %arg10[%c1_27, %c12, %c0_28], %60 {strides = array<i32>} : memref<18x18x64xf32, #tpu.memory_space<vmem>>, vector<16x1x64xf32>,
    %62 = vector.extract_strided_slice %11 {offsets = [0, 24, 0], sizes = [16, 1, 64], strides = [1, 1, 1]} : vector<16x32x64xf32> to vector<16x1x64xf32>
    %63 = vector.extract_strided_slice %11 {offsets = [0, 25, 0], sizes = [16, 1, 64], strides = [1, 1, 1]} : vector<16x32x64xf32> to vector<16x1x64xf32>
    %64 = arith.maximumf %62, %63 : vector<16x1x64xf32>
    %c1_29 = arith.constant 1 : index
    %c13 = arith.constant 13 : index
    %c0_30 = arith.constant 0 : index
    %65 = vector.load %arg10[%c1_29, %c13, %c0_30] : memref<18x18x64xf32, #tpu.memory_space<vmem>>, vector<16x1x64xf32>
    tpu.vector_store %arg10[%c1_29, %c13, %c0_30], %64 {strides = array<i32>} : memref<18x18x64xf32, #tpu.memory_space<vmem>>, vector<16x1x64xf32>,
    %66 = vector.extract_strided_slice %11 {offsets = [0, 26, 0], sizes = [16, 1, 64], strides = [1, 1, 1]} : vector<16x32x64xf32> to vector<16x1x64xf32>
    %67 = vector.extract_strided_slice %11 {offsets = [0, 27, 0], sizes = [16, 1, 64], strides = [1, 1, 1]} : vector<16x32x64xf32> to vector<16x1x64xf32>
    %68 = arith.maximumf %66, %67 : vector<16x1x64xf32>
    %c1_31 = arith.constant 1 : index
    %c14 = arith.constant 14 : index
    %c0_32 = arith.constant 0 : index
    %69 = vector.load %arg10[%c1_31, %c14, %c0_32] : memref<18x18x64xf32, #tpu.memory_space<vmem>>, vector<16x1x64xf32>
    tpu.vector_store %arg10[%c1_31, %c14, %c0_32], %68 {strides = array<i32>} : memref<18x18x64xf32, #tpu.memory_space<vmem>>, vector<16x1x64xf32>,
    %70 = vector.extract_strided_slice %11 {offsets = [0, 28, 0], sizes = [16, 1, 64], strides = [1, 1, 1]} : vector<16x32x64xf32> to vector<16x1x64xf32>
    %71 = vector.extract_strided_slice %11 {offsets = [0, 29, 0], sizes = [16, 1, 64], strides = [1, 1, 1]} : vector<16x32x64xf32> to vector<16x1x64xf32>
    %72 = arith.maximumf %70, %71 : vector<16x1x64xf32>
    %c1_33 = arith.constant 1 : index
    %c15 = arith.constant 15 : index
    %c0_34 = arith.constant 0 : index
    %73 = vector.load %arg10[%c1_33, %c15, %c0_34] : memref<18x18x64xf32, #tpu.memory_space<vmem>>, vector<16x1x64xf32>
    tpu.vector_store %arg10[%c1_33, %c15, %c0_34], %72 {strides = array<i32>} : memref<18x18x64xf32, #tpu.memory_space<vmem>>, vector<16x1x64xf32>,
    %74 = vector.extract_strided_slice %11 {offsets = [0, 30, 0], sizes = [16, 1, 64], strides = [1, 1, 1]} : vector<16x32x64xf32> to vector<16x1x64xf32>
    %75 = vector.extract_strided_slice %11 {offsets = [0, 31, 0], sizes = [16, 1, 64], strides = [1, 1, 1]} : vector<16x32x64xf32> to vector<16x1x64xf32>
    %76 = arith.maximumf %74, %75 : vector<16x1x64xf32>
    %77 = vector.shape_cast %76 : vector<16x1x64xf32> to vector<16x1x64xf32>
    %78 = vector.broadcast %77 : vector<16x1x64xf32> to vector<16x2x64xf32>
    %c1_35 = arith.constant 1 : index
    %c16 = arith.constant 16 : index
    %c0_36 = arith.constant 0 : index
    %79 = vector.load %arg10[%c1_35, %c16, %c0_36] : memref<18x18x64xf32, #tpu.memory_space<vmem>>, vector<16x2x64xf32>
    tpu.vector_store %arg10[%c1_35, %c16, %c0_36], %78 {strides = array<i32>} : memref<18x18x64xf32, #tpu.memory_space<vmem>>, vector<16x2x64xf32>,
    %c1_37 = arith.constant 1 : index
    %c0_38 = arith.constant 0 : index
    %c0_39 = arith.constant 0 : index
    %80 = vector.load %arg10[%c1_37, %c0_38, %c0_39] : memref<18x18x64xf32, #tpu.memory_space<vmem>>, vector<1x18x64xf32>
    %c0_40 = arith.constant 0 : index
    %c0_41 = arith.constant 0 : index
    %c0_42 = arith.constant 0 : index
    %81 = vector.load %arg10[%c0_40, %c0_41, %c0_42] : memref<18x18x64xf32, #tpu.memory_space<vmem>>, vector<1x18x64xf32>
    tpu.vector_store %arg10[%c0_40, %c0_41, %c0_42], %80 {strides = array<i32>} : memref<18x18x64xf32, #tpu.memory_space<vmem>>, vector<1x18x64xf32>,
    %c16_43 = arith.constant 16 : index
    %c0_44 = arith.constant 0 : index
    %c0_45 = arith.constant 0 : index
    %82 = vector.load %arg10[%c16_43, %c0_44, %c0_45] : memref<18x18x64xf32, #tpu.memory_space<vmem>>, vector<1x18x64xf32>
    %c17 = arith.constant 17 : index
    %c0_46 = arith.constant 0 : index
    %c0_47 = arith.constant 0 : index
    %83 = vector.load %arg10[%c17, %c0_46, %c0_47] : memref<18x18x64xf32, #tpu.memory_space<vmem>>, vector<1x18x64xf32>
    tpu.vector_store %arg10[%c17, %c0_46, %c0_47], %82 {strides = array<i32>} : memref<18x18x64xf32, #tpu.memory_space<vmem>>, vector<1x18x64xf32>,
    %c0_48 = arith.constant 0 : index
    %c0_49 = arith.constant 0 : index
    %c0_50 = arith.constant 0 : index
    %84 = vector.load %arg10[%c0_48, %c0_49, %c0_50] : memref<18x18x64xf32, #tpu.memory_space<vmem>>, vector<16x16x64xf32>
    %85 = vector.shape_cast %84 : vector<16x16x64xf32> to vector<256x64xf32>
    %86 = arith.truncf %85 : vector<256x64xf32> to vector<256x64xbf16>
    %c0_51 = arith.constant 0 : index
    %c1_52 = arith.constant 1 : index
    %c0_53 = arith.constant 0 : index
    %87 = vector.load %arg10[%c0_51, %c1_52, %c0_53] : memref<18x18x64xf32, #tpu.memory_space<vmem>>, vector<16x16x64xf32>
    %88 = vector.shape_cast %87 : vector<16x16x64xf32> to vector<256x64xf32>
    %89 = arith.truncf %88 : vector<256x64xf32> to vector<256x64xbf16>
    %c0_54 = arith.constant 0 : index
    %c2_55 = arith.constant 2 : index
    %c0_56 = arith.constant 0 : index
    %90 = vector.load %arg10[%c0_54, %c2_55, %c0_56] : memref<18x18x64xf32, #tpu.memory_space<vmem>>, vector<16x16x64xf32>
    %91 = vector.shape_cast %90 : vector<16x16x64xf32> to vector<256x64xf32>
    %92 = arith.truncf %91 : vector<256x64xf32> to vector<256x64xbf16>
    %c1_57 = arith.constant 1 : index
    %c0_58 = arith.constant 0 : index
    %c0_59 = arith.constant 0 : index
    %93 = vector.load %arg10[%c1_57, %c0_58, %c0_59] : memref<18x18x64xf32, #tpu.memory_space<vmem>>, vector<16x16x64xf32>
    %94 = vector.shape_cast %93 : vector<16x16x64xf32> to vector<256x64xf32>
    %95 = arith.truncf %94 : vector<256x64xf32> to vector<256x64xbf16>
    %c1_60 = arith.constant 1 : index
    %c1_61 = arith.constant 1 : index
    %c0_62 = arith.constant 0 : index
    %96 = vector.load %arg10[%c1_60, %c1_61, %c0_62] : memref<18x18x64xf32, #tpu.memory_space<vmem>>, vector<16x16x64xf32>
    %97 = vector.shape_cast %96 : vector<16x16x64xf32> to vector<256x64xf32>
    %98 = arith.truncf %97 : vector<256x64xf32> to vector<256x64xbf16>
    %c1_63 = arith.constant 1 : index
    %c2_64 = arith.constant 2 : index
    %c0_65 = arith.constant 0 : index
    %99 = vector.load %arg10[%c1_63, %c2_64, %c0_65] : memref<18x18x64xf32, #tpu.memory_space<vmem>>, vector<16x16x64xf32>
    %100 = vector.shape_cast %99 : vector<16x16x64xf32> to vector<256x64xf32>
    %101 = arith.truncf %100 : vector<256x64xf32> to vector<256x64xbf16>
    %c2_66 = arith.constant 2 : index
    %c0_67 = arith.constant 0 : index
    %c0_68 = arith.constant 0 : index
    %102 = vector.load %arg10[%c2_66, %c0_67, %c0_68] : memref<18x18x64xf32, #tpu.memory_space<vmem>>, vector<16x16x64xf32>
    %103 = vector.shape_cast %102 : vector<16x16x64xf32> to vector<256x64xf32>
    %104 = arith.truncf %103 : vector<256x64xf32> to vector<256x64xbf16>
    %c2_69 = arith.constant 2 : index
    %c1_70 = arith.constant 1 : index
    %c0_71 = arith.constant 0 : index
    %105 = vector.load %arg10[%c2_69, %c1_70, %c0_71] : memref<18x18x64xf32, #tpu.memory_space<vmem>>, vector<16x16x64xf32>
    %106 = vector.shape_cast %105 : vector<16x16x64xf32> to vector<256x64xf32>
    %107 = arith.truncf %106 : vector<256x64xf32> to vector<256x64xbf16>
    %c2_72 = arith.constant 2 : index
    %c2_73 = arith.constant 2 : index
    %c0_74 = arith.constant 0 : index
    %108 = vector.load %arg10[%c2_72, %c2_73, %c0_74] : memref<18x18x64xf32, #tpu.memory_space<vmem>>, vector<16x16x64xf32>
    %109 = vector.shape_cast %108 : vector<16x16x64xf32> to vector<256x64xf32>
    %110 = arith.truncf %109 : vector<256x64xf32> to vector<256x64xbf16>
    %111 = tpu.concatenate %86, %89, %92, %95, %98, %101, %104, %107, %110 in 1 : vector<256x64xbf16>, vector<256x64xbf16>, vector<256x64xbf16>, vector<256x64xbf16>, vector<256x64xbf16>, vector<256x64xbf16>, vector<256x64xbf16>, vector<256x64xbf16>, vector<256x64xbf16> -> vector<256x576xbf16>
    %c0_75 = arith.constant 0 : index
    %c0_76 = arith.constant 0 : index
    %112 = vector.load %arg3[%c0_75, %c0_76] : memref<576x128xbf16, #tpu.memory_space<vmem>>, vector<576x128xbf16>
    %cst_77 = arith.constant dense<0.000000e+00> : vector<256x128xf32>
    %113 = tpu.matmul %111, %112, %cst_77 {dimension_numbers = #tpu.dot_dimension_numbers<[1], [0], [0], [1], [0, 0, 1, 1], [], []>} : vector<256x576xbf16>, vector<576x128xbf16>, vector<256x128xf32> -> vector<256x128xf32>
    %cst_78 = arith.constant 0.000000e+00 : f32
    %114 = vector.broadcast %cst_78 : f32 to vector<256x128xf32>
    %115 = arith.maximumf %113, %114 : vector<256x128xf32>
    %116 = vector.shape_cast %115 : vector<256x128xf32> to vector<8x2x16x128xf32>
    %117 = vector.extract_strided_slice %116 {offsets = [0, 0, 0, 0], sizes = [8, 1, 16, 128], strides = [1, 1, 1, 1]} : vector<8x2x16x128xf32> to vector<8x1x16x128xf32>
    %118 = vector.shape_cast %117 : vector<8x1x16x128xf32> to vector<8x16x128xf32>
    %119 = vector.extract_strided_slice %116 {offsets = [0, 1, 0, 0], sizes = [8, 1, 16, 128], strides = [1, 1, 1, 1]} : vector<8x2x16x128xf32> to vector<8x1x16x128xf32>
    %120 = vector.shape_cast %119 : vector<8x1x16x128xf32> to vector<8x16x128xf32>
    %121 = arith.maximumf %118, %120 : vector<8x16x128xf32>
    %122 = vector.extract_strided_slice %121 {offsets = [0, 0, 0], sizes = [8, 1, 128], strides = [1, 1, 1]} : vector<8x16x128xf32> to vector<8x1x128xf32>
    %123 = vector.extract_strided_slice %121 {offsets = [0, 1, 0], sizes = [8, 1, 128], strides = [1, 1, 1]} : vector<8x16x128xf32> to vector<8x1x128xf32>
    %124 = arith.maximumf %122, %123 : vector<8x1x128xf32>
    %125 = vector.shape_cast %124 : vector<8x1x128xf32> to vector<8x1x128xf32>
    %126 = vector.broadcast %125 : vector<8x1x128xf32> to vector<8x2x128xf32>
    %c1_79 = arith.constant 1 : index
    %c0_80 = arith.constant 0 : index
    %c0_81 = arith.constant 0 : index
    %127 = vector.load %arg11[%c1_79, %c0_80, %c0_81] : memref<10x10x128xf32, #tpu.memory_space<vmem>>, vector<8x2x128xf32>
    tpu.vector_store %arg11[%c1_79, %c0_80, %c0_81], %126 {strides = array<i32>} : memref<10x10x128xf32, #tpu.memory_space<vmem>>, vector<8x2x128xf32>,
    %128 = vector.extract_strided_slice %121 {offsets = [0, 2, 0], sizes = [8, 1, 128], strides = [1, 1, 1]} : vector<8x16x128xf32> to vector<8x1x128xf32>
    %129 = vector.extract_strided_slice %121 {offsets = [0, 3, 0], sizes = [8, 1, 128], strides = [1, 1, 1]} : vector<8x16x128xf32> to vector<8x1x128xf32>
    %130 = arith.maximumf %128, %129 : vector<8x1x128xf32>
    %c1_82 = arith.constant 1 : index
    %c2_83 = arith.constant 2 : index
    %c0_84 = arith.constant 0 : index
    %131 = vector.load %arg11[%c1_82, %c2_83, %c0_84] : memref<10x10x128xf32, #tpu.memory_space<vmem>>, vector<8x1x128xf32>
    tpu.vector_store %arg11[%c1_82, %c2_83, %c0_84], %130 {strides = array<i32>} : memref<10x10x128xf32, #tpu.memory_space<vmem>>, vector<8x1x128xf32>,
    %132 = vector.extract_strided_slice %121 {offsets = [0, 4, 0], sizes = [8, 1, 128], strides = [1, 1, 1]} : vector<8x16x128xf32> to vector<8x1x128xf32>
    %133 = vector.extract_strided_slice %121 {offsets = [0, 5, 0], sizes = [8, 1, 128], strides = [1, 1, 1]} : vector<8x16x128xf32> to vector<8x1x128xf32>
    %134 = arith.maximumf %132, %133 : vector<8x1x128xf32>
    %c1_85 = arith.constant 1 : index
    %c3_86 = arith.constant 3 : index
    %c0_87 = arith.constant 0 : index
    %135 = vector.load %arg11[%c1_85, %c3_86, %c0_87] : memref<10x10x128xf32, #tpu.memory_space<vmem>>, vector<8x1x128xf32>
    tpu.vector_store %arg11[%c1_85, %c3_86, %c0_87], %134 {strides = array<i32>} : memref<10x10x128xf32, #tpu.memory_space<vmem>>, vector<8x1x128xf32>,
    %136 = vector.extract_strided_slice %121 {offsets = [0, 6, 0], sizes = [8, 1, 128], strides = [1, 1, 1]} : vector<8x16x128xf32> to vector<8x1x128xf32>
    %137 = vector.extract_strided_slice %121 {offsets = [0, 7, 0], sizes = [8, 1, 128], strides = [1, 1, 1]} : vector<8x16x128xf32> to vector<8x1x128xf32>
    %138 = arith.maximumf %136, %137 : vector<8x1x128xf32>
    %c1_88 = arith.constant 1 : index
    %c4_89 = arith.constant 4 : index
    %c0_90 = arith.constant 0 : index
    %139 = vector.load %arg11[%c1_88, %c4_89, %c0_90] : memref<10x10x128xf32, #tpu.memory_space<vmem>>, vector<8x1x128xf32>
    tpu.vector_store %arg11[%c1_88, %c4_89, %c0_90], %138 {strides = array<i32>} : memref<10x10x128xf32, #tpu.memory_space<vmem>>, vector<8x1x128xf32>,
    %140 = vector.extract_strided_slice %121 {offsets = [0, 8, 0], sizes = [8, 1, 128], strides = [1, 1, 1]} : vector<8x16x128xf32> to vector<8x1x128xf32>
    %141 = vector.extract_strided_slice %121 {offsets = [0, 9, 0], sizes = [8, 1, 128], strides = [1, 1, 1]} : vector<8x16x128xf32> to vector<8x1x128xf32>
    %142 = arith.maximumf %140, %141 : vector<8x1x128xf32>
    %c1_91 = arith.constant 1 : index
    %c5_92 = arith.constant 5 : index
    %c0_93 = arith.constant 0 : index
    %143 = vector.load %arg11[%c1_91, %c5_92, %c0_93] : memref<10x10x128xf32, #tpu.memory_space<vmem>>, vector<8x1x128xf32>
    tpu.vector_store %arg11[%c1_91, %c5_92, %c0_93], %142 {strides = array<i32>} : memref<10x10x128xf32, #tpu.memory_space<vmem>>, vector<8x1x128xf32>,
    %144 = vector.extract_strided_slice %121 {offsets = [0, 10, 0], sizes = [8, 1, 128], strides = [1, 1, 1]} : vector<8x16x128xf32> to vector<8x1x128xf32>
    %145 = vector.extract_strided_slice %121 {offsets = [0, 11, 0], sizes = [8, 1, 128], strides = [1, 1, 1]} : vector<8x16x128xf32> to vector<8x1x128xf32>
    %146 = arith.maximumf %144, %145 : vector<8x1x128xf32>
    %c1_94 = arith.constant 1 : index
    %c6_95 = arith.constant 6 : index
    %c0_96 = arith.constant 0 : index
    %147 = vector.load %arg11[%c1_94, %c6_95, %c0_96] : memref<10x10x128xf32, #tpu.memory_space<vmem>>, vector<8x1x128xf32>
    tpu.vector_store %arg11[%c1_94, %c6_95, %c0_96], %146 {strides = array<i32>} : memref<10x10x128xf32, #tpu.memory_space<vmem>>, vector<8x1x128xf32>,
    %148 = vector.extract_strided_slice %121 {offsets = [0, 12, 0], sizes = [8, 1, 128], strides = [1, 1, 1]} : vector<8x16x128xf32> to vector<8x1x128xf32>
    %149 = vector.extract_strided_slice %121 {offsets = [0, 13, 0], sizes = [8, 1, 128], strides = [1, 1, 1]} : vector<8x16x128xf32> to vector<8x1x128xf32>
    %150 = arith.maximumf %148, %149 : vector<8x1x128xf32>
    %c1_97 = arith.constant 1 : index
    %c7_98 = arith.constant 7 : index
    %c0_99 = arith.constant 0 : index
    %151 = vector.load %arg11[%c1_97, %c7_98, %c0_99] : memref<10x10x128xf32, #tpu.memory_space<vmem>>, vector<8x1x128xf32>
    tpu.vector_store %arg11[%c1_97, %c7_98, %c0_99], %150 {strides = array<i32>} : memref<10x10x128xf32, #tpu.memory_space<vmem>>, vector<8x1x128xf32>,
    %152 = vector.extract_strided_slice %121 {offsets = [0, 14, 0], sizes = [8, 1, 128], strides = [1, 1, 1]} : vector<8x16x128xf32> to vector<8x1x128xf32>
    %153 = vector.extract_strided_slice %121 {offsets = [0, 15, 0], sizes = [8, 1, 128], strides = [1, 1, 1]} : vector<8x16x128xf32> to vector<8x1x128xf32>
    %154 = arith.maximumf %152, %153 : vector<8x1x128xf32>
    %155 = vector.shape_cast %154 : vector<8x1x128xf32> to vector<8x1x128xf32>
    %156 = vector.broadcast %155 : vector<8x1x128xf32> to vector<8x2x128xf32>
    %c1_100 = arith.constant 1 : index
    %c8_101 = arith.constant 8 : index
    %c0_102 = arith.constant 0 : index
    %157 = vector.load %arg11[%c1_100, %c8_101, %c0_102] : memref<10x10x128xf32, #tpu.memory_space<vmem>>, vector<8x2x128xf32>
    tpu.vector_store %arg11[%c1_100, %c8_101, %c0_102], %156 {strides = array<i32>} : memref<10x10x128xf32, #tpu.memory_space<vmem>>, vector<8x2x128xf32>,
    %c1_103 = arith.constant 1 : index
    %c0_104 = arith.constant 0 : index
    %c0_105 = arith.constant 0 : index
    %158 = vector.load %arg11[%c1_103, %c0_104, %c0_105] : memref<10x10x128xf32, #tpu.memory_space<vmem>>, vector<1x10x128xf32>
    %c0_106 = arith.constant 0 : index
    %c0_107 = arith.constant 0 : index
    %c0_108 = arith.constant 0 : index
    %159 = vector.load %arg11[%c0_106, %c0_107, %c0_108] : memref<10x10x128xf32, #tpu.memory_space<vmem>>, vector<1x10x128xf32>
    tpu.vector_store %arg11[%c0_106, %c0_107, %c0_108], %158 {strides = array<i32>} : memref<10x10x128xf32, #tpu.memory_space<vmem>>, vector<1x10x128xf32>,
    %c8_109 = arith.constant 8 : index
    %c0_110 = arith.constant 0 : index
    %c0_111 = arith.constant 0 : index
    %160 = vector.load %arg11[%c8_109, %c0_110, %c0_111] : memref<10x10x128xf32, #tpu.memory_space<vmem>>, vector<1x10x128xf32>
    %c9_112 = arith.constant 9 : index
    %c0_113 = arith.constant 0 : index
    %c0_114 = arith.constant 0 : index
    %161 = vector.load %arg11[%c9_112, %c0_113, %c0_114] : memref<10x10x128xf32, #tpu.memory_space<vmem>>, vector<1x10x128xf32>
    tpu.vector_store %arg11[%c9_112, %c0_113, %c0_114], %160 {strides = array<i32>} : memref<10x10x128xf32, #tpu.memory_space<vmem>>, vector<1x10x128xf32>,
    %c0_115 = arith.constant 0 : index
    %c0_116 = arith.constant 0 : index
    %c0_117 = arith.constant 0 : index
    %162 = vector.load %arg11[%c0_115, %c0_116, %c0_117] : memref<10x10x128xf32, #tpu.memory_space<vmem>>, vector<8x8x128xf32>
    %163 = vector.shape_cast %162 : vector<8x8x128xf32> to vector<64x128xf32>
    %164 = arith.truncf %163 : vector<64x128xf32> to vector<64x128xbf16>
    %c0_118 = arith.constant 0 : index
    %c1_119 = arith.constant 1 : index
    %c0_120 = arith.constant 0 : index
    %165 = vector.load %arg11[%c0_118, %c1_119, %c0_120] : memref<10x10x128xf32, #tpu.memory_space<vmem>>, vector<8x8x128xf32>
    %166 = vector.shape_cast %165 : vector<8x8x128xf32> to vector<64x128xf32>
    %167 = arith.truncf %166 : vector<64x128xf32> to vector<64x128xbf16>
    %c0_121 = arith.constant 0 : index
    %c2_122 = arith.constant 2 : index
    %c0_123 = arith.constant 0 : index
    %168 = vector.load %arg11[%c0_121, %c2_122, %c0_123] : memref<10x10x128xf32, #tpu.memory_space<vmem>>, vector<8x8x128xf32>
    %169 = vector.shape_cast %168 : vector<8x8x128xf32> to vector<64x128xf32>
    %170 = arith.truncf %169 : vector<64x128xf32> to vector<64x128xbf16>
    %c1_124 = arith.constant 1 : index
    %c0_125 = arith.constant 0 : index
    %c0_126 = arith.constant 0 : index
    %171 = vector.load %arg11[%c1_124, %c0_125, %c0_126] : memref<10x10x128xf32, #tpu.memory_space<vmem>>, vector<8x8x128xf32>
    %172 = vector.shape_cast %171 : vector<8x8x128xf32> to vector<64x128xf32>
    %173 = arith.truncf %172 : vector<64x128xf32> to vector<64x128xbf16>
    %c1_127 = arith.constant 1 : index
    %c1_128 = arith.constant 1 : index
    %c0_129 = arith.constant 0 : index
    %174 = vector.load %arg11[%c1_127, %c1_128, %c0_129] : memref<10x10x128xf32, #tpu.memory_space<vmem>>, vector<8x8x128xf32>
    %175 = vector.shape_cast %174 : vector<8x8x128xf32> to vector<64x128xf32>
    %176 = arith.truncf %175 : vector<64x128xf32> to vector<64x128xbf16>
    %c1_130 = arith.constant 1 : index
    %c2_131 = arith.constant 2 : index
    %c0_132 = arith.constant 0 : index
    %177 = vector.load %arg11[%c1_130, %c2_131, %c0_132] : memref<10x10x128xf32, #tpu.memory_space<vmem>>, vector<8x8x128xf32>
    %178 = vector.shape_cast %177 : vector<8x8x128xf32> to vector<64x128xf32>
    %179 = arith.truncf %178 : vector<64x128xf32> to vector<64x128xbf16>
    %c2_133 = arith.constant 2 : index
    %c0_134 = arith.constant 0 : index
    %c0_135 = arith.constant 0 : index
    %180 = vector.load %arg11[%c2_133, %c0_134, %c0_135] : memref<10x10x128xf32, #tpu.memory_space<vmem>>, vector<8x8x128xf32>
    %181 = vector.shape_cast %180 : vector<8x8x128xf32> to vector<64x128xf32>
    %182 = arith.truncf %181 : vector<64x128xf32> to vector<64x128xbf16>
    %c2_136 = arith.constant 2 : index
    %c1_137 = arith.constant 1 : index
    %c0_138 = arith.constant 0 : index
    %183 = vector.load %arg11[%c2_136, %c1_137, %c0_138] : memref<10x10x128xf32, #tpu.memory_space<vmem>>, vector<8x8x128xf32>
    %184 = vector.shape_cast %183 : vector<8x8x128xf32> to vector<64x128xf32>
    %185 = arith.truncf %184 : vector<64x128xf32> to vector<64x128xbf16>
    %c2_139 = arith.constant 2 : index
    %c2_140 = arith.constant 2 : index
    %c0_141 = arith.constant 0 : index
    %186 = vector.load %arg11[%c2_139, %c2_140, %c0_141] : memref<10x10x128xf32, #tpu.memory_space<vmem>>, vector<8x8x128xf32>
    %187 = vector.shape_cast %186 : vector<8x8x128xf32> to vector<64x128xf32>
    %188 = arith.truncf %187 : vector<64x128xf32> to vector<64x128xbf16>
    %189 = tpu.concatenate %164, %167, %170, %173, %176, %179, %182, %185, %188 in 1 : vector<64x128xbf16>, vector<64x128xbf16>, vector<64x128xbf16>, vector<64x128xbf16>, vector<64x128xbf16>, vector<64x128xbf16>, vector<64x128xbf16>, vector<64x128xbf16>, vector<64x128xbf16> -> vector<64x1152xbf16>
    %c0_142 = arith.constant 0 : index
    %c0_143 = arith.constant 0 : index
    %190 = vector.load %arg4[%c0_142, %c0_143] : memref<1152x256xbf16, #tpu.memory_space<vmem>>, vector<1152x256xbf16>
    %cst_144 = arith.constant dense<0.000000e+00> : vector<64x256xf32>
    %191 = tpu.matmul %189, %190, %cst_144 {dimension_numbers = #tpu.dot_dimension_numbers<[1], [0], [0], [1], [0, 0, 1, 1], [], []>} : vector<64x1152xbf16>, vector<1152x256xbf16>, vector<64x256xf32> -> vector<64x256xf32>
    %cst_145 = arith.constant 0.000000e+00 : f32
    %192 = vector.broadcast %cst_145 : f32 to vector<64x256xf32>
    %193 = arith.maximumf %191, %192 : vector<64x256xf32>
    %194 = vector.shape_cast %193 : vector<64x256xf32> to vector<4x2x8x256xf32>
    %195 = vector.extract_strided_slice %194 {offsets = [0, 0, 0, 0], sizes = [4, 1, 8, 256], strides = [1, 1, 1, 1]} : vector<4x2x8x256xf32> to vector<4x1x8x256xf32>
    %196 = vector.shape_cast %195 : vector<4x1x8x256xf32> to vector<4x8x256xf32>
    %197 = vector.extract_strided_slice %194 {offsets = [0, 1, 0, 0], sizes = [4, 1, 8, 256], strides = [1, 1, 1, 1]} : vector<4x2x8x256xf32> to vector<4x1x8x256xf32>
    %198 = vector.shape_cast %197 : vector<4x1x8x256xf32> to vector<4x8x256xf32>
    %199 = arith.maximumf %196, %198 : vector<4x8x256xf32>
    %200 = vector.extract_strided_slice %199 {offsets = [0, 0, 0], sizes = [1, 1, 256], strides = [1, 1, 1]} : vector<4x8x256xf32> to vector<1x1x256xf32>
    %201 = vector.extract_strided_slice %199 {offsets = [0, 1, 0], sizes = [1, 1, 256], strides = [1, 1, 1]} : vector<4x8x256xf32> to vector<1x1x256xf32>
    %202 = arith.maximumf %200, %201 : vector<1x1x256xf32>
    %203 = vector.shape_cast %202 : vector<1x1x256xf32> to vector<1x256xf32>
    %204 = vector.extract_strided_slice %199 {offsets = [0, 2, 0], sizes = [1, 1, 256], strides = [1, 1, 1]} : vector<4x8x256xf32> to vector<1x1x256xf32>
    %205 = vector.extract_strided_slice %199 {offsets = [0, 3, 0], sizes = [1, 1, 256], strides = [1, 1, 1]} : vector<4x8x256xf32> to vector<1x1x256xf32>
    %206 = arith.maximumf %204, %205 : vector<1x1x256xf32>
    %207 = vector.shape_cast %206 : vector<1x1x256xf32> to vector<1x256xf32>
    %208 = vector.extract_strided_slice %199 {offsets = [0, 4, 0], sizes = [1, 1, 256], strides = [1, 1, 1]} : vector<4x8x256xf32> to vector<1x1x256xf32>
    %209 = vector.extract_strided_slice %199 {offsets = [0, 5, 0], sizes = [1, 1, 256], strides = [1, 1, 1]} : vector<4x8x256xf32> to vector<1x1x256xf32>
    %210 = arith.maximumf %208, %209 : vector<1x1x256xf32>
    %211 = vector.shape_cast %210 : vector<1x1x256xf32> to vector<1x256xf32>
    %212 = vector.extract_strided_slice %199 {offsets = [0, 6, 0], sizes = [1, 1, 256], strides = [1, 1, 1]} : vector<4x8x256xf32> to vector<1x1x256xf32>
    %213 = vector.extract_strided_slice %199 {offsets = [0, 7, 0], sizes = [1, 1, 256], strides = [1, 1, 1]} : vector<4x8x256xf32> to vector<1x1x256xf32>
    %214 = arith.maximumf %212, %213 : vector<1x1x256xf32>
    %215 = vector.shape_cast %214 : vector<1x1x256xf32> to vector<1x256xf32>
    %216 = vector.extract_strided_slice %199 {offsets = [1, 0, 0], sizes = [1, 1, 256], strides = [1, 1, 1]} : vector<4x8x256xf32> to vector<1x1x256xf32>
    %217 = vector.extract_strided_slice %199 {offsets = [1, 1, 0], sizes = [1, 1, 256], strides = [1, 1, 1]} : vector<4x8x256xf32> to vector<1x1x256xf32>
    %218 = arith.maximumf %216, %217 : vector<1x1x256xf32>
    %219 = vector.shape_cast %218 : vector<1x1x256xf32> to vector<1x256xf32>
    %220 = vector.extract_strided_slice %199 {offsets = [1, 2, 0], sizes = [1, 1, 256], strides = [1, 1, 1]} : vector<4x8x256xf32> to vector<1x1x256xf32>
    %221 = vector.extract_strided_slice %199 {offsets = [1, 3, 0], sizes = [1, 1, 256], strides = [1, 1, 1]} : vector<4x8x256xf32> to vector<1x1x256xf32>
    %222 = arith.maximumf %220, %221 : vector<1x1x256xf32>
    %223 = vector.shape_cast %222 : vector<1x1x256xf32> to vector<1x256xf32>
    %224 = vector.extract_strided_slice %199 {offsets = [1, 4, 0], sizes = [1, 1, 256], strides = [1, 1, 1]} : vector<4x8x256xf32> to vector<1x1x256xf32>
    %225 = vector.extract_strided_slice %199 {offsets = [1, 5, 0], sizes = [1, 1, 256], strides = [1, 1, 1]} : vector<4x8x256xf32> to vector<1x1x256xf32>
    %226 = arith.maximumf %224, %225 : vector<1x1x256xf32>
    %227 = vector.shape_cast %226 : vector<1x1x256xf32> to vector<1x256xf32>
    %228 = vector.extract_strided_slice %199 {offsets = [1, 6, 0], sizes = [1, 1, 256], strides = [1, 1, 1]} : vector<4x8x256xf32> to vector<1x1x256xf32>
    %229 = vector.extract_strided_slice %199 {offsets = [1, 7, 0], sizes = [1, 1, 256], strides = [1, 1, 1]} : vector<4x8x256xf32> to vector<1x1x256xf32>
    %230 = arith.maximumf %228, %229 : vector<1x1x256xf32>
    %231 = vector.shape_cast %230 : vector<1x1x256xf32> to vector<1x256xf32>
    %232 = vector.extract_strided_slice %199 {offsets = [2, 0, 0], sizes = [1, 1, 256], strides = [1, 1, 1]} : vector<4x8x256xf32> to vector<1x1x256xf32>
    %233 = vector.extract_strided_slice %199 {offsets = [2, 1, 0], sizes = [1, 1, 256], strides = [1, 1, 1]} : vector<4x8x256xf32> to vector<1x1x256xf32>
    %234 = arith.maximumf %232, %233 : vector<1x1x256xf32>
    %235 = vector.shape_cast %234 : vector<1x1x256xf32> to vector<1x256xf32>
    %236 = vector.extract_strided_slice %199 {offsets = [2, 2, 0], sizes = [1, 1, 256], strides = [1, 1, 1]} : vector<4x8x256xf32> to vector<1x1x256xf32>
    %237 = vector.extract_strided_slice %199 {offsets = [2, 3, 0], sizes = [1, 1, 256], strides = [1, 1, 1]} : vector<4x8x256xf32> to vector<1x1x256xf32>
    %238 = arith.maximumf %236, %237 : vector<1x1x256xf32>
    %239 = vector.shape_cast %238 : vector<1x1x256xf32> to vector<1x256xf32>
    %240 = vector.extract_strided_slice %199 {offsets = [2, 4, 0], sizes = [1, 1, 256], strides = [1, 1, 1]} : vector<4x8x256xf32> to vector<1x1x256xf32>
    %241 = vector.extract_strided_slice %199 {offsets = [2, 5, 0], sizes = [1, 1, 256], strides = [1, 1, 1]} : vector<4x8x256xf32> to vector<1x1x256xf32>
    %242 = arith.maximumf %240, %241 : vector<1x1x256xf32>
    %243 = vector.shape_cast %242 : vector<1x1x256xf32> to vector<1x256xf32>
    %244 = vector.extract_strided_slice %199 {offsets = [2, 6, 0], sizes = [1, 1, 256], strides = [1, 1, 1]} : vector<4x8x256xf32> to vector<1x1x256xf32>
    %245 = vector.extract_strided_slice %199 {offsets = [2, 7, 0], sizes = [1, 1, 256], strides = [1, 1, 1]} : vector<4x8x256xf32> to vector<1x1x256xf32>
    %246 = arith.maximumf %244, %245 : vector<1x1x256xf32>
    %247 = vector.shape_cast %246 : vector<1x1x256xf32> to vector<1x256xf32>
    %248 = vector.extract_strided_slice %199 {offsets = [3, 0, 0], sizes = [1, 1, 256], strides = [1, 1, 1]} : vector<4x8x256xf32> to vector<1x1x256xf32>
    %249 = vector.extract_strided_slice %199 {offsets = [3, 1, 0], sizes = [1, 1, 256], strides = [1, 1, 1]} : vector<4x8x256xf32> to vector<1x1x256xf32>
    %250 = arith.maximumf %248, %249 : vector<1x1x256xf32>
    %251 = vector.shape_cast %250 : vector<1x1x256xf32> to vector<1x256xf32>
    %252 = vector.extract_strided_slice %199 {offsets = [3, 2, 0], sizes = [1, 1, 256], strides = [1, 1, 1]} : vector<4x8x256xf32> to vector<1x1x256xf32>
    %253 = vector.extract_strided_slice %199 {offsets = [3, 3, 0], sizes = [1, 1, 256], strides = [1, 1, 1]} : vector<4x8x256xf32> to vector<1x1x256xf32>
    %254 = arith.maximumf %252, %253 : vector<1x1x256xf32>
    %255 = vector.shape_cast %254 : vector<1x1x256xf32> to vector<1x256xf32>
    %256 = vector.extract_strided_slice %199 {offsets = [3, 4, 0], sizes = [1, 1, 256], strides = [1, 1, 1]} : vector<4x8x256xf32> to vector<1x1x256xf32>
    %257 = vector.extract_strided_slice %199 {offsets = [3, 5, 0], sizes = [1, 1, 256], strides = [1, 1, 1]} : vector<4x8x256xf32> to vector<1x1x256xf32>
    %258 = arith.maximumf %256, %257 : vector<1x1x256xf32>
    %259 = vector.shape_cast %258 : vector<1x1x256xf32> to vector<1x256xf32>
    %260 = vector.extract_strided_slice %199 {offsets = [3, 6, 0], sizes = [1, 1, 256], strides = [1, 1, 1]} : vector<4x8x256xf32> to vector<1x1x256xf32>
    %261 = vector.extract_strided_slice %199 {offsets = [3, 7, 0], sizes = [1, 1, 256], strides = [1, 1, 1]} : vector<4x8x256xf32> to vector<1x1x256xf32>
    %262 = arith.maximumf %260, %261 : vector<1x1x256xf32>
    %263 = vector.shape_cast %262 : vector<1x1x256xf32> to vector<1x256xf32>
    %264 = tpu.concatenate %203, %207, %211, %215, %219, %223, %227, %231, %235, %239, %243, %247, %251, %255, %259, %263 in 1 : vector<1x256xf32>, vector<1x256xf32>, vector<1x256xf32>, vector<1x256xf32>, vector<1x256xf32>, vector<1x256xf32>, vector<1x256xf32>, vector<1x256xf32>, vector<1x256xf32>, vector<1x256xf32>, vector<1x256xf32>, vector<1x256xf32>, vector<1x256xf32>, vector<1x256xf32>, vector<1x256xf32>, vector<1x256xf32> -> vector<1x4096xf32>
    %265 = arith.truncf %264 : vector<1x4096xf32> to vector<1x4096xbf16>
    %c0_146 = arith.constant 0 : index
    %c0_147 = arith.constant 0 : index
    %266 = vector.load %arg5[%c0_146, %c0_147] : memref<4096x384xbf16, #tpu.memory_space<vmem>>, vector<4096x384xbf16>
    %cst_148 = arith.constant dense<0.000000e+00> : vector<1x384xf32>
    %267 = tpu.matmul %265, %266, %cst_148 {dimension_numbers = #tpu.dot_dimension_numbers<[1], [0], [0], [1], [0, 0, 1, 1], [], []>} : vector<1x4096xbf16>, vector<4096x384xbf16>, vector<1x384xf32> -> vector<1x384xf32>
    %c0_149 = arith.constant 0 : index
    %c0_150 = arith.constant 0 : index
    %268 = vector.load %arg6[%c0_149, %c0_150] : memref<1x384xf32, #tpu.memory_space<vmem>>, vector<1x384xf32>
    %269 = arith.addf %267, %268 : vector<1x384xf32>
    %cst_151 = arith.constant 0.000000e+00 : f32
    %270 = vector.broadcast %cst_151 : f32 to vector<1x384xf32>
    %271 = arith.maximumf %269, %270 : vector<1x384xf32>
    %272 = arith.truncf %271 : vector<1x384xf32> to vector<1x384xbf16>
    %c0_152 = arith.constant 0 : index
    %c0_153 = arith.constant 0 : index
    %273 = vector.load %arg7[%c0_152, %c0_153] : memref<384x12xbf16, #tpu.memory_space<vmem>>, vector<384x12xbf16>
    %cst_154 = arith.constant dense<0.000000e+00> : vector<1x12xf32>
    %274 = tpu.matmul %272, %273, %cst_154 {dimension_numbers = #tpu.dot_dimension_numbers<[1], [0], [0], [1], [0, 0, 1, 1], [], []>} : vector<1x384xbf16>, vector<384x12xbf16>, vector<1x12xf32> -> vector<1x12xf32>
    %c0_155 = arith.constant 0 : index
    %c0_156 = arith.constant 0 : index
    %275 = vector.load %arg8[%c0_155, %c0_156] : memref<1x12xf32, #tpu.memory_space<vmem>>, vector<1x12xf32>
    %276 = arith.addf %274, %275 : vector<1x12xf32>
    %277 = vector.shape_cast %276 : vector<1x12xf32> to vector<1x1x12xf32>
    %c0_157 = arith.constant 0 : index
    %c0_158 = arith.constant 0 : index
    %c0_159 = arith.constant 0 : index
    %278 = vector.load %arg9[%c0_157, %c0_158, %c0_159] : memref<1x1x12xf32, #tpu.memory_space<vmem>>, vector<1x1x12xf32>
    tpu.vector_store %arg9[%c0_157, %c0_158, %c0_159], %277 {strides = array<i32>} : memref<1x1x12xf32, #tpu.memory_space<vmem>>, vector<1x1x12xf32>,
    return
  }
  func.func @transform_0(%arg0: i32) -> (i32, i32, i32) {
    %c0_i32 = arith.constant 0 : i32
    %c0_i32_0 = arith.constant 0 : i32
    %c0_i32_1 = arith.constant 0 : i32
    return %arg0, %c0_i32, %c0_i32_0 : i32, i32, i32
  }
  func.func @transform_1(%arg0: i32) -> (i32, i32) {
    %c0_i32 = arith.constant 0 : i32
    %c0_i32_0 = arith.constant 0 : i32
    %c0_i32_1 = arith.constant 0 : i32
    return %c0_i32, %c0_i32_0 : i32, i32
  }
  func.func @transform_2(%arg0: i32) -> (i32, i32) {
    %c0_i32 = arith.constant 0 : i32
    %c0_i32_0 = arith.constant 0 : i32
    %c0_i32_1 = arith.constant 0 : i32
    return %c0_i32, %c0_i32_0 : i32, i32
  }
  func.func @transform_3(%arg0: i32) -> (i32, i32) {
    %c0_i32 = arith.constant 0 : i32
    %c0_i32_0 = arith.constant 0 : i32
    %c0_i32_1 = arith.constant 0 : i32
    return %c0_i32, %c0_i32_0 : i32, i32
  }
  func.func @transform_4(%arg0: i32) -> (i32, i32) {
    %c0_i32 = arith.constant 0 : i32
    %c0_i32_0 = arith.constant 0 : i32
    %c0_i32_1 = arith.constant 0 : i32
    return %c0_i32, %c0_i32_0 : i32, i32
  }
  func.func @transform_5(%arg0: i32) -> (i32, i32) {
    %c0_i32 = arith.constant 0 : i32
    %c0_i32_0 = arith.constant 0 : i32
    %c0_i32_1 = arith.constant 0 : i32
    return %c0_i32, %c0_i32_0 : i32, i32
  }
  func.func @transform_6(%arg0: i32) -> (i32, i32) {
    %c0_i32 = arith.constant 0 : i32
    %c0_i32_0 = arith.constant 0 : i32
    %c0_i32_1 = arith.constant 0 : i32
    return %c0_i32, %c0_i32_0 : i32, i32
  }
  func.func @transform_7(%arg0: i32) -> (i32, i32) {
    %c0_i32 = arith.constant 0 : i32
    %c0_i32_0 = arith.constant 0 : i32
    %c0_i32_1 = arith.constant 0 : i32
    return %c0_i32, %c0_i32_0 : i32, i32
  }
  func.func @transform_8(%arg0: i32) -> (i32, i32, i32) {
    %c0_i32 = arith.constant 0 : i32
    %c0_i32_0 = arith.constant 0 : i32
    %c0_i32_1 = arith.constant 0 : i32
    return %arg0, %c0_i32, %c0_i32_0 : i32, i32, i32
  }
}

</mosaic_0001>

<bundles_post_ra>
// kernel: network_forward.1
= control target key start
LH: loop header
LB: loop body
LE: loop exit
PB: predicated region body
PF: predicated region fallthrough
CT: control target
= control target key end

     0   :  { %s16001_s27 = smov 0   ;;  %s20278_s0 = inlined_call_operand.vmem [shape: bf16[2,1024,32], index: 0, kind: input, shape index: {}]   ;;  %s20279_s1 = inlined_call_operand.vmem [shape: bf16[32,64], index: 1, kind: input, shape index: {}]   ;;  %s20280_s2 = inlined_call_operand.vmem [shape: bf16[576,128], index: 2, kind: input, shape index: {}]   ;;  %s20281_s3 = inlined_call_operand.vmem [shape: bf16[1152,256], index: 3, kind: input, shape index: {}]   ;;  %s20282_s4 = inlined_call_operand.vmem [shape: bf16[4096,384], index: 4, kind: input, shape index: {}]   ;;  %s20283_s5 = inlined_call_operand.vmem [shape: f32[1,384], index: 5, kind: input, shape index: {}]   ;;  %s20284_s6 = inlined_call_operand.vmem [shape: bf16[384,12], index: 6, kind: input, shape index: {}]   ;;  %s20285_s7 = inlined_call_operand.vmem [shape: f32[1,12], index: 7, kind: input, shape index: {}]   ;;  %s20286_s8 = inlined_call_operand.vmem [shape: f32[2,1,12], index: 8, kind: output, shape index: {}]  }
   0x1 LB: > { %s12552_s28 = sadd.s32 4294967295, %s15950_s27   ;;  %p12556_p0 = scmp.ge.s32.totalorder %s15950_s27, 1  ;;  %s15950_s27 = sphi %s16001_s27, %s18_s27  }
   0x2   : > { %p262_p1 = scmp.lt.s32.totalorder %s15950_s27, 3 }
   0x4   : > { %p263_p2 = pnand %p12556_p0, %p262_p1 }
   0x6   : > { %266 = sbr.rel (%p263_p2) target bundleno = 2305 (0x901), region = 52 }
   0xb   : > { %v14577_v0 = vld [vmem:[%s20279_s1 + $0x8] sm:$0xff]   ;;  %p294_p3 = scmp.lt.s32.totalorder %s12552_s28, 1  ;;  %v14578_v1 = vld [vmem:[%s20279_s1] sm:$0xff]   ;;  %vm767_vm0 = vcmask 261120   ;;  %v14641_v33 = vld [vmem:[%s20280_s2 + $0x118] sm:$0xff]   ;;  %vm1843_vm1 = vcmask 518146  }
   0xc   : > { %14373 = vmatprep.subr.bf16.mxu0 %v14577_v0  ;;  %v14642_v36 = vld [vmem:[%s20280_s2 + $0x110] sm:$0xff]   ;;  %v14645_v37 = vld [vmem:[%s20280_s2 + $0x108] sm:$0xff]   ;;  %v14646_v40 = vld [vmem:[%s20280_s2 + $0x100] sm:$0xff]   ;;  %vm1860_vm2 = vcmask 520196   ;;  %vm1877_vm3 = vcmask 522246   ;;  %vm1958_vm4 = vcmask 516096  }
   0xd   : > { %s20310_s28 = smov (!%p294_p3, %s12552_s28), 1  ;;  %14374 = vmatpush3.bf16.msra.mxu0 %v14577_v0  ;;  %v14647_v57 = vld [vmem:[%s20280_s2 + $0x78] sm:$0xff]   ;;  %v14649_v60 = vld [vmem:[%s20280_s2 + $0x70] sm:$0xff]   ;;  %vm1826_vm5 = vcmask 517120   ;;  %vm2346_vm6 = vcmask 523264   ;;  %s15952_s17 = smov 64  }
   0xe   : > { %14375 = vmatprep.subr.bf16.mxu0 %v14578_v1  ;;  %s13679_s11 = sshll.u32 %s20310_s28, 9  ;;  %v14648_v58 = vld [vmem:[%s20280_s2 + $0x38] sm:$0xff]   ;;  %13746 = vmatprep.subr.bf16.mxu1 %v14647_v57  ;;  %v14650_v63 = vld [vmem:[%s20280_s2 + $0x30] sm:$0xff]   ;;  %v14662_v57 = vld [vmem:[%s20280_s2] sm:$0xff]   ;;  %vm15955_vm7 = vmmov 0   ;;  %vm12503_vm8 = vcmask 90112  }
   0xf   : > { %s16021_s14 = scalar_lea.vmem %s20278_s0, %s13679_s11  ;;  %13747 = vmatpush3.bf16.msra.mxu1 %v14648_v58 }
  0x10   : > { %v14579_v2 = vld [vmem:[%s16021_s14] sm:$0xff]   ;;  %v14580_v3 = vld [vmem:[%s16021_s14 + $0x8] sm:$0xff]   ;;  %v14581_v4 = vld [vmem:[%s16021_s14 + $0x10] sm:$0xff]   ;;  %13748 = vmatprep.subr.bf16.mxu1 %v14649_v60 }
  0x11   : > { %14376 = vmatpush3.bf16.msra.mxu0 %v14578_v1  ;;  %14377 = vmatprep.mubr.msk.bf16.mxu0 %vm767_vm0, %v14579_v2  ;;  %v14582_v5 = vld [vmem:[%s16021_s14 + $0x18] sm:$0xff]   ;;  %v14583_v6 = vld [vmem:[%s16021_s14 + $0x20] sm:$0xff]   ;;  %v14584_v7 = vld [vmem:[%s16021_s14 + $0x28] sm:$0xff]  }
  0x12   : > { %v14585_v8 = vld [vmem:[%s16021_s14 + $0x30] sm:$0xff]   ;;  %v14586_v9 = vld [vmem:[%s16021_s14 + $0x38] sm:$0xff]   ;;  %v14587_v10 = vld [vmem:[%s16021_s14 + $0x40] sm:$0xff]   ;;  %14505 = vmatprep.subr.bf16.mxu0 %v14641_v33 }
  0x13   : > { %v14588_v11 = vld [vmem:[%s16021_s14 + $0x48] sm:$0xff]   ;;  %v14589_v12 = vld [vmem:[%s16021_s14 + $0x50] sm:$0xff]   ;;  %v14590_v13 = vld [vmem:[%s16021_s14 + $0x58] sm:$0xff]   ;;  %13749 = vmatpush3.bf16.msra.mxu1 %v14650_v63 }
  0x14   : > { %14378 = vmatmul.mubr.msk.bf16.vlgmr.msra.gmra.mxu0 %vm767_vm0, %v14580_v3  ;;  %v14591_v14 = vld [vmem:[%s16021_s14 + $0x60] sm:$0xff]   ;;  %v14592_v15 = vld [vmem:[%s16021_s14 + $0x68] sm:$0xff]   ;;  %v14593_v16 = vld [vmem:[%s16021_s14 + $0x70] sm:$0xff]  }
  0x15   : > { %14381 = vmatprep.mubr.msk.bf16.mxu0 %vm767_vm0, %v14581_v4  ;;  %v14594_v17 = vld [vmem:[%s16021_s14 + $0x78] sm:$0xff]   ;;  %v14595_v18 = vld [vmem:[%s16021_s14 + $0x80] sm:$0xff]   ;;  %v14596_v19 = vld [vmem:[%s16021_s14 + $0x88] sm:$0xff]   ;;  %14506 = vmatpush3.bf16.msra.mxu0 %v14641_v33  ;;  %v1761_v4 = vlaneseq }
  0x16   : > { %v14597_v20 = vld [vmem:[%s16021_s14 + $0x90] sm:$0xff]   ;;  %v14598_v21 = vld [vmem:[%s16021_s14 + $0x98] sm:$0xff]   ;;  %v14599_v22 = vld [vmem:[%s16021_s14 + $0xa0] sm:$0xff]   ;;  %14507 = vmatprep.subr.bf16.mxu0 %v14642_v36 }
  0x17   : > { %v14600_v23 = vld [vmem:[%s16021_s14 + $0xa8] sm:$0xff]   ;;  %v14601_v24 = vld [vmem:[%s16021_s14 + $0xb0] sm:$0xff]   ;;  %v14602_v25 = vld [vmem:[%s16021_s14 + $0xb8] sm:$0xff]  }
  0x18   : > { %v14603_v26 = vld [vmem:[%s16021_s14 + $0xc0] sm:$0xff]   ;;  %v14604_v27 = vld [vmem:[%s16021_s14 + $0xc8] sm:$0xff]   ;;  %v14605_v28 = vld [vmem:[%s16021_s14 + $0xd0] sm:$0xff]  }
  0x19   : > { %v14606_v29 = vld [vmem:[%s16021_s14 + $0xd8] sm:$0xff]   ;;  %v14607_v30 = vld [vmem:[%s16021_s14 + $0xe0] sm:$0xff]   ;;  %v14608_v31 = vld [vmem:[%s16021_s14 + $0xe8] sm:$0xff]   ;;  %14508 = vmatpush3.bf16.msra.mxu0 %v14642_v36 }
  0x1a   : > { %v14609_v32 = vld [vmem:[%s16021_s14 + $0xf0] sm:$0xff]   ;;  %v14610_v34 = vld [vmem:[%s16021_s14 + $0xf8] sm:$0xff]   ;;  %v14611_v35 = vld [vmem:[%s16021_s14 + $0x100] sm:$0xff]   ;;  %14509 = vmatprep.subr.bf16.mxu0 %v14645_v37 }
  0x1b   : > { %v14612_v38 = vld [vmem:[%s16021_s14 + $0x108] sm:$0xff]   ;;  %v14613_v39 = vld [vmem:[%s16021_s14 + $0x110] sm:$0xff]   ;;  %v14614_v41 = vld [vmem:[%s16021_s14 + $0x118] sm:$0xff]  }
  0x1c   : > { %14382 = vmatmul.mubr.msk.bf16.gmra.mxu0 %vm767_vm0, %v14582_v5  ;;  %v14615_v42 = vld [vmem:[%s16021_s14 + $0x120] sm:$0xff]   ;;  %v14616_v43 = vld [vmem:[%s16021_s14 + $0x128] sm:$0xff]   ;;  %v14617_v44 = vld [vmem:[%s16021_s14 + $0x130] sm:$0xff]  }
  0x1d   : > { %14385 = vmatprep.mubr.msk.bf16.mxu0 %vm767_vm0, %v14583_v6  ;;  %14510 = vmatpush3.bf16.msra.mxu0 %v14645_v37  ;;  %v14618_v45 = vld [vmem:[%s16021_s14 + $0x138] sm:$0xff]   ;;  %v14619_v46 = vld [vmem:[%s16021_s14 + $0x140] sm:$0xff]   ;;  %v14620_v47 = vld [vmem:[%s16021_s14 + $0x148] sm:$0xff]  }
  0x1e   : > { %14511 = vmatprep.subr.bf16.mxu0 %v14646_v40  ;;  %v14621_v48 = vld [vmem:[%s16021_s14 + $0x150] sm:$0xff]   ;;  %v14622_v49 = vld [vmem:[%s16021_s14 + $0x158] sm:$0xff]   ;;  %v14623_v50 = vld [vmem:[%s16021_s14 + $0x160] sm:$0xff]  }
  0x1f   : > { %v14624_v51 = vld [vmem:[%s16021_s14 + $0x168] sm:$0xff]   ;;  %v14625_v52 = vld [vmem:[%s16021_s14 + $0x170] sm:$0xff]   ;;  %v14626_v53 = vld [vmem:[%s16021_s14 + $0x178] sm:$0xff]  }
  0x20   : > { %v14627_v54 = vld [vmem:[%s16021_s14 + $0x180] sm:$0xff]   ;;  %v14628_v55 = vld [vmem:[%s16021_s14 + $0x188] sm:$0xff]   ;;  %v14629_v56 = vld [vmem:[%s16021_s14 + $0x190] sm:$0xff]  }
  0x21   : > { %14512 = vmatpush3.bf16.msra.mxu0 %v14646_v40  ;;  %v14630_v62 = vld [vmem:[%s16021_s14 + $0x198] sm:$0xff]   ;;  %v14631_v0 = vld [vmem:[%s16021_s14 + $0x1a0] sm:$0xff]   ;;  %v14651_v2 = vld [vmem:[%s20280_s2 + $0x68] sm:$0xff]  }
  0x22   : > { %v14652_v5 = vld [vmem:[%s20280_s2 + $0x28] sm:$0xff]   ;;  %13750 = vmatprep.subr.bf16.mxu1 %v14651_v2  ;;  %v14657_v37 = vld [vmem:[%s20280_s2 + $0x50] sm:$0xff]  }
  0x23   : > { %13751 = vmatpush3.bf16.msra.mxu1 %v14652_v5  ;;  %v14658_v40 = vld [vmem:[%s20280_s2 + $0x10] sm:$0xff]  }
  0x24   : > { %14386 = vmatmul.mubr.msk.bf16.gmra.mxu0 %vm767_vm0, %v14584_v7 }
  0x25   : > { %14389 = vmatprep.mubr.msk.bf16.mxu0 %vm767_vm0, %v14585_v8 }
  0x2c   : > { %14390 = vmatmul.mubr.msk.bf16.gmra.mxu0 %vm767_vm0, %v14586_v9  ;;  %v14653_v9 = vld [vmem:[%s20280_s2 + $0x60] sm:$0xff]  }
  0x2d   : > { %14393 = vmatprep.mubr.msk.bf16.mxu0 %vm767_vm0, %v14587_v10  ;;  %13752 = vmatprep.subr.bf16.mxu1 %v14653_v9 }
  0x34   : > { %14394 = vmatmul.mubr.msk.bf16.gmra.mxu0 %vm767_vm0, %v14588_v11  ;;  %v16162_v11 = vshrl.u32 %v1761_v4, 7 }
  0x35   : > { %14397 = vmatprep.mubr.msk.bf16.mxu0 %vm767_vm0, %v14589_v12  ;;  %v14632_v12 = vld [vmem:[%s16021_s14 + $0x1a8] sm:$0xff]  }
  0x36   : > { %20289 = vst [vmem:[#allocation4_spill] sm:$0xff] %v16162_v11 }
  0x3c   : > { %14398 = vmatmul.mubr.msk.bf16.gmra.mxu0 %vm767_vm0, %v14590_v13  ;;  %v14654_v13 = vld [vmem:[%s20280_s2 + $0x20] sm:$0xff]  }
  0x3d   : > { %14401 = vmatprep.mubr.msk.bf16.mxu0 %vm767_vm0, %v14591_v14  ;;  %13753 = vmatpush3.bf16.msra.mxu1 %v14654_v13 }
  0x44   : > { %14402 = vmatmul.mubr.msk.bf16.gmra.mxu0 %vm767_vm0, %v14592_v15 }
  0x45   : > { %14405 = vmatprep.mubr.msk.bf16.mxu0 %vm767_vm0, %v14593_v16 }
  0x4c   : > { %14406 = vmatmul.mubr.msk.bf16.gmra.mxu0 %vm767_vm0, %v14594_v17  ;;  %v14633_v17 = vld [vmem:[%s16021_s14 + $0x1b0] sm:$0xff]  }
  0x4d   : > { %14409 = vmatprep.mubr.msk.bf16.mxu0 %vm767_vm0, %v14595_v18 }
  0x54   : > { %14410 = vmatmul.mubr.msk.bf16.gmra.mxu0 %vm767_vm0, %v14596_v19 }
  0x55   : > { %14413 = vmatprep.mubr.msk.bf16.mxu0 %vm767_vm0, %v14597_v20 }
  0x5c   : > { %14414 = vmatmul.mubr.msk.bf16.gmra.mxu0 %vm767_vm0, %v14598_v21 }
  0x5d   : > { %14417 = vmatprep.mubr.msk.bf16.mxu0 %vm767_vm0, %v14599_v22 }
  0x64   : > { %14418 = vmatmul.mubr.msk.bf16.gmra.mxu0 %vm767_vm0, %v14600_v23  ;;  %v14655_v23 = vld [vmem:[%s20280_s2 + $0x58] sm:$0xff]  }
  0x65   : > { %14421 = vmatprep.mubr.msk.bf16.mxu0 %vm767_vm0, %v14601_v24  ;;  %13754 = vmatprep.subr.bf16.mxu1 %v14655_v23  ;;  %v14639_v23 = vld [vmem:[%s16021_s14 + $0x1e0] sm:$0xff]  }
  0x6c   : > { %14422 = vmatmul.mubr.msk.bf16.gmra.mxu0 %vm767_vm0, %v14602_v25  ;;  %v16173_v25 = vsub.s32 0, %v16162_v11 }
  0x6d   : > { %14425 = vmatprep.mubr.msk.bf16.mxu0 %vm767_vm0, %v14603_v26 }
  0x74   : > { %14426 = vmatmul.mubr.msk.bf16.gmra.mxu0 %vm767_vm0, %v14604_v27  ;;  %v14656_v27 = vld [vmem:[%s20280_s2 + $0x18] sm:$0xff]  }
  0x75   : > { %14429 = vmatprep.mubr.msk.bf16.mxu0 %vm767_vm0, %v14605_v28  ;;  %13755 = vmatpush3.bf16.msra.mxu1 %v14656_v27 }
  0x76   : > { %13756 = vmatprep.subr.bf16.mxu1 %v14657_v37  ;;  %v14640_v37 = vld [vmem:[%s16021_s14 + $0x1e8] sm:$0xff]  }
  0x79   : > { %13757 = vmatpush3.bf16.msra.mxu1 %v14658_v40 }
  0x7c   : > { %14430 = vmatmul.mubr.msk.bf16.gmra.mxu0 %vm767_vm0, %v14606_v29 }
  0x7d   : > { %14433 = vmatprep.mubr.msk.bf16.mxu0 %vm767_vm0, %v14607_v30 }
  0x84   : > { %14434 = vmatmul.mubr.msk.bf16.gmra.mxu0 %vm767_vm0, %v14608_v31 }
  0x85   : > { %14437 = vmatprep.mubr.msk.bf16.mxu0 %vm767_vm0, %v14609_v32 }
  0x8c   : > { %14438 = vmatmul.mubr.msk.bf16.gmra.mxu0 %vm767_vm0, %v14610_v34 }
  0x8d   : > { %14441 = vmatprep.mubr.msk.bf16.mxu0 %vm767_vm0, %v14611_v35  ;;  %v16184_v35 = vsub.s32 6, %v16162_v11 }
  0x94   : > { %14442 = vmatmul.mubr.msk.bf16.gmra.mxu0 %vm767_vm0, %v14612_v38 }
  0x95   : > { %14445 = vmatprep.mubr.msk.bf16.mxu0 %vm767_vm0, %v14613_v39  ;;  %v14634_v39 = vld [vmem:[%s16021_s14 + $0x1b8] sm:$0xff]  }
  0x9c   : > { %14446 = vmatmul.mubr.msk.bf16.gmra.mxu0 %vm767_vm0, %v14614_v41 }
  0x9d   : > { %14449 = vmatprep.mubr.msk.bf16.mxu0 %vm767_vm0, %v14615_v42 }
  0xa4   : > { %14450 = vmatmul.mubr.msk.bf16.gmra.mxu0 %vm767_vm0, %v14616_v43 }
  0xa5   : > { %14453 = vmatprep.mubr.msk.bf16.mxu0 %vm767_vm0, %v14617_v44  ;;  %v14635_v44 = vld [vmem:[%s16021_s14 + $0x1c0] sm:$0xff]  }
  0xac   : > { %14454 = vmatmul.mubr.msk.bf16.gmra.mxu0 %vm767_vm0, %v14618_v45 }
  0xad   : > { %14457 = vmatprep.mubr.msk.bf16.mxu0 %vm767_vm0, %v14619_v46 }
  0xb4   : > { %14458 = vmatmul.mubr.msk.bf16.gmra.mxu0 %vm767_vm0, %v14620_v47 }
  0xb5   : > { %14461 = vmatprep.mubr.msk.bf16.mxu0 %vm767_vm0, %v14621_v48  ;;  %v14659_v48 = vld [vmem:[%s20280_s2 + $0x48] sm:$0xff]  }
  0xb6   : > { %13758 = vmatprep.subr.bf16.mxu1 %v14659_v48 }
  0xbc   : > { %14462 = vmatmul.mubr.msk.bf16.gmra.mxu0 %vm767_vm0, %v14622_v49 }
  0xbd   : > { %14465 = vmatprep.mubr.msk.bf16.mxu0 %vm767_vm0, %v14623_v50  ;;  %v14660_v50 = vld [vmem:[%s20280_s2 + $0x8] sm:$0xff]  }
  0xbe   : > { %13759 = vmatpush3.bf16.msra.mxu1 %v14660_v50 }
  0xc4   : > { %14466 = vmatmul.mubr.msk.bf16.gmra.mxu0 %vm767_vm0, %v14624_v51 }
  0xc5   : > { %14469 = vmatprep.mubr.msk.bf16.mxu0 %vm767_vm0, %v14625_v52 }
  0xcc   : > { %14470 = vmatmul.mubr.msk.bf16.gmra.mxu0 %vm767_vm0, %v14626_v53 }
  0xcd   : > { %14473 = vmatprep.mubr.msk.bf16.mxu0 %vm767_vm0, %v14627_v54  ;;  %v14661_v54 = vld [vmem:[%s20280_s2 + $0x40] sm:$0xff]  }
  0xce   : > { %13760 = vmatprep.subr.bf16.mxu1 %v14661_v54 }
  0xcf   : > { %13761 = vmatpush3.bf16.msra.mxu1 %v14662_v57 }
  0xd4   : > { %v14379_v59 = vpop.f32.mrf.mxu0  ;;  %14474 = vmatmul.mubr.msk.bf16.gmra.mxu0 %vm767_vm0, %v14628_v55 }
  0xd5   : > { %14477 = vmatprep.mubr.msk.bf16.mxu0 %vm767_vm0, %v14629_v56  ;;  %v1507_v7 = vmax.f32 %v14379_v59, 0.0  ;;  %v14636_v56 = vld [vmem:[%s16021_s14 + $0x1c8] sm:$0xff]  }
  0xd6   : > { %v994_v61 = vpop.f32.mrf.mxu0 }
  0xd7   : > { %v1505_v14 = vmax.f32 %v994_v61, 0.0  ;;  %v14637_v61 = vld [vmem:[%s16021_s14 + $0x1d0] sm:$0xff]  }
  0xd8   : > { %v14380_v1 = vpop.f32.mrf.mxu0 }
  0xd9   : > { %v1508_v19 = vmax.f32 %v14380_v1, 0.0 }
  0xda   : > { %v997_v3 = vpop.f32.mrf.mxu0 }
  0xdb   : > { %v1506_v24 = vmax.f32 %v997_v3, 0.0 }
  0xdc   : > { %v14383_v6 = vpop.f32.mrf.mxu0  ;;  %14478 = vmatmul.mubr.msk.bf16.gmra.mxu0 %vm767_vm0, %v14630_v62 }
  0xdd   : > { %v1511_v8 = vmax.f32 %v14383_v6, 0.0  ;;  %14481 = vmatprep.mubr.msk.bf16.mxu0 %vm767_vm0, %v14631_v0 }
  0xde   : > { %v1010_v10 = vpop.f32.mrf.mxu0 }
  0xdf   : > { %v1635_v15 = vmax.f32 %v1507_v7, %v1511_v8  ;;  %v1509_v16 = vmax.f32 %v1010_v10, 0.0 }
  0xe0   : > { %v14384_v18 = vpop.f32.mrf.mxu0 }
  0xe1   : > { %v2039_v20 = vrot.slane %v1635_v15, 1  ;;  %v1633_v21 = vmax.f32 %v1505_v14, %v1509_v16  ;;  %v1512_v22 = vmax.f32 %v14384_v18, 0.0 }
  0xe2   : > { %v1013_v26 = vpop.f32.mrf.mxu0 }
  0xe3   : > { %v2071_v28 = vmax.f32 %v1635_v15, %v2039_v20  ;;  %v1713_v29 = vrot.slane %v1633_v21, 1  ;;  %v1636_v30 = vmax.f32 %v1508_v19, %v1512_v22  ;;  %v1510_v31 = vmax.f32 %v1013_v26, 0.0  ;;  %v14638_v19 = vld [vmem:[%s16021_s14 + $0x1d8] sm:$0xff]  }
  0xe4   : > { %v14387_v32 = vpop.f32.mrf.mxu0  ;;  %14482 = vmatmul.mubr.msk.bf16.gmra.mxu0 %vm767_vm0, %v14632_v12 }
  0xe5   : > { %2087 = vst.msk [vmem:[#allocation2 + $0x21] sm:$0x1] %vm1958_vm4, %v2071_v28  ;;  %v1745_v33 = vmax.f32 %v1633_v21, %v1713_v29  ;;  %v2167_v34 = vrot.slane %v1636_v30, 1  ;;  %v1634_v36 = vmax.f32 %v1506_v24, %v1510_v31  ;;  %14485 = vmatprep.mubr.msk.bf16.mxu0 %vm767_vm0, %v14633_v17  ;;  %v1515_v52 = vmax.f32 %v14387_v32, 0.0 }
  0xe6   : > { %2103 = vst.msk [vmem:[#allocation2 + $0x20] sm:$0x4] %vm1843_vm1, %v2071_v28  ;;  %v1026_v38 = vpop.f32.mrf.mxu0 }
  0xe7   : > { %2119 = vst.msk [vmem:[#allocation2 + $0x1f] sm:$0x10] %vm1860_vm2, %v2071_v28  ;;  %v1764_v41 = vrot.slane %v1745_v33, %v16173_v25  ;;  %1861 = vst.msk [vmem:[#allocation2 + $0x17] sm:$0x10] %vm1860_vm2, %v1745_v33  ;;  %v2199_v42 = vmax.f32 %v1636_v30, %v2167_v34  ;;  %v1910_v43 = vrot.slane %v1634_v36, 1  ;;  %v1513_v58 = vmax.f32 %v1026_v38, 0.0 }
  0xe8   : > { %2135 = vst.msk [vmem:[#allocation2 + $0x1e] sm:$0x40] %vm1877_vm3, %v2071_v28  ;;  %1878 = vst.msk [vmem:[#allocation2 + $0x16] sm:$0x40] %vm1877_vm3, %v1745_v33  ;;  %v14388_v45 = vpop.f32.mrf.mxu0 }
  0xe9   : > { %1844 = vst.msk [vmem:[#allocation2 + $0x18] sm:$0x4] %vm1843_vm1, %v1745_v33  ;;  %2231 = vst.msk [vmem:[#allocation2 + $0x24] sm:$0x4] %vm1843_vm1, %v2199_v42  ;;  %v2266_v46 = vrot.slane %v2199_v42, %v16184_v35  ;;  %v1942_v47 = vmax.f32 %v1634_v36, %v1910_v43  ;;  %v1516_v63 = vmax.f32 %v14388_v45, 0.0 }
  0xea   : > { %1827 = vst.msk [vmem:[#allocation2 + $0x18] sm:$0x3] %vm1826_vm5, %v1764_v41  ;;  %v1029_v49 = vpop.f32.mrf.mxu0  ;;  %v14643_v41 = vld [vmem:[%s16021_s14 + $0x1f0] sm:$0xff]  }
  0xeb   : > { %2215 = vst.msk [vmem:[#allocation2 + $0x25] sm:$0x1] %vm1958_vm4, %v2199_v42  ;;  %1959 = vst.msk [vmem:[#allocation2 + $0x1d] sm:$0x1] %vm1958_vm4, %v1942_v47  ;;  %v1514_v3 = vmax.f32 %v1029_v49, 0.0 }
  0xec   : > { %2247 = vst.msk [vmem:[#allocation2 + $0x23] sm:$0x10] %vm1860_vm2, %v2199_v42  ;;  %1991 = vst.msk [vmem:[#allocation2 + $0x1b] sm:$0x10] %vm1860_vm2, %v1942_v47  ;;  %v14391_v51 = vpop.f32.mrf.mxu0  ;;  %14486 = vmatmul.mubr.msk.bf16.gmra.mxu0 %vm767_vm0, %v14634_v39 }
  0xed   : > { %2327 = vst.msk [vmem:[#allocation2 + $0x28] sm:$0x3] %vm1826_vm5, %v2266_v46  ;;  %v1519_v53 = vmax.f32 %v14391_v51, 0.0  ;;  %14489 = vmatprep.mubr.msk.bf16.mxu0 %vm767_vm0, %v14635_v44 }
  0xee   : > { %1975 = vst.msk [vmem:[#allocation2 + $0x1c] sm:$0x4] %vm1843_vm1, %v1942_v47  ;;  %v1042_v55 = vpop.f32.mrf.mxu0 }
  0xef   : > { %2007 = vst.msk [vmem:[#allocation2 + $0x1a] sm:$0x40] %vm1877_vm3, %v1942_v47  ;;  %v1639_v59 = vmax.f32 %v1515_v52, %v1519_v53  ;;  %v1517_v60 = vmax.f32 %v1042_v55, 0.0 }
  0xf0   : > { %v14392_v62 = vpop.f32.mrf.mxu0 }
  0xf1   : > { %v2040_v0 = vrot.slane %v1639_v59, 1  ;;  %v1637_v1 = vmax.f32 %v1513_v58, %v1517_v60  ;;  %v1520_v2 = vmax.f32 %v14392_v62, 0.0 }
  0xf2   : > { %v1045_v4 = vpop.f32.mrf.mxu0 }
  0xf3   : > { %v2072_v8 = vmax.f32 %v1639_v59, %v2040_v0  ;;  %v1714_v9 = vrot.slane %v1637_v1, 1  ;;  %v1640_v10 = vmax.f32 %v1516_v63, %v1520_v2  ;;  %v1518_v12 = vmax.f32 %v1045_v4, 0.0  ;;  %v14644_v63 = vld [vmem:[%s16021_s14 + $0x1f8] sm:$0xff]  }
  0xf4   : > { %v2345_v7 = vld [vmem:[#allocation2 + $0x28] sm:$0x3]  ;;  %v14395_v13 = vpop.f32.mrf.mxu0  ;;  %14490 = vmatmul.mubr.msk.bf16.gmra.mxu0 %vm767_vm0, %v14636_v56 }
  0xf5   : > { %v2502_v5 = vld [vmem:[#allocation2 + $0x18] sm:$0xff]  ;;  %2349 = vst.msk [vmem:[#allocation2 + $0x10] sm:$0x3] %vm1826_vm5, %v2345_v7  ;;  %v1746_v15 = vmax.f32 %v1637_v1, %v1714_v9  ;;  %v2168_v16 = vrot.slane %v1640_v10, 1  ;;  %v1638_v17 = vmax.f32 %v1514_v3, %v1518_v12  ;;  %14493 = vmatprep.mubr.msk.bf16.mxu0 %vm767_vm0, %v14637_v61  ;;  %v1523_v33 = vmax.f32 %v14395_v13, 0.0  ;;  %v2409_v61 = vld [vmem:[#allocation2 + $0x21] sm:$0xff] }
  0xf6   : > { %v2503_v6 = vld [vmem:[#allocation2 + $0x20] sm:$0xff]  ;;  %2347 = vst.msk [vmem:[#allocation2] sm:$0xff] %vm2346_vm6, %v2502_v5  ;;  %v1058_v18 = vpop.f32.mrf.mxu0 }
  0xf7   : > { %2348 = vst.msk [vmem:[#allocation2 + $0x8] sm:$0xff] %vm2346_vm6, %v2503_v6  ;;  %v2534_v14 = vpack.c.bf16 %v2503_v6, %v2502_v5  ;;  %v1768_v20 = vrot.slane %v1746_v15, %v16173_v25  ;;  %v2200_v21 = vmax.f32 %v1640_v10, %v2168_v16  ;;  %v1911_v22 = vrot.slane %v1638_v17, 1  ;;  %v2408_v60 = vld [vmem:[#allocation2 + $0x19] sm:$0xff] }
  0xf8   : > { %2088 = vst.msk [vmem:[#allocation2 + $0x39] sm:$0x1] %vm1958_vm4, %v2072_v8  ;;  %v14396_v24 = vpop.f32.mrf.mxu0  ;;  %v1521_v38 = vmax.f32 %v1058_v18, 0.0 }
  0xf9   : > { %2104 = vst.msk [vmem:[#allocation2 + $0x38] sm:$0x4] %vm1843_vm1, %v2072_v8  ;;  %2855 = vrot.lane.b32.xlu0 %v2534_v14, %s15952_s17  ;;  %1845 = vst.msk [vmem:[#allocation2 + $0x30] sm:$0x4] %vm1843_vm1, %v1746_v15  ;;  %v2270_v26 = vrot.slane %v2200_v21, %v16184_v35  ;;  %v1943_v27 = vmax.f32 %v1638_v17, %v1911_v22  ;;  %v1524_v43 = vmax.f32 %v14396_v24, 0.0 }
  0xfa   : > { %2120 = vst.msk [vmem:[#allocation2 + $0x37] sm:$0x10] %vm1860_vm2, %v2072_v8  ;;  %1862 = vst.msk [vmem:[#allocation2 + $0x2f] sm:$0x10] %vm1860_vm2, %v1746_v15  ;;  %v1061_v28 = vpop.f32.mrf.mxu0 }
  0xfb   : > { %2136 = vst.msk [vmem:[#allocation2 + $0x36] sm:$0x40] %vm1877_vm3, %v2072_v8  ;;  %1879 = vst.msk [vmem:[#allocation2 + $0x2e] sm:$0x40] %vm1877_vm3, %v1746_v15  ;;  %v1522_v47 = vmax.f32 %v1061_v28, 0.0  ;;  %v2439_v8 = vpack.c.bf16 %v2409_v61, %v2408_v60 }
  0xfc   : > { %1828 = vst.msk [vmem:[#allocation2 + $0x30] sm:$0x3] %vm1826_vm5, %v1768_v20  ;;  %2328 = vst.msk [vmem:[#allocation2 + $0x40] sm:$0x3] %vm1826_vm5, %v2270_v26  ;;  %v14399_v32 = vpop.f32.mrf.mxu0  ;;  %14494 = vmatmul.mubr.msk.bf16.gmra.mxu0 %vm767_vm0, %v14638_v19 }
  0xfd   : > { %2216 = vst.msk [vmem:[#allocation2 + $0x3d] sm:$0x1] %vm1958_vm4, %v2200_v21  ;;  %1960 = vst.msk [vmem:[#allocation2 + $0x35] sm:$0x1] %vm1958_vm4, %v1943_v27  ;;  %v1527_v34 = vmax.f32 %v14399_v32, 0.0  ;;  %14497 = vmatprep.mubr.msk.bf16.mxu0 %vm767_vm0, %v14639_v23 }
  0xfe   : > { %2232 = vst.msk [vmem:[#allocation2 + $0x3c] sm:$0x4] %vm1843_vm1, %v2200_v21  ;;  %v2406_v29 = vld [vmem:[#allocation2 + $0x1] sm:$0xff]  ;;  %v2407_v30 = vld [vmem:[#allocation2 + $0x9] sm:$0xff]  ;;  %1976 = vst.msk [vmem:[#allocation2 + $0x34] sm:$0x4] %vm1843_vm1, %v1943_v27  ;;  %v1074_v36 = vpop.f32.mrf.mxu0 }
  0xff   : > { %2248 = vst.msk [vmem:[#allocation2 + $0x3b] sm:$0x10] %vm1860_vm2, %v2200_v21  ;;  %1992 = vst.msk [vmem:[#allocation2 + $0x33] sm:$0x10] %vm1860_vm2, %v1943_v27  ;;  %v2438_v31 = vpack.c.bf16 %v2407_v30, %v2406_v29  ;;  %v1643_v39 = vmax.f32 %v1523_v33, %v1527_v34  ;;  %v1525_v40 = vmax.f32 %v1074_v36, 0.0 }
 0x100   : > { %2008 = vst.msk [vmem:[#allocation2 + $0x32] sm:$0x40] %vm1877_vm3, %v1943_v27  ;;  %v14400_v42 = vpop.f32.mrf.mxu0 }
 0x101   : > { %2807 = vrot.lane.b32.xlu0 %v2438_v31, %s15952_s17  ;;  %v2041_v44 = vrot.slane %v1643_v39, 1  ;;  %v1641_v45 = vmax.f32 %v1521_v38, %v1525_v40  ;;  %v1528_v46 = vmax.f32 %v14400_v42, 0.0 }
 0x102   : > { %v1077_v48 = vpop.f32.mrf.mxu0 }
 0x103   : > { %v2073_v51 = vmax.f32 %v1643_v39, %v2041_v44  ;;  %v1715_v52 = vrot.slane %v1641_v45, 1  ;;  %v1644_v53 = vmax.f32 %v1524_v43, %v1528_v46  ;;  %v1526_v54 = vmax.f32 %v1077_v48, 0.0 }
 0x104   : > { %v14403_v55 = vpop.f32.mrf.mxu0  ;;  %14498 = vmatmul.mubr.msk.bf16.gmra.mxu0 %vm767_vm0, %v14640_v37 }
 0x105   : > { %2089 = vst.msk [vmem:[#allocation2 + $0x51] sm:$0x1] %vm1958_vm4, %v2073_v51  ;;  %v1747_v57 = vmax.f32 %v1641_v45, %v1715_v52  ;;  %v2169_v58 = vrot.slane %v1644_v53, 1  ;;  %v1642_v59 = vmax.f32 %v1522_v47, %v1526_v54  ;;  %14501 = vmatprep.mubr.msk.bf16.mxu0 %vm767_vm0, %v14643_v41  ;;  %v1531_v16 = vmax.f32 %v14403_v55, 0.0 }
 0x106   : > { %v2504_v49 = vld [vmem:[#allocation2 + $0x30] sm:$0xff]  ;;  %2105 = vst.msk [vmem:[#allocation2 + $0x50] sm:$0x4] %vm1843_vm1, %v2073_v51  ;;  %v1090_v62 = vpop.f32.mrf.mxu0  ;;  %v2744_v1 = vld [vmem:[#allocation2 + $0x3a] sm:$0xff] }
 0x107   : > { %v2505_v50 = vld [vmem:[#allocation2 + $0x38] sm:$0xff]  ;;  %2121 = vst.msk [vmem:[#allocation2 + $0x4f] sm:$0x10] %vm1860_vm2, %v2073_v51  ;;  %v1772_v2 = vrot.slane %v1747_v57, %v16173_v25  ;;  %1863 = vst.msk [vmem:[#allocation2 + $0x47] sm:$0x10] %vm1860_vm2, %v1747_v57  ;;  %v2201_v3 = vmax.f32 %v1644_v53, %v2169_v58  ;;  %v1912_v4 = vrot.slane %v1642_v59, 1 }
 0x108   : > { %v2535_v56 = vpack.c.bf16 %v2505_v50, %v2504_v49  ;;  %2137 = vst.msk [vmem:[#allocation2 + $0x4e] sm:$0x40] %vm1877_vm3, %v2073_v51  ;;  %v2743_v0 = vld [vmem:[#allocation2 + $0x32] sm:$0xff]  ;;  %1880 = vst.msk [vmem:[#allocation2 + $0x46] sm:$0x40] %vm1877_vm3, %v1747_v57  ;;  %v14404_v7 = vpop.f32.mrf.mxu0  ;;  %v1529_v19 = vmax.f32 %v1090_v62, 0.0 }
 0x109   : > { %1846 = vst.msk [vmem:[#allocation2 + $0x48] sm:$0x4] %vm1843_vm1, %v1747_v57  ;;  %v2410_v5 = vld [vmem:[#allocation2 + $0x31] sm:$0xff]  ;;  %v2411_v6 = vld [vmem:[#allocation2 + $0x39] sm:$0xff]  ;;  %2233 = vst.msk [vmem:[#allocation2 + $0x54] sm:$0x4] %vm1843_vm1, %v2201_v3  ;;  %v2274_v9 = vrot.slane %v2201_v3, %v16184_v35  ;;  %v1944_v10 = vmax.f32 %v1642_v59, %v1912_v4  ;;  %v2775_v13 = vpack.c.bf16 %v2744_v1, %v2743_v0 }
 0x10a   : > { %2857 = vrot.lane.b32.xlu1 %v2535_v56, %s15952_s17  ;;  %1829 = vst.msk [vmem:[#allocation2 + $0x48] sm:$0x3] %vm1826_vm5, %v1772_v2  ;;  %v1093_v12 = vpop.f32.mrf.mxu0  ;;  %v2440_v15 = vpack.c.bf16 %v2411_v6, %v2410_v5  ;;  %v1532_v23 = vmax.f32 %v14404_v7, 0.0 }
 0x10b   : > { %2217 = vst.msk [vmem:[#allocation2 + $0x55] sm:$0x1] %vm1958_vm4, %v2201_v3  ;;  %1961 = vst.msk [vmem:[#allocation2 + $0x4d] sm:$0x1] %vm1958_vm4, %v1944_v10  ;;  %v1530_v28 = vmax.f32 %v1093_v12, 0.0 }
 0x10c   : > { %2249 = vst.msk [vmem:[#allocation2 + $0x53] sm:$0x10] %vm1860_vm2, %v2201_v3  ;;  %1993 = vst.msk [vmem:[#allocation2 + $0x4b] sm:$0x10] %vm1860_vm2, %v1944_v10  ;;  %v14407_v14 = vpop.f32.mrf.mxu0  ;;  %14502 = vmatmul.mubr.msk.bf16.gmra.mxu0 %vm767_vm0, %v14644_v63 }
 0x10d   : > { %2329 = vst.msk [vmem:[#allocation2 + $0x58] sm:$0x3] %vm1826_vm5, %v2274_v9  ;;  %v1535_v17 = vmax.f32 %v14407_v14, 0.0  ;;  %14513 = vmatprep.mubr.msk.bf16.mxu0 %vm2346_vm6, %v2775_v13 }
 0x10e   : > { %2809 = vrot.lane.b32.xlu1 %v2439_v8, %s15952_s17  ;;  %1977 = vst.msk [vmem:[#allocation2 + $0x4c] sm:$0x4] %vm1843_vm1, %v1944_v10  ;;  %v1106_v18 = vpop.f32.mrf.mxu0 }
 0x10f   : > { %2009 = vst.msk [vmem:[#allocation2 + $0x4a] sm:$0x40] %vm1877_vm3, %v1944_v10  ;;  %v1647_v20 = vmax.f32 %v1531_v16, %v1535_v17  ;;  %v1533_v21 = vmax.f32 %v1106_v18, 0.0 }
 0x110   : > { %v14408_v22 = vpop.f32.mrf.mxu0 }
 0x111   : > { %v2042_v24 = vrot.slane %v1647_v20, 1  ;;  %v1645_v26 = vmax.f32 %v1529_v19, %v1533_v21  ;;  %v1536_v27 = vmax.f32 %v14408_v22, 0.0 }
 0x112   : > { %2811 = vrot.lane.b32.xlu1 %v2440_v15, %s15952_s17  ;;  %v1109_v29 = vpop.f32.mrf.mxu0 }
 0x113   : > { %v2074_v33 = vmax.f32 %v1647_v20, %v2042_v24  ;;  %v1716_v34 = vrot.slane %v1645_v26, 1  ;;  %v1648_v36 = vmax.f32 %v1532_v23, %v1536_v27  ;;  %v1534_v37 = vmax.f32 %v1109_v29, 0.0 }
 0x114   : > { %v2746_v31 = vld [vmem:[#allocation2 + $0x52] sm:$0xff]  ;;  %v14411_v41 = vpop.f32.mrf.mxu0 }
 0x115   : > { %v2506_v32 = vld [vmem:[#allocation2 + $0x48] sm:$0xff]  ;;  %v2413_v40 = vld [vmem:[#allocation2 + $0x51] sm:$0xff]  ;;  %2090 = vst.msk [vmem:[#allocation2 + $0x69] sm:$0x1] %vm1958_vm4, %v2074_v33  ;;  %v1748_v45 = vmax.f32 %v1645_v26, %v1716_v34  ;;  %v2170_v46 = vrot.slane %v1648_v36, 1  ;;  %v1646_v47 = vmax.f32 %v1530_v28, %v1534_v37  ;;  %v1539_v57 = vmax.f32 %v14411_v41, 0.0 }
 0x116   : > { %v2745_v30 = vld [vmem:[#allocation2 + $0x4a] sm:$0xff]  ;;  %2106 = vst.msk [vmem:[#allocation2 + $0x68] sm:$0x4] %vm1843_vm1, %v2074_v33  ;;  %v1122_v48 = vpop.f32.mrf.mxu0 }
 0x117   : > { %v2507_v38 = vld [vmem:[#allocation2 + $0x50] sm:$0xff]  ;;  %v2776_v42 = vpack.c.bf16 %v2746_v31, %v2745_v30  ;;  %2122 = vst.msk [vmem:[#allocation2 + $0x67] sm:$0x10] %vm1860_vm2, %v2074_v33  ;;  %v1776_v49 = vrot.slane %v1748_v45, %v16173_v25  ;;  %1864 = vst.msk [vmem:[#allocation2 + $0x5f] sm:$0x10] %vm1860_vm2, %v1748_v45  ;;  %v2202_v50 = vmax.f32 %v1648_v36, %v2170_v46  ;;  %v1913_v51 = vrot.slane %v1646_v47, 1 }
 0x118   : > { %v2412_v39 = vld [vmem:[#allocation2 + $0x49] sm:$0xff]  ;;  %v2536_v43 = vpack.c.bf16 %v2507_v38, %v2506_v32  ;;  %2138 = vst.msk [vmem:[#allocation2 + $0x66] sm:$0x40] %vm1877_vm3, %v2074_v33  ;;  %1881 = vst.msk [vmem:[#allocation2 + $0x5e] sm:$0x40] %vm1877_vm3, %v1748_v45  ;;  %v14412_v52 = vpop.f32.mrf.mxu0  ;;  %v1537_v60 = vmax.f32 %v1122_v48, 0.0 }
 0x119   : > { %v2441_v44 = vpack.c.bf16 %v2413_v40, %v2412_v39  ;;  %14514 = vmatmul.mubr.msk.bf16.vlgmr.msra.gmra.mxu0 %vm2346_vm6, %v2776_v42  ;;  %1847 = vst.msk [vmem:[#allocation2 + $0x60] sm:$0x4] %vm1843_vm1, %v1748_v45  ;;  %2234 = vst.msk [vmem:[#allocation2 + $0x6c] sm:$0x4] %vm1843_vm1, %v2202_v50  ;;  %v2278_v53 = vrot.slane %v2202_v50, %v16184_v35  ;;  %v1945_v54 = vmax.f32 %v1646_v47, %v1913_v51 }
 0x11a   : > { %2859 = vrot.lane.b32.xlu0 %v2536_v43, %s15952_s17  ;;  %1830 = vst.msk [vmem:[#allocation2 + $0x60] sm:$0x3] %vm1826_vm5, %v1776_v49  ;;  %v1125_v55 = vpop.f32.mrf.mxu0  ;;  %v1540_v0 = vmax.f32 %v14412_v52, 0.0 }
 0x11b   : > { %2813 = vrot.lane.b32.xlu1 %v2441_v44, %s15952_s17  ;;  %2218 = vst.msk [vmem:[#allocation2 + $0x6d] sm:$0x1] %vm1958_vm4, %v2202_v50  ;;  %1962 = vst.msk [vmem:[#allocation2 + $0x65] sm:$0x1] %vm1958_vm4, %v1945_v54  ;;  %v1538_v4 = vmax.f32 %v1125_v55, 0.0 }
 0x11c   : > { %2250 = vst.msk [vmem:[#allocation2 + $0x6b] sm:$0x10] %vm1860_vm2, %v2202_v50  ;;  %1994 = vst.msk [vmem:[#allocation2 + $0x63] sm:$0x10] %vm1860_vm2, %v1945_v54  ;;  %v14415_v56 = vpop.f32.mrf.mxu0 }
 0x11d   : > { %2330 = vst.msk [vmem:[#allocation2 + $0x70] sm:$0x3] %vm1826_vm5, %v2278_v53  ;;  %v1543_v58 = vmax.f32 %v14415_v56, 0.0 }
 0x11e   : > { %1978 = vst.msk [vmem:[#allocation2 + $0x64] sm:$0x4] %vm1843_vm1, %v1945_v54  ;;  %v1138_v59 = vpop.f32.mrf.mxu0 }
 0x11f   : > { %2010 = vst.msk [vmem:[#allocation2 + $0x62] sm:$0x40] %vm1877_vm3, %v1945_v54  ;;  %v1651_v61 = vmax.f32 %v1539_v57, %v1543_v58  ;;  %v1541_v62 = vmax.f32 %v1138_v59, 0.0 }
 0x120   : > { %v14416_v63 = vpop.f32.mrf.mxu0 }
 0x121   : > { %v2043_v1 = vrot.slane %v1651_v61, 1  ;;  %v1649_v2 = vmax.f32 %v1537_v60, %v1541_v62  ;;  %v1544_v3 = vmax.f32 %v14416_v63, 0.0 }
 0x122   : > { %v1141_v5 = vpop.f32.mrf.mxu0 }
 0x123   : > { %v2075_v9 = vmax.f32 %v1651_v61, %v2043_v1  ;;  %v1717_v10 = vrot.slane %v1649_v2, 1  ;;  %v1652_v12 = vmax.f32 %v1540_v0, %v1544_v3  ;;  %v1542_v13 = vmax.f32 %v1141_v5, 0.0 }
 0x124   : > { %v2748_v7 = vld [vmem:[#allocation2 + $0x6a] sm:$0xff]  ;;  %v14419_v17 = vpop.f32.mrf.mxu0 }
 0x125   : > { %v2508_v8 = vld [vmem:[#allocation2 + $0x60] sm:$0xff]  ;;  %v2415_v16 = vld [vmem:[#allocation2 + $0x69] sm:$0xff]  ;;  %2091 = vst.msk [vmem:[#allocation2 + $0x81] sm:$0x1] %vm1958_vm4, %v2075_v9  ;;  %v1749_v21 = vmax.f32 %v1649_v2, %v1717_v10  ;;  %v2171_v22 = vrot.slane %v1652_v12, 1  ;;  %v1650_v23 = vmax.f32 %v1538_v4, %v1542_v13  ;;  %v1547_v34 = vmax.f32 %v14419_v17, 0.0 }
 0x126   : > { %v2747_v6 = vld [vmem:[#allocation2 + $0x62] sm:$0xff]  ;;  %2107 = vst.msk [vmem:[#allocation2 + $0x80] sm:$0x4] %vm1843_vm1, %v2075_v9  ;;  %v1154_v24 = vpop.f32.mrf.mxu0 }
 0x127   : > { %v2509_v14 = vld [vmem:[#allocation2 + $0x68] sm:$0xff]  ;;  %v2777_v18 = vpack.c.bf16 %v2748_v7, %v2747_v6  ;;  %2123 = vst.msk [vmem:[#allocation2 + $0x7f] sm:$0x10] %vm1860_vm2, %v2075_v9  ;;  %v1780_v26 = vrot.slane %v1749_v21, %v16173_v25  ;;  %1865 = vst.msk [vmem:[#allocation2 + $0x77] sm:$0x10] %vm1860_vm2, %v1749_v21  ;;  %v2203_v27 = vmax.f32 %v1652_v12, %v2171_v22  ;;  %v1914_v28 = vrot.slane %v1650_v23, 1 }
 0x128   : > { %v2414_v15 = vld [vmem:[#allocation2 + $0x61] sm:$0xff]  ;;  %v2537_v19 = vpack.c.bf16 %v2509_v14, %v2508_v8  ;;  %2139 = vst.msk [vmem:[#allocation2 + $0x7e] sm:$0x40] %vm1877_vm3, %v2075_v9  ;;  %1882 = vst.msk [vmem:[#allocation2 + $0x76] sm:$0x40] %vm1877_vm3, %v1749_v21  ;;  %v14420_v29 = vpop.f32.mrf.mxu0  ;;  %v1545_v38 = vmax.f32 %v1154_v24, 0.0 }
 0x129   : > { %v2442_v20 = vpack.c.bf16 %v2415_v16, %v2414_v15  ;;  %14517 = vmatprep.mubr.msk.bf16.mxu0 %vm2346_vm6, %v2777_v18  ;;  %1848 = vst.msk [vmem:[#allocation2 + $0x78] sm:$0x4] %vm1843_vm1, %v1749_v21  ;;  %2235 = vst.msk [vmem:[#allocation2 + $0x84] sm:$0x4] %vm1843_vm1, %v2203_v27  ;;  %v2282_v30 = vrot.slane %v2203_v27, %v16184_v35  ;;  %v1946_v31 = vmax.f32 %v1650_v23, %v1914_v28 }
 0x12a   : > { %2861 = vrot.lane.b32.xlu0 %v2537_v19, %s15952_s17  ;;  %1831 = vst.msk [vmem:[#allocation2 + $0x78] sm:$0x3] %vm1826_vm5, %v1780_v26  ;;  %v1157_v32 = vpop.f32.mrf.mxu0  ;;  %v1548_v42 = vmax.f32 %v14420_v29, 0.0 }
 0x12b   : > { %2815 = vrot.lane.b32.xlu1 %v2442_v20, %s15952_s17  ;;  %2219 = vst.msk [vmem:[#allocation2 + $0x85] sm:$0x1] %vm1958_vm4, %v2203_v27  ;;  %1963 = vst.msk [vmem:[#allocation2 + $0x7d] sm:$0x1] %vm1958_vm4, %v1946_v31  ;;  %v1546_v46 = vmax.f32 %v1157_v32, 0.0 }
 0x12c   : > { %2251 = vst.msk [vmem:[#allocation2 + $0x83] sm:$0x10] %vm1860_vm2, %v2203_v27  ;;  %1995 = vst.msk [vmem:[#allocation2 + $0x7b] sm:$0x10] %vm1860_vm2, %v1946_v31  ;;  %v14423_v33 = vpop.f32.mrf.mxu0 }
 0x12d   : > { %2331 = vst.msk [vmem:[#allocation2 + $0x88] sm:$0x3] %vm1826_vm5, %v2282_v30  ;;  %v1551_v36 = vmax.f32 %v14423_v33, 0.0 }
 0x12e   : > { %1979 = vst.msk [vmem:[#allocation2 + $0x7c] sm:$0x4] %vm1843_vm1, %v1946_v31  ;;  %v1170_v37 = vpop.f32.mrf.mxu0 }
 0x12f   : > { %2011 = vst.msk [vmem:[#allocation2 + $0x7a] sm:$0x40] %vm1877_vm3, %v1946_v31  ;;  %v1655_v39 = vmax.f32 %v1547_v34, %v1551_v36  ;;  %v1549_v40 = vmax.f32 %v1170_v37, 0.0 }
 0x130   : > { %v14424_v41 = vpop.f32.mrf.mxu0 }
 0x131   : > { %v2044_v43 = vrot.slane %v1655_v39, 1  ;;  %v1653_v44 = vmax.f32 %v1545_v38, %v1549_v40  ;;  %v1552_v45 = vmax.f32 %v14424_v41, 0.0 }
 0x132   : > { %v1173_v47 = vpop.f32.mrf.mxu0 }
 0x133   : > { %v2076_v51 = vmax.f32 %v1655_v39, %v2044_v43  ;;  %v1718_v52 = vrot.slane %v1653_v44, 1  ;;  %v1656_v53 = vmax.f32 %v1548_v42, %v1552_v45  ;;  %v1550_v54 = vmax.f32 %v1173_v47, 0.0 }
 0x134   : > { %v2750_v49 = vld [vmem:[#allocation2 + $0x82] sm:$0xff]  ;;  %v14427_v58 = vpop.f32.mrf.mxu0 }
 0x135   : > { %v2510_v50 = vld [vmem:[#allocation2 + $0x78] sm:$0xff]  ;;  %v2417_v57 = vld [vmem:[#allocation2 + $0x81] sm:$0xff]  ;;  %2092 = vst.msk [vmem:[#allocation2 + $0x99] sm:$0x1] %vm1958_vm4, %v2076_v51  ;;  %v1750_v62 = vmax.f32 %v1653_v44, %v1718_v52  ;;  %v2172_v63 = vrot.slane %v1656_v53, 1  ;;  %v1654_v0 = vmax.f32 %v1546_v46, %v1550_v54  ;;  %v1555_v10 = vmax.f32 %v14427_v58, 0.0 }
 0x136   : > { %v2749_v48 = vld [vmem:[#allocation2 + $0x7a] sm:$0xff]  ;;  %2108 = vst.msk [vmem:[#allocation2 + $0x98] sm:$0x4] %vm1843_vm1, %v2076_v51  ;;  %v1186_v1 = vpop.f32.mrf.mxu0 }
 0x137   : > { %v2511_v55 = vld [vmem:[#allocation2 + $0x80] sm:$0xff]  ;;  %v2778_v59 = vpack.c.bf16 %v2750_v49, %v2749_v48  ;;  %2124 = vst.msk [vmem:[#allocation2 + $0x97] sm:$0x10] %vm1860_vm2, %v2076_v51  ;;  %v1784_v2 = vrot.slane %v1750_v62, %v16173_v25  ;;  %1866 = vst.msk [vmem:[#allocation2 + $0x8f] sm:$0x10] %vm1860_vm2, %v1750_v62  ;;  %v2204_v3 = vmax.f32 %v1656_v53, %v2172_v63  ;;  %v1915_v4 = vrot.slane %v1654_v0, 1 }
 0x138   : > { %v2416_v56 = vld [vmem:[#allocation2 + $0x79] sm:$0xff]  ;;  %v2538_v60 = vpack.c.bf16 %v2511_v55, %v2510_v50  ;;  %2140 = vst.msk [vmem:[#allocation2 + $0x96] sm:$0x40] %vm1877_vm3, %v2076_v51  ;;  %1883 = vst.msk [vmem:[#allocation2 + $0x8e] sm:$0x40] %vm1877_vm3, %v1750_v62  ;;  %v14428_v5 = vpop.f32.mrf.mxu0  ;;  %v1553_v14 = vmax.f32 %v1186_v1, 0.0 }
 0x139   : > { %v2443_v61 = vpack.c.bf16 %v2417_v57, %v2416_v56  ;;  %14518 = vmatmul.mubr.msk.bf16.gmra.mxu0 %vm2346_vm6, %v2778_v59  ;;  %1849 = vst.msk [vmem:[#allocation2 + $0x90] sm:$0x4] %vm1843_vm1, %v1750_v62  ;;  %2236 = vst.msk [vmem:[#allocation2 + $0x9c] sm:$0x4] %vm1843_vm1, %v2204_v3  ;;  %v2286_v6 = vrot.slane %v2204_v3, %v16184_v35  ;;  %v1947_v7 = vmax.f32 %v1654_v0, %v1915_v4 }
 0x13a   : > { %2863 = vrot.lane.b32.xlu0 %v2538_v60, %s15952_s17  ;;  %1832 = vst.msk [vmem:[#allocation2 + $0x90] sm:$0x3] %vm1826_vm5, %v1784_v2  ;;  %v1189_v8 = vpop.f32.mrf.mxu0  ;;  %v1556_v18 = vmax.f32 %v14428_v5, 0.0 }
 0x13b   : > { %2817 = vrot.lane.b32.xlu1 %v2443_v61, %s15952_s17  ;;  %2220 = vst.msk [vmem:[#allocation2 + $0x9d] sm:$0x1] %vm1958_vm4, %v2204_v3  ;;  %1964 = vst.msk [vmem:[#allocation2 + $0x95] sm:$0x1] %vm1958_vm4, %v1947_v7  ;;  %v1554_v22 = vmax.f32 %v1189_v8, 0.0 }
 0x13c   : > { %2252 = vst.msk [vmem:[#allocation2 + $0x9b] sm:$0x10] %vm1860_vm2, %v2204_v3  ;;  %1996 = vst.msk [vmem:[#allocation2 + $0x93] sm:$0x10] %vm1860_vm2, %v1947_v7  ;;  %v14431_v9 = vpop.f32.mrf.mxu0 }
 0x13d   : > { %2332 = vst.msk [vmem:[#allocation2 + $0xa0] sm:$0x3] %vm1826_vm5, %v2286_v6  ;;  %v1559_v12 = vmax.f32 %v14431_v9, 0.0 }
 0x13e   : > { %1980 = vst.msk [vmem:[#allocation2 + $0x94] sm:$0x4] %vm1843_vm1, %v1947_v7  ;;  %v1202_v13 = vpop.f32.mrf.mxu0 }
 0x13f   : > { %2012 = vst.msk [vmem:[#allocation2 + $0x92] sm:$0x40] %vm1877_vm3, %v1947_v7  ;;  %v1659_v15 = vmax.f32 %v1555_v10, %v1559_v12  ;;  %v1557_v16 = vmax.f32 %v1202_v13, 0.0 }
 0x140   : > { %v14432_v17 = vpop.f32.mrf.mxu0 }
 0x141   : > { %v2045_v19 = vrot.slane %v1659_v15, 1  ;;  %v1657_v20 = vmax.f32 %v1553_v14, %v1557_v16  ;;  %v1560_v21 = vmax.f32 %v14432_v17, 0.0 }
 0x142   : > { %v1205_v23 = vpop.f32.mrf.mxu0 }
 0x143   : > { %v2077_v28 = vmax.f32 %v1659_v15, %v2045_v19  ;;  %v1719_v29 = vrot.slane %v1657_v20, 1  ;;  %v1660_v30 = vmax.f32 %v1556_v18, %v1560_v21  ;;  %v1558_v31 = vmax.f32 %v1205_v23, 0.0 }
 0x144   : > { %v2752_v26 = vld [vmem:[#allocation2 + $0x9a] sm:$0xff]  ;;  %v14435_v36 = vpop.f32.mrf.mxu0 }
 0x145   : > { %v2512_v27 = vld [vmem:[#allocation2 + $0x90] sm:$0xff]  ;;  %v2419_v34 = vld [vmem:[#allocation2 + $0x99] sm:$0xff]  ;;  %2093 = vst.msk [vmem:[#allocation2 + $0xb1] sm:$0x1] %vm1958_vm4, %v2077_v28  ;;  %v1751_v40 = vmax.f32 %v1657_v20, %v1719_v29  ;;  %v2173_v41 = vrot.slane %v1660_v30, 1  ;;  %v1658_v42 = vmax.f32 %v1554_v22, %v1558_v31  ;;  %v1563_v52 = vmax.f32 %v14435_v36, 0.0 }
 0x146   : > { %v2751_v24 = vld [vmem:[#allocation2 + $0x92] sm:$0xff]  ;;  %2109 = vst.msk [vmem:[#allocation2 + $0xb0] sm:$0x4] %vm1843_vm1, %v2077_v28  ;;  %v1218_v43 = vpop.f32.mrf.mxu0 }
 0x147   : > { %v2513_v32 = vld [vmem:[#allocation2 + $0x98] sm:$0xff]  ;;  %v2779_v37 = vpack.c.bf16 %v2752_v26, %v2751_v24  ;;  %2125 = vst.msk [vmem:[#allocation2 + $0xaf] sm:$0x10] %vm1860_vm2, %v2077_v28  ;;  %v1788_v44 = vrot.slane %v1751_v40, %v16173_v25  ;;  %1867 = vst.msk [vmem:[#allocation2 + $0xa7] sm:$0x10] %vm1860_vm2, %v1751_v40  ;;  %v2205_v45 = vmax.f32 %v1660_v30, %v2173_v41  ;;  %v1916_v46 = vrot.slane %v1658_v42, 1 }
 0x148   : > { %v2418_v33 = vld [vmem:[#allocation2 + $0x91] sm:$0xff]  ;;  %v2539_v38 = vpack.c.bf16 %v2513_v32, %v2512_v27  ;;  %2141 = vst.msk [vmem:[#allocation2 + $0xae] sm:$0x40] %vm1877_vm3, %v2077_v28  ;;  %1884 = vst.msk [vmem:[#allocation2 + $0xa6] sm:$0x40] %vm1877_vm3, %v1751_v40  ;;  %v14436_v47 = vpop.f32.mrf.mxu0  ;;  %v1561_v55 = vmax.f32 %v1218_v43, 0.0 }
 0x149   : > { %v2444_v39 = vpack.c.bf16 %v2419_v34, %v2418_v33  ;;  %14521 = vmatprep.mubr.msk.bf16.mxu0 %vm2346_vm6, %v2779_v37  ;;  %1850 = vst.msk [vmem:[#allocation2 + $0xa8] sm:$0x4] %vm1843_vm1, %v1751_v40  ;;  %2237 = vst.msk [vmem:[#allocation2 + $0xb4] sm:$0x4] %vm1843_vm1, %v2205_v45  ;;  %v2290_v48 = vrot.slane %v2205_v45, %v16184_v35  ;;  %v1948_v49 = vmax.f32 %v1658_v42, %v1916_v46 }
 0x14a   : > { %2865 = vrot.lane.b32.xlu0 %v2539_v38, %s15952_s17  ;;  %1833 = vst.msk [vmem:[#allocation2 + $0xa8] sm:$0x3] %vm1826_vm5, %v1788_v44  ;;  %v1221_v50 = vpop.f32.mrf.mxu0  ;;  %v1564_v59 = vmax.f32 %v14436_v47, 0.0 }
 0x14b   : > { %2819 = vrot.lane.b32.xlu1 %v2444_v39, %s15952_s17  ;;  %2221 = vst.msk [vmem:[#allocation2 + $0xb5] sm:$0x1] %vm1958_vm4, %v2205_v45  ;;  %1965 = vst.msk [vmem:[#allocation2 + $0xad] sm:$0x1] %vm1958_vm4, %v1948_v49  ;;  %v1562_v63 = vmax.f32 %v1221_v50, 0.0 }
 0x14c   : > { %2253 = vst.msk [vmem:[#allocation2 + $0xb3] sm:$0x10] %vm1860_vm2, %v2205_v45  ;;  %1997 = vst.msk [vmem:[#allocation2 + $0xab] sm:$0x10] %vm1860_vm2, %v1948_v49  ;;  %v14439_v51 = vpop.f32.mrf.mxu0 }
 0x14d   : > { %2333 = vst.msk [vmem:[#allocation2 + $0xb8] sm:$0x3] %vm1826_vm5, %v2290_v48  ;;  %v1567_v53 = vmax.f32 %v14439_v51, 0.0 }
 0x14e   : > { %1981 = vst.msk [vmem:[#allocation2 + $0xac] sm:$0x4] %vm1843_vm1, %v1948_v49  ;;  %v1234_v54 = vpop.f32.mrf.mxu0 }
 0x14f   : > { %2013 = vst.msk [vmem:[#allocation2 + $0xaa] sm:$0x40] %vm1877_vm3, %v1948_v49  ;;  %v1663_v56 = vmax.f32 %v1563_v52, %v1567_v53  ;;  %v1565_v57 = vmax.f32 %v1234_v54, 0.0 }
 0x150   : > { %v14440_v58 = vpop.f32.mrf.mxu0 }
 0x151   : > { %v2046_v60 = vrot.slane %v1663_v56, 1  ;;  %v1661_v61 = vmax.f32 %v1561_v55, %v1565_v57  ;;  %v1568_v62 = vmax.f32 %v14440_v58, 0.0  ;;  %v2454_v57 = vld [vmem:[#allocation2 + $0x2] sm:$0xff]  ;;  %v2455_v58 = vld [vmem:[#allocation2 + $0xa] sm:$0xff] }
 0x152   : > { %v1237_v0 = vpop.f32.mrf.mxu0 }
 0x153   : > { %v2078_v4 = vmax.f32 %v1663_v56, %v2046_v60  ;;  %v1720_v5 = vrot.slane %v1661_v61, 1  ;;  %v1664_v6 = vmax.f32 %v1564_v59, %v1568_v62  ;;  %v1566_v7 = vmax.f32 %v1237_v0, 0.0  ;;  %v14663_v59 = vld [vmem:[%s20280_s2 + $0xf8] sm:$0xff]  }
 0x154   : > { %v2754_v2 = vld [vmem:[#allocation2 + $0xb2] sm:$0xff]  ;;  %v14443_v12 = vpop.f32.mrf.mxu0  ;;  %13858 = vmatprep.subr.bf16.mxu1 %v14663_v59 }
 0x155   : > { %v2514_v3 = vld [vmem:[#allocation2 + $0xa8] sm:$0xff]  ;;  %v2421_v10 = vld [vmem:[#allocation2 + $0xb1] sm:$0xff]  ;;  %2094 = vst.msk [vmem:[#allocation2 + $0xc9] sm:$0x1] %vm1958_vm4, %v2078_v4  ;;  %v1752_v16 = vmax.f32 %v1661_v61, %v1720_v5  ;;  %v2174_v17 = vrot.slane %v1664_v6, 1  ;;  %v1662_v18 = vmax.f32 %v1562_v63, %v1566_v7  ;;  %v1571_v29 = vmax.f32 %v14443_v12, 0.0 }
 0x156   : > { %v2753_v1 = vld [vmem:[#allocation2 + $0xaa] sm:$0xff]  ;;  %2110 = vst.msk [vmem:[#allocation2 + $0xc8] sm:$0x4] %vm1843_vm1, %v2078_v4  ;;  %v1250_v19 = vpop.f32.mrf.mxu0 }
 0x157   : > { %v2515_v8 = vld [vmem:[#allocation2 + $0xb0] sm:$0xff]  ;;  %v2780_v13 = vpack.c.bf16 %v2754_v2, %v2753_v1  ;;  %2126 = vst.msk [vmem:[#allocation2 + $0xc7] sm:$0x10] %vm1860_vm2, %v2078_v4  ;;  %v1792_v20 = vrot.slane %v1752_v16, %v16173_v25  ;;  %1868 = vst.msk [vmem:[#allocation2 + $0xbf] sm:$0x10] %vm1860_vm2, %v1752_v16  ;;  %v2206_v21 = vmax.f32 %v1664_v6, %v2174_v17  ;;  %v1917_v22 = vrot.slane %v1662_v18, 1 }
 0x158   : > { %v2420_v9 = vld [vmem:[#allocation2 + $0xa9] sm:$0xff]  ;;  %v2540_v14 = vpack.c.bf16 %v2515_v8, %v2514_v3  ;;  %2142 = vst.msk [vmem:[#allocation2 + $0xc6] sm:$0x40] %vm1877_vm3, %v2078_v4  ;;  %1885 = vst.msk [vmem:[#allocation2 + $0xbe] sm:$0x40] %vm1877_vm3, %v1752_v16  ;;  %v14444_v23 = vpop.f32.mrf.mxu0  ;;  %v1569_v32 = vmax.f32 %v1250_v19, 0.0  ;;  %v2486_v3 = vpack.c.bf16 %v2455_v58, %v2454_v57 }
 0x159   : > { %v2445_v15 = vpack.c.bf16 %v2421_v10, %v2420_v9  ;;  %14522 = vmatmul.mubr.msk.bf16.gmra.mxu0 %vm2346_vm6, %v2780_v13  ;;  %1851 = vst.msk [vmem:[#allocation2 + $0xc0] sm:$0x4] %vm1843_vm1, %v1752_v16  ;;  %2238 = vst.msk [vmem:[#allocation2 + $0xcc] sm:$0x4] %vm1843_vm1, %v2206_v21  ;;  %v2294_v24 = vrot.slane %v2206_v21, %v16184_v35  ;;  %v1949_v26 = vmax.f32 %v1662_v18, %v1917_v22  ;;  %v2358_v9 = vld [vmem:[#allocation2] sm:$0xff]  ;;  %v2359_v10 = vld [vmem:[#allocation2 + $0x8] sm:$0xff] }
 0x15a   : > { %2867 = vrot.lane.b32.xlu0 %v2540_v14, %s15952_s17  ;;  %1834 = vst.msk [vmem:[#allocation2 + $0xc0] sm:$0x3] %vm1826_vm5, %v1792_v20  ;;  %v1253_v27 = vpop.f32.mrf.mxu0  ;;  %v1572_v37 = vmax.f32 %v14444_v23, 0.0  ;;  %v14664_v16 = vld [vmem:[%s20280_s2 + $0xb8] sm:$0xff]   ;;  %v2390_v20 = vpack.c.bf16 %v2359_v10, %v2358_v9 }
 0x15b   : > { %2821 = vrot.lane.b32.xlu1 %v2445_v15, %s15952_s17  ;;  %2222 = vst.msk [vmem:[#allocation2 + $0xcd] sm:$0x1] %vm1958_vm4, %v2206_v21  ;;  %1966 = vst.msk [vmem:[#allocation2 + $0xc5] sm:$0x1] %vm1958_vm4, %v1949_v26  ;;  %v1570_v41 = vmax.f32 %v1253_v27, 0.0 }
 0x15c   : > { %2254 = vst.msk [vmem:[#allocation2 + $0xcb] sm:$0x10] %vm1860_vm2, %v2206_v21  ;;  %1998 = vst.msk [vmem:[#allocation2 + $0xc3] sm:$0x10] %vm1860_vm2, %v1949_v26  ;;  %v14447_v28 = vpop.f32.mrf.mxu0 }
 0x15d   : > { %2334 = vst.msk [vmem:[#allocation2 + $0xd0] sm:$0x3] %vm1826_vm5, %v2294_v24  ;;  %v1575_v30 = vmax.f32 %v14447_v28, 0.0  ;;  %v14665_v24 = vld [vmem:[%s20280_s2 + $0xf0] sm:$0xff]  }
 0x15e   : > { %1982 = vst.msk [vmem:[#allocation2 + $0xc4] sm:$0x4] %vm1843_vm1, %v1949_v26  ;;  %v1266_v31 = vpop.f32.mrf.mxu0 }
 0x15f   : > { %2014 = vst.msk [vmem:[#allocation2 + $0xc2] sm:$0x40] %vm1877_vm3, %v1949_v26  ;;  %v1667_v33 = vmax.f32 %v1571_v29, %v1575_v30  ;;  %v1573_v34 = vmax.f32 %v1266_v31, 0.0 }
 0x160   : > { %v14448_v36 = vpop.f32.mrf.mxu0 }
 0x161   : > { %v2047_v38 = vrot.slane %v1667_v33, 1  ;;  %v1665_v39 = vmax.f32 %v1569_v32, %v1573_v34  ;;  %v1576_v40 = vmax.f32 %v14448_v36, 0.0 }
 0x162   : > { %v1269_v42 = vpop.f32.mrf.mxu0 }
 0x163   : > { %v2079_v46 = vmax.f32 %v1667_v33, %v2047_v38  ;;  %v1721_v47 = vrot.slane %v1665_v39, 1  ;;  %v1668_v48 = vmax.f32 %v1572_v37, %v1576_v40  ;;  %v1574_v49 = vmax.f32 %v1269_v42, 0.0 }
 0x164   : > { %v2756_v44 = vld [vmem:[#allocation2 + $0xca] sm:$0xff]  ;;  %v14451_v53 = vpop.f32.mrf.mxu0 }
 0x165   : > { %v2516_v45 = vld [vmem:[#allocation2 + $0xc0] sm:$0xff]  ;;  %v2423_v52 = vld [vmem:[#allocation2 + $0xc9] sm:$0xff]  ;;  %2095 = vst.msk [vmem:[#allocation2 + $0xe1] sm:$0x1] %vm1958_vm4, %v2079_v46  ;;  %v1753_v60 = vmax.f32 %v1665_v39, %v1721_v47  ;;  %v2175_v61 = vrot.slane %v1668_v48, 1  ;;  %v1666_v62 = vmax.f32 %v1570_v41, %v1574_v49  ;;  %v1579_v13 = vmax.f32 %v14451_v53, 0.0 }
 0x166   : > { %v2755_v43 = vld [vmem:[#allocation2 + $0xc2] sm:$0xff]  ;;  %2111 = vst.msk [vmem:[#allocation2 + $0xe0] sm:$0x4] %vm1843_vm1, %v2079_v46  ;;  %v1282_v63 = vpop.f32.mrf.mxu0 }
 0x167   : > { %v2517_v50 = vld [vmem:[#allocation2 + $0xc8] sm:$0xff]  ;;  %v2781_v54 = vpack.c.bf16 %v2756_v44, %v2755_v43  ;;  %2127 = vst.msk [vmem:[#allocation2 + $0xdf] sm:$0x10] %vm1860_vm2, %v2079_v46  ;;  %v1796_v0 = vrot.slane %v1753_v60, %v16173_v25  ;;  %1869 = vst.msk [vmem:[#allocation2 + $0xd7] sm:$0x10] %vm1860_vm2, %v1753_v60  ;;  %v2207_v1 = vmax.f32 %v1668_v48, %v2175_v61  ;;  %v1918_v2 = vrot.slane %v1666_v62, 1 }
 0x168   : > { %v2422_v51 = vld [vmem:[#allocation2 + $0xc1] sm:$0xff]  ;;  %v2541_v55 = vpack.c.bf16 %v2517_v50, %v2516_v45  ;;  %2143 = vst.msk [vmem:[#allocation2 + $0xde] sm:$0x40] %vm1877_vm3, %v2079_v46  ;;  %1886 = vst.msk [vmem:[#allocation2 + $0xd6] sm:$0x40] %vm1877_vm3, %v1753_v60  ;;  %v14452_v5 = vpop.f32.mrf.mxu0  ;;  %v1577_v14 = vmax.f32 %v1282_v63, 0.0 }
 0x169   : > { %v2446_v56 = vpack.c.bf16 %v2423_v52, %v2422_v51  ;;  %14525 = vmatprep.mubr.msk.bf16.mxu0 %vm2346_vm6, %v2781_v54  ;;  %1852 = vst.msk [vmem:[#allocation2 + $0xd8] sm:$0x4] %vm1843_vm1, %v1753_v60  ;;  %2239 = vst.msk [vmem:[#allocation2 + $0xe4] sm:$0x4] %vm1843_vm1, %v2207_v1  ;;  %v2298_v6 = vrot.slane %v2207_v1, %v16184_v35  ;;  %v1950_v7 = vmax.f32 %v1666_v62, %v1918_v2  ;;  %v2456_v48 = vld [vmem:[#allocation2 + $0x1a] sm:$0xff]  ;;  %v2457_v49 = vld [vmem:[#allocation2 + $0x22] sm:$0xff] }
 0x16a   : > { %2869 = vrot.lane.b32.xlu0 %v2541_v55, %s15952_s17  ;;  %1835 = vst.msk [vmem:[#allocation2 + $0xd8] sm:$0x3] %vm1826_vm5, %v1796_v0  ;;  %v1285_v12 = vpop.f32.mrf.mxu0  ;;  %v1580_v17 = vmax.f32 %v14452_v5, 0.0  ;;  %v14666_v50 = vld [vmem:[%s20280_s2 + $0xb0] sm:$0xff]   ;;  %v2360_v55 = vld [vmem:[#allocation2 + $0x18] sm:$0xff]  ;;  %v16433_v59 = vpack.c.bf16 %v2457_v49, %v2456_v48  ;;  %v2361_v60 = vld [vmem:[#allocation2 + $0x20] sm:$0xff] }
 0x16b   : > { %2823 = vrot.lane.b32.xlu1 %v2446_v56, %s15952_s17  ;;  %v2856_v4 = vpop.permute.xlu0 %2855  ;;  %2223 = vst.msk [vmem:[#allocation2 + $0xe5] sm:$0x1] %vm1958_vm4, %v2207_v1  ;;  %1967 = vst.msk [vmem:[#allocation2 + $0xdd] sm:$0x1] %vm1958_vm4, %v1950_v7  ;;  %v1578_v31 = vmax.f32 %v1285_v12, 0.0  ;;  %v2391_v5 = vpack.c.bf16 %v2361_v60, %v2360_v55 }
 0x16c   : > { %2255 = vst.msk [vmem:[#allocation2 + $0xe3] sm:$0x10] %vm1860_vm2, %v2207_v1  ;;  %v3049_v8 = vsel %vm2346_vm6, %v2486_v3, %v2856_v4  ;;  %1999 = vst.msk [vmem:[#allocation2 + $0xdb] sm:$0x10] %vm1860_vm2, %v1950_v7  ;;  %v14455_v15 = vpop.f32.mrf.mxu0 }
 0x16d   : > { %3607 = vmatprep.mubr.bf16.mxu1 %v3049_v8  ;;  %2335 = vst.msk [vmem:[#allocation2 + $0xe8] sm:$0x3] %vm1826_vm5, %v2298_v6  ;;  %v1583_v18 = vmax.f32 %v14455_v15, 0.0  ;;  %v14667_v15 = vld [vmem:[%s20280_s2 + $0xe8] sm:$0xff]  }
 0x16e   : > { %1983 = vst.msk [vmem:[#allocation2 + $0xdc] sm:$0x4] %vm1843_vm1, %v1950_v7  ;;  %v1298_v19 = vpop.f32.mrf.mxu0 }
 0x16f   : > { %2015 = vst.msk [vmem:[#allocation2 + $0xda] sm:$0x40] %vm1877_vm3, %v1950_v7  ;;  %v1671_v21 = vmax.f32 %v1579_v13, %v1583_v18  ;;  %v1581_v22 = vmax.f32 %v1298_v19, 0.0 }
 0x170   : > { %v14456_v26 = vpop.f32.mrf.mxu0 }
 0x171   : > { %v2048_v28 = vrot.slane %v1671_v21, 1  ;;  %v1669_v29 = vmax.f32 %v1577_v14, %v1581_v22  ;;  %v1584_v30 = vmax.f32 %v14456_v26, 0.0 }
 0x172   : > { %v1301_v32 = vpop.f32.mrf.mxu0 }
 0x173   : > { %v2808_v23 = vpop.permute.xlu0 %2807  ;;  %v2080_v37 = vmax.f32 %v1671_v21, %v2048_v28  ;;  %v1722_v38 = vrot.slane %v1669_v29, 1  ;;  %v1672_v39 = vmax.f32 %v1580_v17, %v1584_v30  ;;  %v1582_v40 = vmax.f32 %v1301_v32, 0.0 }
 0x174   : > { %v2985_v27 = vsel %vm2346_vm6, %v2390_v20, %v2808_v23  ;;  %v2758_v34 = vld [vmem:[#allocation2 + $0xe2] sm:$0xff]  ;;  %v14459_v44 = vpop.f32.mrf.mxu0 }
 0x175   : > { %3608 = vmatmul.mubr.bf16.vlgmr.msra.gmra.mxu1 %v2985_v27  ;;  %v2518_v36 = vld [vmem:[#allocation2 + $0xd8] sm:$0xff]  ;;  %v2425_v43 = vld [vmem:[#allocation2 + $0xe1] sm:$0xff]  ;;  %2096 = vst.msk [vmem:[#allocation2 + $0xf9] sm:$0x1] %vm1958_vm4, %v2080_v37  ;;  %v1754_v51 = vmax.f32 %v1669_v29, %v1722_v38  ;;  %v2176_v52 = vrot.slane %v1672_v39, 1  ;;  %v1670_v53 = vmax.f32 %v1578_v31, %v1582_v40  ;;  %v1587_v3 = vmax.f32 %v14459_v44, 0.0 }
 0x176   : > { %v2757_v33 = vld [vmem:[#allocation2 + $0xda] sm:$0xff]  ;;  %13859 = vmatpush3.bf16.msra.mxu1 %v14664_v16  ;;  %2112 = vst.msk [vmem:[#allocation2 + $0xf8] sm:$0x4] %vm1843_vm1, %v2080_v37  ;;  %v1314_v54 = vpop.f32.mrf.mxu0  ;;  %v2458_v38 = vld [vmem:[#allocation2 + $0x32] sm:$0xff]  ;;  %v14668_v40 = vld [vmem:[%s20280_s2 + $0xa8] sm:$0xff]  }
 0x177   : > { %v2519_v41 = vld [vmem:[#allocation2 + $0xe0] sm:$0xff]  ;;  %13860 = vmatprep.subr.bf16.mxu1 %v14665_v24  ;;  %v2782_v45 = vpack.c.bf16 %v2758_v34, %v2757_v33  ;;  %2128 = vst.msk [vmem:[#allocation2 + $0xf7] sm:$0x10] %vm1860_vm2, %v2080_v37  ;;  %v1800_v56 = vrot.slane %v1754_v51, %v16173_v25  ;;  %1870 = vst.msk [vmem:[#allocation2 + $0xef] sm:$0x10] %vm1860_vm2, %v1754_v51  ;;  %v2208_v57 = vmax.f32 %v1672_v39, %v2176_v52  ;;  %v2362_v44 = vld [vmem:[#allocation2 + $0x30] sm:$0xff] }
 0x178   : > { %v2424_v42 = vld [vmem:[#allocation2 + $0xd9] sm:$0xff]  ;;  %v2542_v46 = vpack.c.bf16 %v2519_v41, %v2518_v36  ;;  %2144 = vst.msk [vmem:[#allocation2 + $0xf6] sm:$0x40] %vm1877_vm3, %v2080_v37  ;;  %1887 = vst.msk [vmem:[#allocation2 + $0xee] sm:$0x40] %vm1877_vm3, %v1754_v51  ;;  %v1919_v58 = vrot.slane %v1670_v53, 1  ;;  %v14460_v62 = vpop.f32.mrf.mxu0 }
 0x179   : > { %v2447_v47 = vpack.c.bf16 %v2425_v43, %v2424_v42  ;;  %14526 = vmatmul.mubr.msk.bf16.gmra.mxu0 %vm2346_vm6, %v2782_v45  ;;  %1853 = vst.msk [vmem:[#allocation2 + $0xf0] sm:$0x4] %vm1843_vm1, %v1754_v51  ;;  %2240 = vst.msk [vmem:[#allocation2 + $0xfc] sm:$0x4] %vm1843_vm1, %v2208_v57  ;;  %v2302_v63 = vrot.slane %v2208_v57, %v16184_v35  ;;  %v1585_v4 = vmax.f32 %v1314_v54, 0.0  ;;  %v1588_v8 = vmax.f32 %v14460_v62, 0.0 }
 0x17a   : > { %2871 = vrot.lane.b32.xlu0 %v2542_v46, %s15952_s17  ;;  %13861 = vmatpush3.bf16.msra.mxu1 %v14666_v50  ;;  %1836 = vst.msk [vmem:[#allocation2 + $0xf0] sm:$0x3] %vm1826_vm5, %v1800_v56  ;;  %v1951_v0 = vmax.f32 %v1670_v53, %v1919_v58  ;;  %v1317_v2 = vpop.f32.mrf.mxu0  ;;  %v2459_v39 = vld [vmem:[#allocation2 + $0x3a] sm:$0xff] }
 0x17b   : > { %2825 = vrot.lane.b32.xlu1 %v2447_v47, %s15952_s17  ;;  %2224 = vst.msk [vmem:[#allocation2 + $0xfd] sm:$0x1] %vm1958_vm4, %v2208_v57  ;;  %13862 = vmatprep.subr.bf16.mxu1 %v14667_v15  ;;  %v1586_v20 = vmax.f32 %v1317_v2, 0.0  ;;  %v2363_v45 = vld [vmem:[#allocation2 + $0x38] sm:$0xff]  ;;  %v16468_v51 = vpack.c.bf16 %v2459_v39, %v2458_v38 }
 0x17c   : > { %v2858_v61 = vpop.permute.xlu1 %2857  ;;  %2256 = vst.msk [vmem:[#allocation2 + $0xfb] sm:$0x10] %vm1860_vm2, %v2208_v57  ;;  %2000 = vst.msk [vmem:[#allocation2 + $0xf3] sm:$0x10] %vm1860_vm2, %v1951_v0  ;;  %v14463_v7 = vpop.f32.mrf.mxu0  ;;  %v2392_v54 = vpack.c.bf16 %v2363_v45, %v2362_v44 }
 0x17d   : > { %v3053_v1 = vsel %vm2346_vm6, %v16433_v59, %v2858_v61  ;;  %2336 = vst.msk [vmem:[#allocation2 + $0x100] sm:$0x3] %vm1826_vm5, %v2302_v63  ;;  %v1591_v9 = vmax.f32 %v14463_v7, 0.0 }
 0x17e   : > { %3615 = vmatprep.mubr.bf16.mxu1 %v3053_v1  ;;  %1968 = vst.msk [vmem:[#allocation2 + $0xf5] sm:$0x1] %vm1958_vm4, %v1951_v0  ;;  %v1330_v12 = vpop.f32.mrf.mxu0  ;;  %13863 = vmatpush3.bf16.msra.mxu1 %v14668_v40 }
 0x17f   : > { %1984 = vst.msk [vmem:[#allocation2 + $0xf4] sm:$0x4] %vm1843_vm1, %v1951_v0  ;;  %v1675_v13 = vmax.f32 %v1587_v3, %v1591_v9  ;;  %v1589_v14 = vmax.f32 %v1330_v12, 0.0 }
 0x180   : > { %2016 = vst.msk [vmem:[#allocation2 + $0xf2] sm:$0x40] %vm1877_vm3, %v1951_v0  ;;  %v2810_v6 = vpop.permute.xlu1 %2809  ;;  %v14464_v16 = vpop.f32.mrf.mxu0 }
 0x181   : > { %v2989_v10 = vsel %vm2346_vm6, %v2391_v5, %v2810_v6  ;;  %v2049_v17 = vrot.slane %v1675_v13, 1  ;;  %v1673_v18 = vmax.f32 %v1585_v4, %v1589_v14  ;;  %v1592_v19 = vmax.f32 %v14464_v16, 0.0  ;;  %v14669_v5 = vld [vmem:[%s20280_s2 + $0xe0] sm:$0xff]  }
 0x182   : > { %3616 = vmatmul.mubr.bf16.gmra.mxu1 %v2989_v10  ;;  %v1333_v21 = vpop.f32.mrf.mxu0  ;;  %13864 = vmatprep.subr.bf16.mxu1 %v14669_v5 }
 0x183   : > { %v2081_v26 = vmax.f32 %v1675_v13, %v2049_v17  ;;  %v1723_v27 = vrot.slane %v1673_v18, 1  ;;  %v1676_v28 = vmax.f32 %v1588_v8, %v1592_v19  ;;  %v1590_v29 = vmax.f32 %v1333_v21, 0.0 }
 0x184   : > { %v2760_v23 = vld [vmem:[#allocation2 + $0xfa] sm:$0xff]  ;;  %v14467_v33 = vpop.f32.mrf.mxu0  ;;  %v2812_v48 = vpop.permute.xlu1 %2811 }
 0x185   : > { %v2427_v32 = vld [vmem:[#allocation2 + $0xf9] sm:$0xff]  ;;  %2097 = vst.msk [vmem:[#allocation2 + $0x111] sm:$0x1] %vm1958_vm4, %v2081_v26  ;;  %v1755_v41 = vmax.f32 %v1673_v18, %v1723_v27  ;;  %v2177_v42 = vrot.slane %v1676_v28, 1  ;;  %v1674_v43 = vmax.f32 %v1586_v20, %v1590_v29  ;;  %v2993_v60 = vsel %vm2346_vm6, %v2392_v54, %v2812_v48 }
 0x186   : > { %v2520_v24 = vld [vmem:[#allocation2 + $0xf0] sm:$0xff]  ;;  %2113 = vst.msk [vmem:[#allocation2 + $0x110] sm:$0x4] %vm1843_vm1, %v2081_v26  ;;  %v1346_v46 = vpop.f32.mrf.mxu0  ;;  %v1595_v61 = vmax.f32 %v14467_v33, 0.0 }
 0x187   : > { %v2759_v22 = vld [vmem:[#allocation2 + $0xf2] sm:$0xff]  ;;  %2129 = vst.msk [vmem:[#allocation2 + $0x10f] sm:$0x10] %vm1860_vm2, %v2081_v26  ;;  %v1804_v47 = vrot.slane %v1755_v41, %v16173_v25  ;;  %1871 = vst.msk [vmem:[#allocation2 + $0x107] sm:$0x10] %vm1860_vm2, %v1755_v41  ;;  %v2209_v49 = vmax.f32 %v1676_v28, %v2177_v42  ;;  %v1920_v50 = vrot.slane %v1674_v43, 1 }
 0x188   : > { %v2521_v30 = vld [vmem:[#allocation2 + $0xf8] sm:$0xff]  ;;  %v16451_v34 = vpack.c.bf16 %v2760_v23, %v2759_v22  ;;  %2145 = vst.msk [vmem:[#allocation2 + $0x10e] sm:$0x40] %vm1877_vm3, %v2081_v26  ;;  %1888 = vst.msk [vmem:[#allocation2 + $0x106] sm:$0x40] %vm1877_vm3, %v1755_v41  ;;  %v14468_v53 = vpop.f32.mrf.mxu0  ;;  %v1593_v62 = vmax.f32 %v1346_v46, 0.0 }
 0x189   : > { %v2426_v31 = vld [vmem:[#allocation2 + $0xf1] sm:$0xff]  ;;  %v2543_v36 = vpack.c.bf16 %v2521_v30, %v2520_v24  ;;  %1854 = vst.msk [vmem:[#allocation2 + $0x108] sm:$0x4] %vm1843_vm1, %v1755_v41  ;;  %2241 = vst.msk [vmem:[#allocation2 + $0x114] sm:$0x4] %vm1843_vm1, %v2209_v49  ;;  %v2306_v55 = vrot.slane %v2209_v49, %v16184_v35  ;;  %v1952_v56 = vmax.f32 %v1674_v43, %v1920_v50  ;;  %v1596_v0 = vmax.f32 %v14468_v53, 0.0 }
 0x18a   : > { %v2448_v37 = vpack.c.bf16 %v2427_v32, %v2426_v31  ;;  %14529 = vmatprep.mubr.msk.bf16.mxu0 %vm2346_vm6, %v16451_v34  ;;  %1837 = vst.msk [vmem:[#allocation2 + $0x108] sm:$0x3] %vm1826_vm5, %v1804_v47  ;;  %v1349_v58 = vpop.f32.mrf.mxu0  ;;  %v2460_v28 = vld [vmem:[#allocation2 + $0x4a] sm:$0xff]  ;;  %v2461_v29 = vld [vmem:[#allocation2 + $0x52] sm:$0xff]  ;;  %v14670_v30 = vld [vmem:[%s20280_s2 + $0xa0] sm:$0xff]  }
 0x18b   : > { %2873 = vrot.lane.b32.xlu0 %v2543_v36, %s15952_s17  ;;  %2225 = vst.msk [vmem:[#allocation2 + $0x115] sm:$0x1] %vm1958_vm4, %v2209_v49  ;;  %1969 = vst.msk [vmem:[#allocation2 + $0x10d] sm:$0x1] %vm1958_vm4, %v1952_v56  ;;  %v1594_v10 = vmax.f32 %v1349_v58, 0.0  ;;  %v2364_v36 = vld [vmem:[#allocation2 + $0x48] sm:$0xff]  ;;  %v16506_v43 = vpack.c.bf16 %v2461_v29, %v2460_v28  ;;  %13865 = vmatpush3.bf16.msra.mxu1 %v14670_v30 }
 0x18c   : > { %2827 = vrot.lane.b32.xlu1 %v2448_v37, %s15952_s17  ;;  %v2860_v52 = vpop.permute.xlu0 %2859  ;;  %2257 = vst.msk [vmem:[#allocation2 + $0x113] sm:$0x10] %vm1860_vm2, %v2209_v49  ;;  %2001 = vst.msk [vmem:[#allocation2 + $0x10b] sm:$0x10] %vm1860_vm2, %v1952_v56  ;;  %v14471_v63 = vpop.f32.mrf.mxu0  ;;  %v2365_v37 = vld [vmem:[#allocation2 + $0x50] sm:$0xff]  ;;  %v2366_v29 = vld [vmem:[#allocation2 + $0x60] sm:$0xff] }
 0x18d   : > { %v3057_v57 = vsel %vm2346_vm6, %v16468_v51, %v2860_v52  ;;  %2337 = vst.msk [vmem:[#allocation2 + $0x118] sm:$0x3] %vm1826_vm5, %v2306_v55  ;;  %v1599_v1 = vmax.f32 %v14471_v63, 0.0  ;;  %v2814_v39 = vpop.permute.xlu1 %2813  ;;  %v2393_v46 = vpack.c.bf16 %v2365_v37, %v2364_v36  ;;  %v2367_v30 = vld [vmem:[#allocation2 + $0x68] sm:$0xff] }
 0x18e   : > { %3623 = vmatprep.mubr.bf16.mxu1 %v3057_v57  ;;  %1985 = vst.msk [vmem:[#allocation2 + $0x10c] sm:$0x4] %vm1843_vm1, %v1952_v56  ;;  %v1362_v2 = vpop.f32.mrf.mxu0 }
 0x18f   : > { %2017 = vst.msk [vmem:[#allocation2 + $0x10a] sm:$0x40] %vm1877_vm3, %v1952_v56  ;;  %3624 = vmatmul.mubr.bf16.gmra.mxu1 %v2993_v60  ;;  %v1679_v3 = vmax.f32 %v1595_v61, %v1599_v1  ;;  %v1597_v4 = vmax.f32 %v1362_v2, 0.0  ;;  %v2997_v52 = vsel %vm2346_vm6, %v2393_v46, %v2814_v39  ;;  %v14671_v56 = vld [vmem:[%s20280_s2 + $0xd8] sm:$0xff]  }
 0x190   : > { %v14472_v6 = vpop.f32.mrf.mxu0  ;;  %13866 = vmatprep.subr.bf16.mxu1 %v14671_v56 }
 0x191   : > { %v2050_v7 = vrot.slane %v1679_v3, 1  ;;  %v1677_v8 = vmax.f32 %v1593_v62, %v1597_v4  ;;  %v1600_v9 = vmax.f32 %v14472_v6, 0.0 }
 0x192   : > { %v1365_v12 = vpop.f32.mrf.mxu0 }
 0x193   : > { %v2082_v16 = vmax.f32 %v1679_v3, %v2050_v7  ;;  %v1724_v17 = vrot.slane %v1677_v8, 1  ;;  %v1680_v18 = vmax.f32 %v1596_v0, %v1600_v9  ;;  %v1598_v19 = vmax.f32 %v1365_v12, 0.0  ;;  %v14672_v3 = vld [vmem:[%s20280_s2 + $0x98] sm:$0xff]  }
 0x194   : > { %v2762_v14 = vld [vmem:[#allocation2 + $0x112] sm:$0xff]  ;;  %v14475_v23 = vpop.f32.mrf.mxu0  ;;  %13867 = vmatpush3.bf16.msra.mxu1 %v14672_v3 }
 0x195   : > { %v2522_v15 = vld [vmem:[#allocation2 + $0x108] sm:$0xff]  ;;  %v2429_v22 = vld [vmem:[#allocation2 + $0x111] sm:$0xff]  ;;  %2098 = vst.msk [vmem:[#allocation2 + $0x129] sm:$0x1] %vm1958_vm4, %v2082_v16  ;;  %v1756_v31 = vmax.f32 %v1677_v8, %v1724_v17  ;;  %v2178_v32 = vrot.slane %v1680_v18, 1  ;;  %v1678_v33 = vmax.f32 %v1594_v10, %v1598_v19  ;;  %v1603_v53 = vmax.f32 %v14475_v23, 0.0 }
 0x196   : > { %v2761_v13 = vld [vmem:[#allocation2 + $0x10a] sm:$0xff]  ;;  %2114 = vst.msk [vmem:[#allocation2 + $0x128] sm:$0x4] %vm1843_vm1, %v2082_v16  ;;  %v1378_v38 = vpop.f32.mrf.mxu0 }
 0x197   : > { %v2523_v20 = vld [vmem:[#allocation2 + $0x110] sm:$0xff]  ;;  %v16486_v24 = vpack.c.bf16 %v2762_v14, %v2761_v13  ;;  %2130 = vst.msk [vmem:[#allocation2 + $0x127] sm:$0x10] %vm1860_vm2, %v2082_v16  ;;  %v1808_v40 = vrot.slane %v1756_v31, %v16173_v25  ;;  %1872 = vst.msk [vmem:[#allocation2 + $0x11f] sm:$0x10] %vm1860_vm2, %v1756_v31  ;;  %v2210_v41 = vmax.f32 %v1680_v18, %v2178_v32  ;;  %v1921_v42 = vrot.slane %v1678_v33, 1 }
 0x198   : > { %v2428_v21 = vld [vmem:[#allocation2 + $0x109] sm:$0xff]  ;;  %v2544_v26 = vpack.c.bf16 %v2523_v20, %v2522_v15  ;;  %2146 = vst.msk [vmem:[#allocation2 + $0x126] sm:$0x40] %vm1877_vm3, %v2082_v16  ;;  %1889 = vst.msk [vmem:[#allocation2 + $0x11e] sm:$0x40] %vm1877_vm3, %v1756_v31  ;;  %v14476_v45 = vpop.f32.mrf.mxu0  ;;  %v1601_v58 = vmax.f32 %v1378_v38, 0.0 }
 0x199   : > { %v16488_v27 = vpack.c.bf16 %v2429_v22, %v2428_v21  ;;  %14530 = vmatmul.mubr.msk.bf16.gmra.mxu0 %vm2346_vm6, %v16486_v24  ;;  %1855 = vst.msk [vmem:[#allocation2 + $0x120] sm:$0x4] %vm1843_vm1, %v1756_v31  ;;  %2242 = vst.msk [vmem:[#allocation2 + $0x12c] sm:$0x4] %vm1843_vm1, %v2210_v41  ;;  %v2310_v47 = vrot.slane %v2210_v41, %v16184_v35  ;;  %v1953_v48 = vmax.f32 %v1678_v33, %v1921_v42  ;;  %v2462_v21 = vld [vmem:[#allocation2 + $0x62] sm:$0xff]  ;;  %v2463_v22 = vld [vmem:[#allocation2 + $0x6a] sm:$0xff] }
 0x19a   : > { %2875 = vrot.lane.b32.xlu0 %v2544_v26, %s15952_s17  ;;  %1838 = vst.msk [vmem:[#allocation2 + $0x120] sm:$0x3] %vm1826_vm5, %v1808_v40  ;;  %v1381_v50 = vpop.f32.mrf.mxu0  ;;  %v1604_v63 = vmax.f32 %v14476_v45, 0.0  ;;  %v16547_v38 = vpack.c.bf16 %v2463_v22, %v2462_v21  ;;  %v2465_v21 = vld [vmem:[#allocation2 + $0x82] sm:$0xff] }
 0x19b   : > { %2829 = vrot.lane.b32.xlu1 %v16488_v27, %s15952_s17  ;;  %2226 = vst.msk [vmem:[#allocation2 + $0x12d] sm:$0x1] %vm1958_vm4, %v2210_v41  ;;  %1970 = vst.msk [vmem:[#allocation2 + $0x125] sm:$0x1] %vm1958_vm4, %v1953_v48  ;;  %v1602_v4 = vmax.f32 %v1381_v50, 0.0 }
 0x19c   : > { %v2862_v44 = vpop.permute.xlu0 %2861  ;;  %2258 = vst.msk [vmem:[#allocation2 + $0x12b] sm:$0x10] %vm1860_vm2, %v2210_v41  ;;  %2002 = vst.msk [vmem:[#allocation2 + $0x123] sm:$0x10] %vm1860_vm2, %v1953_v48  ;;  %v14479_v54 = vpop.f32.mrf.mxu0  ;;  %v2394_v41 = vpack.c.bf16 %v2367_v30, %v2366_v29  ;;  %v2369_v29 = vld [vmem:[#allocation2 + $0x80] sm:$0xff] }
 0x19d   : > { %v3061_v49 = vsel %vm2346_vm6, %v16506_v43, %v2862_v44  ;;  %2338 = vst.msk [vmem:[#allocation2 + $0x130] sm:$0x3] %vm1826_vm5, %v2310_v47  ;;  %v1607_v55 = vmax.f32 %v14479_v54, 0.0  ;;  %v2816_v32 = vpop.permute.xlu1 %2815 }
 0x19e   : > { %3631 = vmatprep.mubr.bf16.mxu1 %v3061_v49  ;;  %1986 = vst.msk [vmem:[#allocation2 + $0x124] sm:$0x4] %vm1843_vm1, %v1953_v48  ;;  %v1394_v57 = vpop.f32.mrf.mxu0  ;;  %v3001_v47 = vsel %vm2346_vm6, %v2394_v41, %v2816_v32 }
 0x19f   : > { %2018 = vst.msk [vmem:[#allocation2 + $0x122] sm:$0x40] %vm1877_vm3, %v1953_v48  ;;  %3632 = vmatmul.mubr.bf16.gmra.mxu1 %v2997_v52  ;;  %v1683_v60 = vmax.f32 %v1603_v53, %v1607_v55  ;;  %v1605_v61 = vmax.f32 %v1394_v57, 0.0 }
 0x1a0   : > { %v14480_v62 = vpop.f32.mrf.mxu0 }
 0x1a1   : > { %v2051_v0 = vrot.slane %v1683_v60, 1  ;;  %v1681_v1 = vmax.f32 %v1601_v58, %v1605_v61  ;;  %v1608_v2 = vmax.f32 %v14480_v62, 0.0  ;;  %v14673_v62 = vld [vmem:[%s20280_s2 + $0xd0] sm:$0xff]  }
 0x1a2   : > { %v1397_v5 = vpop.f32.mrf.mxu0  ;;  %13868 = vmatprep.subr.bf16.mxu1 %v14673_v62 }
 0x1a3   : > { %v2083_v9 = vmax.f32 %v1683_v60, %v2051_v0  ;;  %v1725_v10 = vrot.slane %v1681_v1, 1  ;;  %v1684_v12 = vmax.f32 %v1604_v63, %v1608_v2  ;;  %v1606_v13 = vmax.f32 %v1397_v5, 0.0  ;;  %v14674_v63 = vld [vmem:[%s20280_s2 + $0x90] sm:$0xff]  }
 0x1a4   : > { %v2764_v7 = vld [vmem:[#allocation2 + $0x12a] sm:$0xff]  ;;  %v14483_v17 = vpop.f32.mrf.mxu0  ;;  %13869 = vmatpush3.bf16.msra.mxu1 %v14674_v63 }
 0x1a5   : > { %v2524_v8 = vld [vmem:[#allocation2 + $0x120] sm:$0xff]  ;;  %v2431_v16 = vld [vmem:[#allocation2 + $0x129] sm:$0xff]  ;;  %2099 = vst.msk [vmem:[#allocation2 + $0x141] sm:$0x1] %vm1958_vm4, %v2083_v9  ;;  %v1757_v23 = vmax.f32 %v1681_v1, %v1725_v10  ;;  %v2179_v26 = vrot.slane %v1684_v12, 1  ;;  %v1682_v28 = vmax.f32 %v1602_v4, %v1606_v13  ;;  %v1611_v48 = vmax.f32 %v14483_v17, 0.0 }
 0x1a6   : > { %v2763_v6 = vld [vmem:[#allocation2 + $0x122] sm:$0xff]  ;;  %2115 = vst.msk [vmem:[#allocation2 + $0x140] sm:$0x4] %vm1843_vm1, %v2083_v9  ;;  %v1410_v31 = vpop.f32.mrf.mxu0  ;;  %v2464_v17 = vld [vmem:[#allocation2 + $0x7a] sm:$0xff] }
 0x1a7   : > { %v2525_v14 = vld [vmem:[#allocation2 + $0x128] sm:$0xff]  ;;  %v16527_v18 = vpack.c.bf16 %v2764_v7, %v2763_v6  ;;  %2131 = vst.msk [vmem:[#allocation2 + $0x13f] sm:$0x10] %vm1860_vm2, %v2083_v9  ;;  %v1812_v33 = vrot.slane %v1757_v23, %v16173_v25  ;;  %1873 = vst.msk [vmem:[#allocation2 + $0x137] sm:$0x10] %vm1860_vm2, %v1757_v23  ;;  %v2211_v36 = vmax.f32 %v1684_v12, %v2179_v26  ;;  %v1922_v37 = vrot.slane %v1682_v28, 1 }
 0x1a8   : > { %v2430_v15 = vld [vmem:[#allocation2 + $0x121] sm:$0xff]  ;;  %v16529_v19 = vpack.c.bf16 %v2525_v14, %v2524_v8  ;;  %2147 = vst.msk [vmem:[#allocation2 + $0x13e] sm:$0x40] %vm1877_vm3, %v2083_v9  ;;  %1890 = vst.msk [vmem:[#allocation2 + $0x136] sm:$0x40] %vm1877_vm3, %v1757_v23  ;;  %v14484_v40 = vpop.f32.mrf.mxu0  ;;  %v1609_v50 = vmax.f32 %v1410_v31, 0.0 }
 0x1a9   : > { %v16531_v20 = vpack.c.bf16 %v2431_v16, %v2430_v15  ;;  %14533 = vmatprep.mubr.msk.bf16.mxu0 %vm2346_vm6, %v16527_v18  ;;  %1856 = vst.msk [vmem:[#allocation2 + $0x138] sm:$0x4] %vm1843_vm1, %v1757_v23  ;;  %2243 = vst.msk [vmem:[#allocation2 + $0x144] sm:$0x4] %vm1843_vm1, %v2211_v36  ;;  %v2314_v42 = vrot.slane %v2211_v36, %v16184_v35  ;;  %v1954_v44 = vmax.f32 %v1682_v28, %v1922_v37  ;;  %v2368_v28 = vld [vmem:[#allocation2 + $0x78] sm:$0xff] }
 0x1aa   : > { %2877 = vrot.lane.b32.xlu0 %v16529_v19, %s15952_s17  ;;  %1839 = vst.msk [vmem:[#allocation2 + $0x138] sm:$0x3] %vm1826_vm5, %v1812_v33  ;;  %v1413_v46 = vpop.f32.mrf.mxu0  ;;  %v1612_v54 = vmax.f32 %v14484_v40, 0.0  ;;  %v16588_v37 = vpack.c.bf16 %v2465_v21, %v2464_v17  ;;  %v2395_v41 = vpack.c.bf16 %v2369_v29, %v2368_v28 }
 0x1ab   : > { %2831 = vrot.lane.b32.xlu1 %v16531_v20, %s15952_s17  ;;  %2227 = vst.msk [vmem:[#allocation2 + $0x145] sm:$0x1] %vm1958_vm4, %v2211_v36  ;;  %1971 = vst.msk [vmem:[#allocation2 + $0x13d] sm:$0x1] %vm1958_vm4, %v1954_v44  ;;  %v1610_v0 = vmax.f32 %v1413_v46, 0.0 }
 0x1ac   : > { %v2864_v39 = vpop.permute.xlu0 %2863  ;;  %2259 = vst.msk [vmem:[#allocation2 + $0x143] sm:$0x10] %vm1860_vm2, %v2211_v36  ;;  %2003 = vst.msk [vmem:[#allocation2 + $0x13b] sm:$0x10] %vm1860_vm2, %v1954_v44  ;;  %v14487_v49 = vpop.f32.mrf.mxu0 }
 0x1ad   : > { %v3065_v45 = vsel %vm2346_vm6, %v16547_v38, %v2864_v39  ;;  %2339 = vst.msk [vmem:[#allocation2 + $0x148] sm:$0x3] %vm1826_vm5, %v2314_v42  ;;  %v1615_v52 = vmax.f32 %v14487_v49, 0.0  ;;  %v2818_v31 = vpop.permute.xlu1 %2817 }
 0x1ae   : > { %3639 = vmatprep.mubr.bf16.mxu1 %v3065_v45  ;;  %1987 = vst.msk [vmem:[#allocation2 + $0x13c] sm:$0x4] %vm1843_vm1, %v1954_v44  ;;  %v1426_v53 = vpop.f32.mrf.mxu0 }
 0x1af   : > { %2019 = vst.msk [vmem:[#allocation2 + $0x13a] sm:$0x40] %vm1877_vm3, %v1954_v44  ;;  %3640 = vmatmul.mubr.bf16.gmra.mxu1 %v3001_v47  ;;  %v1687_v55 = vmax.f32 %v1611_v48, %v1615_v52  ;;  %v1613_v56 = vmax.f32 %v1426_v53, 0.0  ;;  %v3005_v47 = vsel %vm2346_vm6, %v2395_v41, %v2818_v31  ;;  %v2370_v31 = vld [vmem:[#allocation2 + $0x90] sm:$0xff] }
 0x1b0   : > { %v14488_v57 = vpop.f32.mrf.mxu0 }
 0x1b1   : > { %v2052_v58 = vrot.slane %v1687_v55, 1  ;;  %v1685_v60 = vmax.f32 %v1609_v50, %v1613_v56  ;;  %v1616_v61 = vmax.f32 %v14488_v57, 0.0 }
 0x1b2   : > { %v1429_v1 = vpop.f32.mrf.mxu0 }
 0x1b3   : > { %v2084_v5 = vmax.f32 %v1687_v55, %v2052_v58  ;;  %v1726_v6 = vrot.slane %v1685_v60, 1  ;;  %v1688_v7 = vmax.f32 %v1612_v54, %v1616_v61  ;;  %v1614_v8 = vmax.f32 %v1429_v1, 0.0 }
 0x1b4   : > { %v2766_v3 = vld [vmem:[#allocation2 + $0x142] sm:$0xff]  ;;  %v14491_v13 = vpop.f32.mrf.mxu0 }
 0x1b5   : > { %v2526_v4 = vld [vmem:[#allocation2 + $0x138] sm:$0xff]  ;;  %v2433_v12 = vld [vmem:[#allocation2 + $0x141] sm:$0xff]  ;;  %2100 = vst.msk [vmem:[#allocation2 + $0x159] sm:$0x1] %vm1958_vm4, %v2084_v5  ;;  %v1758_v22 = vmax.f32 %v1685_v60, %v1726_v6  ;;  %v2180_v23 = vrot.slane %v1688_v7, 1  ;;  %v1686_v26 = vmax.f32 %v1610_v0, %v1614_v8  ;;  %v1619_v48 = vmax.f32 %v14491_v13, 0.0 }
 0x1b6   : > { %v2765_v2 = vld [vmem:[#allocation2 + $0x13a] sm:$0xff]  ;;  %2116 = vst.msk [vmem:[#allocation2 + $0x158] sm:$0x4] %vm1843_vm1, %v2084_v5  ;;  %v1442_v30 = vpop.f32.mrf.mxu0 }
 0x1b7   : > { %v2527_v9 = vld [vmem:[#allocation2 + $0x140] sm:$0xff]  ;;  %v16568_v14 = vpack.c.bf16 %v2766_v3, %v2765_v2  ;;  %2132 = vst.msk [vmem:[#allocation2 + $0x157] sm:$0x10] %vm1860_vm2, %v2084_v5  ;;  %v1816_v32 = vrot.slane %v1758_v22, %v16173_v25  ;;  %1874 = vst.msk [vmem:[#allocation2 + $0x14f] sm:$0x10] %vm1860_vm2, %v1758_v22  ;;  %v2212_v33 = vmax.f32 %v1688_v7, %v2180_v23  ;;  %v1923_v36 = vrot.slane %v1686_v26, 1 }
 0x1b8   : > { %v2432_v10 = vld [vmem:[#allocation2 + $0x139] sm:$0xff]  ;;  %v16570_v15 = vpack.c.bf16 %v2527_v9, %v2526_v4  ;;  %2148 = vst.msk [vmem:[#allocation2 + $0x156] sm:$0x40] %vm1877_vm3, %v2084_v5  ;;  %1891 = vst.msk [vmem:[#allocation2 + $0x14e] sm:$0x40] %vm1877_vm3, %v1758_v22  ;;  %v14492_v40 = vpop.f32.mrf.mxu0  ;;  %v1617_v50 = vmax.f32 %v1442_v30, 0.0 }
 0x1b9   : > { %v16572_v16 = vpack.c.bf16 %v2433_v12, %v2432_v10  ;;  %14534 = vmatmul.mubr.msk.bf16.gmra.mxu0 %vm2346_vm6, %v16568_v14  ;;  %1857 = vst.msk [vmem:[#allocation2 + $0x150] sm:$0x4] %vm1843_vm1, %v1758_v22  ;;  %2244 = vst.msk [vmem:[#allocation2 + $0x15c] sm:$0x4] %vm1843_vm1, %v2212_v33  ;;  %v2318_v42 = vrot.slane %v2212_v33, %v16184_v35  ;;  %v1955_v44 = vmax.f32 %v1686_v26, %v1923_v36  ;;  %v2466_v3 = vld [vmem:[#allocation2 + $0x92] sm:$0xff]  ;;  %v2467_v22 = vld [vmem:[#allocation2 + $0x9a] sm:$0xff] }
 0x1ba   : > { %2879 = vrot.lane.b32.xlu0 %v16570_v15, %s15952_s17  ;;  %1840 = vst.msk [vmem:[#allocation2 + $0x150] sm:$0x3] %vm1826_vm5, %v1816_v32  ;;  %v1445_v46 = vpop.f32.mrf.mxu0  ;;  %v1620_v54 = vmax.f32 %v14492_v40, 0.0  ;;  %v14675_v23 = vld [vmem:[%s20280_s2 + $0xc8] sm:$0xff]   ;;  %v2371_v32 = vld [vmem:[#allocation2 + $0x98] sm:$0xff] }
 0x1bb   : > { %2833 = vrot.lane.b32.xlu1 %v16572_v16, %s15952_s17  ;;  %2228 = vst.msk [vmem:[#allocation2 + $0x15d] sm:$0x1] %vm1958_vm4, %v2212_v33  ;;  %1972 = vst.msk [vmem:[#allocation2 + $0x155] sm:$0x1] %vm1958_vm4, %v1955_v44  ;;  %v1618_v62 = vmax.f32 %v1445_v46, 0.0  ;;  %v14676_v26 = vld [vmem:[%s20280_s2 + $0x88] sm:$0xff]   ;;  %13870 = vmatprep.subr.bf16.mxu1 %v14675_v23  ;;  %v16631_v46 = vpack.c.bf16 %v2371_v32, %v2370_v31 }
 0x1bc   : > { %v2866_v39 = vpop.permute.xlu0 %2865  ;;  %2260 = vst.msk [vmem:[#allocation2 + $0x15b] sm:$0x10] %vm1860_vm2, %v2212_v33  ;;  %2004 = vst.msk [vmem:[#allocation2 + $0x153] sm:$0x10] %vm1860_vm2, %v1955_v44  ;;  %v14495_v49 = vpop.f32.mrf.mxu0  ;;  %13871 = vmatpush3.bf16.msra.mxu1 %v14676_v26  ;;  %v2372_v32 = vld [vmem:[#allocation2 + $0xa8] sm:$0xff] }
 0x1bd   : > { %v3069_v45 = vsel %vm2346_vm6, %v16588_v37, %v2866_v39  ;;  %2340 = vst.msk [vmem:[#allocation2 + $0x160] sm:$0x3] %vm1826_vm5, %v2318_v42  ;;  %v1623_v52 = vmax.f32 %v14495_v49, 0.0  ;;  %v2820_v36 = vpop.permute.xlu1 %2819  ;;  %v16629_v42 = vpack.c.bf16 %v2467_v22, %v2466_v3 }
 0x1be   : > { %3647 = vmatprep.mubr.bf16.mxu1 %v3069_v45  ;;  %1988 = vst.msk [vmem:[#allocation2 + $0x154] sm:$0x4] %vm1843_vm1, %v1955_v44  ;;  %v1458_v53 = vpop.f32.mrf.mxu0 }
 0x1bf   : > { %2020 = vst.msk [vmem:[#allocation2 + $0x152] sm:$0x40] %vm1877_vm3, %v1955_v44  ;;  %3648 = vmatmul.mubr.bf16.gmra.mxu1 %v3005_v47  ;;  %v1691_v55 = vmax.f32 %v1619_v48, %v1623_v52  ;;  %v1621_v56 = vmax.f32 %v1458_v53, 0.0  ;;  %v3009_v52 = vsel %vm2346_vm6, %v16631_v46, %v2820_v36  ;;  %v14678_v36 = vld [vmem:[%s20280_s2 + $0x80] sm:$0xff]  }
 0x1c0   : > { %v14496_v57 = vpop.f32.mrf.mxu0 }
 0x1c1   : > { %v2053_v58 = vrot.slane %v1691_v55, 1  ;;  %v1689_v60 = vmax.f32 %v1617_v50, %v1621_v56  ;;  %v1624_v61 = vmax.f32 %v14496_v57, 0.0 }
 0x1c2   : > { %v1461_v63 = vpop.f32.mrf.mxu0 }
 0x1c3   : > { %v2085_v4 = vmax.f32 %v1691_v55, %v2053_v58  ;;  %v1727_v5 = vrot.slane %v1689_v60, 1  ;;  %v1692_v6 = vmax.f32 %v1620_v54, %v1624_v61  ;;  %v1622_v7 = vmax.f32 %v1461_v63, 0.0 }
 0x1c4   : > { %v2768_v1 = vld [vmem:[#allocation2 + $0x15a] sm:$0xff]  ;;  %v14499_v12 = vpop.f32.mrf.mxu0 }
 0x1c5   : > { %v2528_v2 = vld [vmem:[#allocation2 + $0x150] sm:$0xff]  ;;  %v2435_v10 = vld [vmem:[#allocation2 + $0x159] sm:$0xff]  ;;  %2101 = vst.msk [vmem:[#allocation2 + $0x171] sm:$0x1] %vm1958_vm4, %v2085_v4  ;;  %v1759_v28 = vmax.f32 %v1689_v60, %v1727_v5  ;;  %v2181_v29 = vrot.slane %v1692_v6, 1  ;;  %v1690_v30 = vmax.f32 %v1618_v62, %v1622_v7  ;;  %v1627_v53 = vmax.f32 %v14499_v12, 0.0 }
 0x1c6   : > { %v2767_v0 = vld [vmem:[#allocation2 + $0x152] sm:$0xff]  ;;  %2117 = vst.msk [vmem:[#allocation2 + $0x170] sm:$0x4] %vm1843_vm1, %v2085_v4  ;;  %v1474_v33 = vpop.f32.mrf.mxu0  ;;  %v2468_v7 = vld [vmem:[#allocation2 + $0xaa] sm:$0xff] }
 0x1c7   : > { %v2529_v8 = vld [vmem:[#allocation2 + $0x158] sm:$0xff]  ;;  %v16603_v13 = vpack.c.bf16 %v2768_v1, %v2767_v0  ;;  %2133 = vst.msk [vmem:[#allocation2 + $0x16f] sm:$0x10] %vm1860_vm2, %v2085_v4  ;;  %v1820_v39 = vrot.slane %v1759_v28, %v16173_v25  ;;  %1875 = vst.msk [vmem:[#allocation2 + $0x167] sm:$0x10] %vm1860_vm2, %v1759_v28  ;;  %v2213_v40 = vmax.f32 %v1692_v6, %v2181_v29  ;;  %v1924_v41 = vrot.slane %v1690_v30, 1 }
 0x1c8   : > { %v2434_v9 = vld [vmem:[#allocation2 + $0x151] sm:$0xff]  ;;  %v16605_v17 = vpack.c.bf16 %v2529_v8, %v2528_v2  ;;  %2149 = vst.msk [vmem:[#allocation2 + $0x16e] sm:$0x40] %vm1877_vm3, %v2085_v4  ;;  %1892 = vst.msk [vmem:[#allocation2 + $0x166] sm:$0x40] %vm1877_vm3, %v1759_v28  ;;  %v14500_v45 = vpop.f32.mrf.mxu0  ;;  %v1625_v55 = vmax.f32 %v1474_v33, 0.0 }
 0x1c9   : > { %v16607_v21 = vpack.c.bf16 %v2435_v10, %v2434_v9  ;;  %14537 = vmatprep.mubr.msk.bf16.mxu0 %vm2346_vm6, %v16603_v13  ;;  %1858 = vst.msk [vmem:[#allocation2 + $0x168] sm:$0x4] %vm1843_vm1, %v1759_v28  ;;  %2245 = vst.msk [vmem:[#allocation2 + $0x174] sm:$0x4] %vm1843_vm1, %v2213_v40  ;;  %v2322_v47 = vrot.slane %v2213_v40, %v16184_v35  ;;  %v1956_v48 = vmax.f32 %v1690_v30, %v1924_v41  ;;  %v2469_v8 = vld [vmem:[#allocation2 + $0xb2] sm:$0xff]  ;;  %v14677_v33 = vld [vmem:[%s20280_s2 + $0xc0] sm:$0xff]  }
 0x1ca   : > { %2881 = vrot.lane.b32.xlu0 %v16605_v17, %s15952_s17  ;;  %1841 = vst.msk [vmem:[#allocation2 + $0x168] sm:$0x3] %vm1826_vm5, %v1820_v39  ;;  %v1477_v50 = vpop.f32.mrf.mxu0  ;;  %v1628_v58 = vmax.f32 %v14500_v45, 0.0  ;;  %13872 = vmatprep.subr.bf16.mxu1 %v14677_v33  ;;  %v2700_v33 = vld [vmem:[#allocation2 + $0x69] sm:$0xff] }
 0x1cb   : > { %2835 = vrot.lane.b32.xlu1 %v16607_v21, %s15952_s17  ;;  %2229 = vst.msk [vmem:[#allocation2 + $0x175] sm:$0x1] %vm1958_vm4, %v2213_v40  ;;  %1973 = vst.msk [vmem:[#allocation2 + $0x16d] sm:$0x1] %vm1958_vm4, %v1956_v48  ;;  %v1626_v2 = vmax.f32 %v1477_v50, 0.0  ;;  %v16673_v50 = vpack.c.bf16 %v2469_v8, %v2468_v7  ;;  %13873 = vmatpush3.bf16.msra.mxu1 %v14678_v36  ;;  %v2698_v7 = vld [vmem:[#allocation2 + $0x51] sm:$0xff] }
 0x1cc   : > { %v2868_v44 = vpop.permute.xlu0 %2867  ;;  %2261 = vst.msk [vmem:[#allocation2 + $0x173] sm:$0x10] %vm1860_vm2, %v2213_v40  ;;  %2005 = vst.msk [vmem:[#allocation2 + $0x16b] sm:$0x10] %vm1860_vm2, %v1956_v48  ;;  %v14503_v54 = vpop.f32.mrf.mxu0 }
 0x1cd   : > { %v3073_v49 = vsel %vm2346_vm6, %v16629_v42, %v2868_v44  ;;  %2341 = vst.msk [vmem:[#allocation2 + $0x178] sm:$0x3] %vm1826_vm5, %v2322_v47  ;;  %v1631_v56 = vmax.f32 %v14503_v54, 0.0  ;;  %v2373_v44 = vld [vmem:[#allocation2 + $0xb0] sm:$0xff]  ;;  %v2822_v45 = vpop.permute.xlu1 %2821 }
 0x1ce   : > { %3655 = vmatprep.mubr.bf16.mxu1 %v3073_v49  ;;  %1989 = vst.msk [vmem:[#allocation2 + $0x16c] sm:$0x4] %vm1843_vm1, %v1956_v48  ;;  %v1490_v57 = vpop.f32.mrf.mxu0 }
 0x1cf   : > { %2021 = vst.msk [vmem:[#allocation2 + $0x16a] sm:$0x40] %vm1877_vm3, %v1956_v48  ;;  %3656 = vmatmul.mubr.bf16.gmra.mxu1 %v3009_v52  ;;  %v1695_v60 = vmax.f32 %v1627_v53, %v1631_v56  ;;  %v1629_v61 = vmax.f32 %v1490_v57, 0.0  ;;  %v16675_v53 = vpack.c.bf16 %v2373_v44, %v2372_v32  ;;  %v2699_v32 = vld [vmem:[#allocation2 + $0x61] sm:$0xff] }
 0x1d0   : > { %v14504_v62 = vpop.f32.mrf.mxu0  ;;  %v2473_v44 = vld [vmem:[#allocation2 + $0xe2] sm:$0xff] }
 0x1d1   : > { %v2054_v63 = vrot.slane %v1695_v60, 1  ;;  %v1693_v0 = vmax.f32 %v1625_v55, %v1629_v61  ;;  %v1632_v1 = vmax.f32 %v14504_v62, 0.0  ;;  %v3013_v57 = vsel %vm2346_vm6, %v16675_v53, %v2822_v45  ;;  %v2695_v62 = vld [vmem:[#allocation2 + $0x31] sm:$0xff] }
 0x1d2   : > { %v1493_v3 = vpop.f32.mrf.mxu0  ;;  %v2703_v45 = vld [vmem:[#allocation2 + $0x91] sm:$0xff] }
 0x1d3   : > { %v2086_v9 = vmax.f32 %v1695_v60, %v2054_v63  ;;  %v1728_v10 = vrot.slane %v1693_v0, 1  ;;  %v1696_v12 = vmax.f32 %v1628_v58, %v1632_v1  ;;  %v1630_v22 = vmax.f32 %v1493_v3, 0.0  ;;  %v2696_v63 = vld [vmem:[#allocation2 + $0x39] sm:$0xff] }
 0x1d4   : > { %v2770_v5 = vld [vmem:[#allocation2 + $0x172] sm:$0xff] }
 0x1d5   : > { %v2530_v6 = vld [vmem:[#allocation2 + $0x168] sm:$0xff]  ;;  %v2437_v28 = vld [vmem:[#allocation2 + $0x171] sm:$0xff]  ;;  %2102 = vst.msk [vmem:[#allocation2 + $0x189] sm:$0x1] %vm1958_vm4, %v2086_v9  ;;  %v1760_v39 = vmax.f32 %v1693_v0, %v1728_v10  ;;  %v2182_v40 = vrot.slane %v1696_v12, 1  ;;  %v1694_v41 = vmax.f32 %v1626_v2, %v1630_v22 }
 0x1d6   : > { %v2769_v4 = vld [vmem:[#allocation2 + $0x16a] sm:$0xff]  ;;  %2118 = vst.msk [vmem:[#allocation2 + $0x188] sm:$0x4] %vm1843_vm1, %v2086_v9  ;;  %v2470_v2 = vld [vmem:[#allocation2 + $0xc2] sm:$0xff] }
 0x1d7   : > { %v2531_v23 = vld [vmem:[#allocation2 + $0x170] sm:$0xff]  ;;  %v16647_v29 = vpack.c.bf16 %v2770_v5, %v2769_v4  ;;  %2134 = vst.msk [vmem:[#allocation2 + $0x187] sm:$0x10] %vm1860_vm2, %v2086_v9  ;;  %v1824_v47 = vrot.slane %v1760_v39, %v16173_v25  ;;  %1876 = vst.msk [vmem:[#allocation2 + $0x17f] sm:$0x10] %vm1860_vm2, %v1760_v39  ;;  %v2214_v48 = vmax.f32 %v1696_v12, %v2182_v40  ;;  %v1925_v49 = vrot.slane %v1694_v41, 1 }
 0x1d8   : > { %v2436_v26 = vld [vmem:[#allocation2 + $0x169] sm:$0xff]  ;;  %v16649_v30 = vpack.c.bf16 %v2531_v23, %v2530_v6  ;;  %2150 = vst.msk [vmem:[#allocation2 + $0x186] sm:$0x40] %vm1877_vm3, %v2086_v9  ;;  %1893 = vst.msk [vmem:[#allocation2 + $0x17e] sm:$0x40] %vm1877_vm3, %v1760_v39  ;;  %v16707_v9 = vpack.c.bf16 %v2696_v63, %v2695_v62  ;;  %v2702_v40 = vld [vmem:[#allocation2 + $0x81] sm:$0xff] }
 0x1d9   : > { %v16651_v31 = vpack.c.bf16 %v2437_v28, %v2436_v26  ;;  %14538 = vmatmul.mubr.msk.bf16.gmra.mxu0 %vm2346_vm6, %v16647_v29  ;;  %1859 = vst.msk [vmem:[#allocation2 + $0x180] sm:$0x4] %vm1843_vm1, %v1760_v39  ;;  %2246 = vst.msk [vmem:[#allocation2 + $0x18c] sm:$0x4] %vm1843_vm1, %v2214_v48  ;;  %v2326_v54 = vrot.slane %v2214_v48, %v16184_v35  ;;  %v1957_v55 = vmax.f32 %v1694_v41, %v1925_v49  ;;  %v2471_v4 = vld [vmem:[#allocation2 + $0xca] sm:$0xff]  ;;  %v2701_v39 = vld [vmem:[#allocation2 + $0x79] sm:$0xff] }
 0x1da   : > { %2883 = vrot.lane.b32.xlu0 %v16649_v30, %s15952_s17  ;;  %1842 = vst.msk [vmem:[#allocation2 + $0x180] sm:$0x3] %vm1826_vm5, %v1824_v47  ;;  %v2375_v5 = vld [vmem:[#allocation2 + $0xc8] sm:$0xff]  ;;  %v16725_v41 = vpack.c.bf16 %v2700_v33, %v2699_v32  ;;  %v2704_v47 = vld [vmem:[#allocation2 + $0x99] sm:$0xff] }
 0x1db   : > { %2837 = vrot.lane.b32.xlu1 %v16651_v31, %s15952_s17  ;;  %2230 = vst.msk [vmem:[#allocation2 + $0x18d] sm:$0x1] %vm1958_vm4, %v2214_v48  ;;  %1974 = vst.msk [vmem:[#allocation2 + $0x185] sm:$0x1] %vm1958_vm4, %v1957_v55  ;;  %v2697_v6 = vld [vmem:[#allocation2 + $0x49] sm:$0xff]  ;;  %v2376_v49 = vld [vmem:[#allocation2 + $0xd8] sm:$0xff] }
 0x1dc   : > { %v2870_v52 = vpop.permute.xlu0 %2869  ;;  %2262 = vst.msk [vmem:[#allocation2 + $0x18b] sm:$0x10] %vm1860_vm2, %v2214_v48  ;;  %2006 = vst.msk [vmem:[#allocation2 + $0x183] sm:$0x10] %vm1860_vm2, %v1957_v55  ;;  %v16731_v48 = vpack.c.bf16 %v2702_v40, %v2701_v39  ;;  %v2707_v62 = vld [vmem:[#allocation2 + $0xc1] sm:$0xff]  ;;  %v2708_v63 = vld [vmem:[#allocation2 + $0xc9] sm:$0xff] }
 0x1dd   : > { %v3077_v56 = vsel %vm2346_vm6, %v16673_v50, %v2870_v52  ;;  %2342 = vst.msk [vmem:[#allocation2 + $0x190] sm:$0x3] %vm1826_vm5, %v2326_v54  ;;  %v2824_v8 = vpop.permute.xlu1 %2823  ;;  %v2377_v52 = vld [vmem:[#allocation2 + $0xe0] sm:$0xff]  ;;  %v2706_v54 = vld [vmem:[#allocation2 + $0xb1] sm:$0xff]  ;;  %v2380_v33 = vld [vmem:[#allocation2 + $0x108] sm:$0xff] }
 0x1de   : > { %3663 = vmatprep.mubr.bf16.mxu1 %v3077_v56  ;;  %1990 = vst.msk [vmem:[#allocation2 + $0x184] sm:$0x4] %vm1843_vm1, %v1957_v55 }
 0x1df   : > { %2022 = vst.msk [vmem:[#allocation2 + $0x182] sm:$0x40] %vm1877_vm3, %v1957_v55  ;;  %2903 = vrot.lane.b32.xlu1 %v16433_v59, %s15952_s17  ;;  %3664 = vmatmul.mubr.bf16.gmra.mxu1 %v3013_v57  ;;  %v16736_v57 = vpack.c.bf16 %v2704_v47, %v2703_v45 }
 0x1e3   : > { %2905 = vrot.lane.b32.xlu1 %v16468_v51, %s15952_s17  ;;  %v2374_v51 = vld [vmem:[#allocation2 + $0xc0] sm:$0xff] }
 0x1e4   : > { %v2772_v0 = vld [vmem:[#allocation2 + $0x18a] sm:$0xff]  ;;  %v16709_v12 = vpack.c.bf16 %v2375_v5, %v2374_v51  ;;  %v2475_v51 = vld [vmem:[#allocation2 + $0xfa] sm:$0xff] }
 0x1e5   : > { %v2351_v58 = vld [vmem:[#allocation2 + $0x180] sm:$0xff]  ;;  %v2353_v59 = vld [vmem:[#allocation2 + $0x190] sm:$0x3] }
 0x1e6   : > { %v2352_v60 = vld [vmem:[#allocation2 + $0x188] sm:$0xff]  ;;  %2355 = vst.msk [vmem:[#allocation2 + $0x198] sm:$0xff] %vm2346_vm6, %v2351_v58  ;;  %v3017_v23 = vsel %vm2346_vm6, %v16709_v12, %v2824_v8  ;;  %v2711_v5 = vld [vmem:[#allocation2 + $0xf1] sm:$0xff] }
 0x1e7   : > { %v2771_v61 = vld [vmem:[#allocation2 + $0x182] sm:$0xff]  ;;  %2356 = vst.msk [vmem:[#allocation2 + $0x1a0] sm:$0xff] %vm2346_vm6, %v2352_v60  ;;  %2907 = vrot.lane.b32.xlu1 %v16506_v43, %s15952_s17  ;;  %v2549_v1 = vpack.c.bf16 %v2352_v60, %v2351_v58  ;;  %v2494_v43 = vpack.c.bf16 %v2471_v4, %v2470_v2  ;;  %v16738_v60 = vpack.c.bf16 %v2377_v52, %v2376_v49  ;;  %v2474_v4 = vld [vmem:[#allocation2 + $0xf2] sm:$0xff] }
 0x1e8   : > { %v16699_v3 = vpack.c.bf16 %v2772_v0, %v2771_v61  ;;  %2357 = vst.msk [vmem:[#allocation2 + $0x1a8] sm:$0x3] %vm1826_vm5, %v2353_v59  ;;  %v2710_v2 = vld [vmem:[#allocation2 + $0xe1] sm:$0xff]  ;;  %v16752_v59 = vpack.c.bf16 %v2708_v63, %v2707_v62  ;;  %v2378_v8 = vld [vmem:[#allocation2 + $0xf0] sm:$0xff] }
 0x1e9   : > { %2885 = vrot.lane.b32.xlu0 %v2549_v1, %s15952_s17  ;;  %v2709_v1 = vld [vmem:[#allocation2 + $0xd9] sm:$0xff]  ;;  %v2724_v45 = vld [vmem:[#allocation2 + $0x189] sm:$0xff] }
 0x1ea   : > { %14541 = vmatprep.mubr.msk.bf16.mxu0 %vm2346_vm6, %v16699_v3 }
 0x1eb   : > { %2909 = vrot.lane.b32.xlu1 %v16547_v38, %s15952_s17  ;;  %v16718_v38 = vpack.c.bf16 %v2698_v7, %v2697_v6  ;;  %v2712_v6 = vld [vmem:[#allocation2 + $0xf9] sm:$0xff]  ;;  %v16758_v7 = vpack.c.bf16 %v2710_v2, %v2709_v1 }
 0x1ec   : > { %v2872_v10 = vpop.permute.xlu0 %2871 }
 0x1ed   : > { %v3081_v22 = vsel %vm2346_vm6, %v2494_v43, %v2872_v10  ;;  %2951 = vrot.lane.b32.xlu0 %v16707_v9, %s15952_s17  ;;  %v2826_v55 = vpop.permute.xlu1 %2825  ;;  %v2496_v10 = vpack.c.bf16 %v2475_v51, %v2474_v4 }
 0x1ee   : > { %3671 = vmatprep.mubr.bf16.mxu1 %v3081_v22  ;;  %v2773_v26 = vld [vmem:[#allocation2 + $0x19a] sm:$0xff]  ;;  %v3021_v61 = vsel %vm2346_vm6, %v16738_v60, %v2826_v55  ;;  %v16764_v22 = vpack.c.bf16 %v2712_v6, %v2711_v5 }
 0x1ef   : > { %2911 = vrot.lane.b32.xlu1 %v16588_v37, %s15952_s17  ;;  %3672 = vmatmul.mubr.bf16.gmra.mxu1 %v3017_v23  ;;  %v2774_v28 = vld [vmem:[#allocation2 + $0x1a2] sm:$0xff]  ;;  %v2472_v37 = vld [vmem:[#allocation2 + $0xda] sm:$0xff] }
 0x1f0   : > { %v2790_v36 = vpack.c.bf16 %v2774_v28, %v2773_v26  ;;  %v2495_v56 = vpack.c.bf16 %v2473_v44, %v2472_v37  ;;  %v2723_v44 = vld [vmem:[#allocation2 + $0x181] sm:$0xff] }
 0x1f1   : > { %2953 = vrot.lane.b32.xlu0 %v16718_v38, %s15952_s17  ;;  %v16797_v47 = vpack.c.bf16 %v2724_v45, %v2723_v44  ;;  %v2551_v44 = vld [vmem:[#allocation2 + $0x21] sm:$0xff] }
 0x1f2   : > { %14542 = vmatmul.mubr.msk.bf16.gmra.mxu0 %vm2346_vm6, %v2790_v36  ;;  %v2381_v36 = vld [vmem:[#allocation2 + $0x110] sm:$0xff] }
 0x1f3   : > { %2913 = vrot.lane.b32.xlu1 %v16629_v42, %s15952_s17  ;;  %v2705_v42 = vld [vmem:[#allocation2 + $0xa9] sm:$0xff] }
 0x1f4   : > { %v16746_v0 = vpack.c.bf16 %v2706_v54, %v2705_v42 }
 0x1f5   : > { %2955 = vrot.lane.b32.xlu0 %v16725_v41, %s15952_s17 }
 0x1f7   : > { %2915 = vrot.lane.b32.xlu1 %v16673_v50, %s15952_s17 }
 0x1f9   : > { %2957 = vrot.lane.b32.xlu0 %v16731_v48, %s15952_s17 }
 0x1fb   : > { %2917 = vrot.lane.b32.xlu1 %v2494_v43, %s15952_s17  ;;  %v2379_v43 = vld [vmem:[#allocation2 + $0xf8] sm:$0xff] }
 0x1fc   : > { %v16766_v26 = vpack.c.bf16 %v2379_v43, %v2378_v8 }
 0x1fd   : > { %v2874_v58 = vpop.permute.xlu0 %2873  ;;  %2959 = vrot.lane.b32.xlu0 %v16736_v57, %s15952_s17 }
 0x1fe   : > { %v3085_v50 = vsel %vm2346_vm6, %v2495_v56, %v2874_v58 }
 0x1ff   : > { %3679 = vmatprep.mubr.bf16.mxu1 %v3085_v50  ;;  %2919 = vrot.lane.b32.xlu1 %v2495_v56, %s15952_s17 }
 0x200   : > { %3680 = vmatmul.mubr.bf16.gmra.mxu1 %v3021_v61 }
 0x201   : > { %2961 = vrot.lane.b32.xlu0 %v16746_v0, %s15952_s17 }
 0x203   : > { %2921 = vrot.lane.b32.xlu1 %v16451_v34, %s15952_s17  ;;  %v2828_v34 = vpop.permute.xlu1 %2827 }
 0x204   : > { %v3025_v32 = vsel %vm2346_vm6, %v16766_v26, %v2828_v34 }
 0x205   : > { %2963 = vrot.lane.b32.xlu0 %v16752_v59, %s15952_s17 }
 0x207   : > { %2923 = vrot.lane.b32.xlu1 %v16486_v24, %s15952_s17 }
 0x209   : > { %2965 = vrot.lane.b32.xlu0 %v16758_v7, %s15952_s17 }
 0x20b   : > { %2925 = vrot.lane.b32.xlu1 %v16527_v18, %s15952_s17 }
 0x20c   : > { %v2876_v23 = vpop.permute.xlu0 %2875 }
 0x20d   : > { %v3089_v28 = vsel %vm2346_vm6, %v2496_v10, %v2876_v23  ;;  %2967 = vrot.lane.b32.xlu0 %v16764_v22, %s15952_s17  ;;  %v2830_v39 = vpop.permute.xlu1 %2829 }
 0x20e   : > { %3687 = vmatprep.mubr.bf16.mxu1 %v3089_v28 }
 0x20f   : > { %2927 = vrot.lane.b32.xlu1 %v16568_v14, %s15952_s17  ;;  %3688 = vmatmul.mubr.bf16.gmra.mxu1 %v3025_v32  ;;  %v2647_v32 = vld [vmem:[#allocation2 + $0x30] sm:$0xff] }
 0x211   : > { %2969 = vrot.lane.b32.xlu0 %v16488_v27, %s15952_s17  ;;  %v16787_v27 = vpack.c.bf16 %v2381_v36, %v2380_v33  ;;  %v2648_v33 = vld [vmem:[#allocation2 + $0x38] sm:$0xff] }
 0x213   : > { %2929 = vrot.lane.b32.xlu1 %v16603_v13, %s15952_s17 }
 0x215   : > { %2971 = vrot.lane.b32.xlu0 %v16531_v20, %s15952_s17  ;;  %v3029_v20 = vsel %vm2346_vm6, %v16787_v27, %v2830_v39 }
 0x217   : > { %2931 = vrot.lane.b32.xlu1 %v16647_v29, %s15952_s17 }
 0x219   : > { %2973 = vrot.lane.b32.xlu0 %v16572_v16, %s15952_s17  ;;  %v2725_v16 = vld [vmem:[#allocation2 + $0x199] sm:$0xff] }
 0x21b   : > { %2933 = vrot.lane.b32.xlu1 %v16699_v3, %s15952_s17  ;;  %v2726_v3 = vld [vmem:[#allocation2 + $0x1a1] sm:$0xff] }
 0x21c   : > { %v2878_v40 = vpop.permute.xlu0 %2877 }
 0x21d   : > { %v3093_v37 = vsel %vm2346_vm6, %v16486_v24, %v2878_v40  ;;  %2975 = vrot.lane.b32.xlu0 %v16607_v21, %s15952_s17  ;;  %v2742_v24 = vpack.c.bf16 %v2726_v3, %v2725_v16  ;;  %v2832_v21 = vpop.permute.xlu1 %2831  ;;  %v2649_v3 = vld [vmem:[#allocation2 + $0x48] sm:$0xff] }
 0x21e   : > { %3695 = vmatprep.mubr.bf16.mxu1 %v3093_v37  ;;  %v3033_v42 = vsel %vm2346_vm6, %v16529_v19, %v2832_v21 }
 0x21f   : > { %3696 = vmatmul.mubr.bf16.gmra.mxu1 %v3029_v20  ;;  %v2550_v20 = vld [vmem:[#allocation2 + $0x19] sm:$0xff] }
 0x221   : > { %2977 = vrot.lane.b32.xlu0 %v16651_v31, %s15952_s17 }
 0x225   : > { %2979 = vrot.lane.b32.xlu0 %v16797_v47, %s15952_s17 }
 0x229   : > { %2981 = vrot.lane.b32.xlu0 %v2742_v24, %s15952_s17  ;;  %v2650_v24 = vld [vmem:[#allocation2 + $0x50] sm:$0xff]  ;;  %s301_s17 = scalar_lea.vmem %s20286_s8, %s20310_s28 }
 0x22c   : > { %v2880_v49 = vpop.permute.xlu0 %2879 }
 0x22d   : > { %v3097_v52 = vsel %vm2346_vm6, %v16527_v18, %v2880_v49  ;;  %v2834_v58 = vpop.permute.xlu1 %2833  ;;  %v2582_v49 = vpack.c.bf16 %v2551_v44, %v2550_v20 }
 0x22e   : > { %3703 = vmatprep.mubr.bf16.mxu1 %v3097_v52  ;;  %v3037_v18 = vsel %vm2346_vm6, %v16570_v15, %v2834_v58  ;;  %v2651_v58 = vld [vmem:[#allocation2 + $0x60] sm:$0xff] }
 0x22f   : > { %3704 = vmatmul.mubr.bf16.gmra.mxu1 %v3033_v42  ;;  %v2680_v42 = vpack.c.bf16 %v2650_v24, %v2649_v3 }
 0x235   : > { %v13762_v54 = vpop.f32.mrf.mxu1 }
 0x237   : > { %v13763_v55 = vpop.f32.mrf.mxu1 }
 0x238   : > { %v16806_v56 = vadd.f32 %v13763_v55, %v13762_v54 }
 0x239   : > { %v16808_v50 = vpop.f32.mrf.mxu1 }
 0x23b   : > { %v16814_v63 = vpop.f32.mrf.mxu1 }
 0x23c   : > { %v2882_v61 = vpop.permute.xlu0 %2881 }
 0x23d   : > { %v3101_v62 = vsel %vm2346_vm6, %v16568_v14, %v2882_v61  ;;  %v2836_v51 = vpop.permute.xlu1 %2835  ;;  %v2652_v61 = vld [vmem:[#allocation2 + $0x68] sm:$0xff] }
 0x23e   : > { %3711 = vmatprep.mubr.bf16.mxu1 %v3101_v62  ;;  %v3041_v15 = vsel %vm2346_vm6, %v16605_v17, %v2836_v51  ;;  %v2679_v17 = vpack.c.bf16 %v2648_v33, %v2647_v32 }
 0x23f   : > { %3712 = vmatmul.mubr.bf16.gmra.mxu1 %v3037_v18 }
 0x242   : > { %v13768_v19 = vpop.f32.mrf.mxu1 }
 0x244   : > { %v13769_v1 = vpop.f32.mrf.mxu1 }
 0x245   : > { %v16816_v2 = vadd.f32 %v13769_v1, %v13768_v19  ;;  %v2681_v19 = vpack.c.bf16 %v2652_v61, %v2651_v58 }
 0x246   : > { %v16818_v4 = vpop.f32.mrf.mxu1 }
 0x248   : > { %v16820_v6 = vpop.f32.mrf.mxu1 }
 0x24c   : > { %v2884_v5 = vpop.permute.xlu0 %2883 }
 0x24d   : > { %v3105_v14 = vsel %vm2346_vm6, %v16603_v13, %v2884_v5  ;;  %v2838_v23 = vpop.permute.xlu1 %2837 }
 0x24e   : > { %3719 = vmatprep.mubr.bf16.mxu1 %v3105_v14  ;;  %v3045_v13 = vsel %vm2346_vm6, %v16649_v30, %v2838_v23 }
 0x24f   : > { %v13774_v8 = vpop.f32.mrf.mxu1  ;;  %3720 = vmatmul.mubr.bf16.gmra.mxu1 %v3041_v15 }
 0x251   : > { %v13775_v43 = vpop.f32.mrf.mxu1  ;;  %v2904_v21 = vpop.permute.xlu1 %2903 }
 0x252   : > { %v16826_v34 = vadd.f32 %v13775_v43, %v13774_v8  ;;  %v3113_v30 = vsel %vm2346_vm6, %v2582_v49, %v2904_v21  ;;  %v2653_v8 = vld [vmem:[#allocation2 + $0x78] sm:$0xff]  ;;  %v2654_v43 = vld [vmem:[#allocation2 + $0x80] sm:$0xff] }
 0x253   : > { %v16828_v10 = vpop.f32.mrf.mxu1  ;;  %v2682_v33 = vpack.c.bf16 %v2654_v43, %v2653_v8  ;;  %v14682_v49 = vld [vmem:[%s20281_s3 + $0x60] ss:$8 sps:$4 sm:$0xff]   ;;  %v14690_v8 = vld [vmem:[%s20281_s3 + $0x44] ss:$8 sps:$4 sm:$0xff]  }
 0x255   : > { %v16832_v39 = vpop.f32.mrf.mxu1  ;;  %v2906_v62 = vpop.permute.xlu1 %2905 }
 0x256   : > { %v3117_v51 = vsel %vm2346_vm6, %v16707_v9, %v2906_v62  ;;  %v14679_v9 = vld [vmem:[%s20281_s3 + $0x70] ss:$8 sps:$4 sm:$0xff]  }
 0x259   : > { %v2908_v23 = vpop.permute.xlu1 %2907 }
 0x25b   : > { %v2886_v28 = vpop.permute.xlu0 %2885 }
 0x25c   : > { %v3109_v36 = vsel %vm2346_vm6, %v16647_v29, %v2886_v28 }
 0x25d   : > { %3727 = vmatprep.mubr.bf16.mxu1 %v3109_v36  ;;  %v3121_v36 = vsel %vm2346_vm6, %v16718_v38, %v2908_v23  ;;  %v14691_v23 = vld [vmem:[%s20281_s3 + $0x30] ss:$8 sps:$4 sm:$0xff]  }
 0x25e   : > { %3728 = vmatmul.mubr.bf16.gmra.mxu1 %v3045_v13 }
 0x25f   : > { %v13780_v40 = vpop.f32.mrf.mxu1  ;;  %v2952_v37 = vpop.permute.xlu0 %2951 }
 0x260   : > { %v3177_v45 = vsel %vm2346_vm6, %v2679_v17, %v2952_v37  ;;  %v14681_v17 = vld [vmem:[%s20281_s3 + $0x74] ss:$8 sps:$4 sm:$0xff]   ;;  %v2910_v37 = vpop.permute.xlu1 %2909 }
 0x261   : > { %v13781_v16 = vpop.f32.mrf.mxu1  ;;  %3768 = vmatprep.mubr.bf16.mxu1 %v3177_v45  ;;  %5282 = vmatprep.subr.bf16.mxu1 %v14681_v17  ;;  %v3125_v38 = vsel %vm2346_vm6, %v16725_v41, %v2910_v37  ;;  %v14694_v17 = vld [vmem:[%s20281_s3 + $0x170] ss:$8 sps:$4 sm:$0xff]   ;;  %v14696_v37 = vld [vmem:[%s20281_s3 + $0x174] ss:$8 sps:$4 sm:$0xff]  }
 0x262   : > { %v16837_v29 = vadd.f32 %v13781_v16, %v13780_v40  ;;  %5355 = vmatprep.subr.bf16.mxu0 %v14696_v37 }
 0x263   : > { %v2954_v52 = vpop.permute.xlu0 %2953  ;;  %v16841_v55 = vpop.f32.mrf.mxu1  ;;  %5356 = vmatpush1.bf16.msra.mxu0 %v14694_v17 }
 0x264   : > { %v3181_v54 = vsel %vm2346_vm6, %v2680_v42, %v2954_v52  ;;  %v2912_v24 = vpop.permute.xlu1 %2911  ;;  %v14684_v52 = vld [vmem:[%s20281_s3 + $0x64] ss:$8 sps:$4 sm:$0xff]  }
 0x265   : > { %v16843_v1 = vpop.f32.mrf.mxu1  ;;  %v3129_v41 = vsel %vm2346_vm6, %v16731_v48, %v2912_v24  ;;  %v14702_v24 = vld [vmem:[%s20281_s3 + $0x164] ss:$8 sps:$4 sm:$0xff]  }
 0x266   : > { %3769 = vmatmul.mubr.bf16.vlgmr.msra.gmra.mxu1 %v3113_v30  ;;  %v14685_v30 = vld [vmem:[%s20281_s3 + $0x50] ss:$8 sps:$4 sm:$0xff]   ;;  %5357 = vmatprep.subr.bf16.mxu0 %v14702_v24  ;;  %v2572_v24 = vld [vmem:[#allocation2 + $0x121] sm:$0xff] }
 0x267   : > { %3776 = vmatprep.mubr.bf16.mxu1 %v3181_v54  ;;  %v2956_v18 = vpop.permute.xlu0 %2955  ;;  %5283 = vmatpush1.bf16.msra.mxu1 %v14679_v9  ;;  %v14687_v54 = vld [vmem:[%s20281_s3 + $0x54] ss:$8 sps:$4 sm:$0xff]  }
 0x268   : > { %v3185_v5 = vsel %vm2346_vm6, %v2681_v19, %v2956_v18  ;;  %5284 = vmatprep.subr.bf16.mxu1 %v14684_v52  ;;  %v2914_v61 = vpop.permute.xlu1 %2913 }
 0x26b   : > { %v2958_v32 = vpop.permute.xlu0 %2957  ;;  %5285 = vmatpush1.bf16.msra.mxu1 %v14682_v49 }
 0x26c   : > { %v3189_v13 = vsel %vm2346_vm6, %v2682_v33, %v2958_v32  ;;  %5286 = vmatprep.subr.bf16.mxu1 %v14687_v54  ;;  %v14693_v32 = vld [vmem:[%s20281_s3 + $0x34] ss:$8 sps:$4 sm:$0xff]   ;;  %v2667_v54 = vld [vmem:[#allocation2 + $0x120] sm:$0xff] }
 0x26e   : > { %3777 = vmatmul.mubr.bf16.gmra.mxu1 %v3117_v51 }
 0x26f   : > { %v13786_v14 = vpop.f32.mrf.mxu1  ;;  %3784 = vmatprep.mubr.bf16.mxu1 %v3185_v5  ;;  %v2960_v20 = vpop.permute.xlu0 %2959  ;;  %5287 = vmatpush1.bf16.msra.mxu1 %v14685_v30 }
 0x270   : > { %v3193_v45 = vsel %vm2346_vm6, %v16631_v46, %v2960_v20  ;;  %v2916_v5 = vpop.permute.xlu1 %2915  ;;  %5288 = vmatprep.subr.bf16.mxu1 %v14690_v8  ;;  %v14706_v8 = vld [vmem:[%s20281_s3 + $0x10] ss:$8 sps:$4 sm:$0xff]  }
 0x271   : > { %v13787_v15 = vpop.f32.mrf.mxu1 }
 0x272   : > { %v16848_v28 = vadd.f32 %v13787_v15, %v13786_v14  ;;  %v14688_v15 = vld [vmem:[%s20281_s3 + $0x40] ss:$8 sps:$4 sm:$0xff]  }
 0x273   : > { %v16859_v40 = vpop.f32.mrf.mxu1  ;;  %v2962_v42 = vpop.permute.xlu0 %2961  ;;  %5289 = vmatpush1.bf16.msra.mxu1 %v14688_v15 }
 0x274   : > { %v3197_v46 = vsel %vm2346_vm6, %v16675_v53, %v2962_v42  ;;  %v3133_v53 = vsel %vm2346_vm6, %v16736_v57, %v2914_v61  ;;  %v3137_v57 = vsel %vm2346_vm6, %v16746_v0, %v2916_v5  ;;  %5290 = vmatprep.subr.bf16.mxu1 %v14693_v32  ;;  %v2668_v61 = vld [vmem:[#allocation2 + $0x128] sm:$0xff]  ;;  %v2670_v32 = vld [vmem:[#allocation2 + $0x140] sm:$0xff] }
 0x275   : > { %v16861_v44 = vpop.f32.mrf.mxu1  ;;  %v14709_v5 = vld [vmem:[%s20281_s3 + $0x140] ss:$8 sps:$4 sm:$0xff]  }
 0x276   : > { %3785 = vmatmul.mubr.bf16.gmra.mxu1 %v3121_v36  ;;  %v2918_v36 = vpop.permute.xlu1 %2917 }
 0x277   : > { %3792 = vmatprep.mubr.bf16.mxu1 %v3189_v13  ;;  %v2964_v48 = vpop.permute.xlu0 %2963  ;;  %5291 = vmatpush1.bf16.msra.mxu1 %v14691_v23  ;;  %v2669_v23 = vld [vmem:[#allocation2 + $0x138] sm:$0xff] }
 0x278   : > { %v3201_v18 = vsel %vm2346_vm6, %v16709_v12, %v2964_v48 }
 0x27b   : > { %v2966_v43 = vpop.permute.xlu0 %2965 }
 0x27c   : > { %v3205_v12 = vsel %vm2346_vm6, %v16738_v60, %v2966_v43  ;;  %v3141_v60 = vsel %vm2346_vm6, %v16752_v59, %v2918_v36  ;;  %v14697_v59 = vld [vmem:[%s20281_s3 + $0x20] ss:$8 sps:$4 sm:$0xff]   ;;  %v14714_v36 = vld [vmem:[%s20281_s3 + $0x134] ss:$8 sps:$4 sm:$0xff]  }
 0x27d   : > { %v2570_v43 = vld [vmem:[#allocation2 + $0x109] sm:$0xff] }
 0x27e   : > { %3793 = vmatmul.mubr.bf16.gmra.mxu1 %v3125_v38 }
 0x27f   : > { %v13792_v16 = vpop.f32.mrf.mxu1  ;;  %3800 = vmatprep.mubr.bf16.mxu1 %v3193_v45  ;;  %v2968_v0 = vpop.permute.xlu0 %2967 }
 0x280   : > { %v3209_v9 = vsel %vm2346_vm6, %v16766_v26, %v2968_v0  ;;  %v14699_v26 = vld [vmem:[%s20281_s3 + $0x24] ss:$8 sps:$4 sm:$0xff]   ;;  %v2920_v45 = vpop.permute.xlu1 %2919 }
 0x281   : > { %v13793_v3 = vpop.f32.mrf.mxu1  ;;  %5292 = vmatprep.subr.bf16.mxu1 %v14699_v26  ;;  %v3145_v52 = vsel %vm2346_vm6, %v16758_v7, %v2920_v45  ;;  %v14718_v45 = vld [vmem:[%s20281_s3 + $0x120] ss:$8 sps:$4 sm:$0xff]  }
 0x282   : > { %v16867_v21 = vadd.f32 %v13793_v3, %v13792_v16  ;;  %v14700_v3 = vld [vmem:[%s20281_s3 + $0x160] ss:$8 sps:$4 sm:$0xff]   ;;  %5293 = vmatpush1.bf16.msra.mxu1 %v14697_v59  ;;  %v14720_v59 = vld [vmem:[%s20281_s3 + $0x124] ss:$8 sps:$4 sm:$0xff]  }
 0x283   : > { %v16885_v58 = vpop.f32.mrf.mxu1  ;;  %v2970_v49 = vpop.permute.xlu0 %2969  ;;  %5358 = vmatpush1.bf16.msra.mxu0 %v14700_v3  ;;  %v14717_v3 = vld [vmem:[%s20281_s3 + $0x4] ss:$8 sps:$4 sm:$0xff]  }
 0x284   : > { %v3213_v42 = vsel %vm2346_vm6, %v16787_v27, %v2970_v49  ;;  %v2922_v7 = vpop.permute.xlu1 %2921  ;;  %v2573_v49 = vld [vmem:[#allocation2 + $0x129] sm:$0xff] }
 0x285   : > { %v16887_v62 = vpop.f32.mrf.mxu1  ;;  %v3149_v27 = vsel %vm2346_vm6, %v16764_v22, %v2922_v7  ;;  %v14708_v22 = vld [vmem:[%s20281_s3 + $0x14] ss:$8 sps:$4 sm:$0xff]   ;;  %v14721_v7 = vld [vmem:[%s20281_s3 + $0x110] ss:$8 sps:$4 sm:$0xff]  }
 0x286   : > { %3801 = vmatmul.mubr.bf16.gmra.mxu1 %v3129_v41  ;;  %v14703_v41 = vld [vmem:[%s20281_s3 + $0x150] ss:$8 sps:$4 sm:$0xff]   ;;  %5294 = vmatprep.subr.bf16.mxu1 %v14708_v22 }
 0x287   : > { %3808 = vmatprep.mubr.bf16.mxu1 %v3197_v46  ;;  %v14705_v46 = vld [vmem:[%s20281_s3 + $0x154] ss:$8 sps:$4 sm:$0xff]   ;;  %v2972_v48 = vpop.permute.xlu0 %2971  ;;  %5295 = vmatpush1.bf16.msra.mxu1 %v14706_v8  ;;  %v14729_v8 = vld [vmem:[%s20281_s3 + $0x104] ss:$8 sps:$4 sm:$0xff]  }
 0x288   : > { %5359 = vmatprep.subr.bf16.mxu0 %v14705_v46  ;;  %v2924_v0 = vpop.permute.xlu1 %2923  ;;  %v2672_v46 = vld [vmem:[#allocation2 + $0x158] sm:$0xff]  ;;  %5296 = vmatprep.subr.bf16.mxu1 %v14717_v3 }
 0x289   : > { %5360 = vmatpush1.bf16.msra.mxu0 %v14703_v41  ;;  %v2671_v41 = vld [vmem:[#allocation2 + $0x150] sm:$0xff] }
 0x28a   : > { %v14738_v3 = vld [vmem:[%s20281_s3 + $0xd4] ss:$8 sps:$4 sm:$0xff]  }
 0x28b   : > { %v2974_v17 = vpop.permute.xlu0 %2973 }
 0x28e   : > { %3809 = vmatmul.mubr.bf16.gmra.mxu1 %v3133_v53  ;;  %v2689_v53 = vpack.c.bf16 %v2668_v61, %v2667_v54  ;;  %v14723_v54 = vld [vmem:[%s20281_s3 + $0x114] ss:$8 sps:$4 sm:$0xff]   ;;  %v2926_v61 = vpop.permute.xlu1 %2925 }
 0x28f   : > { %v13798_v19 = vpop.f32.mrf.mxu1  ;;  %3816 = vmatprep.mubr.bf16.mxu1 %v3201_v18 }
 0x291   : > { %v13799_v51 = vpop.f32.mrf.mxu1 }
 0x292   : > { %v16893_v14 = vadd.f32 %v13799_v51, %v13798_v19  ;;  %v14711_v19 = vld [vmem:[%s20281_s3 + $0x144] ss:$8 sps:$4 sm:$0xff]   ;;  %v3217_v51 = vsel %vm2346_vm6, %v2689_v53, %v2972_v48  ;;  %v2976_v48 = vpop.permute.xlu0 %2975  ;;  %v2593_v53 = vpack.c.bf16 %v2573_v49, %v2572_v24  ;;  %v14736_v49 = vld [vmem:[%s20281_s3 + $0xd0] ss:$8 sps:$4 sm:$0xff]  }
 0x293   : > { %v16911_v33 = vpop.f32.mrf.mxu1  ;;  %5361 = vmatprep.subr.bf16.mxu0 %v14711_v19  ;;  %v2691_v19 = vpack.c.bf16 %v2672_v46, %v2671_v41  ;;  %v14741_v41 = vld [vmem:[%s20281_s3 + $0x1e4] ss:$8 sps:$4 sm:$0xff]  }
 0x294   : > { %5362 = vmatpush1.bf16.msra.mxu0 %v14709_v5 }
 0x295   : > { %v16913_v13 = vpop.f32.mrf.mxu1  ;;  %5363 = vmatprep.subr.bf16.mxu0 %v14714_v36  ;;  %v3225_v22 = vsel %vm2346_vm6, %v2691_v19, %v2976_v48  ;;  %v14730_v36 = vld [vmem:[%s20281_s3 + $0xe0] ss:$8 sps:$4 sm:$0xff]  }
 0x296   : > { %3817 = vmatmul.mubr.bf16.gmra.mxu1 %v3137_v57  ;;  %v2571_v57 = vld [vmem:[#allocation2 + $0x111] sm:$0xff]  ;;  %v2577_v48 = vld [vmem:[#allocation2 + $0x159] sm:$0xff] }
 0x297   : > { %3824 = vmatprep.mubr.bf16.mxu1 %v3205_v12  ;;  %v2592_v37 = vpack.c.bf16 %v2571_v57, %v2570_v43  ;;  %v14727_v43 = vld [vmem:[%s20281_s3 + $0x100] ss:$8 sps:$4 sm:$0xff]  }
 0x298   : > { %v2675_v19 = vld [vmem:[#allocation2 + $0x180] sm:$0xff] }
 0x29e   : > { %3825 = vmatmul.mubr.bf16.gmra.mxu1 %v3141_v60 }
 0x29f   : > { %v13804_v20 = vpop.f32.mrf.mxu1  ;;  %3832 = vmatprep.mubr.bf16.mxu1 %v3209_v9  ;;  %v14712_v9 = vld [vmem:[%s20281_s3 + $0x130] ss:$8 sps:$4 sm:$0xff]  }
 0x2a0   : > { %5364 = vmatpush1.bf16.msra.mxu0 %v14712_v9  ;;  %v2673_v9 = vld [vmem:[#allocation2 + $0x168] sm:$0xff] }
 0x2a1   : > { %v13805_v38 = vpop.f32.mrf.mxu1  ;;  %5365 = vmatprep.subr.bf16.mxu0 %v14720_v59  ;;  %v14733_v59 = vld [vmem:[%s20281_s3 + $0x1f0] ss:$8 sps:$4 sm:$0xff]  }
 0x2a2   : > { %v16931_v16 = vadd.f32 %v13805_v38, %v13804_v20  ;;  %v2690_v20 = vpack.c.bf16 %v2670_v32, %v2669_v23  ;;  %v3153_v38 = vsel %vm2346_vm6, %v2592_v37, %v2924_v0  ;;  %v2574_v23 = vld [vmem:[#allocation2 + $0x139] sm:$0xff]  ;;  %v2575_v32 = vld [vmem:[#allocation2 + $0x141] sm:$0xff] }
 0x2a3   : > { %v16949_v30 = vpop.f32.mrf.mxu1  ;;  %v14735_v37 = vld [vmem:[%s20281_s3 + $0x1f4] ss:$8 sps:$4 sm:$0xff]  }
 0x2a4   : > { %v3221_v26 = vsel %vm2346_vm6, %v2690_v20, %v2974_v17  ;;  %5366 = vmatpush1.bf16.msra.mxu0 %v14718_v45  ;;  %v2674_v17 = vld [vmem:[#allocation2 + $0x170] sm:$0xff]  ;;  %v2928_v20 = vpop.permute.xlu1 %2927  ;;  %v2978_v45 = vpop.permute.xlu0 %2977 }
 0x2a5   : > { %v16951_v18 = vpop.f32.mrf.mxu1  ;;  %5367 = vmatprep.subr.bf16.mxu0 %v14723_v54  ;;  %v2692_v24 = vpack.c.bf16 %v2674_v17, %v2673_v9  ;;  %v14739_v54 = vld [vmem:[%s20281_s3 + $0x1e0] ss:$8 sps:$4 sm:$0xff]   ;;  %v14753_v9 = vld [vmem:[%s20281_s3 + $0x1c4] ss:$8 sps:$4 sm:$0xff]  }
 0x2a6   : > { %3833 = vmatmul.mubr.bf16.gmra.mxu1 %v3145_v52  ;;  %v14715_v52 = vld [vmem:[%s20281_s3] ss:$8 sps:$4 sm:$0xff]  }
 0x2a7   : > { %3840 = vmatprep.mubr.bf16.mxu1 %v3213_v42  ;;  %5297 = vmatpush1.bf16.msra.mxu1 %v14715_v52  ;;  %v3229_v46 = vsel %vm2346_vm6, %v2692_v24, %v2978_v45  ;;  %v2678_v24 = vld [vmem:[#allocation2 + $0x1a0] sm:$0xff] }
 0x2a8   : > { %5368 = vmatpush1.bf16.msra.mxu0 %v14721_v7  ;;  %v2576_v7 = vld [vmem:[#allocation2 + $0x151] sm:$0xff] }
 0x2a9   : > { %5369 = vmatprep.subr.bf16.mxu0 %v14729_v8  ;;  %v2930_v8 = vpop.permute.xlu1 %2929 }
 0x2ac   : > { %5370 = vmatpush1.bf16.msra.mxu0 %v14727_v43  ;;  %v2595_v43 = vpack.c.bf16 %v2577_v48, %v2576_v7  ;;  %v14760_v48 = vld [vmem:[%s20281_s3 + $0x90] ss:$8 sps:$4 sm:$0xff]  }
 0x2ad   : > { %5371 = vmatprep.subr.bf16.mxu0 %v14735_v37  ;;  %v14751_v37 = vld [vmem:[%s20281_s3 + $0x1c0] ss:$8 sps:$4 sm:$0xff]  }
 0x2ae   : > { %3841 = vmatmul.mubr.bf16.gmra.mxu1 %v3149_v27  ;;  %v14726_v27 = vld [vmem:[%s20281_s3 + $0xf4] ss:$8 sps:$4 sm:$0xff]  }
 0x2af   : > { %v13810_v15 = vpop.f32.mrf.mxu1  ;;  %3848 = vmatprep.mubr.bf16.mxu1 %v3217_v51  ;;  %v14724_v51 = vld [vmem:[%s20281_s3 + $0xf0] ss:$8 sps:$4 sm:$0xff]   ;;  %5298 = vmatprep.subr.bf16.mxu1 %v14726_v27 }
 0x2b0   : > { %5299 = vmatpush2.bf16.msra.mxu1 %v14724_v51  ;;  %5372 = vmatpush2.bf16.msra.mxu0 %v14733_v59  ;;  %v2676_v51 = vld [vmem:[#allocation2 + $0x188] sm:$0xff] }
 0x2b1   : > { %v13811_v12 = vpop.f32.mrf.mxu1  ;;  %5373 = vmatprep.subr.bf16.mxu0 %v14741_v41  ;;  %v14756_v59 = vld [vmem:[%s20281_s3 + $0xa4] ss:$8 sps:$4 sm:$0xff]  }
 0x2b2   : > { %v16971_v60 = vadd.f32 %v13811_v12, %v13810_v15  ;;  %v3157_v15 = vsel %vm2346_vm6, %v2593_v53, %v2926_v61  ;;  %v14732_v12 = vld [vmem:[%s20281_s3 + $0xe4] ss:$8 sps:$4 sm:$0xff]   ;;  %v14742_v53 = vld [vmem:[%s20281_s3 + $0xc0] ss:$8 sps:$4 sm:$0xff]  }
 0x2b3   : > { %v16990_v42 = vpop.f32.mrf.mxu1  ;;  %5300 = vmatprep.subr.bf16.mxu1 %v14732_v12  ;;  %v14744_v61 = vld [vmem:[%s20281_s3 + $0xc4] ss:$8 sps:$4 sm:$0xff]   ;;  %v14750_v12 = vld [vmem:[%s20281_s3 + $0xb4] ss:$8 sps:$4 sm:$0xff]  }
 0x2b4   : > { %5301 = vmatpush2.bf16.msra.mxu1 %v14730_v36  ;;  %5374 = vmatpush2.bf16.msra.mxu0 %v14739_v54  ;;  %v3165_v36 = vsel %vm2346_vm6, %v2595_v43, %v2930_v8  ;;  %v14768_v8 = vld [vmem:[%s20281_s3 + $0x84] ss:$8 sps:$4 sm:$0xff]   ;;  %v14771_v43 = vld [vmem:[%s20281_s3 + $0x194] ss:$8 sps:$4 sm:$0xff]  }
 0x2b5   : > { %v17004_v5 = vpop.f32.mrf.mxu1  ;;  %5302 = vmatprep.subr.bf16.mxu1 %v14738_v3  ;;  %v2677_v3 = vld [vmem:[#allocation2 + $0x198] sm:$0xff] }
 0x2b6   : > { %3849 = vmatmul.mubr.bf16.gmra.mxu1 %v3153_v38  ;;  %v2694_v7 = vpack.c.bf16 %v2678_v24, %v2677_v3 }
 0x2b7   : > { %3856 = vmatprep.mubr.bf16.mxu1 %v3221_v26  ;;  %v2594_v26 = vpack.c.bf16 %v2575_v32, %v2574_v23  ;;  %v2693_v23 = vpack.c.bf16 %v2676_v51, %v2675_v19  ;;  %v14748_v32 = vld [vmem:[%s20281_s3 + $0xb0] ss:$8 sps:$4 sm:$0xff]   ;;  %v14765_v19 = vld [vmem:[%s20281_s3 + $0x1a4] ss:$8 sps:$4 sm:$0xff]  }
 0x2b8   : > { %5303 = vmatpush2.bf16.msra.mxu1 %v14736_v49  ;;  %v14759_v49 = vld [vmem:[%s20281_s3 + $0x1b4] ss:$8 sps:$4 sm:$0xff]  }
 0x2b9   : > { %v3161_v52 = vsel %vm2346_vm6, %v2594_v26, %v2928_v20  ;;  %5304 = vmatprep.subr.bf16.mxu1 %v14744_v61  ;;  %v14754_v26 = vld [vmem:[%s20281_s3 + $0xa0] ss:$8 sps:$4 sm:$0xff]   ;;  %v14762_v61 = vld [vmem:[%s20281_s3 + $0x94] ss:$8 sps:$4 sm:$0xff]  }
 0x2bc   : > { %5305 = vmatpush2.bf16.msra.mxu1 %v14742_v53 }
 0x2bd   : > { %5306 = vmatprep.subr.bf16.mxu1 %v14750_v12  ;;  %v14769_v12 = vld [vmem:[%s20281_s3 + $0x190] ss:$8 sps:$4 sm:$0xff]  }
 0x2be   : > { %3857 = vmatmul.mubr.bf16.gmra.mxu1 %v3157_v15  ;;  %v14747_v15 = vld [vmem:[%s20281_s3 + $0x1d4] ss:$8 sps:$4 sm:$0xff]  }
 0x2bf   : > { %3864 = vmatprep.mubr.bf16.mxu1 %v3225_v22  ;;  %v14745_v22 = vld [vmem:[%s20281_s3 + $0x1d0] ss:$8 sps:$4 sm:$0xff]   ;;  %5375 = vmatprep.subr.bf16.mxu0 %v14747_v15  ;;  %v14763_v15 = vld [vmem:[%s20281_s3 + $0x1a0] ss:$8 sps:$4 sm:$0xff]  }
 0x2c0   : > { %v13816_v57 = vpop.f32.mrf.mxu1  ;;  %5376 = vmatpush2.bf16.msra.mxu0 %v14745_v22  ;;  %5307 = vmatpush2.bf16.msra.mxu1 %v14748_v32 }
 0x2c1   : > { %5377 = vmatprep.subr.bf16.mxu0 %v14753_v9  ;;  %5308 = vmatprep.subr.bf16.mxu1 %v14756_v59  ;;  %v14772_v9 = vld [vmem:[%s20281_s3 + $0x180] ss:$8 sps:$4 sm:$0xff]  }
 0x2c2   : > { %v13817_v0 = vpop.f32.mrf.mxu1 }
 0x2c3   : > { %v17023_v38 = vadd.f32 %v13817_v0, %v13816_v57  ;;  %v2980_v57 = vpop.permute.xlu0 %2979 }
 0x2c4   : > { %v17048_v27 = vpop.f32.mrf.mxu1  ;;  %v3233_v17 = vsel %vm2346_vm6, %v2693_v23, %v2980_v57  ;;  %5378 = vmatpush2.bf16.msra.mxu0 %v14751_v37  ;;  %5309 = vmatpush2.bf16.msra.mxu1 %v14754_v26 }
 0x2c5   : > { %5379 = vmatprep.subr.bf16.mxu0 %v14759_v49  ;;  %5310 = vmatprep.subr.bf16.mxu1 %v14762_v61  ;;  %v14777_v49 = vld [vmem:[%s20281_s3 + $0x274] ss:$8 sps:$4 sm:$0xff]  }
 0x2c6   : > { %3865 = vmatmul.mubr.bf16.gmra.mxu1 %v3161_v52  ;;  %v17063_v0 = vpop.f32.mrf.mxu1  ;;  %v2932_v52 = vpop.permute.xlu1 %2931 }
 0x2c7   : > { %3872 = vmatprep.mubr.bf16.mxu1 %v3229_v46  ;;  %v14757_v46 = vld [vmem:[%s20281_s3 + $0x1b0] ss:$8 sps:$4 sm:$0xff]   ;;  %v2982_v54 = vpop.permute.xlu0 %2981  ;;  %v3169_v53 = vsel %vm2346_vm6, %v16651_v31, %v2932_v52  ;;  %v14766_v31 = vld [vmem:[%s20281_s3 + $0x80] ss:$8 sps:$4 sm:$0xff]  }
 0x2c8   : > { %5380 = vmatpush2.bf16.msra.mxu0 %v14757_v46  ;;  %v3237_v51 = vsel %vm2346_vm6, %v2694_v7, %v2982_v54  ;;  %5311 = vmatpush2.bf16.msra.mxu1 %v14760_v48  ;;  %v14789_v48 = vld [vmem:[%s20281_s3 + $0x374] ss:$8 sps:$4 sm:$0xff]  }
 0x2c9   : > { %5381 = vmatprep.subr.bf16.mxu0 %v14765_v19  ;;  %5312 = vmatprep.subr.bf16.mxu1 %v14768_v8 }
 0x2ca   : > { %v2934_v57 = vpop.permute.xlu1 %2933 }
 0x2cb   : > { %v3173_v23 = vsel %vm2346_vm6, %v16797_v47, %v2934_v57 }
 0x2cc   : > { %5382 = vmatpush2.bf16.msra.mxu0 %v14763_v15  ;;  %5313 = vmatpush2.bf16.msra.mxu1 %v14766_v31 }
 0x2cd   : > { %5383 = vmatprep.subr.bf16.mxu0 %v14771_v43  ;;  %5428 = vmatprep.subr.bf16.mxu1 %v14777_v49 }
 0x2ce   : > { %3873 = vmatmul.mubr.bf16.gmra.mxu1 %v3165_v36  ;;  %v14774_v36 = vld [vmem:[%s20281_s3 + $0x184] ss:$8 sps:$4 sm:$0xff]  }
 0x2cf   : > { %v13822_v20 = vpop.f32.mrf.mxu1  ;;  %3880 = vmatprep.mubr.bf16.mxu1 %v3233_v17 }
 0x2d0   : > { %5384 = vmatpush2.bf16.msra.mxu0 %v14769_v12 }
 0x2d1   : > { %v13823_v45 = vpop.f32.mrf.mxu1  ;;  %5385 = vmatprep.subr.bf16.mxu0 %v14774_v36 }
 0x2d2   : > { %v17081_v41 = vadd.f32 %v13823_v45, %v13822_v20 }
 0x2d3   : > { %v17107_v22 = vpop.f32.mrf.mxu1 }
 0x2d4   : > { %5386 = vmatpush2.bf16.msra.mxu0 %v14772_v9 }
 0x2d5   : > { %v17117_v32 = vpop.f32.mrf.mxu1  ;;  %5501 = vmatprep.subr.bf16.mxu0 %v14789_v48 }
 0x2d6   : > { %3881 = vmatmul.mubr.bf16.gmra.mxu1 %v3169_v53 }
 0x2d7   : > { %3888 = vmatprep.mubr.bf16.mxu1 %v3237_v51 }
 0x2de   : > { %3889 = vmatmul.mubr.bf16.gmra.mxu1 %v3173_v23 }
 0x2df   : > { %v13828_v17 = vpop.f32.mrf.mxu1 }
 0x2e1   : > { %v13829_v37 = vpop.f32.mrf.mxu1 }
 0x2e2   : > { %v17125_v20 = vadd.f32 %v13829_v37, %v13828_v17  ;;  %v14515_v37 = vpop.f32.mrf.mxu0 }
 0x2e3   : > { %v17127_v59 = vpop.f32.mrf.mxu1 }
 0x2e5   : > { %v17129_v47 = vpop.f32.mrf.mxu1 }
 0x2ef   : > { %v13834_v26 = vpop.f32.mrf.mxu1 }
 0x2f1   : > { %v13835_v45 = vpop.f32.mrf.mxu1 }
 0x2f2   : > { %v17131_v3 = vadd.f32 %v13835_v45, %v13834_v26 }
 0x2f3   : > { %v17133_v24 = vpop.f32.mrf.mxu1 }
 0x2f5   : > { %v17138_v52 = vpop.f32.mrf.mxu1 }
 0x2ff   : > { %v13840_v46 = vpop.f32.mrf.mxu1 }
 0x301   : > { %v13841_v54 = vpop.f32.mrf.mxu1 }
 0x302   : > { %v17140_v61 = vadd.f32 %v13841_v54, %v13840_v46  ;;  %v3931_v46 = vpop.f32.mrf.mxu0 }
 0x303   : > { %v17142_v7 = vpop.f32.mrf.mxu1 }
 0x304   : > { %20290 = vst [vmem:[#allocation5_spill] sm:$0xff] %v17140_v61  ;;  %20291 = vst [vmem:[#allocation6_spill] sm:$0xff] %v17142_v7  ;;  %v14516_v11 = vpop.f32.mrf.mxu0 }
 0x305   : > { %v17147_v53 = vpop.f32.mrf.mxu1 }
 0x306   : > { %20292 = vst [vmem:[#allocation7_spill] sm:$0xff] %v17147_v53  ;;  %v3934_v53 = vpop.f32.mrf.mxu0 }
 0x30f   : > { %v13846_v19 = vpop.f32.mrf.mxu1 }
 0x311   : > { %v13847_v51 = vpop.f32.mrf.mxu1 }
 0x312   : > { %v17149_v15 = vadd.f32 %v13847_v51, %v13846_v19 }
 0x313   : > { %v17151_v8 = vpop.f32.mrf.mxu1 }
 0x314   : > { %20293 = vst [vmem:[#allocation8_spill] sm:$0xff] %v17149_v15  ;;  %20294 = vst [vmem:[#allocation9_spill] sm:$0xff] %v17151_v8 }
 0x315   : > { %v17153_v31 = vpop.f32.mrf.mxu1 }
 0x316   : > { %20295 = vst [vmem:[#allocation10_spill] sm:$0xff] %v17153_v31 }
 0x31e   : > { %v13852_v43 = vpop.f32.mrf.mxu1 }
 0x320   : > { %v13853_v57 = vpop.f32.mrf.mxu1 }
 0x321   : > { %v17155_v12 = vadd.f32 %v13853_v57, %v13852_v43  ;;  %v13767_v43 = vadd.f32 %v16814_v63, %v16808_v50 }
 0x322   : > { %v17157_v23 = vpop.f32.mrf.mxu1 }
 0x323   : > { %20296 = vst [vmem:[#allocation11_spill] sm:$0xff] %v17155_v12  ;;  %20297 = vst [vmem:[#allocation12_spill] sm:$0xff] %v17157_v23 }
 0x324   : > { %v17159_v36 = vpop.f32.mrf.mxu1 }
 0x325   : > { %20298 = vst [vmem:[#allocation13_spill] sm:$0xff] %v17159_v36 }
 0x326   : > { %v13874_v9 = vpop.f32.mrf.mxu1 }
 0x328   : > { %v13875_v17 = vpop.f32.mrf.mxu1 }
 0x329   : > { %v13876_v45 = vadd.f32 %v13875_v17, %v13874_v9  ;;  %v13773_v9 = vadd.f32 %v16820_v6, %v16818_v4 }
 0x32a   : > { %v13877_v26 = vpop.f32.mrf.mxu1 }
 0x32b   : > { %v3771_v48 = vadd.f32 %v13876_v45, %v16806_v56 }
 0x32c   : > { %v13878_v49 = vpop.f32.mrf.mxu1 }
 0x32d   : > { %v13879_v19 = vadd.f32 %v13878_v49, %v13877_v26  ;;  %v3932_v12 = vadd.f32 %v3931_v46, %v3771_v48 }
 0x32e   : > { %v13880_v54 = vpop.f32.mrf.mxu1 }
 0x32f   : > { %v3774_v36 = vadd.f32 %v13879_v19, %v13767_v43  ;;  %v4058_v26 = vmax.f32 %v3932_v12, 0.0  ;;  %v13779_v12 = vadd.f32 %v16832_v39, %v16828_v10 }
 0x330   : > { %v13881_v51 = vpop.f32.mrf.mxu1 }
 0x331   : > { %v13882_v57 = vadd.f32 %v13881_v51, %v13880_v54  ;;  %v3935_v45 = vadd.f32 %v3934_v53, %v3774_v36  ;;  %v14519_v51 = vpop.f32.mrf.mxu0 }
 0x332   : > { %v13883_v23 = vpop.f32.mrf.mxu1 }
 0x333   : > { %v3779_v31 = vadd.f32 %v13882_v57, %v16816_v2  ;;  %v4059_v48 = vmax.f32 %v3935_v45, 0.0  ;;  %v3947_v6 = vpop.f32.mrf.mxu0  ;;  %v13785_v45 = vadd.f32 %v16843_v1, %v16841_v55 }
 0x334   : > { %v13884_v8 = vpop.f32.mrf.mxu1 }
 0x335   : > { %v3940_v17 = vadd.f32 %v14515_v37, %v3779_v31  ;;  %v13885_v15 = vadd.f32 %v13884_v8, %v13883_v23  ;;  %v14520_v37 = vpop.f32.mrf.mxu0 }
 0x336   : > { %v13886_v56 = vpop.f32.mrf.mxu1 }
 0x337   : > { %v4060_v49 = vmax.f32 %v3940_v17, 0.0  ;;  %v3782_v7 = vadd.f32 %v13885_v15, %v13773_v9 }
 0x338   : > { %v13887_v50 = vpop.f32.mrf.mxu1 }
 0x339   : > { %v4090_v63 = vmax.f32 %v4058_v26, %v4060_v49  ;;  %v3943_v54 = vadd.f32 %v14516_v11, %v3782_v7  ;;  %v13888_v43 = vadd.f32 %v13887_v50, %v13886_v56  ;;  %v3950_v49 = vpop.f32.mrf.mxu0 }
 0x33a   : > { %v13889_v46 = vpop.f32.mrf.mxu1 }
 0x33b   : > { %v4114_v19 = vrot.slane %v4090_v63, 1  ;;  %v4061_v2 = vmax.f32 %v3943_v54, 0.0  ;;  %v3787_v15 = vadd.f32 %v13888_v43, %v16826_v34 }
 0x33c   : > { %v13890_v57 = vpop.f32.mrf.mxu1 }
 0x33d   : > { %v4130_v61 = vmax.f32 %v4090_v63, %v4114_v19  ;;  %v4091_v4 = vmax.f32 %v4059_v48, %v4061_v2  ;;  %v13891_v11 = vadd.f32 %v13890_v57, %v13889_v46  ;;  %v3948_v56 = vadd.f32 %v3947_v6, %v3787_v15  ;;  %v14523_v57 = vpop.f32.mrf.mxu0 }
 0x33e   : > { %v13892_v8 = vpop.f32.mrf.mxu1 }
 0x33f   : > { %v4141_v31 = vrot.slane %v4130_v61, %v16173_v25  ;;  %4179 = vst [vmem:[#allocation3 + $0x10] sm:$0x4] %v4130_v61  ;;  %4187 = vst [vmem:[#allocation3 + $0xf] sm:$0x10] %v4130_v61  ;;  %v4211_v53 = vrot.slane %v4091_v4, 1  ;;  %v4062_v63 = vmax.f32 %v3948_v56, 0.0 }
 0x340   : > { %4195 = vst [vmem:[#allocation3 + $0xe] sm:$0x40] %v4130_v61  ;;  %v13893_v7 = vpop.f32.mrf.mxu1  ;;  %v3790_v61 = vadd.f32 %v13891_v11, %v13779_v12  ;;  %v3963_v11 = vpop.f32.mrf.mxu0 }
 0x341   : > { %4171 = vst [vmem:[#allocation3 + $0x10] sm:$0x3] %v4141_v31  ;;  %v4227_v23 = vmax.f32 %v4091_v4, %v4211_v53  ;;  %v13894_v36 = vadd.f32 %v13893_v7, %v13892_v8 }
 0x342   : > { %v13895_v9 = vpop.f32.mrf.mxu1  ;;  %v3951_v54 = vadd.f32 %v3950_v49, %v3790_v61 }
 0x343   : > { %4235 = vst [vmem:[#allocation3 + $0x15] sm:$0x1] %v4227_v23  ;;  %4243 = vst [vmem:[#allocation3 + $0x14] sm:$0x4] %v4227_v23  ;;  %v4262_v17 = vrot.slane %v4227_v23, %v16184_v35  ;;  %v3795_v26 = vadd.f32 %v13894_v36, %v16837_v29 }
 0x344   : > { %4251 = vst [vmem:[#allocation3 + $0x13] sm:$0x10] %v4227_v23  ;;  %v13896_v34 = vpop.f32.mrf.mxu1  ;;  %v4063_v29 = vmax.f32 %v3951_v54, 0.0 }
 0x345   : > { %4291 = vst [vmem:[#allocation3 + $0x18] sm:$0x3] %v4262_v17  ;;  %v3956_v10 = vadd.f32 %v14519_v51, %v3795_v26  ;;  %v13897_v39 = vadd.f32 %v13896_v34, %v13895_v9  ;;  %v13791_v17 = vadd.f32 %v16861_v44, %v16859_v40  ;;  %v14524_v26 = vpop.f32.mrf.mxu0  ;;  %v13797_v40 = vadd.f32 %v16887_v62, %v16885_v58 }
 0x346   : > { %v13898_v50 = vpop.f32.mrf.mxu1 }
 0x347   : > { %v4064_v46 = vmax.f32 %v3956_v10, 0.0  ;;  %v3798_v48 = vadd.f32 %v13897_v39, %v13785_v45 }
 0x348   : > { %v13899_v19 = vpop.f32.mrf.mxu1 }
 0x349   : > { %v4092_v2 = vmax.f32 %v4062_v63, %v4064_v46  ;;  %v3959_v43 = vadd.f32 %v14520_v37, %v3798_v48  ;;  %v13900_v55 = vadd.f32 %v13899_v19, %v13898_v50  ;;  %v14775_v48 = vld [vmem:[%s20281_s3 + $0x270] ss:$8 sps:$4 sm:$0xff]   ;;  %v3966_v19 = vpop.f32.mrf.mxu0 }
 0x34a   : > { %v13901_v4 = vpop.f32.mrf.mxu1 }
 0x34b   : > { %v17175_v6 = vld [vmem:[#allocation3 + $0x10] sm:$0xff]  ;;  %v4115_v8 = vrot.slane %v4092_v2, 1  ;;  %v4065_v31 = vmax.f32 %v3959_v43, 0.0  ;;  %v3803_v36 = vadd.f32 %v13900_v55, %v16848_v28 }
 0x34c   : > { %4301 = vst [vmem:[#allocation3] sm:$0xff] %v17175_v6  ;;  %v13902_v1 = vpop.f32.mrf.mxu1  ;;  %v4300_v51 = vld [vmem:[#allocation3 + $0x18] sm:$0x3]  ;;  %v14780_v43 = vld [vmem:[%s20281_s3 + $0x264] ss:$8 sps:$4 sm:$0xff]  }
 0x34d   : > { %v4131_v53 = vmax.f32 %v4092_v2, %v4115_v8  ;;  %v4093_v15 = vmax.f32 %v4063_v29, %v4065_v31  ;;  %4302 = vst [vmem:[#allocation3 + $0x8] sm:$0x3] %v4300_v51  ;;  %v13903_v37 = vadd.f32 %v13902_v1, %v13901_v4  ;;  %v3964_v10 = vadd.f32 %v3963_v11, %v3803_v36  ;;  %v17184_v63 = vld [vmem:[#allocation3 + $0x11] sm:$0xff]  ;;  %v17197_v1 = vpop.f32.mrf.mxu0 }
 0x34e   : > { %v13904_v7 = vpop.f32.mrf.mxu1  ;;  %v14778_v11 = vld [vmem:[%s20281_s3 + $0x260] ss:$8 sps:$4 sm:$0xff]  }
 0x34f   : > { %v4145_v12 = vrot.slane %v4131_v53, %v16173_v25  ;;  %4180 = vst [vmem:[#allocation3 + $0x20] sm:$0x4] %v4131_v53  ;;  %4188 = vst [vmem:[#allocation3 + $0x1f] sm:$0x10] %v4131_v53  ;;  %v4212_v23 = vrot.slane %v4093_v15, 1  ;;  %v3806_v39 = vadd.f32 %v13903_v37, %v13791_v17  ;;  %v4066_v4 = vmax.f32 %v3964_v10, 0.0 }
 0x350   : > { %4196 = vst [vmem:[#allocation3 + $0x1e] sm:$0x40] %v4131_v53  ;;  %v13905_v9 = vpop.f32.mrf.mxu1  ;;  %v14787_v17 = vld [vmem:[%s20281_s3 + $0x370] ss:$8 sps:$4 sm:$0xff]  }
 0x351   : > { %4172 = vst [vmem:[#allocation3 + $0x20] sm:$0x3] %v4145_v12  ;;  %v4228_v56 = vmax.f32 %v4093_v15, %v4212_v23  ;;  %v13906_v61 = vadd.f32 %v13905_v9, %v13904_v7  ;;  %v3967_v58 = vadd.f32 %v3966_v19, %v3806_v39  ;;  %v14783_v7 = vld [vmem:[%s20281_s3 + $0x254] ss:$8 sps:$4 sm:$0xff]   ;;  %v17209_v9 = vld [vmem:[#allocation3 + $0x12] sm:$0xff]  ;;  %v3979_v39 = vpop.f32.mrf.mxu0 }
 0x352   : > { %v13907_v34 = vpop.f32.mrf.mxu1  ;;  %v14801_v19 = vld [vmem:[%s20281_s3 + $0x354] ss:$8 sps:$4 sm:$0xff]  }
 0x353   : > { %4236 = vst [vmem:[#allocation3 + $0x25] sm:$0x1] %v4228_v56  ;;  %4244 = vst [vmem:[#allocation3 + $0x24] sm:$0x4] %v4228_v56  ;;  %v4266_v45 = vrot.slane %v4228_v56, %v16184_v35  ;;  %v3811_v49 = vadd.f32 %v13906_v61, %v16867_v21  ;;  %v4317_v21 = vpack.c.bf16 %v17175_v6, %v17175_v6  ;;  %v4067_v12 = vmax.f32 %v3967_v58, 0.0 }
 0x354   : > { %4252 = vst [vmem:[#allocation3 + $0x23] sm:$0x10] %v4228_v56  ;;  %v13908_v28 = vpop.f32.mrf.mxu1  ;;  %v4321_v50 = vld [vmem:[#allocation3 + $0x1] sm:$0xff] }
 0x355   : > { %4292 = vst [vmem:[#allocation3 + $0x28] sm:$0x3] %v4266_v45  ;;  %v3972_v44 = vadd.f32 %v14523_v57, %v3811_v49  ;;  %v13909_v54 = vadd.f32 %v13908_v28, %v13907_v34  ;;  %v4329_v46 = vpack.c.bf16 %v17184_v63, %v4321_v50  ;;  %v4333_v55 = vld [vmem:[#allocation3 + $0x2] sm:$0xff]  ;;  %v14795_v34 = vld [vmem:[%s20281_s3 + $0x364] ss:$8 sps:$4 sm:$0xff]  }
 0x356   : > { %v13910_v2 = vpop.f32.mrf.mxu1  ;;  %v4341_v61 = vpack.c.bf16 %v17209_v9, %v4333_v55  ;;  %v14781_v28 = vld [vmem:[%s20281_s3 + $0x250] ss:$8 sps:$4 sm:$0xff]  }
 0x357   : > { %v4068_v62 = vmax.f32 %v3972_v44, 0.0  ;;  %v3814_v57 = vadd.f32 %v13909_v54, %v13797_v40  ;;  %5314 = vmatprep.mubr.bf16.mxu1 %v4329_v46  ;;  %v14793_v46 = vld [vmem:[%s20281_s3 + $0x360] ss:$8 sps:$4 sm:$0xff]  }
 0x358   : > { %v13911_v29 = vpop.f32.mrf.mxu1  ;;  %5315 = vmatmul.mubr.bf16.vlgmr.msra.gmra.mxu1 %v4317_v21 }
 0x359   : > { %v4094_v8 = vmax.f32 %v4066_v4, %v4068_v62  ;;  %v3975_v31 = vadd.f32 %v14524_v26, %v3814_v57  ;;  %5429 = vmatpush1.bf16.msra.mxu1 %v14775_v48  ;;  %v13912_v51 = vadd.f32 %v13911_v29, %v13910_v2  ;;  %v13803_v2 = vadd.f32 %v16913_v13, %v16911_v33  ;;  %v14528_v4 = vpop.f32.mrf.mxu0  ;;  %v14784_v57 = vld [vmem:[%s20281_s3 + $0x240] ss:$8 sps:$4 sm:$0xff]   ;;  %v14792_v33 = vld [vmem:[%s20281_s3 + $0x234] ss:$8 sps:$4 sm:$0xff]   ;;  %v14799_v13 = vld [vmem:[%s20281_s3 + $0x350] ss:$8 sps:$4 sm:$0xff]  }
 0x35a   : > { %v13913_v53 = vpop.f32.mrf.mxu1  ;;  %5430 = vmatprep.subr.bf16.mxu1 %v14780_v43 }
 0x35b   : > { %v17199_v15 = vld [vmem:[#allocation3 + $0x20] sm:$0xff]  ;;  %v4116_v23 = vrot.slane %v4094_v8, 1  ;;  %v4069_v36 = vmax.f32 %v3975_v31, 0.0 }
 0x35c   : > { %v4353_v37 = vpack.c.bf16 %v17199_v15, %v17175_v6  ;;  %v13914_v56 = vpop.f32.mrf.mxu1  ;;  %v17215_v26 = vld [vmem:[#allocation3 + $0x21] sm:$0xff]  ;;  %v3819_v6 = vadd.f32 %v13912_v51, %v16893_v14  ;;  %v14786_v14 = vld [vmem:[%s20281_s3 + $0x244] ss:$8 sps:$4 sm:$0xff]  }
 0x35d   : > { %v4132_v45 = vmax.f32 %v4094_v8, %v4116_v23  ;;  %v4095_v10 = vmax.f32 %v4067_v12, %v4069_v36  ;;  %5431 = vmatpush1.bf16.msra.mxu1 %v14778_v11  ;;  %v4365_v50 = vpack.c.bf16 %v17215_v26, %v17184_v63  ;;  %v13915_v54 = vadd.f32 %v13914_v56, %v13913_v53  ;;  %v14807_v51 = vld [vmem:[%s20281_s3 + $0x344] ss:$8 sps:$4 sm:$0xff]   ;;  %v14790_v23 = vld [vmem:[%s20281_s3 + $0x230] ss:$8 sps:$4 sm:$0xff]  }
 0x35e   : > { %5387 = vmatprep.mubr.bf16.mxu0 %v4353_v37  ;;  %v13916_v49 = vpop.f32.mrf.mxu1  ;;  %5432 = vmatprep.subr.bf16.mxu1 %v14783_v7  ;;  %v3980_v58 = vadd.f32 %v3979_v39, %v3819_v6  ;;  %v13809_v53 = vadd.f32 %v16951_v18, %v16949_v30  ;;  %v3982_v7 = vpop.f32.mrf.mxu0  ;;  %v14798_v30 = vld [vmem:[%s20281_s3 + $0x224] ss:$8 sps:$4 sm:$0xff]   ;;  %v14805_v18 = vld [vmem:[%s20281_s3 + $0x340] ss:$8 sps:$4 sm:$0xff]  }
 0x35f   : > { %5388 = vmatmul.mubr.bf16.vlgmr.msra.gmra.mxu0 %v4341_v61  ;;  %v4149_v40 = vrot.slane %v4132_v45, %v16173_v25  ;;  %4181 = vst [vmem:[#allocation3 + $0x30] sm:$0x4] %v4132_v45  ;;  %4189 = vst [vmem:[#allocation3 + $0x2f] sm:$0x10] %v4132_v45  ;;  %v4213_v44 = vrot.slane %v4095_v10, 1  ;;  %v3822_v8 = vadd.f32 %v13915_v54, %v13803_v2 }
 0x360   : > { %4197 = vst [vmem:[#allocation3 + $0x2e] sm:$0x40] %v4132_v45  ;;  %5502 = vmatpush1.bf16.msra.mxu0 %v14787_v17  ;;  %v13917_v48 = vpop.f32.mrf.mxu1  ;;  %v4070_v36 = vmax.f32 %v3980_v58, 0.0  ;;  %v14813_v61 = vld [vmem:[%s20281_s3 + $0x334] ss:$8 sps:$4 sm:$0xff]  }
 0x361   : > { %5503 = vmatprep.subr.bf16.mxu0 %v14795_v34  ;;  %4173 = vst [vmem:[#allocation3 + $0x30] sm:$0x3] %v4149_v40  ;;  %v4229_v21 = vmax.f32 %v4095_v10, %v4213_v44  ;;  %v13918_v43 = vadd.f32 %v13917_v48, %v13916_v49  ;;  %5433 = vmatpush1.bf16.msra.mxu1 %v14781_v28  ;;  %v17267_v10 = vpop.f32.mrf.mxu0  ;;  %v14796_v49 = vld [vmem:[%s20281_s3 + $0x220] ss:$8 sps:$4 sm:$0xff]   ;;  %v14804_v28 = vld [vmem:[%s20281_s3 + $0x214] ss:$8 sps:$4 sm:$0xff]  }
 0x362   : > { %v13919_v62 = vpop.f32.mrf.mxu1  ;;  %5434 = vmatprep.subr.bf16.mxu1 %v14786_v14  ;;  %v3983_v37 = vadd.f32 %v3982_v7, %v3822_v8  ;;  %v14811_v14 = vld [vmem:[%s20281_s3 + $0x330] ss:$8 sps:$4 sm:$0xff]   ;;  %v14819_v2 = vld [vmem:[%s20281_s3 + $0x324] ss:$8 sps:$4 sm:$0xff]  }
 0x363   : > { %4237 = vst [vmem:[#allocation3 + $0x35] sm:$0x1] %v4229_v21  ;;  %4245 = vst [vmem:[#allocation3 + $0x34] sm:$0x4] %v4229_v21  ;;  %v4270_v29 = vrot.slane %v4229_v21, %v16184_v35  ;;  %v3827_v31 = vadd.f32 %v13918_v43, %v16931_v16 }
 0x364   : > { %4253 = vst [vmem:[#allocation3 + $0x33] sm:$0x10] %v4229_v21  ;;  %5504 = vmatpush1.bf16.msra.mxu0 %v14793_v46  ;;  %v13920_v55 = vpop.f32.mrf.mxu1  ;;  %v4071_v40 = vmax.f32 %v3983_v37, 0.0 }
 0x365   : > { %5505 = vmatprep.subr.bf16.mxu0 %v14801_v19  ;;  %4293 = vst [vmem:[#allocation3 + $0x38] sm:$0x3] %v4270_v29  ;;  %v3988_v16 = vadd.f32 %v17197_v1, %v3827_v31  ;;  %v13921_v11 = vadd.f32 %v13920_v55, %v13919_v62  ;;  %5435 = vmatpush1.bf16.msra.mxu1 %v14784_v57  ;;  %v14802_v29 = vld [vmem:[%s20281_s3 + $0x210] ss:$8 sps:$4 sm:$0xff]   ;;  %v14817_v55 = vld [vmem:[%s20281_s3 + $0x320] ss:$8 sps:$4 sm:$0xff]  }
 0x366   : > { %v13922_v12 = vpop.f32.mrf.mxu1  ;;  %5436 = vmatprep.subr.bf16.mxu1 %v14792_v33 }
 0x367   : > { %v4072_v17 = vmax.f32 %v3988_v16, 0.0  ;;  %v3830_v56 = vadd.f32 %v13921_v11, %v13809_v53  ;;  %v14825_v53 = vld [vmem:[%s20281_s3 + $0x314] ss:$8 sps:$4 sm:$0xff]  }
 0x368   : > { %5506 = vmatpush1.bf16.msra.mxu0 %v14799_v13  ;;  %v13923_v1 = vpop.f32.mrf.mxu1  ;;  %v14810_v13 = vld [vmem:[%s20281_s3 + $0x204] ss:$8 sps:$4 sm:$0xff]  }
 0x369   : > { %5507 = vmatprep.subr.bf16.mxu0 %v14807_v51  ;;  %v4096_v34 = vmax.f32 %v4070_v36, %v4072_v17  ;;  %v3991_v45 = vadd.f32 %v14528_v4, %v3830_v56  ;;  %v13924_v39 = vadd.f32 %v13923_v1, %v13922_v12  ;;  %5437 = vmatpush1.bf16.msra.mxu1 %v14790_v23  ;;  %v3995_v4 = vpop.f32.mrf.mxu0  ;;  %v14808_v36 = vld [vmem:[%s20281_s3 + $0x200] ss:$8 sps:$4 sm:$0xff]   ;;  %v14823_v56 = vld [vmem:[%s20281_s3 + $0x310] ss:$8 sps:$4 sm:$0xff]  }
 0x36a   : > { %v13925_v6 = vpop.f32.mrf.mxu1  ;;  %5438 = vmatprep.subr.bf16.mxu1 %v14798_v30  ;;  %v13821_v1 = vadd.f32 %v17063_v0, %v17048_v27  ;;  %v14822_v27 = vld [vmem:[%s20281_s3 + $0x2e4] ss:$8 sps:$4 sm:$0xff]   ;;  %v14829_v0 = vld [vmem:[%s20281_s3 + $0x300] ss:$8 sps:$4 sm:$0xff]  }
 0x36b   : > { %v4117_v44 = vrot.slane %v4096_v34, 1  ;;  %v4073_v54 = vmax.f32 %v3991_v45, 0.0  ;;  %v17280_v19 = vld [vmem:[#allocation3 + $0x30] sm:$0xff]  ;;  %v3835_v58 = vadd.f32 %v13924_v39, %v16971_v60  ;;  %v14532_v7 = vpop.f32.mrf.mxu0  ;;  %v14814_v39 = vld [vmem:[%s20281_s3 + $0x2f0] ss:$8 sps:$4 sm:$0xff]  }
 0x36c   : > { %5508 = vmatpush1.bf16.msra.mxu0 %v14805_v18  ;;  %v13926_v46 = vpop.f32.mrf.mxu1  ;;  %v17278_v48 = vld [vmem:[#allocation3 + $0x31] sm:$0xff]  ;;  %v17296_v60 = vpack.c.bf16 %v17280_v19, %v17199_v15  ;;  %v13815_v15 = vadd.f32 %v17004_v5, %v16990_v42  ;;  %v14816_v5 = vld [vmem:[%s20281_s3 + $0x2f4] ss:$8 sps:$4 sm:$0xff]  }
 0x36d   : > { %5509 = vmatprep.subr.bf16.mxu0 %v14813_v61  ;;  %v4133_v21 = vmax.f32 %v4096_v34, %v4117_v44  ;;  %v4097_v43 = vmax.f32 %v4071_v40, %v4073_v54  ;;  %v17288_v57 = vpack.c.bf16 %v17278_v48, %v17215_v26  ;;  %5439 = vmatpush1.bf16.msra.mxu1 %v14796_v49  ;;  %v14831_v18 = vld [vmem:[%s20281_s3 + $0x304] ss:$8 sps:$4 sm:$0xff]   ;;  %v3998_v34 = vpop.f32.mrf.mxu0  ;;  %v14837_v44 = vld [vmem:[%s20281_s3 + $0x3f4] ss:$8 sps:$4 sm:$0xff]   ;;  %v14874_v26 = vld [vmem:[%s20281_s3 + $0x450] ss:$8 sps:$4 sm:$0xff]  }
 0x36e   : > { %v13928_v62 = vpop.f32.mrf.mxu1  ;;  %v13927_v33 = vadd.f32 %v13926_v46, %v13925_v6  ;;  %5440 = vmatprep.subr.bf16.mxu1 %v14804_v28  ;;  %v3996_v12 = vadd.f32 %v3995_v4, %v3835_v58  ;;  %v17340_v46 = vld [vmem:[#allocation3 + $0x32] sm:$0xff] }
 0x36f   : > { %v4153_v8 = vrot.slane %v4133_v21, %v16173_v25  ;;  %4182 = vst [vmem:[#allocation3 + $0x40] sm:$0x4] %v4133_v21  ;;  %4190 = vst [vmem:[#allocation3 + $0x3f] sm:$0x10] %v4133_v21  ;;  %v4214_v31 = vrot.slane %v4097_v43, 1  ;;  %5324 = vmatprep.mubr.bf16.mxu1 %v17288_v57 }
 0x370   : > { %4198 = vst [vmem:[#allocation3 + $0x3e] sm:$0x40] %v4133_v21  ;;  %5510 = vmatpush1.bf16.msra.mxu0 %v14811_v14  ;;  %v13929_v51 = vpop.f32.mrf.mxu1  ;;  %5325 = vmatmul.mubr.bf16.gmra.mxu1 %v17296_v60  ;;  %v3838_v17 = vadd.f32 %v13927_v33, %v13815_v15  ;;  %v4074_v6 = vmax.f32 %v3996_v12, 0.0  ;;  %v14820_v58 = vld [vmem:[%s20281_s3 + $0x2e0] ss:$8 sps:$4 sm:$0xff]  }
 0x371   : > { %5511 = vmatprep.subr.bf16.mxu0 %v14819_v2  ;;  %4174 = vst [vmem:[#allocation3 + $0x40] sm:$0x3] %v4153_v8  ;;  %v4230_v16 = vmax.f32 %v4097_v43, %v4214_v31  ;;  %v13930_v11 = vadd.f32 %v13929_v51, %v13928_v62  ;;  %5441 = vmatpush1.bf16.msra.mxu1 %v14802_v29  ;;  %v17342_v2 = vpop.f32.mrf.mxu0  ;;  %v14828_v62 = vld [vmem:[%s20281_s3 + $0x2d4] ss:$8 sps:$4 sm:$0xff]   ;;  %v14843_v15 = vld [vmem:[%s20281_s3 + $0x3e4] ss:$8 sps:$4 sm:$0xff]  }
 0x372   : > { %v13931_v23 = vpop.f32.mrf.mxu1  ;;  %5442 = vmatprep.subr.bf16.mxu1 %v14810_v13  ;;  %v3999_v49 = vadd.f32 %v3998_v34, %v3838_v17  ;;  %v17354_v13 = vld [vmem:[#allocation3 + $0x22] sm:$0xff] }
 0x373   : > { %4238 = vst [vmem:[#allocation3 + $0x45] sm:$0x1] %v4230_v16  ;;  %4246 = vst [vmem:[#allocation3 + $0x44] sm:$0x4] %v4230_v16  ;;  %v4274_v37 = vrot.slane %v4230_v16, %v16184_v35  ;;  %v3843_v42 = vadd.f32 %v13930_v11, %v17023_v38  ;;  %v4011_v11 = vpop.f32.mrf.mxu0 }
 0x374   : > { %4254 = vst [vmem:[#allocation3 + $0x43] sm:$0x10] %v4230_v16  ;;  %5512 = vmatpush1.bf16.msra.mxu0 %v14817_v55  ;;  %v13932_v30 = vpop.f32.mrf.mxu1  ;;  %v4075_v29 = vmax.f32 %v3999_v49, 0.0  ;;  %v14835_v55 = vld [vmem:[%s20281_s3 + $0x3f0] ss:$8 sps:$4 sm:$0xff]  }
 0x375   : > { %5513 = vmatprep.subr.bf16.mxu0 %v14825_v53  ;;  %4294 = vst [vmem:[#allocation3 + $0x48] sm:$0x3] %v4274_v37  ;;  %v4004_v38 = vadd.f32 %v17267_v10, %v3843_v42  ;;  %v13933_v61 = vadd.f32 %v13932_v30, %v13931_v23  ;;  %5443 = vmatpush1.bf16.msra.mxu1 %v14808_v36  ;;  %v14826_v23 = vld [vmem:[%s20281_s3 + $0x2d0] ss:$8 sps:$4 sm:$0xff]   ;;  %v14841_v42 = vld [vmem:[%s20281_s3 + $0x3e0] ss:$8 sps:$4 sm:$0xff]  }
 0x376   : > { %v13934_v45 = vpop.f32.mrf.mxu1  ;;  %5444 = vmatprep.subr.bf16.mxu1 %v14816_v5  ;;  %v17361_v53 = vpack.c.bf16 %v17340_v46, %v17354_v13  ;;  %v13827_v30 = vadd.f32 %v17117_v32, %v17107_v22  ;;  %v14840_v22 = vld [vmem:[%s20281_s3 + $0x2b4] ss:$8 sps:$4 sm:$0xff]   ;;  %v14847_v32 = vld [vmem:[%s20281_s3 + $0x3d0] ss:$8 sps:$4 sm:$0xff]  }
 0x377   : > { %v4076_v28 = vmax.f32 %v4004_v38, 0.0  ;;  %v3846_v40 = vadd.f32 %v13933_v61, %v13821_v1  ;;  %v14536_v38 = vpop.f32.mrf.mxu0 }
 0x378   : > { %5514 = vmatpush1.bf16.msra.mxu0 %v14823_v56  ;;  %v13935_v10 = vpop.f32.mrf.mxu1  ;;  %v14849_v56 = vld [vmem:[%s20281_s3 + $0x3d4] ss:$8 sps:$4 sm:$0xff]  }
 0x379   : > { %5515 = vmatprep.subr.bf16.mxu0 %v14831_v18  ;;  %v4098_v54 = vmax.f32 %v4074_v6, %v4076_v28  ;;  %v4007_v14 = vadd.f32 %v14532_v7, %v3846_v40  ;;  %v13936_v21 = vadd.f32 %v13935_v10, %v13934_v45  ;;  %5445 = vmatpush2.bf16.msra.mxu1 %v14814_v39  ;;  %v14832_v45 = vld [vmem:[%s20281_s3 + $0x2c0] ss:$8 sps:$4 sm:$0xff]   ;;  %v14855_v40 = vld [vmem:[%s20281_s3 + $0x3c4] ss:$8 sps:$4 sm:$0xff]   ;;  %v4014_v10 = vpop.f32.mrf.mxu0 }
 0x37a   : > { %v13937_v43 = vpop.f32.mrf.mxu1  ;;  %5446 = vmatprep.subr.bf16.mxu1 %v14822_v27  ;;  %v13833_v27 = vadd.f32 %v17129_v47, %v17127_v59  ;;  %v14846_v59 = vld [vmem:[%s20281_s3 + $0x2a4] ss:$8 sps:$4 sm:$0xff]   ;;  %v14853_v47 = vld [vmem:[%s20281_s3 + $0x3c0] ss:$8 sps:$4 sm:$0xff]  }
 0x37b   : > { %v17344_v4 = vld [vmem:[#allocation3 + $0x40] sm:$0xff]  ;;  %v4118_v8 = vrot.slane %v4098_v54, 1  ;;  %v4077_v31 = vmax.f32 %v4007_v14, 0.0  ;;  %v3851_v7 = vadd.f32 %v13936_v21, %v17081_v41  ;;  %v14834_v41 = vld [vmem:[%s20281_s3 + $0x2c4] ss:$8 sps:$4 sm:$0xff]  }
 0x37c   : > { %v4354_v33 = vpack.c.bf16 %v17344_v4, %v17280_v19  ;;  %5516 = vmatpush1.bf16.msra.mxu0 %v14829_v0  ;;  %v13938_v51 = vpop.f32.mrf.mxu1 }
 0x37d   : > { %5517 = vmatprep.subr.bf16.mxu0 %v14837_v44  ;;  %v4134_v16 = vmax.f32 %v4098_v54, %v4118_v8  ;;  %v4099_v19 = vmax.f32 %v4075_v29, %v4077_v31  ;;  %5447 = vmatpush2.bf16.msra.mxu1 %v14820_v58  ;;  %v13939_v17 = vadd.f32 %v13938_v51, %v13937_v43  ;;  %v14838_v54 = vld [vmem:[%s20281_s3 + $0x2b0] ss:$8 sps:$4 sm:$0xff]   ;;  %v17412_v29 = vpop.f32.mrf.mxu0  ;;  %v14852_v51 = vld [vmem:[%s20281_s3 + $0x294] ss:$8 sps:$4 sm:$0xff]  }
 0x37e   : > { %5397 = vmatprep.mubr.bf16.mxu0 %v4354_v33  ;;  %v13940_v12 = vpop.f32.mrf.mxu1  ;;  %5448 = vmatprep.subr.bf16.mxu1 %v14828_v62  ;;  %v4012_v61 = vadd.f32 %v4011_v11, %v3851_v7  ;;  %v14861_v62 = vld [vmem:[%s20281_s3 + $0x3b4] ss:$8 sps:$4 sm:$0xff]   ;;  %v14859_v7 = vld [vmem:[%s20281_s3 + $0x3b0] ss:$8 sps:$4 sm:$0xff]  }
 0x37f   : > { %5398 = vmatmul.mubr.bf16.gmra.mxu0 %v17361_v53  ;;  %v4157_v36 = vrot.slane %v4134_v16, %v16173_v25  ;;  %4183 = vst [vmem:[#allocation3 + $0x50] sm:$0x4] %v4134_v16  ;;  %4191 = vst [vmem:[#allocation3 + $0x4f] sm:$0x10] %v4134_v16  ;;  %v4215_v37 = vrot.slane %v4099_v19, 1  ;;  %v3854_v6 = vadd.f32 %v13939_v17, %v13827_v30  ;;  %v4027_v17 = vpop.f32.mrf.mxu0 }
 0x380   : > { %4199 = vst [vmem:[#allocation3 + $0x4e] sm:$0x40] %v4134_v16  ;;  %5518 = vmatpush2.bf16.msra.mxu0 %v14835_v55  ;;  %v13941_v5 = vpop.f32.mrf.mxu1  ;;  %v4078_v14 = vmax.f32 %v4012_v61, 0.0  ;;  %v14844_v55 = vld [vmem:[%s20281_s3 + $0x2a0] ss:$8 sps:$4 sm:$0xff]  }
 0x381   : > { %5519 = vmatprep.subr.bf16.mxu0 %v14843_v15  ;;  %4175 = vst [vmem:[#allocation3 + $0x50] sm:$0x3] %v4157_v36  ;;  %v4231_v18 = vmax.f32 %v4099_v19, %v4215_v37  ;;  %v13942_v1 = vadd.f32 %v13941_v5, %v13940_v12  ;;  %5449 = vmatpush2.bf16.msra.mxu1 %v14826_v23  ;;  %v14867_v37 = vld [vmem:[%s20281_s3 + $0x3a4] ss:$8 sps:$4 sm:$0xff]   ;;  %v17430_v5 = vld [vmem:[#allocation3 + $0x41] sm:$0xff] }
 0x382   : > { %v13943_v34 = vpop.f32.mrf.mxu1  ;;  %5450 = vmatprep.subr.bf16.mxu1 %v14834_v41  ;;  %v4015_v21 = vadd.f32 %v4014_v10, %v3854_v6  ;;  %v14865_v6 = vld [vmem:[%s20281_s3 + $0x3a0] ss:$8 sps:$4 sm:$0xff]  }
 0x383   : > { %4239 = vst [vmem:[#allocation3 + $0x55] sm:$0x1] %v4231_v18  ;;  %4247 = vst [vmem:[#allocation3 + $0x54] sm:$0x4] %v4231_v18  ;;  %v4278_v39 = vrot.slane %v4231_v18, %v16184_v35  ;;  %v3859_v49 = vadd.f32 %v13942_v1, %v17125_v20  ;;  %v14850_v1 = vld [vmem:[%s20281_s3 + $0x290] ss:$8 sps:$4 sm:$0xff]  }
 0x384   : > { %4255 = vst [vmem:[#allocation3 + $0x53] sm:$0x10] %v4231_v18  ;;  %5520 = vmatpush2.bf16.msra.mxu0 %v14841_v42  ;;  %v13944_v28 = vpop.f32.mrf.mxu1  ;;  %v4079_v15 = vmax.f32 %v4015_v21, 0.0  ;;  %v14879_v21 = vld [vmem:[%s20281_s3 + $0x384] ss:$8 sps:$4 sm:$0xff]  }
 0x385   : > { %5521 = vmatprep.subr.bf16.mxu0 %v14849_v56  ;;  %4295 = vst [vmem:[#allocation3 + $0x58] sm:$0x3] %v4278_v39  ;;  %v4020_v20 = vadd.f32 %v17342_v2, %v3859_v49  ;;  %v13945_v0 = vadd.f32 %v13944_v28, %v13943_v34  ;;  %5451 = vmatpush2.bf16.msra.mxu1 %v14832_v45  ;;  %v14858_v39 = vld [vmem:[%s20281_s3 + $0x284] ss:$8 sps:$4 sm:$0xff]  }
 0x386   : > { %v13946_v44 = vpop.f32.mrf.mxu1  ;;  %5452 = vmatprep.subr.bf16.mxu1 %v14840_v22  ;;  %v13839_v49 = vadd.f32 %v17138_v52, %v17133_v24  ;;  %v14540_v22 = vpop.f32.mrf.mxu0  ;;  %v14856_v24 = vld [vmem:[%s20281_s3 + $0x280] ss:$8 sps:$4 sm:$0xff]  }
 0x387   : > { %v4080_v43 = vmax.f32 %v4020_v20, 0.0  ;;  %v3862_v58 = vadd.f32 %v13945_v0, %v13833_v27  ;;  %v20299_v0 = vld [vmem:[#allocation5_spill] sm:$0xff] }
 0x388   : > { %5522 = vmatpush2.bf16.msra.mxu0 %v14847_v32  ;;  %v13947_v2 = vpop.f32.mrf.mxu1 }
 0x389   : > { %5523 = vmatprep.subr.bf16.mxu0 %v14855_v40  ;;  %v4100_v8 = vmax.f32 %v4078_v14, %v4080_v43  ;;  %v4023_v31 = vadd.f32 %v14536_v38, %v3862_v58  ;;  %5453 = vmatpush2.bf16.msra.mxu1 %v14838_v54  ;;  %v13948_v11 = vadd.f32 %v13947_v2, %v13946_v44  ;;  %v14864_v44 = vld [vmem:[%s20281_s3 + $0x474] ss:$8 sps:$4 sm:$0xff]   ;;  %v14871_v54 = vld [vmem:[%s20281_s3 + $0x390] ss:$8 sps:$4 sm:$0xff]   ;;  %v4030_v43 = vpop.f32.mrf.mxu0  ;;  %v20300_v58 = vld [vmem:[#allocation6_spill] sm:$0xff] }
 0x38a   : > { %v13949_v33 = vpop.f32.mrf.mxu1  ;;  %5454 = vmatprep.subr.bf16.mxu1 %v14846_v59  ;;  %v20301_v59 = vld [vmem:[#allocation7_spill] sm:$0xff] }
 0x38b   : > { %v4119_v16 = vrot.slane %v4100_v8, 1  ;;  %v4081_v19 = vmax.f32 %v4023_v31, 0.0  ;;  %v17425_v36 = vld [vmem:[#allocation3 + $0x50] sm:$0xff]  ;;  %v3867_v34 = vadd.f32 %v13948_v11, %v17131_v3 }
 0x38c   : > { %5524 = vmatpush2.bf16.msra.mxu0 %v14853_v47  ;;  %v13950_v12 = vpop.f32.mrf.mxu1  ;;  %v17423_v23 = vld [vmem:[#allocation3 + $0x51] sm:$0xff]  ;;  %v17443_v45 = vpack.c.bf16 %v17425_v36, %v17344_v4  ;;  %v14873_v4 = vld [vmem:[%s20281_s3 + $0x394] ss:$8 sps:$4 sm:$0xff]   ;;  %v13845_v47 = vadd.f32 %v20301_v59, %v20300_v58 }
 0x38d   : > { %5525 = vmatprep.subr.bf16.mxu0 %v14861_v62  ;;  %v4135_v41 = vmax.f32 %v4100_v8, %v4119_v16  ;;  %v4101_v42 = vmax.f32 %v4079_v15, %v4081_v19  ;;  %v13951_v56 = vadd.f32 %v13950_v12, %v13949_v33  ;;  %v17434_v18 = vpack.c.bf16 %v17423_v23, %v17430_v5  ;;  %v14877_v15 = vld [vmem:[%s20281_s3 + $0x380] ss:$8 sps:$4 sm:$0xff]   ;;  %v20306_v59 = vld [vmem:[#allocation12_spill] sm:$0xff] }
 0x38e   : > { %v13952_v30 = vpop.f32.mrf.mxu1  ;;  %5455 = vmatpush2.bf16.msra.mxu1 %v14844_v55  ;;  %v4028_v20 = vadd.f32 %v4027_v17, %v3867_v34 }
 0x38f   : > { %v4161_v38 = vrot.slane %v4135_v41, %v16173_v25  ;;  %4184 = vst [vmem:[#allocation3 + $0x60] sm:$0x4] %v4135_v41  ;;  %4192 = vst [vmem:[#allocation3 + $0x5f] sm:$0x10] %v4135_v41  ;;  %v4216_v61 = vrot.slane %v4101_v42, 1  ;;  %5456 = vmatprep.subr.bf16.mxu1 %v14852_v51  ;;  %5334 = vmatprep.mubr.bf16.mxu1 %v17434_v18  ;;  %v3870_v40 = vadd.f32 %v13951_v56, %v13839_v49 }
 0x390   : > { %4200 = vst [vmem:[#allocation3 + $0x5e] sm:$0x40] %v4135_v41  ;;  %5526 = vmatpush2.bf16.msra.mxu0 %v14859_v7  ;;  %v13953_v3 = vpop.f32.mrf.mxu1  ;;  %5335 = vmatmul.mubr.bf16.gmra.mxu1 %v17443_v45  ;;  %v4082_v33 = vmax.f32 %v4028_v20, 0.0  ;;  %v17478_v7 = vld [vmem:[#allocation3 + $0x52] sm:$0xff] }
 0x391   : > { %5527 = vmatprep.subr.bf16.mxu0 %v14867_v37  ;;  %4176 = vst [vmem:[#allocation3 + $0x60] sm:$0x3] %v4161_v38  ;;  %v4232_v32 = vmax.f32 %v4101_v42, %v4216_v61  ;;  %v13954_v28 = vadd.f32 %v13953_v3, %v13952_v30  ;;  %v4031_v8 = vadd.f32 %v4030_v43, %v3870_v40  ;;  %v20303_v40 = vld [vmem:[#allocation9_spill] sm:$0xff] }
 0x392   : > { %v13955_v27 = vpop.f32.mrf.mxu1  ;;  %5457 = vmatpush2.bf16.msra.mxu1 %v14850_v1  ;;  %v17481_v1 = vld [vmem:[#allocation3 + $0x42] sm:$0xff] }
 0x393   : > { %4240 = vst [vmem:[#allocation3 + $0x65] sm:$0x1] %v4232_v32  ;;  %4248 = vst [vmem:[#allocation3 + $0x64] sm:$0x4] %v4232_v32  ;;  %v4282_v52 = vrot.slane %v4232_v32, %v16184_v35  ;;  %v3875_v10 = vadd.f32 %v13954_v28, %v20299_v0  ;;  %5458 = vmatprep.subr.bf16.mxu1 %v14858_v39  ;;  %v4083_v12 = vmax.f32 %v4031_v8, 0.0 }
 0x394   : > { %4256 = vst [vmem:[#allocation3 + $0x63] sm:$0x10] %v4232_v32  ;;  %5528 = vmatpush2.bf16.msra.mxu0 %v14865_v6  ;;  %v13956_v14 = vpop.f32.mrf.mxu1  ;;  %v17485_v61 = vpack.c.bf16 %v17478_v7, %v17481_v1 }
 0x395   : > { %5529 = vmatprep.subr.bf16.mxu0 %v14873_v4  ;;  %4296 = vst [vmem:[#allocation3 + $0x68] sm:$0x3] %v4282_v52  ;;  %v4036_v2 = vadd.f32 %v17412_v29, %v3875_v10  ;;  %v13957_v62 = vadd.f32 %v13956_v14, %v13955_v27  ;;  %v14543_v29 = vpop.f32.mrf.mxu0  ;;  %v20302_v4 = vld [vmem:[#allocation8_spill] sm:$0xff]  ;;  %v20304_v27 = vld [vmem:[#allocation10_spill] sm:$0xff] }
 0x396   : > { %v13958_v31 = vpop.f32.mrf.mxu1  ;;  %5459 = vmatpush2.bf16.msra.mxu1 %v14856_v24  ;;  %v13851_v24 = vadd.f32 %v20304_v27, %v20303_v40 }
 0x397   : > { %v4084_v55 = vmax.f32 %v4036_v2, 0.0  ;;  %v3878_v51 = vadd.f32 %v13957_v62, %v13845_v47  ;;  %5574 = vmatprep.subr.bf16.mxu1 %v14864_v44  ;;  %v4043_v6 = vpop.f32.mrf.mxu0  ;;  %v20307_v47 = vld [vmem:[#allocation13_spill] sm:$0xff] }
 0x398   : > { %5530 = vmatpush2.bf16.msra.mxu0 %v14871_v54  ;;  %v13959_v16 = vpop.f32.mrf.mxu1  ;;  %v13857_v2 = vadd.f32 %v20307_v47, %v20306_v59  ;;  %v14897_v59 = vld [vmem:[%s20282_s4 + $0xac] ss:$12 sps:$4 sm:$0xff]   ;;  %v14898_v47 = vld [vmem:[%s20282_s4 + $0x228] ss:$12 sps:$4 sm:$0xff]  }
 0x399   : > { %5531 = vmatprep.subr.bf16.mxu0 %v14879_v21  ;;  %v4102_v19 = vmax.f32 %v4082_v33, %v4084_v55  ;;  %v4039_v11 = vadd.f32 %v14540_v22, %v3878_v51  ;;  %v13960_v56 = vadd.f32 %v13959_v16, %v13958_v31  ;;  %v14544_v0 = vpop.f32.mrf.mxu0  ;;  %v20305_v21 = vld [vmem:[#allocation11_spill] sm:$0xff] }
 0x39a   : > { %v13961_v37 = vpop.f32.mrf.mxu1 }
 0x39b   : > { %v4350_v17 = vld [vmem:[#allocation3 + $0x60] sm:$0xff]  ;;  %v4120_v41 = vrot.slane %v4102_v19, 1  ;;  %v4085_v42 = vmax.f32 %v4039_v11, 0.0  ;;  %v3883_v22 = vadd.f32 %v13960_v56, %v20302_v4  ;;  %v4046_v31 = vpop.f32.mrf.mxu0  ;;  %v14870_v4 = vld [vmem:[%s20281_s3 + $0x464] ss:$8 sps:$4 sm:$0xff]  }
 0x39c   : > { %v4355_v30 = vpack.c.bf16 %v4350_v17, %v17425_v36  ;;  %5532 = vmatpush2.bf16.msra.mxu0 %v14877_v15  ;;  %v13962_v38 = vpop.f32.mrf.mxu1  ;;  %v4339_v40 = vld [vmem:[#allocation3 + $0x62] sm:$0xff] }
 0x39d   : > { %v4136_v34 = vmax.f32 %v4102_v19, %v4120_v41  ;;  %v4103_v39 = vmax.f32 %v4083_v12, %v4085_v42  ;;  %v13963_v32 = vadd.f32 %v13962_v38, %v13961_v37  ;;  %v4044_v54 = vadd.f32 %v4043_v6, %v3883_v22  ;;  %v17496_v42 = vld [vmem:[#allocation3 + $0x61] sm:$0xff] }
 0x39e   : > { %5407 = vmatprep.mubr.bf16.mxu0 %v4355_v30  ;;  %v13964_v49 = vpop.f32.mrf.mxu1  ;;  %v4379_v27 = vpack.c.bf16 %v4339_v40, %v17478_v7  ;;  %v4367_v7 = vpack.c.bf16 %v17496_v42, %v17423_v23 }
 0x39f   : > { %5408 = vmatmul.mubr.bf16.gmra.mxu0 %v17485_v61  ;;  %v4165_v3 = vrot.slane %v4136_v34, %v16173_v25  ;;  %4185 = vst [vmem:[#allocation3 + $0x70] sm:$0x4] %v4136_v34  ;;  %4193 = vst [vmem:[#allocation3 + $0x6f] sm:$0x10] %v4136_v34  ;;  %v4217_v36 = vrot.slane %v4103_v39, 1  ;;  %v3886_v14 = vadd.f32 %v13963_v32, %v13851_v24  ;;  %v4086_v33 = vmax.f32 %v4044_v54, 0.0 }
 0x3a0   : > { %4201 = vst [vmem:[#allocation3 + $0x6e] sm:$0x40] %v4136_v34  ;;  %v13965_v28 = vpop.f32.mrf.mxu1  ;;  %v14876_v32 = vld [vmem:[%s20281_s3 + $0x454] ss:$8 sps:$4 sm:$0xff]   ;;  %v14880_v24 = vld [vmem:[%s20281_s3 + $0x440] ss:$8 sps:$4 sm:$0xff]  }
 0x3a1   : > { %4177 = vst [vmem:[#allocation3 + $0x70] sm:$0x3] %v4165_v3  ;;  %v4233_v52 = vmax.f32 %v4103_v39, %v4217_v36  ;;  %v13966_v20 = vadd.f32 %v13965_v28, %v13964_v49  ;;  %v4047_v55 = vadd.f32 %v4046_v31, %v3886_v14  ;;  %v4377_v49 = vpack.c.bf16 %v17354_v13, %v17209_v9  ;;  %v14862_v36 = vld [vmem:[%s20281_s3 + $0x470] ss:$8 sps:$4 sm:$0xff]   ;;  %v14892_v54 = vld [vmem:[%s20281_s3 + $0x400] ss:$8 sps:$4 sm:$0xff]  }
 0x3a2   : > { %v13967_v10 = vpop.f32.mrf.mxu1  ;;  %v4378_v9 = vpack.c.bf16 %v17481_v1, %v17340_v46  ;;  %v14882_v1 = vld [vmem:[%s20281_s3 + $0x444] ss:$8 sps:$4 sm:$0xff]   ;;  %v15953_v14 = vmov 0   ;;  %v14904_v31 = vld [vmem:[%s20282_s4 + $0x210] ss:$12 sps:$4 sm:$0xff]  }
 0x3a3   : > { %4241 = vst [vmem:[#allocation3 + $0x75] sm:$0x1] %v4233_v52  ;;  %4249 = vst [vmem:[#allocation3 + $0x74] sm:$0x4] %v4233_v52  ;;  %v4286_v44 = vrot.slane %v4233_v52, %v16184_v35  ;;  %v3891_v43 = vadd.f32 %v13966_v20, %v20305_v21  ;;  %v4087_v11 = vmax.f32 %v4047_v55, 0.0 }
 0x3a4   : > { %4257 = vst [vmem:[#allocation3 + $0x73] sm:$0x10] %v4233_v52  ;;  %v13968_v58 = vpop.f32.mrf.mxu1  ;;  %v14888_v52 = vld [vmem:[%s20281_s3 + $0x424] ss:$8 sps:$4 sm:$0xff]  }
 0x3a5   : > { %4297 = vst [vmem:[#allocation3 + $0x78] sm:$0x3] %v4286_v44  ;;  %v4052_v62 = vadd.f32 %v14543_v29, %v3891_v43  ;;  %v13969_v8 = vadd.f32 %v13968_v58, %v13967_v10  ;;  %v14889_v10 = vld [vmem:[%s20281_s3 + $0x410] ss:$8 sps:$4 sm:$0xff]   ;;  %v14894_v44 = vld [vmem:[%s20281_s3 + $0x404] ss:$8 sps:$4 sm:$0xff]  }
 0x3a6   : > { %v14895_v58 = vld [vmem:[%s20282_s4 + $0xa8] ss:$12 sps:$4 sm:$0xff]   ;;  %v14907_v55 = vld [vmem:[%s20282_s4 + $0x78] ss:$12 sps:$4 sm:$0xff]  }
 0x3a7   : > { %v4088_v51 = vmax.f32 %v4052_v62, 0.0  ;;  %v3894_v15 = vadd.f32 %v13969_v8, %v13857_v2  ;;  %v14901_v2 = vld [vmem:[%s20282_s4 + $0x90] ss:$12 sps:$4 sm:$0xff]  }
 0x3a9   : > { %v4104_v16 = vmax.f32 %v4086_v33, %v4088_v51  ;;  %v4055_v19 = vadd.f32 %v14544_v0, %v3894_v15  ;;  %v14886_v0 = vld [vmem:[%s20281_s3 + $0x420] ss:$8 sps:$4 sm:$0xff]   ;;  %v14910_v15 = vld [vmem:[%s20282_s4 + $0x1f8] ss:$12 sps:$4 sm:$0xff]  }
 0x3aa   : > { %v14906_v33 = vld [vmem:[%s20282_s4 + $0x214] ss:$12 sps:$4 sm:$0xff]   ;;  %v14909_v51 = vld [vmem:[%s20282_s4 + $0x7c] ss:$12 sps:$4 sm:$0xff]  }
 0x3ab   : > { %v4121_v12 = vrot.slane %v4104_v16, 1  ;;  %v4089_v37 = vmax.f32 %v4055_v19, 0.0  ;;  %v4316_v41 = vld [vmem:[#allocation3 + $0x70] sm:$0xff] }
 0x3ac   : > { %v17498_v56 = vld [vmem:[#allocation3 + $0x71] sm:$0xff]  ;;  %v17504_v34 = vpack.c.bf16 %v4316_v41, %v4350_v17 }
 0x3ad   : > { %v4137_v30 = vmax.f32 %v4104_v16, %v4121_v12  ;;  %v4105_v38 = vmax.f32 %v4087_v11, %v4089_v37  ;;  %v17502_v29 = vpack.c.bf16 %v17498_v56, %v17496_v42  ;;  %v4340_v13 = vld [vmem:[#allocation3 + $0x72] sm:$0xff]  ;;  %v14921_v42 = vld [vmem:[%s20282_s4 + $0x4c] ss:$12 sps:$4 sm:$0xff]  }
 0x3ae   : > { %v17529_v46 = vpack.c.bf16 %v4340_v13, %v4339_v40  ;;  %v14912_v16 = vld [vmem:[%s20282_s4 + $0x1fc] ss:$12 sps:$4 sm:$0xff]   ;;  %v14913_v19 = vld [vmem:[%s20282_s4 + $0x60] ss:$12 sps:$4 sm:$0xff]   ;;  %v14915_v11 = vld [vmem:[%s20282_s4 + $0x64] ss:$12 sps:$4 sm:$0xff]  }
 0x3af   : > { %v4169_v39 = vrot.slane %v4137_v30, %v16173_v25  ;;  %4186 = vst [vmem:[#allocation3 + $0x80] sm:$0x4] %v4137_v30  ;;  %4194 = vst [vmem:[#allocation3 + $0x7f] sm:$0x10] %v4137_v30  ;;  %v4218_v6 = vrot.slane %v4105_v38, 1  ;;  %5344 = vmatprep.mubr.bf16.mxu1 %v17502_v29 }
 0x3b0   : > { %4202 = vst [vmem:[#allocation3 + $0x7e] sm:$0x40] %v4137_v30  ;;  %5345 = vmatmul.mubr.bf16.gmra.mxu1 %v17504_v34  ;;  %v14916_v12 = vld [vmem:[%s20282_s4 + $0x1e0] ss:$12 sps:$4 sm:$0xff]   ;;  %v14918_v37 = vld [vmem:[%s20282_s4 + $0x1e4] ss:$12 sps:$4 sm:$0xff]  }
 0x3b1   : > { %4178 = vst [vmem:[#allocation3 + $0x80] sm:$0x3] %v4169_v39  ;;  %v4234_v3 = vmax.f32 %v4105_v38, %v4218_v6  ;;  %5460 = vmatprep.mubr.bf16.mxu1 %v4377_v49  ;;  %v14924_v30 = vld [vmem:[%s20282_s4 + $0x1cc] ss:$12 sps:$4 sm:$0xff]   ;;  %v14925_v38 = vld [vmem:[%s20282_s4 + $0x30] ss:$12 sps:$4 sm:$0xff]  }
 0x3b2   : > { %v14930_v39 = vld [vmem:[%s20282_s4 + $0x1b4] ss:$12 sps:$4 sm:$0xff]   ;;  %v14931_v6 = vld [vmem:[%s20282_s4 + $0x18] ss:$12 sps:$4 sm:$0xff]   ;;  %v14933_v49 = vld [vmem:[%s20282_s4 + $0x1c] ss:$12 sps:$4 sm:$0xff]  }
 0x3b3   : > { %4242 = vst [vmem:[#allocation3 + $0x85] sm:$0x1] %v4234_v3  ;;  %4250 = vst [vmem:[#allocation3 + $0x84] sm:$0x4] %v4234_v3  ;;  %v4290_v17 = vrot.slane %v4234_v3, %v16184_v35  ;;  %v14868_v35 = vld [vmem:[%s20281_s3 + $0x460] ss:$8 sps:$4 sm:$0xff]  }
 0x3b4   : > { %4258 = vst [vmem:[#allocation3 + $0x83] sm:$0x10] %v4234_v3  ;;  %v14934_v3 = vld [vmem:[%s20282_s4 + $0x198] ss:$12 sps:$4 sm:$0xff]   ;;  %v14949_v40 = vld [vmem:[%s20282_s4 + $0x150] ss:$12 sps:$4 sm:$0xff]  }
 0x3b5   : > { %4298 = vst [vmem:[#allocation3 + $0x88] sm:$0x3] %v4290_v17  ;;  %v14936_v17 = vld [vmem:[%s20282_s4 + $0x19c] ss:$12 sps:$4 sm:$0xff]  }
 0x3b8   : > { %5461 = vmatmul.mubr.bf16.vlgmr.msra.gmra.mxu1 %v4365_v50  ;;  %v4366_v50 = vpack.c.bf16 %v17430_v5, %v17278_v48  ;;  %v14885_v48 = vld [vmem:[%s20281_s3 + $0x434] ss:$8 sps:$4 sm:$0xff]  }
 0x3b9   : > { %5575 = vmatpush1.bf16.msra.mxu1 %v14862_v36  ;;  %5470 = vmatprep.mubr.bf16.mxu1 %v4378_v9  ;;  %v14937_v36 = vld [vmem:[%s20282_s4] ss:$12 sps:$4 sm:$0xff]  }
 0x3ba   : > { %5576 = vmatprep.subr.bf16.mxu1 %v14870_v4  ;;  %v14939_v4 = vld [vmem:[%s20282_s4 + $0x4] ss:$12 sps:$4 sm:$0xff]   ;;  %v14940_v9 = vld [vmem:[%s20282_s4 + $0x180] ss:$12 sps:$4 sm:$0xff]  }
 0x3bb   : > { %v4352_v22 = vld [vmem:[#allocation3 + $0x80] sm:$0xff] }
 0x3bc   : > { %v4356_v28 = vpack.c.bf16 %v4352_v22, %v4316_v41  ;;  %4307 = vst [vmem:[#allocation3 + $0x90] sm:$0xff] %v4352_v22  ;;  %v4305_v63 = vld [vmem:[#allocation3 + $0x88] sm:$0x3]  ;;  %v4393_v43 = vpack.c.bf16 %v4352_v22, %v4352_v22  ;;  %v14919_v41 = vld [vmem:[%s20282_s4 + $0x48] ss:$12 sps:$4 sm:$0xff]  }
 0x3bd   : > { %5577 = vmatpush1.bf16.msra.mxu1 %v14868_v35  ;;  %4308 = vst [vmem:[#allocation3 + $0x98] sm:$0x3] %v4305_v63  ;;  %v4376_v5 = vld [vmem:[#allocation3 + $0x82] sm:$0xff] }
 0x3be   : > { %5417 = vmatprep.mubr.bf16.mxu0 %v4356_v28  ;;  %5578 = vmatprep.subr.bf16.mxu1 %v14876_v32  ;;  %v4380_v20 = vpack.c.bf16 %v4376_v5, %v4340_v13  ;;  %v4364_v23 = vld [vmem:[#allocation3 + $0x81] sm:$0xff] }
 0x3bf   : > { %5418 = vmatmul.mubr.bf16.gmra.mxu0 %v17529_v46  ;;  %v14942_v35 = vld [vmem:[%s20282_s4 + $0x184] ss:$12 sps:$4 sm:$0xff]   ;;  %v14943_v13 = vld [vmem:[%s20282_s4 + $0x168] ss:$12 sps:$4 sm:$0xff]   ;;  %v14945_v22 = vld [vmem:[%s20282_s4 + $0x16c] ss:$12 sps:$4 sm:$0xff]  }
 0x3c0   : > { %5533 = vmatprep.mubr.bf16.mxu0 %v17288_v57  ;;  %5471 = vmatmul.mubr.bf16.gmra.mxu1 %v4366_v50  ;;  %v14883_v57 = vld [vmem:[%s20281_s3 + $0x430] ss:$8 sps:$4 sm:$0xff]   ;;  %v14946_v32 = vld [vmem:[%s20282_s4 + $0x2e8] ss:$12 sps:$4 sm:$0xff]  }
 0x3c1   : > { %5579 = vmatpush1.bf16.msra.mxu1 %v14874_v26  ;;  %5480 = vmatprep.mubr.bf16.mxu1 %v4379_v27  ;;  %v14948_v28 = vld [vmem:[%s20282_s4 + $0x2ec] ss:$12 sps:$4 sm:$0xff]   ;;  %v14952_v63 = vld [vmem:[%s20282_s4 + $0x2d0] ss:$12 sps:$4 sm:$0xff]   ;;  %v14954_v26 = vld [vmem:[%s20282_s4 + $0x2d4] ss:$12 sps:$4 sm:$0xff]  }
 0x3c2   : > { %5580 = vmatprep.subr.bf16.mxu1 %v14882_v1  ;;  %v14955_v50 = vld [vmem:[%s20282_s4 + $0x138] ss:$12 sps:$4 sm:$0xff]   ;;  %v14957_v1 = vld [vmem:[%s20282_s4 + $0x13c] ss:$12 sps:$4 sm:$0xff]  }
 0x3c3   : > { %v14958_v27 = vld [vmem:[%s20282_s4 + $0x2b8] ss:$12 sps:$4 sm:$0xff]  }
 0x3c4   : > { %v4401_v21 = vld [vmem:[#allocation3 + $0x91] sm:$0xff] }
 0x3c5   : > { %5581 = vmatpush1.bf16.msra.mxu1 %v14880_v24  ;;  %v4413_v62 = vld [vmem:[#allocation3 + $0x92] sm:$0xff] }
 0x3c6   : > { %5582 = vmatprep.subr.bf16.mxu1 %v14885_v48  ;;  %v4417_v8 = vpack.c.bf16 %v4413_v62, %v4376_v5  ;;  %v14960_v24 = vld [vmem:[%s20282_s4 + $0x2bc] ss:$12 sps:$4 sm:$0xff]   ;;  %v14961_v48 = vld [vmem:[%s20282_s4 + $0x120] ss:$12 sps:$4 sm:$0xff]   ;;  %v14963_v5 = vld [vmem:[%s20282_s4 + $0x124] ss:$12 sps:$4 sm:$0xff]  }
 0x3c7   : > { %5534 = vmatmul.mubr.bf16.vlgmr.msra.gmra.mxu0 %v17296_v60  ;;  %v14891_v60 = vld [vmem:[%s20281_s3 + $0x414] ss:$8 sps:$4 sm:$0xff]  }
 0x3c8   : > { %5543 = vmatprep.mubr.bf16.mxu0 %v17434_v18  ;;  %5481 = vmatmul.mubr.bf16.gmra.mxu1 %v4367_v7  ;;  %v4368_v18 = vpack.c.bf16 %v4364_v23, %v17498_v56  ;;  %v14922_v56 = vld [vmem:[%s20282_s4 + $0x1c8] ss:$12 sps:$4 sm:$0xff]   ;;  %v14966_v7 = vld [vmem:[%s20282_s4 + $0x2a4] ss:$12 sps:$4 sm:$0xff]  }
 0x3c9   : > { %5583 = vmatpush1.bf16.msra.mxu1 %v14883_v57  ;;  %5490 = vmatprep.mubr.bf16.mxu1 %v4380_v20  ;;  %v14964_v57 = vld [vmem:[%s20282_s4 + $0x2a0] ss:$12 sps:$4 sm:$0xff]  }
 0x3ca   : > { %5584 = vmatprep.subr.bf16.mxu1 %v14888_v52  ;;  %v14967_v52 = vld [vmem:[%s20282_s4 + $0x108] ss:$12 sps:$4 sm:$0xff]   ;;  %v14969_v20 = vld [vmem:[%s20282_s4 + $0x10c] ss:$12 sps:$4 sm:$0xff]  }
 0x3cd   : > { %5585 = vmatpush1.bf16.msra.mxu1 %v14886_v0  ;;  %v14972_v0 = vld [vmem:[%s20282_s4 + $0x28c] ss:$12 sps:$4 sm:$0xff]  }
 0x3ce   : > { %5586 = vmatprep.subr.bf16.mxu1 %v14891_v60  ;;  %v14970_v60 = vld [vmem:[%s20282_s4 + $0x288] ss:$12 sps:$4 sm:$0xff]  }
 0x3cf   : > { %5544 = vmatmul.mubr.bf16.gmra.mxu0 %v17443_v45  ;;  %v4405_v45 = vpack.c.bf16 %v4401_v21, %v4364_v23  ;;  %v14975_v23 = vld [vmem:[%s20282_s4 + $0xf4] ss:$12 sps:$4 sm:$0xff]   ;;  %v14984_v21 = vld [vmem:[%s20282_s4 + $0x25c] ss:$12 sps:$4 sm:$0xff]  }
 0x3d0   : > { %5553 = vmatprep.mubr.bf16.mxu0 %v17502_v29  ;;  %5491 = vmatmul.mubr.bf16.gmra.mxu1 %v4368_v18  ;;  %v14927_v29 = vld [vmem:[%s20282_s4 + $0x34] ss:$12 sps:$4 sm:$0xff]  }
 0x3d1   : > { %5587 = vmatpush1.bf16.msra.mxu1 %v14889_v10  ;;  %5606 = vmatprep.mubr.bf16.mxu1 %v15953_v14  ;;  %v14973_v10 = vld [vmem:[%s20282_s4 + $0xf0] ss:$12 sps:$4 sm:$0xff]   ;;  %v14978_v18 = vld [vmem:[%s20282_s4 + $0x274] ss:$12 sps:$4 sm:$0xff]  }
 0x3d2   : > { %5588 = vmatprep.subr.bf16.mxu1 %v14894_v44  ;;  %v14976_v44 = vld [vmem:[%s20282_s4 + $0x270] ss:$12 sps:$4 sm:$0xff]  }
 0x3d5   : > { %5589 = vmatpush1.bf16.msra.mxu1 %v14892_v54  ;;  %v14981_v54 = vld [vmem:[%s20282_s4 + $0xdc] ss:$12 sps:$4 sm:$0xff]  }
 0x3d6   : > { %10928 = vmatprep.subr.bf16.mxu1 %v14897_v59  ;;  %v14985_v59 = vld [vmem:[%s20282_s4 + $0xc0] ss:$12 sps:$4 sm:$0xff]  }
 0x3d7   : > { %5554 = vmatmul.mubr.bf16.gmra.mxu0 %v17504_v34  ;;  %v14928_v34 = vld [vmem:[%s20282_s4 + $0x1b0] ss:$12 sps:$4 sm:$0xff]  }
 0x3d8   : > { %5563 = vmatprep.mubr.bf16.mxu0 %v4405_v45  ;;  %5607 = vmatmul.mubr.bf16.vlgmr.msra.gmra.mxu1 %v17361_v53  ;;  %v14900_v53 = vld [vmem:[%s20282_s4 + $0x22c] ss:$12 sps:$4 sm:$0xff]  }
 0x3d9   : > { %5616 = vmatprep.mubr.bf16.mxu1 %v15953_v14  ;;  %10969 = vmatprep.subr.bf16.mxu0 %v14900_v53  ;;  %v14982_v45 = vld [vmem:[%s20282_s4 + $0x258] ss:$12 sps:$4 sm:$0xff]   ;;  %v14988_v53 = vld [vmem:[%s20282_s4 + $0x240] ss:$12 sps:$4 sm:$0xff]  }
 0x3da   : > { %10929 = vmatpush1.bf16.msra.mxu1 %v14895_v58  ;;  %10970 = vmatpush1.bf16.msra.mxu0 %v14898_v47  ;;  %v14987_v58 = vld [vmem:[%s20282_s4 + $0xc4] ss:$12 sps:$4 sm:$0xff]  }
 0x3db   : > { %10971 = vmatprep.subr.bf16.mxu0 %v14906_v33  ;;  %v14990_v47 = vld [vmem:[%s20282_s4 + $0x244] ss:$12 sps:$4 sm:$0xff]  }
 0x3de   : > { %10972 = vmatpush1.bf16.msra.mxu0 %v14904_v31 }
 0x3df   : > { %5564 = vmatmul.mubr.bf16.gmra.mxu0 %v4393_v43  ;;  %10973 = vmatprep.subr.bf16.mxu0 %v14912_v16 }
 0x3e0   : > { %5617 = vmatmul.mubr.bf16.gmra.mxu1 %v17485_v61  ;;  %v14903_v61 = vld [vmem:[%s20282_s4 + $0x94] ss:$12 sps:$4 sm:$0xff]  }
 0x3e1   : > { %5626 = vmatprep.mubr.bf16.mxu1 %v15953_v14  ;;  %10930 = vmatprep.subr.bf16.mxu1 %v14903_v61 }
 0x3e2   : > { %10931 = vmatpush1.bf16.msra.mxu1 %v14901_v2  ;;  %10974 = vmatpush1.bf16.msra.mxu0 %v14910_v15  ;;  %v14993_v2 = vld [vmem:[%s20282_s4 + $0x3ac] ss:$12 sps:$4 sm:$0xff]  }
 0x3e3   : > { %10932 = vmatprep.subr.bf16.mxu1 %v14909_v51  ;;  %10975 = vmatprep.subr.bf16.mxu0 %v14918_v37 }
 0x3e6   : > { %10933 = vmatpush1.bf16.msra.mxu1 %v14907_v55  ;;  %10976 = vmatpush1.bf16.msra.mxu0 %v14916_v12 }
 0x3e7   : > { %10934 = vmatprep.subr.bf16.mxu1 %v14915_v11  ;;  %10977 = vmatprep.subr.bf16.mxu0 %v14924_v30 }
 0x3e8   : > { %5627 = vmatmul.mubr.bf16.gmra.mxu1 %v17529_v46  ;;  %v14951_v46 = vld [vmem:[%s20282_s4 + $0x154] ss:$12 sps:$4 sm:$0xff]  }
 0x3e9   : > { %5636 = vmatprep.mubr.bf16.mxu1 %v15953_v14  ;;  %v14979_v14 = vld [vmem:[%s20282_s4 + $0xd8] ss:$12 sps:$4 sm:$0xff]  }
 0x3ea   : > { %10935 = vmatpush1.bf16.msra.mxu1 %v14913_v19  ;;  %10978 = vmatpush1.bf16.msra.mxu0 %v14922_v56 }
 0x3eb   : > { %10936 = vmatprep.subr.bf16.mxu1 %v14921_v42  ;;  %10979 = vmatprep.subr.bf16.mxu0 %v14930_v39 }
 0x3ee   : > { %10937 = vmatpush1.bf16.msra.mxu1 %v14919_v41  ;;  %10980 = vmatpush1.bf16.msra.mxu0 %v14928_v34 }
 0x3ef   : > { %10938 = vmatprep.subr.bf16.mxu1 %v14927_v29  ;;  %10981 = vmatprep.subr.bf16.mxu0 %v14936_v17 }
 0x3f0   : > { %5637 = vmatmul.mubr.bf16.gmra.mxu1 %v4417_v8  ;;  %v14996_v8 = vld [vmem:[%s20282_s4 + $0x52c] ss:$12 sps:$4 sm:$0xff]  }
 0x3f2   : > { %10939 = vmatpush1.bf16.msra.mxu1 %v14925_v38  ;;  %10982 = vmatpush1.bf16.msra.mxu0 %v14934_v3 }
 0x3f3   : > { %10940 = vmatprep.subr.bf16.mxu1 %v14933_v49  ;;  %10983 = vmatprep.subr.bf16.mxu0 %v14942_v35 }
 0x3f6   : > { %10941 = vmatpush1.bf16.msra.mxu1 %v14931_v6  ;;  %10984 = vmatpush1.bf16.msra.mxu0 %v14940_v9 }
 0x3f7   : > { %10942 = vmatprep.subr.bf16.mxu1 %v14939_v4  ;;  %10985 = vmatprep.subr.bf16.mxu0 %v14948_v28 }
 0x3fa   : > { %10943 = vmatpush1.bf16.msra.mxu1 %v14937_v36  ;;  %10986 = vmatpush2.bf16.msra.mxu0 %v14946_v32 }
 0x3fb   : > { %10944 = vmatprep.subr.bf16.mxu1 %v14945_v22  ;;  %10987 = vmatprep.subr.bf16.mxu0 %v14954_v26 }
 0x3fe   : > { %10945 = vmatpush2.bf16.msra.mxu1 %v14943_v13  ;;  %10988 = vmatpush2.bf16.msra.mxu0 %v14952_v63 }
 0x3ff   : > { %10946 = vmatprep.subr.bf16.mxu1 %v14951_v46  ;;  %10989 = vmatprep.subr.bf16.mxu0 %v14960_v24 }
 0x402   : > { %10947 = vmatpush2.bf16.msra.mxu1 %v14949_v40  ;;  %10990 = vmatpush2.bf16.msra.mxu0 %v14958_v27 }
 0x403   : > { %10948 = vmatprep.subr.bf16.mxu1 %v14957_v1  ;;  %10991 = vmatprep.subr.bf16.mxu0 %v14966_v7 }
 0x406   : > { %10949 = vmatpush2.bf16.msra.mxu1 %v14955_v50  ;;  %10992 = vmatpush2.bf16.msra.mxu0 %v14964_v57 }
 0x407   : > { %10950 = vmatprep.subr.bf16.mxu1 %v14963_v5  ;;  %10993 = vmatprep.subr.bf16.mxu0 %v14972_v0 }
 0x40a   : > { %10951 = vmatpush2.bf16.msra.mxu1 %v14961_v48  ;;  %10994 = vmatpush2.bf16.msra.mxu0 %v14970_v60 }
 0x40b   : > { %10952 = vmatprep.subr.bf16.mxu1 %v14969_v20  ;;  %10995 = vmatprep.subr.bf16.mxu0 %v14978_v18 }
 0x40e   : > { %10953 = vmatpush2.bf16.msra.mxu1 %v14967_v52  ;;  %10996 = vmatpush2.bf16.msra.mxu0 %v14976_v44 }
 0x40f   : > { %10954 = vmatprep.subr.bf16.mxu1 %v14975_v23  ;;  %10997 = vmatprep.subr.bf16.mxu0 %v14984_v21 }
 0x412   : > { %10955 = vmatpush2.bf16.msra.mxu1 %v14973_v10  ;;  %10998 = vmatpush2.bf16.msra.mxu0 %v14982_v45 }
 0x413   : > { %10956 = vmatprep.subr.bf16.mxu1 %v14981_v54  ;;  %10999 = vmatprep.subr.bf16.mxu0 %v14990_v47 }
 0x416   : > { %10957 = vmatpush2.bf16.msra.mxu1 %v14979_v14  ;;  %11000 = vmatpush2.bf16.msra.mxu0 %v14988_v53 }
 0x417   : > { %10958 = vmatprep.subr.bf16.mxu1 %v14987_v58  ;;  %11051 = vmatprep.subr.bf16.mxu0 %v14996_v8 }
 0x418   : > { %v17760_v43 = vpop.f32.mrf.mxu1 }
 0x41a   : > { %10959 = vmatpush2.bf16.msra.mxu1 %v14985_v59  ;;  %v17774_v61 = vpop.f32.mrf.mxu1 }
 0x41b   : > { %11010 = vmatprep.subr.bf16.mxu1 %v14993_v2 }
 0x41c   : > { %v17784_v31 = vpop.f32.mrf.mxu1 }
 0x41e   : > { %v17788_v55 = vpop.f32.mrf.mxu1 }
 0x41f   : > { %v17779_v62 = vpop.f32.mrf.mxu0 }
 0x421   : > { %v17786_v33 = vpop.f32.mrf.mxu0 }
 0x423   : > { %v17790_v51 = vpop.f32.mrf.mxu0 }
 0x425   : > { %v17792_v16 = vpop.f32.mrf.mxu0 }
 0x430   : > { %v5326_v15 = vpop.f32.mrf.mxu1 }
 0x432   : > { %v5328_v19 = vpop.f32.mrf.mxu1 }
 0x434   : > { %v5330_v37 = vpop.f32.mrf.mxu1 }
 0x436   : > { %v5332_v38 = vpop.f32.mrf.mxu1 }
 0x43f   : > { %v5399_v11 = vpop.f32.mrf.mxu0 }
 0x440   : > { %v5400_v12 = vadd.f32 %v5399_v11, %v5326_v15 }
 0x441   : > { %v5401_v41 = vpop.f32.mrf.mxu0 }
 0x442   : > { %v5402_v42 = vadd.f32 %v5401_v41, %v5328_v19 }
 0x443   : > { %v5403_v56 = vpop.f32.mrf.mxu0 }
 0x444   : > { %v5404_v30 = vadd.f32 %v5403_v56, %v5330_v37 }
 0x445   : > { %v5405_v29 = vpop.f32.mrf.mxu0 }
 0x446   : > { %v5406_v34 = vadd.f32 %v5405_v29, %v5332_v38 }
 0x450   : > { %v5336_v39 = vpop.f32.mrf.mxu1 }
 0x452   : > { %v5338_v6 = vpop.f32.mrf.mxu1 }
 0x454   : > { %v5340_v17 = vpop.f32.mrf.mxu1 }
 0x456   : > { %v5342_v13 = vpop.f32.mrf.mxu1 }
 0x45f   : > { %v5409_v49 = vpop.f32.mrf.mxu0 }
 0x460   : > { %v5410_v3 = vadd.f32 %v5409_v49, %v5336_v39 }
 0x461   : > { %v5411_v36 = vpop.f32.mrf.mxu0 }
 0x462   : > { %v5412_v4 = vadd.f32 %v5411_v36, %v5338_v6 }
 0x463   : > { %v5413_v9 = vpop.f32.mrf.mxu0 }
 0x464   : > { %v5414_v35 = vadd.f32 %v5413_v9, %v5340_v17  ;;  %v5390_v17 = vadd.f32 %v17779_v62, %v17760_v43 }
 0x465   : > { %v5415_v22 = vpop.f32.mrf.mxu0 }
 0x466   : > { %v5416_v32 = vadd.f32 %v5415_v22, %v5342_v13  ;;  %v5394_v13 = vadd.f32 %v17790_v51, %v17784_v31 }
 0x470   : > { %v5346_v28 = vpop.f32.mrf.mxu1 }
 0x472   : > { %v5348_v40 = vpop.f32.mrf.mxu1 }
 0x474   : > { %v5350_v46 = vpop.f32.mrf.mxu1 }
 0x476   : > { %v5352_v63 = vpop.f32.mrf.mxu1 }
 0x478   : > { %v5462_v26 = vpop.f32.mrf.mxu1 }
 0x479   : > { %v5463_v22 = vadd.f32 %v5462_v26, %v5390_v17 }
 0x47a   : > { %v5464_v50 = vpop.f32.mrf.mxu1 }
 0x47c   : > { %v5466_v1 = vpop.f32.mrf.mxu1 }
 0x47d   : > { %v5467_v43 = vadd.f32 %v5466_v1, %v5394_v13 }
 0x47e   : > { %v5468_v24 = vpop.f32.mrf.mxu1 }
 0x47f   : > { %v5419_v27 = vpop.f32.mrf.mxu0 }
 0x480   : > { %v5420_v48 = vadd.f32 %v5419_v27, %v5346_v28  ;;  %v5472_v57 = vpop.f32.mrf.mxu1  ;;  %v5396_v27 = vadd.f32 %v17792_v16, %v17788_v55 }
 0x481   : > { %v5421_v5 = vpop.f32.mrf.mxu0  ;;  %v5473_v52 = vadd.f32 %v5472_v57, %v5400_v12 }
 0x482   : > { %v5422_v7 = vadd.f32 %v5421_v5, %v5348_v40  ;;  %v5474_v0 = vpop.f32.mrf.mxu1 }
 0x483   : > { %v5423_v20 = vpop.f32.mrf.mxu0  ;;  %v17794_v23 = vadd.f32 %v5474_v0, %v5402_v42 }
 0x484   : > { %v5424_v60 = vadd.f32 %v5423_v20, %v5350_v46  ;;  %v5476_v18 = vpop.f32.mrf.mxu1 }
 0x485   : > { %v5425_v10 = vpop.f32.mrf.mxu0  ;;  %v5477_v54 = vadd.f32 %v5476_v18, %v5404_v30 }
 0x486   : > { %v5426_v44 = vadd.f32 %v5425_v10, %v5352_v63  ;;  %v5478_v14 = vpop.f32.mrf.mxu1 }
 0x487   : > { %v5535_v21 = vpop.f32.mrf.mxu0  ;;  %v17796_v45 = vadd.f32 %v5478_v14, %v5406_v34 }
 0x488   : > { %v5482_v58 = vpop.f32.mrf.mxu1  ;;  %v5536_v62 = vadd.f32 %v5535_v21, %v5463_v22 }
 0x489   : > { %v5537_v59 = vpop.f32.mrf.mxu0  ;;  %v5483_v47 = vadd.f32 %v5482_v58, %v5410_v3 }
 0x48a   : > { %v5484_v53 = vpop.f32.mrf.mxu1 }
 0x48b   : > { %v5539_v2 = vpop.f32.mrf.mxu0  ;;  %v17798_v8 = vadd.f32 %v5484_v53, %v5412_v4  ;;  %v5392_v4 = vadd.f32 %v17786_v33, %v17774_v61  ;;  %v5469_v33 = vadd.f32 %v5468_v24, %v5396_v27 }
 0x48c   : > { %v5486_v15 = vpop.f32.mrf.mxu1  ;;  %v5540_v57 = vadd.f32 %v5539_v2, %v5467_v43  ;;  %v14999_v43 = vld [vmem:[%s20282_s4 + $0x394] ss:$12 sps:$4 sm:$0xff]  }
 0x48d   : > { %v5541_v19 = vpop.f32.mrf.mxu0  ;;  %v5487_v11 = vadd.f32 %v5486_v15, %v5414_v35  ;;  %v5465_v40 = vadd.f32 %v5464_v50, %v5392_v4 }
 0x48e   : > { %v5488_v12 = vpop.f32.mrf.mxu1  ;;  %v5542_v20 = vadd.f32 %v5541_v19, %v5469_v33 }
 0x48f   : > { %v5545_v37 = vpop.f32.mrf.mxu0  ;;  %v17800_v41 = vadd.f32 %v5488_v12, %v5416_v32 }
 0x490   : > { %v5546_v42 = vadd.f32 %v5545_v37, %v5473_v52  ;;  %v5492_v56 = vpop.f32.mrf.mxu1 }
 0x491   : > { %v5547_v30 = vpop.f32.mrf.mxu0  ;;  %v5493_v38 = vadd.f32 %v5492_v56, %v5420_v48  ;;  %v5538_v48 = vadd.f32 %v5537_v59, %v5465_v40 }
 0x492   : > { %v5494_v29 = vpop.f32.mrf.mxu1  ;;  %v5548_v59 = vadd.f32 %v5547_v30, %v17794_v23 }
 0x493   : > { %v5549_v34 = vpop.f32.mrf.mxu0  ;;  %v5495_v39 = vadd.f32 %v5494_v29, %v5422_v7 }
 0x494   : > { %v5550_v6 = vadd.f32 %v5549_v34, %v5477_v54  ;;  %v5496_v49 = vpop.f32.mrf.mxu1 }
 0x495   : > { %v5551_v3 = vpop.f32.mrf.mxu0  ;;  %v5497_v36 = vadd.f32 %v5496_v49, %v5424_v60 }
 0x496   : > { %v5498_v9 = vpop.f32.mrf.mxu1  ;;  %v5552_v29 = vadd.f32 %v5551_v3, %v17796_v45  ;;  %v14991_v45 = vld [vmem:[%s20282_s4 + $0x3a8] ss:$12 sps:$4 sm:$0xff]  }
 0x497   : > { %v5555_v35 = vpop.f32.mrf.mxu0  ;;  %v17808_v32 = vadd.f32 %v5498_v9, %v5426_v44 }
 0x498   : > { %v5556_v28 = vadd.f32 %v5555_v35, %v5483_v47  ;;  %v5608_v63 = vpop.f32.mrf.mxu1 }
 0x499   : > { %v5557_v46 = vpop.f32.mrf.mxu0  ;;  %v5609_v7 = vadd.f32 %v5608_v63, %v5536_v62 }
 0x49a   : > { %v5610_v61 = vpop.f32.mrf.mxu1  ;;  %v5558_v27 = vadd.f32 %v5557_v46, %v17798_v8 }
 0x49b   : > { %v5559_v5 = vpop.f32.mrf.mxu0  ;;  %v5611_v31 = vadd.f32 %v5610_v61, %v5538_v48  ;;  %v5647_v10 = vmax.f32 %v5609_v7, 0.0  ;;  %v14994_v61 = vld [vmem:[%s20282_s4 + $0x528] ss:$12 sps:$4 sm:$0xff]   ;;  %v14997_v7 = vld [vmem:[%s20282_s4 + $0x390] ss:$12 sps:$4 sm:$0xff]  }
 0x49c   : > { %v5560_v52 = vadd.f32 %v5559_v5, %v5487_v11  ;;  %v5612_v26 = vpop.f32.mrf.mxu1 }
 0x49d   : > { %v5561_v51 = vpop.f32.mrf.mxu0  ;;  %v5613_v0 = vadd.f32 %v5612_v26, %v5540_v57  ;;  %v5648_v16 = vmax.f32 %v5611_v31, 0.0  ;;  %v15002_v31 = vld [vmem:[%s20282_s4 + $0x514] ss:$12 sps:$4 sm:$0xff]  }
 0x49e   : > { %v5614_v60 = vpop.f32.mrf.mxu1  ;;  %v5562_v8 = vadd.f32 %v5561_v51, %v17800_v41  ;;  %v15005_v41 = vld [vmem:[%s20282_s4 + $0x37c] ss:$12 sps:$4 sm:$0xff]  }
 0x49f   : > { %v5565_v50 = vpop.f32.mrf.mxu0  ;;  %v5649_v18 = vmax.f32 %v5613_v0, 0.0  ;;  %v5615_v55 = vadd.f32 %v5614_v60, %v5542_v20  ;;  %v15000_v60 = vld [vmem:[%s20282_s4 + $0x510] ss:$12 sps:$4 sm:$0xff]  }
 0x4a0   : > { %v17812_v44 = vadd.f32 %v5565_v50, %v5493_v38  ;;  %v5618_v54 = vpop.f32.mrf.mxu1 }
 0x4a1   : > { %v5567_v1 = vpop.f32.mrf.mxu0  ;;  %v5663_v14 = vmax.f32 %v5647_v10, %v5649_v18  ;;  %v5650_v24 = vmax.f32 %v5615_v55, 0.0  ;;  %v5619_v58 = vadd.f32 %v5618_v54, %v5546_v42  ;;  %v15008_v54 = vld [vmem:[%s20282_s4 + $0x4fc] ss:$12 sps:$4 sm:$0xff]  }
 0x4a2   : > { %v17814_v21 = vadd.f32 %v5567_v1, %v5495_v39  ;;  %v5620_v53 = vpop.f32.mrf.mxu1  ;;  %v15003_v1 = vld [vmem:[%s20282_s4 + $0x378] ss:$12 sps:$4 sm:$0xff]  }
 0x4a3   : > { %v5569_v47 = vpop.f32.mrf.mxu0  ;;  %v5673_v2 = vrot.slane %v5663_v14, 1  ;;  %v5664_v15 = vmax.f32 %v5648_v16, %v5650_v24  ;;  %v5621_v11 = vadd.f32 %v5620_v53, %v5548_v59  ;;  %v5651_v49 = vmax.f32 %v5619_v58, 0.0  ;;  %v15011_v58 = vld [vmem:[%s20282_s4 + $0x364] ss:$12 sps:$4 sm:$0xff]  }
 0x4a4   : > { %v17817_v19 = vadd.f32 %v5569_v47, %v5497_v36  ;;  %v5622_v12 = vpop.f32.mrf.mxu1  ;;  %v15006_v53 = vld [vmem:[%s20282_s4 + $0x4f8] ss:$12 sps:$4 sm:$0xff]  }
 0x4a5   : > { %v17819_v37 = vmax.f32 %v5663_v14, %v5673_v2  ;;  %v5674_v56 = vrot.slane %v5664_v15, 1  ;;  %v5623_v38 = vadd.f32 %v5622_v12, %v5550_v6  ;;  %v5652_v30 = vmax.f32 %v5621_v11, 0.0  ;;  %v5571_v14 = vpop.f32.mrf.mxu0  ;;  %v15009_v11 = vld [vmem:[%s20282_s4 + $0x360] ss:$12 sps:$4 sm:$0xff]  }
 0x4a6   : > { %v5624_v34 = vpop.f32.mrf.mxu1  ;;  %v5572_v2 = vadd.f32 %v5571_v14, %v17808_v32  ;;  %v15063_v14 = vld [vmem:[%s20282_s4 + $0x408] ss:$12 sps:$4 sm:$0xff]  }
 0x4a7   : > { %v5678_v39 = vmax.f32 %v5664_v15, %v5674_v56  ;;  %v5653_v42 = vmax.f32 %v5623_v38, 0.0  ;;  %v5705_v23 = vrot.slane %v17819_v37, 2  ;;  %v5625_v17 = vadd.f32 %v5624_v34, %v5552_v29  ;;  %v15017_v56 = vld [vmem:[%s20282_s4 + $0x34c] ss:$12 sps:$4 sm:$0xff]  }
 0x4a8   : > { %v5628_v4 = vpop.f32.mrf.mxu1  ;;  %v17825_v36 = vpack.c.bf16 %v17819_v37, %v17819_v37 }
 0x4a9   : > { %v17827_v9 = vmax.f32 %v5651_v49, %v5653_v42  ;;  %v5629_v35 = vadd.f32 %v5628_v4, %v5556_v28  ;;  %v17829_v13 = vpack.c.bf16 %v5678_v39, %v5678_v39  ;;  %v5654_v6 = vmax.f32 %v5625_v17, 0.0  ;;  %v15015_v42 = vld [vmem:[%s20282_s4 + $0x348] ss:$12 sps:$4 sm:$0xff]  }
 0x4aa   : > { %v5630_v3 = vpop.f32.mrf.mxu1  ;;  %v5706_v22 = vrot.slane %v5678_v39, 2  ;;  %v5710_v40 = vrot.slane %v5678_v39, 4  ;;  %v5714_v63 = vrot.slane %v5678_v39, 6  ;;  %v17850_v46 = vpack.c.bf16 %v5705_v23, %v5705_v23  ;;  %v15020_v23 = vld [vmem:[%s20282_s4 + $0x4cc] ss:$12 sps:$4 sm:$0xff]  }
 0x4ab   : > { %10960 = vmatprep.mubr.bf16.mxu1 %v17829_v13  ;;  %v17839_v28 = vmax.f32 %v5652_v30, %v5654_v6  ;;  %v5631_v33 = vadd.f32 %v5630_v3, %v5558_v27  ;;  %v15023_v30 = vld [vmem:[%s20282_s4 + $0x334] ss:$12 sps:$4 sm:$0xff]   ;;  %v15029_v6 = vld [vmem:[%s20282_s4 + $0x31c] ss:$12 sps:$4 sm:$0xff]   ;;  %v15030_v27 = vld [vmem:[%s20282_s4 + $0x498] ss:$12 sps:$4 sm:$0xff]  }
 0x4ac   : > { %v5632_v62 = vpop.f32.mrf.mxu1  ;;  %10961 = vmatmul.mubr.bf16.vlgmr.msra.gmra.mxu1 %v17825_v36  ;;  %v17842_v48 = vpack.c.bf16 %v5706_v22, %v5706_v22  ;;  %v17844_v5 = vpack.c.bf16 %v5710_v40, %v5710_v40  ;;  %v17860_v20 = vpack.c.bf16 %v5714_v63, %v5714_v63  ;;  %v15018_v4 = vld [vmem:[%s20282_s4 + $0x4c8] ss:$12 sps:$4 sm:$0xff]   ;;  %v15024_v3 = vld [vmem:[%s20282_s4 + $0x4b0] ss:$12 sps:$4 sm:$0xff]   ;;  %v15027_v22 = vld [vmem:[%s20282_s4 + $0x318] ss:$12 sps:$4 sm:$0xff]  }
 0x4ad   : > { %v5633_v57 = vadd.f32 %v5632_v62, %v5560_v52  ;;  %11011 = vmatpush1.bf16.msra.mxu1 %v14991_v45  ;;  %v5655_v52 = vmax.f32 %v5629_v35, 0.0  ;;  %v5656_v10 = vmax.f32 %v5631_v33, 0.0  ;;  %v15021_v35 = vld [vmem:[%s20282_s4 + $0x330] ss:$12 sps:$4 sm:$0xff]   ;;  %v15026_v45 = vld [vmem:[%s20282_s4 + $0x4b4] ss:$12 sps:$4 sm:$0xff]  }
 0x4ae   : > { %11001 = vmatprep.mubr.bf16.mxu0 %v17842_v48  ;;  %11042 = vmatprep.mubr.bf16.mxu1 %v17844_v5  ;;  %v5634_v26 = vpop.f32.mrf.mxu1  ;;  %v15032_v40 = vld [vmem:[%s20282_s4 + $0x49c] ss:$12 sps:$4 sm:$0xff]   ;;  %v15035_v63 = vld [vmem:[%s20282_s4 + $0x304] ss:$12 sps:$4 sm:$0xff]  }
 0x4af   : > { %v5657_v51 = vmax.f32 %v5633_v57, 0.0  ;;  %v5635_v0 = vadd.f32 %v5634_v26, %v5562_v8  ;;  %11002 = vmatmul.mubr.bf16.vlgmr.msra.gmra.mxu0 %v17850_v46  ;;  %11012 = vmatprep.subr.bf16.mxu1 %v14999_v43  ;;  %v15033_v43 = vld [vmem:[%s20282_s4 + $0x300] ss:$12 sps:$4 sm:$0xff]   ;;  %v15038_v62 = vld [vmem:[%s20282_s4 + $0x484] ss:$12 sps:$4 sm:$0xff]  }
 0x4b0   : > { %11052 = vmatpush1.bf16.msra.mxu0 %v14994_v61  ;;  %11083 = vmatprep.mubr.bf16.mxu0 %v17860_v20  ;;  %v5638_v50 = vpop.f32.mrf.mxu1  ;;  %v15041_v61 = vld [vmem:[%s20282_s4 + $0x46c] ss:$12 sps:$4 sm:$0xff]   ;;  %v15039_v33 = vld [vmem:[%s20282_s4 + $0x468] ss:$12 sps:$4 sm:$0xff]   ;;  %v15045_v26 = vld [vmem:[%s20282_s4 + $0x450] ss:$12 sps:$4 sm:$0xff]  }
 0x4b1   : > { %v17870_v18 = vmax.f32 %v5655_v52, %v5657_v51  ;;  %v5658_v55 = vmax.f32 %v5635_v0, 0.0  ;;  %v5639_v16 = vadd.f32 %v5638_v50, %v17812_v44  ;;  %11013 = vmatpush1.bf16.msra.mxu1 %v14997_v7  ;;  %11053 = vmatprep.subr.bf16.mxu0 %v15002_v31  ;;  %v15036_v8 = vld [vmem:[%s20282_s4 + $0x480] ss:$12 sps:$4 sm:$0xff]   ;;  %v15042_v31 = vld [vmem:[%s20282_s4 + $0x5e8] ss:$12 sps:$4 sm:$0xff]  }
 0x4b2   : > { %v5640_v24 = vpop.f32.mrf.mxu1  ;;  %11014 = vmatprep.subr.bf16.mxu1 %v15005_v41  ;;  %v15044_v57 = vld [vmem:[%s20282_s4 + $0x5ec] ss:$12 sps:$4 sm:$0xff]   ;;  %v15047_v7 = vld [vmem:[%s20282_s4 + $0x454] ss:$12 sps:$4 sm:$0xff]   ;;  %v15053_v52 = vld [vmem:[%s20282_s4 + $0x43c] ss:$12 sps:$4 sm:$0xff]  }
 0x4b3   : > { %v17882_v59 = vmax.f32 %v5656_v10, %v5658_v55  ;;  %v5641_v44 = vadd.f32 %v5640_v24, %v17814_v21  ;;  %v15014_v21 = vld [vmem:[%s20282_s4 + $0x4e4] ss:$12 sps:$4 sm:$0xff]   ;;  %v5659_v38 = vmax.f32 %v5639_v16, 0.0  ;;  %v15050_v41 = vld [vmem:[%s20282_s4 + $0x5d4] ss:$12 sps:$4 sm:$0xff]  }
 0x4b4   : > { %11054 = vmatpush1.bf16.msra.mxu0 %v15000_v60  ;;  %v5642_v47 = vpop.f32.mrf.mxu1  ;;  %v15048_v51 = vld [vmem:[%s20282_s4 + $0x5d0] ss:$12 sps:$4 sm:$0xff]   ;;  %v15051_v0 = vld [vmem:[%s20282_s4 + $0x438] ss:$12 sps:$4 sm:$0xff]   ;;  %v15057_v55 = vld [vmem:[%s20282_s4 + $0x420] ss:$12 sps:$4 sm:$0xff]  }
 0x4b5   : > { %v5643_v15 = vadd.f32 %v5642_v47, %v17817_v19  ;;  %11015 = vmatpush1.bf16.msra.mxu1 %v15003_v1  ;;  %11055 = vmatprep.subr.bf16.mxu0 %v15008_v54  ;;  %v15012_v19 = vld [vmem:[%s20282_s4 + $0x4e0] ss:$12 sps:$4 sm:$0xff]   ;;  %v5660_v34 = vmax.f32 %v5641_v44, 0.0  ;;  %v15056_v50 = vld [vmem:[%s20282_s4 + $0x5bc] ss:$12 sps:$4 sm:$0xff]  }
 0x4b6   : > { %v5644_v12 = vpop.f32.mrf.mxu1  ;;  %11016 = vmatprep.subr.bf16.mxu1 %v15011_v58  ;;  %v15059_v60 = vld [vmem:[%s20282_s4 + $0x424] ss:$12 sps:$4 sm:$0xff]   ;;  %v15065_v1 = vld [vmem:[%s20282_s4 + $0x40c] ss:$12 sps:$4 sm:$0xff]   ;;  %v15071_v58 = vld [vmem:[%s20282_s4 + $0x3f4] ss:$12 sps:$4 sm:$0xff]  }
 0x4b7   : > { %v5661_v32 = vmax.f32 %v5643_v15, 0.0  ;;  %v5645_v29 = vadd.f32 %v5644_v12, %v5572_v2  ;;  %v15054_v10 = vld [vmem:[%s20282_s4 + $0x5b8] ss:$12 sps:$4 sm:$0xff]   ;;  %v15060_v54 = vld [vmem:[%s20282_s4 + $0x5a0] ss:$12 sps:$4 sm:$0xff]   ;;  %v5682_v12 = vrot.slane %v17839_v28, 1 }
 0x4b8   : > { %11056 = vmatpush1.bf16.msra.mxu0 %v15006_v53  ;;  %v15062_v16 = vld [vmem:[%s20282_s4 + $0x5a4] ss:$12 sps:$4 sm:$0xff]   ;;  %v15068_v24 = vld [vmem:[%s20282_s4 + $0x58c] ss:$12 sps:$4 sm:$0xff]   ;;  %v15066_v44 = vld [vmem:[%s20282_s4 + $0x588] ss:$12 sps:$4 sm:$0xff]  }
 0x4b9   : > { %v17902_v39 = vmax.f32 %v5659_v38, %v5661_v32  ;;  %v5662_v49 = vmax.f32 %v5645_v29, 0.0  ;;  %11017 = vmatpush1.bf16.msra.mxu1 %v15009_v11  ;;  %11057 = vmatprep.subr.bf16.mxu0 %v15014_v21  ;;  %v15069_v47 = vld [vmem:[%s20282_s4 + $0x3f0] ss:$12 sps:$4 sm:$0xff]   ;;  %v15074_v53 = vld [vmem:[%s20282_s4 + $0x574] ss:$12 sps:$4 sm:$0xff]  }
 0x4ba   : > { %11018 = vmatprep.subr.bf16.mxu1 %v15017_v56  ;;  %v15077_v2 = vld [vmem:[%s20282_s4 + $0x3dc] ss:$12 sps:$4 sm:$0xff]   ;;  %v15075_v11 = vld [vmem:[%s20282_s4 + $0x3d8] ss:$12 sps:$4 sm:$0xff]   ;;  %v15081_v32 = vld [vmem:[%s20282_s4 + $0x3c0] ss:$12 sps:$4 sm:$0xff]  }
 0x4bb   : > { %v17913_v17 = vmax.f32 %v5660_v34, %v5662_v49  ;;  %v15072_v15 = vld [vmem:[%s20282_s4 + $0x570] ss:$12 sps:$4 sm:$0xff]   ;;  %v15078_v38 = vld [vmem:[%s20282_s4 + $0x558] ss:$12 sps:$4 sm:$0xff]   ;;  %v5709_v34 = vrot.slane %v17819_v37, 4 }
 0x4bc   : > { %11058 = vmatpush1.bf16.msra.mxu0 %v15012_v19  ;;  %v15080_v21 = vld [vmem:[%s20282_s4 + $0x55c] ss:$12 sps:$4 sm:$0xff]   ;;  %v15083_v56 = vld [vmem:[%s20282_s4 + $0x3c4] ss:$12 sps:$4 sm:$0xff]   ;;  %v18046_v19 = vmax.f32 %v17839_v28, %v5682_v12  ;;  %v15089_v49 = vld [vmem:[%s20282_s4 + $0x6ac] ss:$12 sps:$4 sm:$0xff]  }
 0x4bd   : > { %11019 = vmatpush1.bf16.msra.mxu1 %v15015_v42  ;;  %11059 = vmatprep.subr.bf16.mxu0 %v15020_v23  ;;  %v15086_v29 = vld [vmem:[%s20282_s4 + $0x544] ss:$12 sps:$4 sm:$0xff]   ;;  %v15084_v42 = vld [vmem:[%s20282_s4 + $0x540] ss:$12 sps:$4 sm:$0xff]   ;;  %v15087_v23 = vld [vmem:[%s20282_s4 + $0x6a8] ss:$12 sps:$4 sm:$0xff]  }
 0x4be   : > { %11020 = vmatprep.subr.bf16.mxu1 %v15023_v30  ;;  %v5713_v28 = vrot.slane %v17819_v37, 6  ;;  %v18059_v30 = vpack.c.bf16 %v5709_v34, %v5709_v34  ;;  %v15090_v37 = vld [vmem:[%s20282_s4 + $0x828] ss:$12 sps:$4 sm:$0xff]   ;;  %v15155_v34 = vld [vmem:[%s20282_s4 + $0x724] ss:$12 sps:$4 sm:$0xff]  }
 0x4bf   : > { %v15146_v12 = vld [vmem:[%s20282_s4 + $0x8d4] ss:$12 sps:$4 sm:$0xff]  }
 0x4c0   : > { %11060 = vmatpush1.bf16.msra.mxu0 %v15018_v4  ;;  %v15092_v4 = vld [vmem:[%s20282_s4 + $0x82c] ss:$12 sps:$4 sm:$0xff]  }
 0x4c1   : > { %11021 = vmatpush1.bf16.msra.mxu1 %v15021_v35  ;;  %11061 = vmatprep.subr.bf16.mxu0 %v15026_v45  ;;  %v5720_v35 = vrot.slane %v18046_v19, 2  ;;  %v15095_v45 = vld [vmem:[%s20282_s4 + $0x694] ss:$12 sps:$4 sm:$0xff]  }
 0x4c2   : > { %11022 = vmatprep.subr.bf16.mxu1 %v15029_v6  ;;  %v18070_v6 = vpack.c.bf16 %v18046_v19, %v18046_v19 }
 0x4c4   : > { %11062 = vmatpush1.bf16.msra.mxu0 %v15024_v3  ;;  %v18077_v3 = vpack.c.bf16 %v5713_v28, %v5713_v28  ;;  %v15161_v28 = vld [vmem:[%s20282_s4 + $0x70c] ss:$12 sps:$4 sm:$0xff]  }
 0x4c5   : > { %11023 = vmatpush1.bf16.msra.mxu1 %v15027_v22  ;;  %11063 = vmatprep.subr.bf16.mxu0 %v15032_v40  ;;  %v15093_v22 = vld [vmem:[%s20282_s4 + $0x690] ss:$12 sps:$4 sm:$0xff]   ;;  %v15098_v40 = vld [vmem:[%s20282_s4 + $0x814] ss:$12 sps:$4 sm:$0xff]  }
 0x4c6   : > { %11024 = vmatprep.subr.bf16.mxu1 %v15035_v63  ;;  %v18085_v63 = vpack.c.bf16 %v5720_v35, %v5720_v35  ;;  %v15159_v35 = vld [vmem:[%s20282_s4 + $0x708] ss:$12 sps:$4 sm:$0xff]  }
 0x4c8   : > { %11064 = vmatpush1.bf16.msra.mxu0 %v15030_v27  ;;  %v15101_v27 = vld [vmem:[%s20282_s4 + $0x67c] ss:$12 sps:$4 sm:$0xff]  }
 0x4c9   : > { %11025 = vmatpush1.bf16.msra.mxu1 %v15033_v43  ;;  %11065 = vmatprep.subr.bf16.mxu0 %v15038_v62  ;;  %v15096_v43 = vld [vmem:[%s20282_s4 + $0x810] ss:$12 sps:$4 sm:$0xff]   ;;  %v15099_v62 = vld [vmem:[%s20282_s4 + $0x678] ss:$12 sps:$4 sm:$0xff]  }
 0x4ca   : > { %11026 = vmatprep.subr.bf16.mxu1 %v15041_v61  ;;  %v15104_v61 = vld [vmem:[%s20282_s4 + $0x7fc] ss:$12 sps:$4 sm:$0xff]  }
 0x4cc   : > { %11066 = vmatpush1.bf16.msra.mxu0 %v15036_v8  ;;  %v15107_v8 = vld [vmem:[%s20282_s4 + $0x664] ss:$12 sps:$4 sm:$0xff]  }
 0x4cd   : > { %11027 = vmatpush2.bf16.msra.mxu1 %v15039_v33  ;;  %11067 = vmatprep.subr.bf16.mxu0 %v15044_v57  ;;  %v15102_v33 = vld [vmem:[%s20282_s4 + $0x7f8] ss:$12 sps:$4 sm:$0xff]   ;;  %v15105_v57 = vld [vmem:[%s20282_s4 + $0x660] ss:$12 sps:$4 sm:$0xff]  }
 0x4ce   : > { %11028 = vmatprep.subr.bf16.mxu1 %v15047_v7  ;;  %v15110_v7 = vld [vmem:[%s20282_s4 + $0x7e4] ss:$12 sps:$4 sm:$0xff]  }
 0x4d0   : > { %11068 = vmatpush2.bf16.msra.mxu0 %v15042_v31  ;;  %v15113_v31 = vld [vmem:[%s20282_s4 + $0x64c] ss:$12 sps:$4 sm:$0xff]  }
 0x4d1   : > { %11029 = vmatpush2.bf16.msra.mxu1 %v15045_v26  ;;  %11069 = vmatprep.subr.bf16.mxu0 %v15050_v41  ;;  %v15108_v26 = vld [vmem:[%s20282_s4 + $0x7e0] ss:$12 sps:$4 sm:$0xff]   ;;  %v15111_v41 = vld [vmem:[%s20282_s4 + $0x648] ss:$12 sps:$4 sm:$0xff]  }
 0x4d2   : > { %11030 = vmatprep.subr.bf16.mxu1 %v15053_v52  ;;  %v15116_v52 = vld [vmem:[%s20282_s4 + $0x7cc] ss:$12 sps:$4 sm:$0xff]  }
 0x4d4   : > { %11070 = vmatpush2.bf16.msra.mxu0 %v15048_v51  ;;  %v15119_v51 = vld [vmem:[%s20282_s4 + $0x634] ss:$12 sps:$4 sm:$0xff]  }
 0x4d5   : > { %11031 = vmatpush2.bf16.msra.mxu1 %v15051_v0  ;;  %11071 = vmatprep.subr.bf16.mxu0 %v15056_v50  ;;  %v15114_v0 = vld [vmem:[%s20282_s4 + $0x7c8] ss:$12 sps:$4 sm:$0xff]   ;;  %v15117_v50 = vld [vmem:[%s20282_s4 + $0x630] ss:$12 sps:$4 sm:$0xff]  }
 0x4d6   : > { %11032 = vmatprep.subr.bf16.mxu1 %v15059_v60  ;;  %v15122_v60 = vld [vmem:[%s20282_s4 + $0x7b4] ss:$12 sps:$4 sm:$0xff]  }
 0x4d8   : > { %11072 = vmatpush2.bf16.msra.mxu0 %v15054_v10  ;;  %v15125_v10 = vld [vmem:[%s20282_s4 + $0x61c] ss:$12 sps:$4 sm:$0xff]  }
 0x4d9   : > { %11033 = vmatpush2.bf16.msra.mxu1 %v15057_v55  ;;  %11073 = vmatprep.subr.bf16.mxu0 %v15062_v16  ;;  %v15120_v55 = vld [vmem:[%s20282_s4 + $0x7b0] ss:$12 sps:$4 sm:$0xff]   ;;  %v15123_v16 = vld [vmem:[%s20282_s4 + $0x618] ss:$12 sps:$4 sm:$0xff]  }
 0x4da   : > { %11034 = vmatprep.subr.bf16.mxu1 %v15065_v1  ;;  %v15128_v1 = vld [vmem:[%s20282_s4 + $0x79c] ss:$12 sps:$4 sm:$0xff]  }
 0x4dc   : > { %11074 = vmatpush2.bf16.msra.mxu0 %v15060_v54  ;;  %v15131_v54 = vld [vmem:[%s20282_s4 + $0x604] ss:$12 sps:$4 sm:$0xff]  }
 0x4dd   : > { %11035 = vmatpush2.bf16.msra.mxu1 %v15063_v14  ;;  %11075 = vmatprep.subr.bf16.mxu0 %v15068_v24  ;;  %v15126_v14 = vld [vmem:[%s20282_s4 + $0x798] ss:$12 sps:$4 sm:$0xff]   ;;  %v15129_v24 = vld [vmem:[%s20282_s4 + $0x600] ss:$12 sps:$4 sm:$0xff]  }
 0x4de   : > { %11036 = vmatprep.subr.bf16.mxu1 %v15071_v58  ;;  %v15134_v58 = vld [vmem:[%s20282_s4 + $0x784] ss:$12 sps:$4 sm:$0xff]  }
 0x4e0   : > { %11076 = vmatpush2.bf16.msra.mxu0 %v15066_v44  ;;  %v15137_v44 = vld [vmem:[%s20282_s4 + $0x76c] ss:$12 sps:$4 sm:$0xff]  }
 0x4e1   : > { %11037 = vmatpush2.bf16.msra.mxu1 %v15069_v47  ;;  %11077 = vmatprep.subr.bf16.mxu0 %v15074_v53  ;;  %v15132_v47 = vld [vmem:[%s20282_s4 + $0x780] ss:$12 sps:$4 sm:$0xff]   ;;  %v15135_v53 = vld [vmem:[%s20282_s4 + $0x768] ss:$12 sps:$4 sm:$0xff]  }
 0x4e2   : > { %11038 = vmatprep.subr.bf16.mxu1 %v15077_v2  ;;  %v15140_v2 = vld [vmem:[%s20282_s4 + $0x8ec] ss:$12 sps:$4 sm:$0xff]  }
 0x4e4   : > { %11078 = vmatpush2.bf16.msra.mxu0 %v15072_v15  ;;  %v15143_v15 = vld [vmem:[%s20282_s4 + $0x754] ss:$12 sps:$4 sm:$0xff]  }
 0x4e5   : > { %11039 = vmatpush2.bf16.msra.mxu1 %v15075_v11  ;;  %11079 = vmatprep.subr.bf16.mxu0 %v15080_v21  ;;  %v15138_v11 = vld [vmem:[%s20282_s4 + $0x8e8] ss:$12 sps:$4 sm:$0xff]   ;;  %v15141_v21 = vld [vmem:[%s20282_s4 + $0x750] ss:$12 sps:$4 sm:$0xff]  }
 0x4e6   : > { %11040 = vmatprep.subr.bf16.mxu1 %v15083_v56  ;;  %v15149_v56 = vld [vmem:[%s20282_s4 + $0x73c] ss:$12 sps:$4 sm:$0xff]  }
 0x4e8   : > { %11080 = vmatpush2.bf16.msra.mxu0 %v15078_v38  ;;  %v15144_v38 = vld [vmem:[%s20282_s4 + $0x8d0] ss:$12 sps:$4 sm:$0xff]  }
 0x4e9   : > { %11041 = vmatpush2.bf16.msra.mxu1 %v15081_v32  ;;  %11081 = vmatprep.subr.bf16.mxu0 %v15086_v29  ;;  %v15147_v32 = vld [vmem:[%s20282_s4 + $0x738] ss:$12 sps:$4 sm:$0xff]   ;;  %v15152_v29 = vld [vmem:[%s20282_s4 + $0x8bc] ss:$12 sps:$4 sm:$0xff]  }
 0x4ea   : > { %11092 = vmatprep.subr.bf16.mxu1 %v15089_v49  ;;  %v15150_v49 = vld [vmem:[%s20282_s4 + $0x8b8] ss:$12 sps:$4 sm:$0xff]  }
 0x4ec   : > { %11082 = vmatpush2.bf16.msra.mxu0 %v15084_v42  ;;  %11043 = vmatmul.mubr.bf16.vlgmr.msra.gmra.mxu1 %v18059_v30  ;;  %v15153_v42 = vld [vmem:[%s20282_s4 + $0x720] ss:$12 sps:$4 sm:$0xff]  }
 0x4ed   : > { %11093 = vmatpush1.bf16.msra.mxu1 %v15087_v23  ;;  %11124 = vmatprep.mubr.bf16.mxu1 %v18070_v6  ;;  %v15158_v23 = vld [vmem:[%s20282_s4 + $0x8a4] ss:$12 sps:$4 sm:$0xff]  }
 0x4ee   : > { %11133 = vmatprep.subr.bf16.mxu0 %v15092_v4  ;;  %11094 = vmatprep.subr.bf16.mxu1 %v15095_v45  ;;  %v15156_v4 = vld [vmem:[%s20282_s4 + $0x8a0] ss:$12 sps:$4 sm:$0xff]  }
 0x4ef   : > { %11084 = vmatmul.mubr.bf16.vlgmr.msra.gmra.mxu0 %v18077_v3  ;;  %v15164_v45 = vld [vmem:[%s20282_s4 + $0x88c] ss:$12 sps:$4 sm:$0xff]  }
 0x4f0   : > { %11134 = vmatpush1.bf16.msra.mxu0 %v15090_v37  ;;  %11165 = vmatprep.mubr.bf16.mxu0 %v18085_v63  ;;  %v15167_v37 = vld [vmem:[%s20282_s4 + $0x6f4] ss:$12 sps:$4 sm:$0xff]  }
 0x4f1   : > { %11095 = vmatpush1.bf16.msra.mxu1 %v15093_v22  ;;  %11135 = vmatprep.subr.bf16.mxu0 %v15098_v40  ;;  %v15162_v22 = vld [vmem:[%s20282_s4 + $0x888] ss:$12 sps:$4 sm:$0xff]   ;;  %v15165_v40 = vld [vmem:[%s20282_s4 + $0x6f0] ss:$12 sps:$4 sm:$0xff]  }
 0x4f2   : > { %11096 = vmatprep.subr.bf16.mxu1 %v15101_v27  ;;  %v15170_v27 = vld [vmem:[%s20282_s4 + $0x874] ss:$12 sps:$4 sm:$0xff]  }
 0x4f4   : > { %11136 = vmatpush1.bf16.msra.mxu0 %v15096_v43  ;;  %v15173_v43 = vld [vmem:[%s20282_s4 + $0x6dc] ss:$12 sps:$4 sm:$0xff]  }
 0x4f5   : > { %11097 = vmatpush1.bf16.msra.mxu1 %v15099_v62  ;;  %11137 = vmatprep.subr.bf16.mxu0 %v15104_v61  ;;  %v15168_v62 = vld [vmem:[%s20282_s4 + $0x870] ss:$12 sps:$4 sm:$0xff]   ;;  %v5681_v61 = vrot.slane %v17827_v9, 1 }
 0x4f6   : > { %11098 = vmatprep.subr.bf16.mxu1 %v15107_v8  ;;  %v15171_v8 = vld [vmem:[%s20282_s4 + $0x6d8] ss:$12 sps:$4 sm:$0xff]  }
 0x4f8   : > { %11138 = vmatpush1.bf16.msra.mxu0 %v15102_v33  ;;  %v15176_v33 = vld [vmem:[%s20282_s4 + $0x85c] ss:$12 sps:$4 sm:$0xff]  }
 0x4f9   : > { %11099 = vmatpush1.bf16.msra.mxu1 %v15105_v57  ;;  %11139 = vmatprep.subr.bf16.mxu0 %v15110_v7  ;;  %v15179_v57 = vld [vmem:[%s20282_s4 + $0x6c4] ss:$12 sps:$4 sm:$0xff]  }
 0x4fa   : > { %11100 = vmatprep.subr.bf16.mxu1 %v15113_v31  ;;  %v15174_v7 = vld [vmem:[%s20282_s4 + $0x858] ss:$12 sps:$4 sm:$0xff]   ;;  %v18253_v31 = vmax.f32 %v17827_v9, %v5681_v61  ;;  %v15180_v9 = vld [vmem:[%s20282_s4 + $0x840] ss:$12 sps:$4 sm:$0xff]   ;;  %v15231_v61 = vld [vmem:[%s20282_s4 + $0xa68] ss:$12 sps:$4 sm:$0xff]  }
 0x4fc   : > { %11140 = vmatpush1.bf16.msra.mxu0 %v15108_v26  ;;  %v15177_v26 = vld [vmem:[%s20282_s4 + $0x6c0] ss:$12 sps:$4 sm:$0xff]  }
 0x4fd   : > { %11101 = vmatpush1.bf16.msra.mxu1 %v15111_v41  ;;  %11141 = vmatprep.subr.bf16.mxu0 %v15116_v52  ;;  %v15182_v41 = vld [vmem:[%s20282_s4 + $0x844] ss:$12 sps:$4 sm:$0xff]   ;;  %v15185_v52 = vld [vmem:[%s20282_s4 + $0x9ac] ss:$12 sps:$4 sm:$0xff]  }
 0x4fe   : > { %11102 = vmatprep.subr.bf16.mxu1 %v15119_v51  ;;  %v5724_v51 = vrot.slane %v18046_v19, 4 }
 0x500   : > { %11142 = vmatpush1.bf16.msra.mxu0 %v15114_v0  ;;  %v15183_v0 = vld [vmem:[%s20282_s4 + $0x9a8] ss:$12 sps:$4 sm:$0xff]  }
 0x501   : > { %11103 = vmatpush1.bf16.msra.mxu1 %v15117_v50  ;;  %11143 = vmatprep.subr.bf16.mxu0 %v15122_v60  ;;  %v5719_v50 = vrot.slane %v18253_v31, 2  ;;  %v18274_v60 = vpack.c.bf16 %v18253_v31, %v18253_v31 }
 0x502   : > { %11104 = vmatprep.subr.bf16.mxu1 %v15125_v10  ;;  %v15188_v10 = vld [vmem:[%s20282_s4 + $0xb2c] ss:$12 sps:$4 sm:$0xff]  }
 0x504   : > { %11144 = vmatpush1.bf16.msra.mxu0 %v15120_v55  ;;  %v5728_v55 = vrot.slane %v18046_v19, 6  ;;  %v15189_v19 = vld [vmem:[%s20282_s4 + $0x990] ss:$12 sps:$4 sm:$0xff]  }
 0x505   : > { %11105 = vmatpush1.bf16.msra.mxu1 %v15123_v16  ;;  %11145 = vmatprep.subr.bf16.mxu0 %v15128_v1  ;;  %v15191_v16 = vld [vmem:[%s20282_s4 + $0x994] ss:$12 sps:$4 sm:$0xff]   ;;  %v18283_v1 = vpack.c.bf16 %v5724_v51, %v5724_v51  ;;  %v15243_v51 = vld [vmem:[%s20282_s4 + $0xa38] ss:$12 sps:$4 sm:$0xff]  }
 0x506   : > { %11106 = vmatprep.subr.bf16.mxu1 %v15131_v54  ;;  %v15186_v54 = vld [vmem:[%s20282_s4 + $0xb28] ss:$12 sps:$4 sm:$0xff]  }
 0x508   : > { %11146 = vmatpush1.bf16.msra.mxu0 %v15126_v14  ;;  %v18290_v14 = vpack.c.bf16 %v5719_v50, %v5719_v50  ;;  %v15246_v50 = vld [vmem:[%s20282_s4 + $0xbb8] ss:$12 sps:$4 sm:$0xff]  }
 0x509   : > { %11107 = vmatpush1.bf16.msra.mxu1 %v15129_v24  ;;  %11147 = vmatprep.subr.bf16.mxu0 %v15134_v58  ;;  %v15194_v24 = vld [vmem:[%s20282_s4 + $0xb14] ss:$12 sps:$4 sm:$0xff]   ;;  %v18298_v58 = vpack.c.bf16 %v5728_v55, %v5728_v55  ;;  %v15254_v55 = vld [vmem:[%s20282_s4 + $0xba4] ss:$12 sps:$4 sm:$0xff]  }
 0x50a   : > { %11108 = vmatprep.subr.bf16.mxu1 %v15137_v44  ;;  %v15197_v44 = vld [vmem:[%s20282_s4 + $0x97c] ss:$12 sps:$4 sm:$0xff]  }
 0x50c   : > { %11148 = vmatpush1.bf16.msra.mxu0 %v15132_v47  ;;  %v15192_v47 = vld [vmem:[%s20282_s4 + $0xb10] ss:$12 sps:$4 sm:$0xff]  }
 0x50d   : > { %11109 = vmatpush2.bf16.msra.mxu1 %v15135_v53  ;;  %11149 = vmatprep.subr.bf16.mxu0 %v15140_v2  ;;  %v15195_v53 = vld [vmem:[%s20282_s4 + $0x978] ss:$12 sps:$4 sm:$0xff]   ;;  %v15200_v2 = vld [vmem:[%s20282_s4 + $0xafc] ss:$12 sps:$4 sm:$0xff]  }
 0x50e   : > { %11110 = vmatprep.subr.bf16.mxu1 %v15143_v15  ;;  %v15203_v15 = vld [vmem:[%s20282_s4 + $0x964] ss:$12 sps:$4 sm:$0xff]  }
 0x510   : > { %11150 = vmatpush2.bf16.msra.mxu0 %v15138_v11  ;;  %v15198_v11 = vld [vmem:[%s20282_s4 + $0xaf8] ss:$12 sps:$4 sm:$0xff]  }
 0x511   : > { %11111 = vmatpush2.bf16.msra.mxu1 %v15141_v21  ;;  %11151 = vmatprep.subr.bf16.mxu0 %v15146_v12  ;;  %v15201_v21 = vld [vmem:[%s20282_s4 + $0x960] ss:$12 sps:$4 sm:$0xff]   ;;  %v15206_v12 = vld [vmem:[%s20282_s4 + $0xae4] ss:$12 sps:$4 sm:$0xff]  }
 0x512   : > { %11112 = vmatprep.subr.bf16.mxu1 %v15149_v56  ;;  %v15209_v56 = vld [vmem:[%s20282_s4 + $0x94c] ss:$12 sps:$4 sm:$0xff]  }
 0x514   : > { %11152 = vmatpush2.bf16.msra.mxu0 %v15144_v38  ;;  %v15204_v38 = vld [vmem:[%s20282_s4 + $0xae0] ss:$12 sps:$4 sm:$0xff]  }
 0x515   : > { %11113 = vmatpush2.bf16.msra.mxu1 %v15147_v32  ;;  %11153 = vmatprep.subr.bf16.mxu0 %v15152_v29  ;;  %v15207_v32 = vld [vmem:[%s20282_s4 + $0x948] ss:$12 sps:$4 sm:$0xff]   ;;  %v15212_v29 = vld [vmem:[%s20282_s4 + $0xacc] ss:$12 sps:$4 sm:$0xff]  }
 0x516   : > { %11114 = vmatprep.subr.bf16.mxu1 %v15155_v34  ;;  %v15215_v34 = vld [vmem:[%s20282_s4 + $0x934] ss:$12 sps:$4 sm:$0xff]  }
 0x518   : > { %11154 = vmatpush2.bf16.msra.mxu0 %v15150_v49  ;;  %v15210_v49 = vld [vmem:[%s20282_s4 + $0xac8] ss:$12 sps:$4 sm:$0xff]  }
 0x519   : > { %11115 = vmatpush2.bf16.msra.mxu1 %v15153_v42  ;;  %11155 = vmatprep.subr.bf16.mxu0 %v15158_v23  ;;  %v15213_v42 = vld [vmem:[%s20282_s4 + $0x930] ss:$12 sps:$4 sm:$0xff]   ;;  %v15218_v23 = vld [vmem:[%s20282_s4 + $0xab4] ss:$12 sps:$4 sm:$0xff]  }
 0x51a   : > { %11116 = vmatprep.subr.bf16.mxu1 %v15161_v28  ;;  %v15221_v28 = vld [vmem:[%s20282_s4 + $0x91c] ss:$12 sps:$4 sm:$0xff]  }
 0x51c   : > { %11156 = vmatpush2.bf16.msra.mxu0 %v15156_v4  ;;  %v15216_v4 = vld [vmem:[%s20282_s4 + $0xab0] ss:$12 sps:$4 sm:$0xff]  }
 0x51d   : > { %11117 = vmatpush2.bf16.msra.mxu1 %v15159_v35  ;;  %11157 = vmatprep.subr.bf16.mxu0 %v15164_v45  ;;  %v15219_v35 = vld [vmem:[%s20282_s4 + $0x918] ss:$12 sps:$4 sm:$0xff]   ;;  %v15224_v45 = vld [vmem:[%s20282_s4 + $0xa9c] ss:$12 sps:$4 sm:$0xff]  }
 0x51e   : > { %11118 = vmatprep.subr.bf16.mxu1 %v15167_v37  ;;  %v15227_v37 = vld [vmem:[%s20282_s4 + $0x904] ss:$12 sps:$4 sm:$0xff]  }
 0x520   : > { %11158 = vmatpush2.bf16.msra.mxu0 %v15162_v22  ;;  %v15222_v22 = vld [vmem:[%s20282_s4 + $0xa98] ss:$12 sps:$4 sm:$0xff]  }
 0x521   : > { %11119 = vmatpush2.bf16.msra.mxu1 %v15165_v40  ;;  %11159 = vmatprep.subr.bf16.mxu0 %v15170_v27  ;;  %v15225_v40 = vld [vmem:[%s20282_s4 + $0x900] ss:$12 sps:$4 sm:$0xff]   ;;  %v15230_v27 = vld [vmem:[%s20282_s4 + $0xa84] ss:$12 sps:$4 sm:$0xff]  }
 0x522   : > { %11120 = vmatprep.subr.bf16.mxu1 %v15173_v43  ;;  %v15233_v43 = vld [vmem:[%s20282_s4 + $0xa6c] ss:$12 sps:$4 sm:$0xff]  }
 0x524   : > { %11160 = vmatpush2.bf16.msra.mxu0 %v15168_v62  ;;  %v15228_v62 = vld [vmem:[%s20282_s4 + $0xa80] ss:$12 sps:$4 sm:$0xff]  }
 0x525   : > { %11121 = vmatpush2.bf16.msra.mxu1 %v15171_v8  ;;  %11161 = vmatprep.subr.bf16.mxu0 %v15176_v33  ;;  %v15236_v8 = vld [vmem:[%s20282_s4 + $0xbec] ss:$12 sps:$4 sm:$0xff]   ;;  %v15239_v33 = vld [vmem:[%s20282_s4 + $0xa54] ss:$12 sps:$4 sm:$0xff]  }
 0x526   : > { %11122 = vmatprep.subr.bf16.mxu1 %v15179_v57  ;;  %v15234_v57 = vld [vmem:[%s20282_s4 + $0xbe8] ss:$12 sps:$4 sm:$0xff]  }
 0x528   : > { %11162 = vmatpush2.bf16.msra.mxu0 %v15174_v7  ;;  %v15237_v7 = vld [vmem:[%s20282_s4 + $0xa50] ss:$12 sps:$4 sm:$0xff]  }
 0x529   : > { %11123 = vmatpush2.bf16.msra.mxu1 %v15177_v26  ;;  %11163 = vmatprep.subr.bf16.mxu0 %v15182_v41  ;;  %v15242_v26 = vld [vmem:[%s20282_s4 + $0xbd4] ss:$12 sps:$4 sm:$0xff]   ;;  %v15245_v41 = vld [vmem:[%s20282_s4 + $0xa3c] ss:$12 sps:$4 sm:$0xff]  }
 0x52a   : > { %11174 = vmatprep.subr.bf16.mxu1 %v15185_v52  ;;  %v15240_v52 = vld [vmem:[%s20282_s4 + $0xbd0] ss:$12 sps:$4 sm:$0xff]  }
 0x52c   : > { %11164 = vmatpush2.bf16.msra.mxu0 %v15180_v9  ;;  %11125 = vmatmul.mubr.bf16.vlgmr.msra.gmra.mxu1 %v18274_v60  ;;  %v15248_v9 = vld [vmem:[%s20282_s4 + $0xbbc] ss:$12 sps:$4 sm:$0xff]  }
 0x52d   : > { %11175 = vmatpush1.bf16.msra.mxu1 %v15183_v0  ;;  %11206 = vmatprep.mubr.bf16.mxu1 %v18283_v1  ;;  %v15251_v0 = vld [vmem:[%s20282_s4 + $0xa24] ss:$12 sps:$4 sm:$0xff]  }
 0x52e   : > { %11215 = vmatprep.subr.bf16.mxu0 %v15188_v10  ;;  %11176 = vmatprep.subr.bf16.mxu1 %v15191_v16  ;;  %v15249_v10 = vld [vmem:[%s20282_s4 + $0xa20] ss:$12 sps:$4 sm:$0xff]  }
 0x52f   : > { %11166 = vmatmul.mubr.bf16.vlgmr.msra.gmra.mxu0 %v18290_v14  ;;  %v15257_v16 = vld [vmem:[%s20282_s4 + $0xa0c] ss:$12 sps:$4 sm:$0xff]  }
 0x530   : > { %11216 = vmatpush1.bf16.msra.mxu0 %v15186_v54  ;;  %11247 = vmatprep.mubr.bf16.mxu0 %v18298_v58  ;;  %v15252_v54 = vld [vmem:[%s20282_s4 + $0xba0] ss:$12 sps:$4 sm:$0xff]  }
 0x531   : > { %11177 = vmatpush1.bf16.msra.mxu1 %v15189_v19  ;;  %11217 = vmatprep.subr.bf16.mxu0 %v15194_v24  ;;  %v15255_v19 = vld [vmem:[%s20282_s4 + $0xa08] ss:$12 sps:$4 sm:$0xff]   ;;  %v15260_v24 = vld [vmem:[%s20282_s4 + $0xb8c] ss:$12 sps:$4 sm:$0xff]  }
 0x532   : > { %11178 = vmatprep.subr.bf16.mxu1 %v15197_v44  ;;  %v15263_v44 = vld [vmem:[%s20282_s4 + $0x9f4] ss:$12 sps:$4 sm:$0xff]  }
 0x534   : > { %11218 = vmatpush1.bf16.msra.mxu0 %v15192_v47  ;;  %v15258_v47 = vld [vmem:[%s20282_s4 + $0xb88] ss:$12 sps:$4 sm:$0xff]  }
 0x535   : > { %11179 = vmatpush1.bf16.msra.mxu1 %v15195_v53  ;;  %11219 = vmatprep.subr.bf16.mxu0 %v15200_v2  ;;  %v15261_v53 = vld [vmem:[%s20282_s4 + $0x9f0] ss:$12 sps:$4 sm:$0xff]   ;;  %v15266_v2 = vld [vmem:[%s20282_s4 + $0xb74] ss:$12 sps:$4 sm:$0xff]  }
 0x536   : > { %11180 = vmatprep.subr.bf16.mxu1 %v15203_v15  ;;  %v15269_v15 = vld [vmem:[%s20282_s4 + $0x9dc] ss:$12 sps:$4 sm:$0xff]  }
 0x538   : > { %11220 = vmatpush1.bf16.msra.mxu0 %v15198_v11  ;;  %v15264_v11 = vld [vmem:[%s20282_s4 + $0xb70] ss:$12 sps:$4 sm:$0xff]  }
 0x539   : > { %11181 = vmatpush1.bf16.msra.mxu1 %v15201_v21  ;;  %11221 = vmatprep.subr.bf16.mxu0 %v15206_v12  ;;  %v15267_v21 = vld [vmem:[%s20282_s4 + $0x9d8] ss:$12 sps:$4 sm:$0xff]   ;;  %v15272_v12 = vld [vmem:[%s20282_s4 + $0xb5c] ss:$12 sps:$4 sm:$0xff]  }
 0x53a   : > { %11182 = vmatprep.subr.bf16.mxu1 %v15209_v56  ;;  %v5690_v56 = vrot.slane %v17882_v59, 1 }
 0x53c   : > { %11222 = vmatpush1.bf16.msra.mxu0 %v15204_v38  ;;  %v15275_v38 = vld [vmem:[%s20282_s4 + $0x9c4] ss:$12 sps:$4 sm:$0xff]  }
 0x53d   : > { %11183 = vmatpush1.bf16.msra.mxu1 %v15207_v32  ;;  %11223 = vmatprep.subr.bf16.mxu0 %v15212_v29  ;;  %v15270_v32 = vld [vmem:[%s20282_s4 + $0xb58] ss:$12 sps:$4 sm:$0xff]   ;;  %v15273_v29 = vld [vmem:[%s20282_s4 + $0x9c0] ss:$12 sps:$4 sm:$0xff]  }
 0x53e   : > { %11184 = vmatprep.subr.bf16.mxu1 %v15215_v34  ;;  %v15278_v34 = vld [vmem:[%s20282_s4 + $0xb44] ss:$12 sps:$4 sm:$0xff]  }
 0x540   : > { %11224 = vmatpush1.bf16.msra.mxu0 %v15210_v49  ;;  %v18472_v49 = vmax.f32 %v17882_v59, %v5690_v56  ;;  %v15279_v59 = vld [vmem:[%s20282_s4 + $0xca8] ss:$12 sps:$4 sm:$0xff]   ;;  %v15300_v56 = vld [vmem:[%s20282_s4 + $0xde0] ss:$12 sps:$4 sm:$0xff]  }
 0x541   : > { %11185 = vmatpush1.bf16.msra.mxu1 %v15213_v42  ;;  %11225 = vmatprep.subr.bf16.mxu0 %v15218_v23  ;;  %v5723_v42 = vrot.slane %v18253_v31, 4  ;;  %v15281_v23 = vld [vmem:[%s20282_s4 + $0xcac] ss:$12 sps:$4 sm:$0xff]  }
 0x542   : > { %11186 = vmatprep.subr.bf16.mxu1 %v15221_v28  ;;  %v6815_v28 = vld [vmem:[%s20283_s5] sm:$0x7] }
 0x544   : > { %11226 = vmatpush1.bf16.msra.mxu0 %v15216_v4  ;;  %v20308_v4 = vld [vmem:[#allocation4_spill] sm:$0xff] }
 0x545   : > { %11187 = vmatpush1.bf16.msra.mxu1 %v15219_v35  ;;  %11227 = vmatprep.subr.bf16.mxu0 %v15224_v45  ;;  %v10919_v35 = vsub.s32 1, %v20308_v4  ;;  %v15276_v45 = vld [vmem:[%s20282_s4 + $0xb40] ss:$12 sps:$4 sm:$0xff]  }
 0x546   : > { %11188 = vmatprep.subr.bf16.mxu1 %v15227_v37  ;;  %v10916_v37 = vrot.slane %v6815_v28, %v16173_v25 }
 0x547   : > { %v10920_v25 = vrot.slane %v6815_v28, %v10919_v35  ;;  %v15317_v28 = vld [vmem:[%s20282_s4 + $0xc1c] ss:$12 sps:$4 sm:$0xff]  }
 0x548   : > { %11228 = vmatpush1.bf16.msra.mxu0 %v15222_v22  ;;  %v5727_v22 = vrot.slane %v18253_v31, 6  ;;  %v15312_v35 = vld [vmem:[%s20282_s4 + $0xdb0] ss:$12 sps:$4 sm:$0xff]  }
 0x549   : > { %11189 = vmatpush1.bf16.msra.mxu1 %v15225_v40  ;;  %11229 = vmatprep.subr.bf16.mxu0 %v15230_v27  ;;  %v18490_v40 = vpack.c.bf16 %v5723_v42, %v5723_v42  ;;  %v15284_v27 = vld [vmem:[%s20282_s4 + $0xe2c] ss:$12 sps:$4 sm:$0xff]   ;;  %v15309_v42 = vld [vmem:[%s20282_s4 + $0xc30] ss:$12 sps:$4 sm:$0xff]  }
 0x54a   : > { %11190 = vmatprep.subr.bf16.mxu1 %v15233_v43  ;;  %v5734_v43 = vrot.slane %v18472_v49, 2 }
 0x54c   : > { %11230 = vmatpush1.bf16.msra.mxu0 %v15228_v62  ;;  %v15287_v62 = vld [vmem:[%s20282_s4 + $0xc94] ss:$12 sps:$4 sm:$0xff]  }
 0x54d   : > { %11191 = vmatpush2.bf16.msra.mxu1 %v15231_v61  ;;  %11231 = vmatprep.subr.bf16.mxu0 %v15236_v8  ;;  %v18501_v61 = vpack.c.bf16 %v18472_v49, %v18472_v49  ;;  %v15282_v8 = vld [vmem:[%s20282_s4 + $0xe28] ss:$12 sps:$4 sm:$0xff]  }
 0x54e   : > { %11192 = vmatprep.subr.bf16.mxu1 %v15239_v33 }
 0x550   : > { %11232 = vmatpush2.bf16.msra.mxu0 %v15234_v57  ;;  %v18508_v57 = vpack.c.bf16 %v5727_v22, %v5727_v22  ;;  %v15318_v22 = vld [vmem:[%s20282_s4 + $0xd98] ss:$12 sps:$4 sm:$0xff]  }
 0x551   : > { %11193 = vmatpush2.bf16.msra.mxu1 %v15237_v7  ;;  %11233 = vmatprep.subr.bf16.mxu0 %v15242_v26  ;;  %v15285_v7 = vld [vmem:[%s20282_s4 + $0xc90] ss:$12 sps:$4 sm:$0xff]   ;;  %v15290_v26 = vld [vmem:[%s20282_s4 + $0xe14] ss:$12 sps:$4 sm:$0xff]  }
 0x552   : > { %11194 = vmatprep.subr.bf16.mxu1 %v15245_v41 }
 0x554   : > { %11234 = vmatpush2.bf16.msra.mxu0 %v15240_v52  ;;  %v18516_v52 = vpack.c.bf16 %v5734_v43, %v5734_v43  ;;  %v15326_v43 = vld [vmem:[%s20282_s4 + $0xd84] ss:$12 sps:$4 sm:$0xff]  }
 0x555   : > { %11195 = vmatpush2.bf16.msra.mxu1 %v15243_v51  ;;  %11235 = vmatprep.subr.bf16.mxu0 %v15248_v9  ;;  %v15293_v51 = vld [vmem:[%s20282_s4 + $0xc7c] ss:$12 sps:$4 sm:$0xff]  }
 0x556   : > { %11196 = vmatprep.subr.bf16.mxu1 %v15251_v0 }
 0x558   : > { %11236 = vmatpush2.bf16.msra.mxu0 %v15246_v50 }
 0x559   : > { %11197 = vmatpush2.bf16.msra.mxu1 %v15249_v10  ;;  %11237 = vmatprep.subr.bf16.mxu0 %v15254_v55  ;;  %v15288_v55 = vld [vmem:[%s20282_s4 + $0xe10] ss:$12 sps:$4 sm:$0xff]  }
 0x55a   : > { %11198 = vmatprep.subr.bf16.mxu1 %v15257_v16 }
 0x55c   : > { %11238 = vmatpush2.bf16.msra.mxu0 %v15252_v54  ;;  %v15291_v54 = vld [vmem:[%s20282_s4 + $0xc78] ss:$12 sps:$4 sm:$0xff]  }
 0x55d   : > { %11199 = vmatpush2.bf16.msra.mxu1 %v15255_v19  ;;  %11239 = vmatprep.subr.bf16.mxu0 %v15260_v24  ;;  %v15296_v19 = vld [vmem:[%s20282_s4 + $0xdfc] ss:$12 sps:$4 sm:$0xff]  }
 0x55e   : > { %11200 = vmatprep.subr.bf16.mxu1 %v15263_v44 }
 0x560   : > { %11240 = vmatpush2.bf16.msra.mxu0 %v15258_v47  ;;  %v15299_v47 = vld [vmem:[%s20282_s4 + $0xc64] ss:$12 sps:$4 sm:$0xff]  }
 0x561   : > { %11201 = vmatpush2.bf16.msra.mxu1 %v15261_v53  ;;  %11241 = vmatprep.subr.bf16.mxu0 %v15266_v2  ;;  %v15294_v2 = vld [vmem:[%s20282_s4 + $0xdf8] ss:$12 sps:$4 sm:$0xff]  }
 0x562   : > { %11202 = vmatprep.subr.bf16.mxu1 %v15269_v15 }
 0x564   : > { %11242 = vmatpush2.bf16.msra.mxu0 %v15264_v11  ;;  %v15297_v11 = vld [vmem:[%s20282_s4 + $0xc60] ss:$12 sps:$4 sm:$0xff]  }
 0x565   : > { %11203 = vmatpush2.bf16.msra.mxu1 %v15267_v21  ;;  %11243 = vmatprep.subr.bf16.mxu0 %v15272_v12  ;;  %v15302_v21 = vld [vmem:[%s20282_s4 + $0xde4] ss:$12 sps:$4 sm:$0xff]   ;;  %v15305_v12 = vld [vmem:[%s20282_s4 + $0xc4c] ss:$12 sps:$4 sm:$0xff]  }
 0x566   : > { %11204 = vmatprep.subr.bf16.mxu1 %v15275_v38  ;;  %v15303_v38 = vld [vmem:[%s20282_s4 + $0xc48] ss:$12 sps:$4 sm:$0xff]  }
 0x568   : > { %11244 = vmatpush2.bf16.msra.mxu0 %v15270_v32  ;;  %v15308_v32 = vld [vmem:[%s20282_s4 + $0xdcc] ss:$12 sps:$4 sm:$0xff]  }
 0x569   : > { %11205 = vmatpush2.bf16.msra.mxu1 %v15273_v29  ;;  %11245 = vmatprep.subr.bf16.mxu0 %v15278_v34  ;;  %v15311_v29 = vld [vmem:[%s20282_s4 + $0xc34] ss:$12 sps:$4 sm:$0xff]  }
 0x56a   : > { %11256 = vmatprep.subr.bf16.mxu1 %v15281_v23  ;;  %v15306_v34 = vld [vmem:[%s20282_s4 + $0xdc8] ss:$12 sps:$4 sm:$0xff]  }
 0x56b   : > { %v15314_v23 = vld [vmem:[%s20282_s4 + $0xdb4] ss:$12 sps:$4 sm:$0xff]  }
 0x56c   : > { %11246 = vmatpush2.bf16.msra.mxu0 %v15276_v45  ;;  %11207 = vmatmul.mubr.bf16.vlgmr.msra.gmra.mxu1 %v18490_v40  ;;  %v10962_v31 = vpop.f32.mrf.mxu1  ;;  %v15315_v45 = vld [vmem:[%s20282_s4 + $0xc18] ss:$12 sps:$4 sm:$0xff]  }
 0x56d   : > { %v10963_v33 = vadd.f32 %v10962_v31, %v10916_v37  ;;  %11257 = vmatpush1.bf16.msra.mxu1 %v15279_v59  ;;  %11288 = vmatprep.mubr.bf16.mxu1 %v18501_v61  ;;  %v15320_v59 = vld [vmem:[%s20282_s4 + $0xd9c] ss:$12 sps:$4 sm:$0xff]   ;;  %v15323_v37 = vld [vmem:[%s20282_s4 + $0xc04] ss:$12 sps:$4 sm:$0xff]  }
 0x56e   : > { %11297 = vmatprep.subr.bf16.mxu0 %v15284_v27  ;;  %v10964_v41 = vpop.f32.mrf.mxu1  ;;  %11258 = vmatprep.subr.bf16.mxu1 %v15287_v62  ;;  %v15321_v27 = vld [vmem:[%s20282_s4 + $0xc00] ss:$12 sps:$4 sm:$0xff]   ;;  %v15327_v31 = vld [vmem:[%s20282_s4 + $0xd68] ss:$12 sps:$4 sm:$0xff]  }
 0x56f   : > { %11248 = vmatmul.mubr.bf16.vlgmr.msra.gmra.mxu0 %v18508_v57  ;;  %v10965_v9 = vadd.f32 %v10964_v41, %v10920_v25  ;;  %v11003_v0 = vpop.f32.mrf.mxu0  ;;  %v15329_v62 = vld [vmem:[%s20282_s4 + $0xd6c] ss:$12 sps:$4 sm:$0xff]   ;;  %v15338_v41 = vld [vmem:[%s20282_s4 + $0xed4] ss:$12 sps:$4 sm:$0xff]  }
 0x570   : > { %v18522_v50 = vadd.f32 %v11003_v0, %v10963_v33  ;;  %11298 = vmatpush1.bf16.msra.mxu0 %v15282_v8  ;;  %11329 = vmatprep.mubr.bf16.mxu0 %v18516_v52  ;;  %v10966_v10 = vpop.f32.mrf.mxu1  ;;  %v15324_v25 = vld [vmem:[%s20282_s4 + $0xd80] ss:$12 sps:$4 sm:$0xff]   ;;  %v15339_v0 = vld [vmem:[%s20282_s4 + $0xd38] ss:$12 sps:$4 sm:$0xff]  }
 0x571   : > { %v11005_v16 = vpop.f32.mrf.mxu0  ;;  %11259 = vmatpush1.bf16.msra.mxu1 %v15285_v7  ;;  %11299 = vmatprep.subr.bf16.mxu0 %v15290_v26  ;;  %v15332_v8 = vld [vmem:[%s20282_s4 + $0xeec] ss:$12 sps:$4 sm:$0xff]   ;;  %v15335_v33 = vld [vmem:[%s20282_s4 + $0xd54] ss:$12 sps:$4 sm:$0xff]   ;;  %v15333_v26 = vld [vmem:[%s20282_s4 + $0xd50] ss:$12 sps:$4 sm:$0xff]  }
 0x572   : > { %v18534_v24 = vadd.f32 %v11005_v16, %v10965_v9  ;;  %v10967_v44 = vpop.f32.mrf.mxu1  ;;  %11260 = vmatprep.subr.bf16.mxu1 %v15293_v51  ;;  %v15330_v7 = vld [vmem:[%s20282_s4 + $0xee8] ss:$12 sps:$4 sm:$0xff]   ;;  %v15336_v9 = vld [vmem:[%s20282_s4 + $0xed0] ss:$12 sps:$4 sm:$0xff]   ;;  %v15342_v16 = vld [vmem:[%s20282_s4 + $0xeb8] ss:$12 sps:$4 sm:$0xff]  }
 0x573   : > { %v11007_v53 = vpop.f32.mrf.mxu0  ;;  %v15341_v51 = vld [vmem:[%s20282_s4 + $0xd3c] ss:$12 sps:$4 sm:$0xff]   ;;  %v15353_v44 = vld [vmem:[%s20282_s4 + $0xd0c] ss:$12 sps:$4 sm:$0xff]  }
 0x574   : > { %11300 = vmatpush1.bf16.msra.mxu0 %v15288_v55  ;;  %v15344_v10 = vld [vmem:[%s20282_s4 + $0xebc] ss:$12 sps:$4 sm:$0xff]   ;;  %v15347_v55 = vld [vmem:[%s20282_s4 + $0xd24] ss:$12 sps:$4 sm:$0xff]  }
 0x575   : > { %v11008_v15 = vpop.f32.mrf.mxu0  ;;  %11261 = vmatpush1.bf16.msra.mxu1 %v15291_v54  ;;  %11301 = vmatprep.subr.bf16.mxu0 %v15296_v19  ;;  %v15345_v54 = vld [vmem:[%s20282_s4 + $0xd20] ss:$12 sps:$4 sm:$0xff]   ;;  %v15350_v19 = vld [vmem:[%s20282_s4 + $0xea4] ss:$12 sps:$4 sm:$0xff]   ;;  %v15351_v53 = vld [vmem:[%s20282_s4 + $0xd08] ss:$12 sps:$4 sm:$0xff]  }
 0x576   : > { %11262 = vmatprep.subr.bf16.mxu1 %v15299_v47  ;;  %v15348_v47 = vld [vmem:[%s20282_s4 + $0xea0] ss:$12 sps:$4 sm:$0xff]  }
 0x577   : > { %v15359_v15 = vld [vmem:[%s20282_s4 + $0xcf4] ss:$12 sps:$4 sm:$0xff]  }
 0x578   : > { %11302 = vmatpush1.bf16.msra.mxu0 %v15294_v2  ;;  %v15356_v2 = vld [vmem:[%s20282_s4 + $0xe8c] ss:$12 sps:$4 sm:$0xff]  }
 0x579   : > { %11263 = vmatpush1.bf16.msra.mxu1 %v15297_v11  ;;  %11303 = vmatprep.subr.bf16.mxu0 %v15302_v21  ;;  %v15354_v11 = vld [vmem:[%s20282_s4 + $0xe88] ss:$12 sps:$4 sm:$0xff]   ;;  %v15357_v21 = vld [vmem:[%s20282_s4 + $0xcf0] ss:$12 sps:$4 sm:$0xff]  }
 0x57a   : > { %11264 = vmatprep.subr.bf16.mxu1 %v15305_v12  ;;  %v15362_v12 = vld [vmem:[%s20282_s4 + $0xe74] ss:$12 sps:$4 sm:$0xff]  }
 0x57c   : > { %11304 = vmatpush1.bf16.msra.mxu0 %v15300_v56  ;;  %v15365_v56 = vld [vmem:[%s20282_s4 + $0xcdc] ss:$12 sps:$4 sm:$0xff]  }
 0x57d   : > { %11265 = vmatpush1.bf16.msra.mxu1 %v15303_v38  ;;  %11305 = vmatprep.subr.bf16.mxu0 %v15308_v32  ;;  %v15360_v38 = vld [vmem:[%s20282_s4 + $0xe70] ss:$12 sps:$4 sm:$0xff]   ;;  %v5689_v32 = vrot.slane %v17870_v18, 1 }
 0x57e   : > { %11266 = vmatprep.subr.bf16.mxu1 %v15311_v29  ;;  %v15363_v29 = vld [vmem:[%s20282_s4 + $0xcd8] ss:$12 sps:$4 sm:$0xff]  }
 0x580   : > { %11306 = vmatpush1.bf16.msra.mxu0 %v15306_v34  ;;  %v15368_v34 = vld [vmem:[%s20282_s4 + $0xe5c] ss:$12 sps:$4 sm:$0xff]  }
 0x581   : > { %11267 = vmatpush1.bf16.msra.mxu1 %v15309_v42  ;;  %11307 = vmatprep.subr.bf16.mxu0 %v15314_v23  ;;  %v15371_v42 = vld [vmem:[%s20282_s4 + $0xcc4] ss:$12 sps:$4 sm:$0xff]  }
 0x582   : > { %11268 = vmatprep.subr.bf16.mxu1 %v15317_v28  ;;  %v15366_v23 = vld [vmem:[%s20282_s4 + $0xe58] ss:$12 sps:$4 sm:$0xff]   ;;  %v18688_v28 = vmax.f32 %v17870_v18, %v5689_v32  ;;  %v15372_v18 = vld [vmem:[%s20282_s4 + $0xe40] ss:$12 sps:$4 sm:$0xff]  }
 0x583   : > { %v15401_v32 = vld [vmem:[%s20282_s4 + $0xf4c] ss:$12 sps:$4 sm:$0xff]  }
 0x584   : > { %11308 = vmatpush1.bf16.msra.mxu0 %v15312_v35  ;;  %v15369_v35 = vld [vmem:[%s20282_s4 + $0xcc0] ss:$12 sps:$4 sm:$0xff]  }
 0x585   : > { %11269 = vmatpush1.bf16.msra.mxu1 %v15315_v45  ;;  %11309 = vmatprep.subr.bf16.mxu0 %v15320_v59  ;;  %v15374_v45 = vld [vmem:[%s20282_s4 + $0xe44] ss:$12 sps:$4 sm:$0xff]   ;;  %v15377_v59 = vld [vmem:[%s20282_s4 + $0xfac] ss:$12 sps:$4 sm:$0xff]  }
 0x586   : > { %11270 = vmatprep.subr.bf16.mxu1 %v15323_v37  ;;  %v5738_v37 = vrot.slane %v18472_v49, 4 }
 0x588   : > { %11310 = vmatpush1.bf16.msra.mxu0 %v15318_v22  ;;  %v15375_v22 = vld [vmem:[%s20282_s4 + $0xfa8] ss:$12 sps:$4 sm:$0xff]  }
 0x589   : > { %11271 = vmatpush1.bf16.msra.mxu1 %v15321_v27  ;;  %11311 = vmatprep.subr.bf16.mxu0 %v15326_v43  ;;  %v5733_v27 = vrot.slane %v18688_v28, 2  ;;  %v18709_v43 = vpack.c.bf16 %v18688_v28, %v18688_v28 }
 0x58a   : > { %11272 = vmatprep.subr.bf16.mxu1 %v15329_v62  ;;  %v15380_v62 = vld [vmem:[%s20282_s4 + $0x112c] ss:$12 sps:$4 sm:$0xff]  }
 0x58c   : > { %11312 = vmatpush1.bf16.msra.mxu0 %v15324_v25  ;;  %v5742_v25 = vrot.slane %v18472_v49, 6  ;;  %v18726_v49 = vpack.c.bf16 %v5733_v27, %v5733_v27  ;;  %v15416_v27 = vld [vmem:[%s20282_s4 + $0x109c] ss:$12 sps:$4 sm:$0xff]  }
 0x58d   : > { %11273 = vmatpush2.bf16.msra.mxu1 %v15327_v31  ;;  %11313 = vmatprep.subr.bf16.mxu0 %v15332_v8  ;;  %v15383_v31 = vld [vmem:[%s20282_s4 + $0xf94] ss:$12 sps:$4 sm:$0xff]   ;;  %v18718_v8 = vpack.c.bf16 %v5738_v37, %v5738_v37  ;;  %v15413_v37 = vld [vmem:[%s20282_s4 + $0xf1c] ss:$12 sps:$4 sm:$0xff]  }
 0x58e   : > { %11274 = vmatprep.subr.bf16.mxu1 %v15335_v33 }
 0x590   : > { %11314 = vmatpush2.bf16.msra.mxu0 %v15330_v7  ;;  %v15378_v7 = vld [vmem:[%s20282_s4 + $0x1128] ss:$12 sps:$4 sm:$0xff]  }
 0x591   : > { %11275 = vmatpush2.bf16.msra.mxu1 %v15333_v26  ;;  %11315 = vmatprep.subr.bf16.mxu0 %v15338_v41  ;;  %v15381_v41 = vld [vmem:[%s20282_s4 + $0xf90] ss:$12 sps:$4 sm:$0xff]  }
 0x592   : > { %11276 = vmatprep.subr.bf16.mxu1 %v15341_v51  ;;  %v15386_v51 = vld [vmem:[%s20282_s4 + $0x1114] ss:$12 sps:$4 sm:$0xff]  }
 0x594   : > { %11316 = vmatpush2.bf16.msra.mxu0 %v15336_v9 }
 0x595   : > { %11277 = vmatpush2.bf16.msra.mxu1 %v15339_v0  ;;  %11317 = vmatprep.subr.bf16.mxu0 %v15344_v10  ;;  %v18734_v0 = vpack.c.bf16 %v5742_v25, %v5742_v25  ;;  %v15414_v25 = vld [vmem:[%s20282_s4 + $0x1098] ss:$12 sps:$4 sm:$0xff]  }
 0x596   : > { %11278 = vmatprep.subr.bf16.mxu1 %v15347_v55 }
 0x598   : > { %11318 = vmatpush2.bf16.msra.mxu0 %v15342_v16 }
 0x599   : > { %11279 = vmatpush2.bf16.msra.mxu1 %v15345_v54  ;;  %11319 = vmatprep.subr.bf16.mxu0 %v15350_v19  ;;  %v15384_v19 = vld [vmem:[%s20282_s4 + $0x1110] ss:$12 sps:$4 sm:$0xff]  }
 0x59a   : > { %11280 = vmatprep.subr.bf16.mxu1 %v15353_v44 }
 0x59c   : > { %11320 = vmatpush2.bf16.msra.mxu0 %v15348_v47  ;;  %v15392_v47 = vld [vmem:[%s20282_s4 + $0x10fc] ss:$12 sps:$4 sm:$0xff]  }
 0x59d   : > { %11281 = vmatpush2.bf16.msra.mxu1 %v15351_v53  ;;  %11321 = vmatprep.subr.bf16.mxu0 %v15356_v2 }
 0x59e   : > { %11282 = vmatprep.subr.bf16.mxu1 %v15359_v15  ;;  %v15395_v15 = vld [vmem:[%s20282_s4 + $0xf64] ss:$12 sps:$4 sm:$0xff]  }
 0x5a0   : > { %11322 = vmatpush2.bf16.msra.mxu0 %v15354_v11 }
 0x5a1   : > { %11283 = vmatpush2.bf16.msra.mxu1 %v15357_v21  ;;  %11323 = vmatprep.subr.bf16.mxu0 %v15362_v12  ;;  %v15390_v21 = vld [vmem:[%s20282_s4 + $0x10f8] ss:$12 sps:$4 sm:$0xff]  }
 0x5a2   : > { %11284 = vmatprep.subr.bf16.mxu1 %v15365_v56  ;;  %v15393_v56 = vld [vmem:[%s20282_s4 + $0xf60] ss:$12 sps:$4 sm:$0xff]  }
 0x5a4   : > { %11324 = vmatpush2.bf16.msra.mxu0 %v15360_v38  ;;  %v15398_v38 = vld [vmem:[%s20282_s4 + $0x10e4] ss:$12 sps:$4 sm:$0xff]  }
 0x5a5   : > { %11285 = vmatpush2.bf16.msra.mxu1 %v15363_v29  ;;  %11325 = vmatprep.subr.bf16.mxu0 %v15368_v34  ;;  %v15396_v29 = vld [vmem:[%s20282_s4 + $0x10e0] ss:$12 sps:$4 sm:$0xff]   ;;  %v15399_v34 = vld [vmem:[%s20282_s4 + $0xf48] ss:$12 sps:$4 sm:$0xff]  }
 0x5a6   : > { %11286 = vmatprep.subr.bf16.mxu1 %v15371_v42  ;;  %v15404_v42 = vld [vmem:[%s20282_s4 + $0x10cc] ss:$12 sps:$4 sm:$0xff]  }
 0x5a8   : > { %11326 = vmatpush2.bf16.msra.mxu0 %v15366_v23  ;;  %v15407_v23 = vld [vmem:[%s20282_s4 + $0xf34] ss:$12 sps:$4 sm:$0xff]  }
 0x5a9   : > { %11287 = vmatpush2.bf16.msra.mxu1 %v15369_v35  ;;  %11327 = vmatprep.subr.bf16.mxu0 %v15374_v45  ;;  %v15402_v35 = vld [vmem:[%s20282_s4 + $0x10c8] ss:$12 sps:$4 sm:$0xff]   ;;  %v15405_v45 = vld [vmem:[%s20282_s4 + $0xf30] ss:$12 sps:$4 sm:$0xff]  }
 0x5aa   : > { %11338 = vmatprep.subr.bf16.mxu1 %v15377_v59  ;;  %v15410_v59 = vld [vmem:[%s20282_s4 + $0x10b4] ss:$12 sps:$4 sm:$0xff]  }
 0x5ac   : > { %11328 = vmatpush2.bf16.msra.mxu0 %v15372_v18  ;;  %v11044_v33 = vpop.f32.mrf.mxu1  ;;  %11289 = vmatmul.mubr.bf16.vlgmr.msra.gmra.mxu1 %v18709_v43  ;;  %v15408_v18 = vld [vmem:[%s20282_s4 + $0x10b0] ss:$12 sps:$4 sm:$0xff]  }
 0x5ad   : > { %v11045_v26 = vadd.f32 %v11044_v33, %v18522_v50  ;;  %11339 = vmatpush1.bf16.msra.mxu1 %v15375_v22  ;;  %11370 = vmatprep.mubr.bf16.mxu1 %v18718_v8  ;;  %v15389_v50 = vld [vmem:[%s20282_s4 + $0xf7c] ss:$12 sps:$4 sm:$0xff]   ;;  %v15411_v22 = vld [vmem:[%s20282_s4 + $0xf18] ss:$12 sps:$4 sm:$0xff]  }
 0x5ae   : > { %v11046_v9 = vpop.f32.mrf.mxu1  ;;  %11379 = vmatprep.subr.bf16.mxu0 %v15380_v62  ;;  %11340 = vmatprep.subr.bf16.mxu1 %v15383_v31  ;;  %v15419_v62 = vld [vmem:[%s20282_s4 + $0xf04] ss:$12 sps:$4 sm:$0xff]   ;;  %v15417_v31 = vld [vmem:[%s20282_s4 + $0xf00] ss:$12 sps:$4 sm:$0xff]  }
 0x5af   : > { %v11047_v10 = vadd.f32 %v11046_v9, %v18534_v24  ;;  %v11085_v55 = vpop.f32.mrf.mxu0  ;;  %11330 = vmatmul.mubr.bf16.vlgmr.msra.gmra.mxu0 %v18726_v49  ;;  %v15387_v24 = vld [vmem:[%s20282_s4 + $0xf78] ss:$12 sps:$4 sm:$0xff]   ;;  %v15431_v9 = vld [vmem:[%s20282_s4 + $0x1054] ss:$12 sps:$4 sm:$0xff]  }
 0x5b0   : > { %v18741_v16 = vadd.f32 %v11085_v55, %v11045_v26  ;;  %11380 = vmatpush1.bf16.msra.mxu0 %v15378_v7  ;;  %11411 = vmatprep.mubr.bf16.mxu0 %v18734_v0  ;;  %v11048_v54 = vpop.f32.mrf.mxu1  ;;  %v15422_v33 = vld [vmem:[%s20282_s4 + $0x1084] ss:$12 sps:$4 sm:$0xff]   ;;  %v15425_v7 = vld [vmem:[%s20282_s4 + $0x106c] ss:$12 sps:$4 sm:$0xff]   ;;  %v15434_v55 = vld [vmem:[%s20282_s4 + $0x11d4] ss:$12 sps:$4 sm:$0xff]  }
 0x5b1   : > { %v11087_v44 = vpop.f32.mrf.mxu0  ;;  %11341 = vmatpush1.bf16.msra.mxu1 %v15381_v41  ;;  %11381 = vmatprep.subr.bf16.mxu0 %v15386_v51  ;;  %v15420_v26 = vld [vmem:[%s20282_s4 + $0x1080] ss:$12 sps:$4 sm:$0xff]   ;;  %v15423_v41 = vld [vmem:[%s20282_s4 + $0x1068] ss:$12 sps:$4 sm:$0xff]  }
 0x5b2   : > { %v18753_v53 = vadd.f32 %v11087_v44, %v11047_v10  ;;  %v11049_v2 = vpop.f32.mrf.mxu1  ;;  %11342 = vmatprep.subr.bf16.mxu1 %v15389_v50  ;;  %v15428_v51 = vld [vmem:[%s20282_s4 + $0x11ec] ss:$12 sps:$4 sm:$0xff]   ;;  %v15426_v50 = vld [vmem:[%s20282_s4 + $0x11e8] ss:$12 sps:$4 sm:$0xff]   ;;  %v15429_v10 = vld [vmem:[%s20282_s4 + $0x1050] ss:$12 sps:$4 sm:$0xff]  }
 0x5b3   : > { %v11089_v11 = vpop.f32.mrf.mxu0  ;;  %v15437_v54 = vld [vmem:[%s20282_s4 + $0x103c] ss:$12 sps:$4 sm:$0xff]   ;;  %v15435_v44 = vld [vmem:[%s20282_s4 + $0x1038] ss:$12 sps:$4 sm:$0xff]  }
 0x5b4   : > { %11382 = vmatpush1.bf16.msra.mxu0 %v15384_v19  ;;  %v15432_v19 = vld [vmem:[%s20282_s4 + $0x11d0] ss:$12 sps:$4 sm:$0xff]   ;;  %v15438_v2 = vld [vmem:[%s20282_s4 + $0x11b8] ss:$12 sps:$4 sm:$0xff]  }
 0x5b5   : > { %v11090_v12 = vpop.f32.mrf.mxu0  ;;  %11343 = vmatpush1.bf16.msra.mxu1 %v15387_v24  ;;  %11383 = vmatprep.subr.bf16.mxu0 %v15392_v47  ;;  %v15440_v24 = vld [vmem:[%s20282_s4 + $0x11bc] ss:$12 sps:$4 sm:$0xff]   ;;  %v15443_v47 = vld [vmem:[%s20282_s4 + $0x1024] ss:$12 sps:$4 sm:$0xff]  }
 0x5b6   : > { %11344 = vmatprep.subr.bf16.mxu1 %v15395_v15  ;;  %v15441_v15 = vld [vmem:[%s20282_s4 + $0x1020] ss:$12 sps:$4 sm:$0xff]   ;;  %v15446_v11 = vld [vmem:[%s20282_s4 + $0x11a4] ss:$12 sps:$4 sm:$0xff]  }
 0x5b7   : > { %v15444_v12 = vld [vmem:[%s20282_s4 + $0x11a0] ss:$12 sps:$4 sm:$0xff]  }
 0x5b8   : > { %11384 = vmatpush1.bf16.msra.mxu0 %v15390_v21  ;;  %v15449_v21 = vld [vmem:[%s20282_s4 + $0x100c] ss:$12 sps:$4 sm:$0xff]  }
 0x5b9   : > { %11345 = vmatpush1.bf16.msra.mxu1 %v15393_v56  ;;  %11385 = vmatprep.subr.bf16.mxu0 %v15398_v38  ;;  %v15447_v56 = vld [vmem:[%s20282_s4 + $0x1008] ss:$12 sps:$4 sm:$0xff]   ;;  %v15452_v38 = vld [vmem:[%s20282_s4 + $0x118c] ss:$12 sps:$4 sm:$0xff]  }
 0x5ba   : > { %11346 = vmatprep.subr.bf16.mxu1 %v15401_v32  ;;  %v15455_v32 = vld [vmem:[%s20282_s4 + $0xff4] ss:$12 sps:$4 sm:$0xff]  }
 0x5bc   : > { %11386 = vmatpush1.bf16.msra.mxu0 %v15396_v29  ;;  %v15450_v29 = vld [vmem:[%s20282_s4 + $0x1188] ss:$12 sps:$4 sm:$0xff]  }
 0x5bd   : > { %11347 = vmatpush1.bf16.msra.mxu1 %v15399_v34  ;;  %11387 = vmatprep.subr.bf16.mxu0 %v15404_v42  ;;  %v15453_v34 = vld [vmem:[%s20282_s4 + $0xff0] ss:$12 sps:$4 sm:$0xff]   ;;  %v15458_v42 = vld [vmem:[%s20282_s4 + $0x1174] ss:$12 sps:$4 sm:$0xff]  }
 0x5be   : > { %11348 = vmatprep.subr.bf16.mxu1 %v15407_v23  ;;  %v15461_v23 = vld [vmem:[%s20282_s4 + $0xfdc] ss:$12 sps:$4 sm:$0xff]  }
 0x5c0   : > { %11388 = vmatpush1.bf16.msra.mxu0 %v15402_v35  ;;  %v15456_v35 = vld [vmem:[%s20282_s4 + $0x1170] ss:$12 sps:$4 sm:$0xff]  }
 0x5c1   : > { %11349 = vmatpush1.bf16.msra.mxu1 %v15405_v45  ;;  %11389 = vmatprep.subr.bf16.mxu0 %v15410_v59  ;;  %v15459_v45 = vld [vmem:[%s20282_s4 + $0xfd8] ss:$12 sps:$4 sm:$0xff]   ;;  %v15464_v59 = vld [vmem:[%s20282_s4 + $0x115c] ss:$12 sps:$4 sm:$0xff]  }
 0x5c2   : > { %11350 = vmatprep.subr.bf16.mxu1 %v15413_v37  ;;  %v5698_v37 = vrot.slane %v17913_v17, 1 }
 0x5c4   : > { %11390 = vmatpush1.bf16.msra.mxu0 %v15408_v18  ;;  %v15467_v18 = vld [vmem:[%s20282_s4 + $0xfc4] ss:$12 sps:$4 sm:$0xff]  }
 0x5c5   : > { %11351 = vmatpush1.bf16.msra.mxu1 %v15411_v22  ;;  %11391 = vmatprep.subr.bf16.mxu0 %v15416_v27  ;;  %v15462_v22 = vld [vmem:[%s20282_s4 + $0x1158] ss:$12 sps:$4 sm:$0xff]   ;;  %v15465_v27 = vld [vmem:[%s20282_s4 + $0xfc0] ss:$12 sps:$4 sm:$0xff]  }
 0x5c6   : > { %11352 = vmatprep.subr.bf16.mxu1 %v15419_v62  ;;  %v15470_v62 = vld [vmem:[%s20282_s4 + $0x1144] ss:$12 sps:$4 sm:$0xff]  }
 0x5c8   : > { %11392 = vmatpush1.bf16.msra.mxu0 %v15414_v25  ;;  %v18913_v25 = vmax.f32 %v17913_v17, %v5698_v37  ;;  %v5741_v17 = vrot.slane %v18688_v28, 6  ;;  %v15494_v37 = vld [vmem:[%s20282_s4 + $0x13e4] ss:$12 sps:$4 sm:$0xff]  }
 0x5c9   : > { %11353 = vmatpush1.bf16.msra.mxu1 %v15417_v31  ;;  %11393 = vmatprep.subr.bf16.mxu0 %v15422_v33  ;;  %v5737_v31 = vrot.slane %v18688_v28, 4  ;;  %v15473_v33 = vld [vmem:[%s20282_s4 + $0x12ac] ss:$12 sps:$4 sm:$0xff]   ;;  %v15474_v28 = vld [vmem:[%s20282_s4 + $0x1428] ss:$12 sps:$4 sm:$0xff]  }
 0x5ca   : > { %11354 = vmatprep.subr.bf16.mxu1 %v15425_v7  ;;  %v15468_v7 = vld [vmem:[%s20282_s4 + $0x1140] ss:$12 sps:$4 sm:$0xff]  }
 0x5cc   : > { %11394 = vmatpush1.bf16.msra.mxu0 %v15420_v26  ;;  %v15471_v26 = vld [vmem:[%s20282_s4 + $0x12a8] ss:$12 sps:$4 sm:$0xff]  }
 0x5cd   : > { %11355 = vmatpush2.bf16.msra.mxu1 %v15423_v41  ;;  %11395 = vmatprep.subr.bf16.mxu0 %v15428_v51  ;;  %v18926_v41 = vpack.c.bf16 %v5737_v31, %v5737_v31  ;;  %v15476_v51 = vld [vmem:[%s20282_s4 + $0x142c] ss:$12 sps:$4 sm:$0xff]   ;;  %v15503_v31 = vld [vmem:[%s20282_s4 + $0x1234] ss:$12 sps:$4 sm:$0xff]  }
 0x5ce   : > { %11356 = vmatprep.subr.bf16.mxu1 %v15431_v9  ;;  %v5748_v9 = vrot.slane %v18913_v25, 2 }
 0x5d0   : > { %11396 = vmatpush2.bf16.msra.mxu0 %v15426_v50  ;;  %v15479_v50 = vld [vmem:[%s20282_s4 + $0x1294] ss:$12 sps:$4 sm:$0xff]  }
 0x5d1   : > { %11357 = vmatpush2.bf16.msra.mxu1 %v15429_v10  ;;  %11397 = vmatprep.subr.bf16.mxu0 %v15434_v55  ;;  %v18937_v10 = vpack.c.bf16 %v18913_v25, %v18913_v25 }
 0x5d2   : > { %11358 = vmatprep.subr.bf16.mxu1 %v15437_v54 }
 0x5d4   : > { %11398 = vmatpush2.bf16.msra.mxu0 %v15432_v19  ;;  %v18945_v19 = vpack.c.bf16 %v5741_v17, %v5741_v17  ;;  %v15509_v17 = vld [vmem:[%s20282_s4 + $0x121c] ss:$12 sps:$4 sm:$0xff]  }
 0x5d5   : > { %11359 = vmatpush2.bf16.msra.mxu1 %v15435_v44  ;;  %11399 = vmatprep.subr.bf16.mxu0 %v15440_v24  ;;  %v15477_v44 = vld [vmem:[%s20282_s4 + $0x1290] ss:$12 sps:$4 sm:$0xff]   ;;  %v15482_v24 = vld [vmem:[%s20282_s4 + $0x1414] ss:$12 sps:$4 sm:$0xff]  }
 0x5d6   : > { %11360 = vmatprep.subr.bf16.mxu1 %v15443_v47 }
 0x5d8   : > { %11400 = vmatpush2.bf16.msra.mxu0 %v15438_v2  ;;  %v18953_v2 = vpack.c.bf16 %v5748_v9, %v5748_v9  ;;  %v15507_v9 = vld [vmem:[%s20282_s4 + $0x1218] ss:$12 sps:$4 sm:$0xff]  }
 0x5d9   : > { %11361 = vmatpush2.bf16.msra.mxu1 %v15441_v15  ;;  %11401 = vmatprep.subr.bf16.mxu0 %v15446_v11 }
 0x5da   : > { %11362 = vmatprep.subr.bf16.mxu1 %v15449_v21 }
 0x5dc   : > { %11402 = vmatpush2.bf16.msra.mxu0 %v15444_v12 }
 0x5dd   : > { %11363 = vmatpush2.bf16.msra.mxu1 %v15447_v56  ;;  %11403 = vmatprep.subr.bf16.mxu0 %v15452_v38  ;;  %v15480_v56 = vld [vmem:[%s20282_s4 + $0x1410] ss:$12 sps:$4 sm:$0xff]  }
 0x5de   : > { %11364 = vmatprep.subr.bf16.mxu1 %v15455_v32  ;;  %v15488_v32 = vld [vmem:[%s20282_s4 + $0x13fc] ss:$12 sps:$4 sm:$0xff]  }
 0x5e0   : > { %11404 = vmatpush2.bf16.msra.mxu0 %v15450_v29 }
 0x5e1   : > { %11365 = vmatpush2.bf16.msra.mxu1 %v15453_v34  ;;  %11405 = vmatprep.subr.bf16.mxu0 %v15458_v42  ;;  %v15491_v42 = vld [vmem:[%s20282_s4 + $0x1264] ss:$12 sps:$4 sm:$0xff]  }
 0x5e2   : > { %11366 = vmatprep.subr.bf16.mxu1 %v15461_v23 }
 0x5e4   : > { %11406 = vmatpush2.bf16.msra.mxu0 %v15456_v35  ;;  %v15486_v35 = vld [vmem:[%s20282_s4 + $0x13f8] ss:$12 sps:$4 sm:$0xff]  }
 0x5e5   : > { %11367 = vmatpush2.bf16.msra.mxu1 %v15459_v45  ;;  %11407 = vmatprep.subr.bf16.mxu0 %v15464_v59  ;;  %v15489_v59 = vld [vmem:[%s20282_s4 + $0x1260] ss:$12 sps:$4 sm:$0xff]  }
 0x5e6   : > { %11368 = vmatprep.subr.bf16.mxu1 %v15467_v18  ;;  %v15497_v18 = vld [vmem:[%s20282_s4 + $0x124c] ss:$12 sps:$4 sm:$0xff]  }
 0x5e8   : > { %11408 = vmatpush2.bf16.msra.mxu0 %v15462_v22  ;;  %v15492_v22 = vld [vmem:[%s20282_s4 + $0x13e0] ss:$12 sps:$4 sm:$0xff]  }
 0x5e9   : > { %11369 = vmatpush2.bf16.msra.mxu1 %v15465_v27  ;;  %11409 = vmatprep.subr.bf16.mxu0 %v15470_v62  ;;  %v15495_v27 = vld [vmem:[%s20282_s4 + $0x1248] ss:$12 sps:$4 sm:$0xff]   ;;  %v15500_v62 = vld [vmem:[%s20282_s4 + $0x13cc] ss:$12 sps:$4 sm:$0xff]  }
 0x5ea   : > { %11420 = vmatprep.subr.bf16.mxu1 %v15473_v33  ;;  %v15498_v33 = vld [vmem:[%s20282_s4 + $0x13c8] ss:$12 sps:$4 sm:$0xff]  }
 0x5ec   : > { %11410 = vmatpush2.bf16.msra.mxu0 %v15468_v7  ;;  %v11126_v55 = vpop.f32.mrf.mxu1  ;;  %11371 = vmatmul.mubr.bf16.vlgmr.msra.gmra.mxu1 %v18926_v41  ;;  %v15501_v7 = vld [vmem:[%s20282_s4 + $0x1230] ss:$12 sps:$4 sm:$0xff]  }
 0x5ed   : > { %v11127_v54 = vadd.f32 %v11126_v55, %v18741_v16  ;;  %11421 = vmatpush1.bf16.msra.mxu1 %v15471_v26  ;;  %11452 = vmatprep.mubr.bf16.mxu1 %v18937_v10  ;;  %v15485_v16 = vld [vmem:[%s20282_s4 + $0x127c] ss:$12 sps:$4 sm:$0xff]   ;;  %v15506_v26 = vld [vmem:[%s20282_s4 + $0x13b4] ss:$12 sps:$4 sm:$0xff]   ;;  %v15515_v55 = vld [vmem:[%s20282_s4 + $0x1204] ss:$12 sps:$4 sm:$0xff]  }
 0x5ee   : > { %v11128_v47 = vpop.f32.mrf.mxu1  ;;  %11461 = vmatprep.subr.bf16.mxu0 %v15476_v51  ;;  %11422 = vmatprep.subr.bf16.mxu1 %v15479_v50  ;;  %v15504_v51 = vld [vmem:[%s20282_s4 + $0x13b0] ss:$12 sps:$4 sm:$0xff]  }
 0x5ef   : > { %v11129_v15 = vadd.f32 %v11128_v47, %v18753_v53  ;;  %v11167_v11 = vpop.f32.mrf.mxu0  ;;  %11412 = vmatmul.mubr.bf16.vlgmr.msra.gmra.mxu0 %v18945_v19  ;;  %v15483_v53 = vld [vmem:[%s20282_s4 + $0x1278] ss:$12 sps:$4 sm:$0xff]   ;;  %v15512_v50 = vld [vmem:[%s20282_s4 + $0x139c] ss:$12 sps:$4 sm:$0xff]   ;;  %v15516_v47 = vld [vmem:[%s20282_s4 + $0x1380] ss:$12 sps:$4 sm:$0xff]  }
 0x5f0   : > { %v18960_v21 = vadd.f32 %v11167_v11, %v11127_v54  ;;  %11462 = vmatpush1.bf16.msra.mxu0 %v15474_v28  ;;  %11493 = vmatprep.mubr.bf16.mxu0 %v18953_v2  ;;  %v11130_v12 = vpop.f32.mrf.mxu1  ;;  %v15510_v28 = vld [vmem:[%s20282_s4 + $0x1398] ss:$12 sps:$4 sm:$0xff]   ;;  %v15513_v54 = vld [vmem:[%s20282_s4 + $0x1200] ss:$12 sps:$4 sm:$0xff]  }
 0x5f1   : > { %v11169_v38 = vpop.f32.mrf.mxu0  ;;  %11423 = vmatpush1.bf16.msra.mxu1 %v15477_v44  ;;  %11463 = vmatprep.subr.bf16.mxu0 %v15482_v24  ;;  %v15518_v44 = vld [vmem:[%s20282_s4 + $0x1384] ss:$12 sps:$4 sm:$0xff]   ;;  %v15521_v24 = vld [vmem:[%s20282_s4 + $0x136c] ss:$12 sps:$4 sm:$0xff]   ;;  %v15527_v11 = vld [vmem:[%s20282_s4 + $0x1354] ss:$12 sps:$4 sm:$0xff]  }
 0x5f2   : > { %v18972_v29 = vadd.f32 %v11169_v38, %v11129_v15  ;;  %v11131_v34 = vpop.f32.mrf.mxu1  ;;  %11424 = vmatprep.subr.bf16.mxu1 %v15485_v16  ;;  %v15519_v16 = vld [vmem:[%s20282_s4 + $0x1368] ss:$12 sps:$4 sm:$0xff]   ;;  %v15524_v15 = vld [vmem:[%s20282_s4 + $0x14ec] ss:$12 sps:$4 sm:$0xff]  }
 0x5f3   : > { %v11171_v23 = vpop.f32.mrf.mxu0  ;;  %v15522_v12 = vld [vmem:[%s20282_s4 + $0x14e8] ss:$12 sps:$4 sm:$0xff]   ;;  %v15531_v34 = vld [vmem:[%s20282_s4 + $0x1338] ss:$12 sps:$4 sm:$0xff]  }
 0x5f4   : > { %11464 = vmatpush1.bf16.msra.mxu0 %v15480_v56  ;;  %v15525_v56 = vld [vmem:[%s20282_s4 + $0x1350] ss:$12 sps:$4 sm:$0xff]   ;;  %v15530_v38 = vld [vmem:[%s20282_s4 + $0x14d4] ss:$12 sps:$4 sm:$0xff]  }
 0x5f5   : > { %v11172_v45 = vpop.f32.mrf.mxu0  ;;  %11425 = vmatpush1.bf16.msra.mxu1 %v15483_v53  ;;  %11465 = vmatprep.subr.bf16.mxu0 %v15488_v32  ;;  %v15533_v53 = vld [vmem:[%s20282_s4 + $0x133c] ss:$12 sps:$4 sm:$0xff]   ;;  %v15539_v23 = vld [vmem:[%s20282_s4 + $0x1324] ss:$12 sps:$4 sm:$0xff]  }
 0x5f6   : > { %11426 = vmatprep.subr.bf16.mxu1 %v15491_v42  ;;  %v15528_v32 = vld [vmem:[%s20282_s4 + $0x14d0] ss:$12 sps:$4 sm:$0xff]   ;;  %v15537_v45 = vld [vmem:[%s20282_s4 + $0x1320] ss:$12 sps:$4 sm:$0xff]  }
 0x5f7   : > { %v15536_v42 = vld [vmem:[%s20282_s4 + $0x14bc] ss:$12 sps:$4 sm:$0xff]  }
 0x5f8   : > { %11466 = vmatpush1.bf16.msra.mxu0 %v15486_v35  ;;  %v15534_v35 = vld [vmem:[%s20282_s4 + $0x14b8] ss:$12 sps:$4 sm:$0xff]  }
 0x5f9   : > { %11427 = vmatpush1.bf16.msra.mxu1 %v15489_v59  ;;  %11467 = vmatprep.subr.bf16.mxu0 %v15494_v37  ;;  %v15542_v59 = vld [vmem:[%s20282_s4 + $0x14a4] ss:$12 sps:$4 sm:$0xff]   ;;  %v15545_v37 = vld [vmem:[%s20282_s4 + $0x130c] ss:$12 sps:$4 sm:$0xff]  }
 0x5fa   : > { %11428 = vmatprep.subr.bf16.mxu1 %v15497_v18  ;;  %v15540_v18 = vld [vmem:[%s20282_s4 + $0x14a0] ss:$12 sps:$4 sm:$0xff]  }
 0x5fc   : > { %11468 = vmatpush1.bf16.msra.mxu0 %v15492_v22  ;;  %v15543_v22 = vld [vmem:[%s20282_s4 + $0x1308] ss:$12 sps:$4 sm:$0xff]  }
 0x5fd   : > { %11429 = vmatpush1.bf16.msra.mxu1 %v15495_v27  ;;  %11469 = vmatprep.subr.bf16.mxu0 %v15500_v62  ;;  %v15548_v27 = vld [vmem:[%s20282_s4 + $0x148c] ss:$12 sps:$4 sm:$0xff]   ;;  %v15551_v62 = vld [vmem:[%s20282_s4 + $0x12f4] ss:$12 sps:$4 sm:$0xff]  }
 0x5fe   : > { %11430 = vmatprep.subr.bf16.mxu1 %v15503_v31  ;;  %v15546_v31 = vld [vmem:[%s20282_s4 + $0x1488] ss:$12 sps:$4 sm:$0xff]  }
 0x600   : > { %11470 = vmatpush1.bf16.msra.mxu0 %v15498_v33  ;;  %v15549_v33 = vld [vmem:[%s20282_s4 + $0x12f0] ss:$12 sps:$4 sm:$0xff]  }
 0x601   : > { %11431 = vmatpush1.bf16.msra.mxu1 %v15501_v7  ;;  %11471 = vmatprep.subr.bf16.mxu0 %v15506_v26  ;;  %v15554_v7 = vld [vmem:[%s20282_s4 + $0x1474] ss:$12 sps:$4 sm:$0xff]   ;;  %v15557_v26 = vld [vmem:[%s20282_s4 + $0x12dc] ss:$12 sps:$4 sm:$0xff]  }
 0x602   : > { %11432 = vmatprep.subr.bf16.mxu1 %v15509_v17  ;;  %v15552_v17 = vld [vmem:[%s20282_s4 + $0x1470] ss:$12 sps:$4 sm:$0xff]  }
 0x604   : > { %11472 = vmatpush1.bf16.msra.mxu0 %v15504_v51  ;;  %v5697_v51 = vrot.slane %v17902_v39, 1 }
 0x605   : > { %11433 = vmatpush1.bf16.msra.mxu1 %v15507_v9  ;;  %11473 = vmatprep.subr.bf16.mxu0 %v15512_v50  ;;  %v15555_v9 = vld [vmem:[%s20282_s4 + $0x12d8] ss:$12 sps:$4 sm:$0xff]   ;;  %v15560_v50 = vld [vmem:[%s20282_s4 + $0x145c] ss:$12 sps:$4 sm:$0xff]  }
 0x606   : > { %11434 = vmatprep.subr.bf16.mxu1 %v15515_v55  ;;  %v15563_v55 = vld [vmem:[%s20282_s4 + $0x12c4] ss:$12 sps:$4 sm:$0xff]  }
 0x608   : > { %11474 = vmatpush1.bf16.msra.mxu0 %v15510_v28  ;;  %v15558_v28 = vld [vmem:[%s20282_s4 + $0x1458] ss:$12 sps:$4 sm:$0xff]  }
 0x609   : > { %11435 = vmatpush1.bf16.msra.mxu1 %v15513_v54  ;;  %11475 = vmatprep.subr.bf16.mxu0 %v15518_v44  ;;  %v19126_v54 = vmax.f32 %v17902_v39, %v5697_v51  ;;  %v15561_v44 = vld [vmem:[%s20282_s4 + $0x12c0] ss:$12 sps:$4 sm:$0xff]   ;;  %v15587_v51 = vld [vmem:[%s20282_s4 + $0x1564] ss:$12 sps:$4 sm:$0xff]  }
 0x60a   : > { %11436 = vmatprep.subr.bf16.mxu1 %v15521_v24  ;;  %v15566_v24 = vld [vmem:[%s20282_s4 + $0x1444] ss:$12 sps:$4 sm:$0xff]   ;;  %v15564_v39 = vld [vmem:[%s20282_s4 + $0x1440] ss:$12 sps:$4 sm:$0xff]  }
 0x60c   : > { %11476 = vmatpush1.bf16.msra.mxu0 %v15516_v47  ;;  %v15569_v47 = vld [vmem:[%s20282_s4 + $0x15ac] ss:$12 sps:$4 sm:$0xff]  }
 0x60d   : > { %11437 = vmatpush2.bf16.msra.mxu1 %v15519_v16  ;;  %11477 = vmatprep.subr.bf16.mxu0 %v15524_v15  ;;  %v5752_v16 = vrot.slane %v18913_v25, 4  ;;  %v15567_v15 = vld [vmem:[%s20282_s4 + $0x15a8] ss:$12 sps:$4 sm:$0xff]  }
 0x60e   : > { %11438 = vmatprep.subr.bf16.mxu1 %v15527_v11  ;;  %v5747_v11 = vrot.slane %v19126_v54, 2 }
 0x610   : > { %11478 = vmatpush2.bf16.msra.mxu0 %v15522_v12  ;;  %v19147_v12 = vpack.c.bf16 %v19126_v54, %v19126_v54 }
 0x611   : > { %11439 = vmatpush2.bf16.msra.mxu1 %v15525_v56  ;;  %11479 = vmatprep.subr.bf16.mxu0 %v15530_v38  ;;  %v15572_v56 = vld [vmem:[%s20282_s4 + $0x172c] ss:$12 sps:$4 sm:$0xff]   ;;  %v5756_v38 = vrot.slane %v18913_v25, 6  ;;  %v19164_v25 = vpack.c.bf16 %v5747_v11, %v5747_v11  ;;  %v15594_v11 = vld [vmem:[%s20282_s4 + $0x16c8] ss:$12 sps:$4 sm:$0xff]  }
 0x612   : > { %11440 = vmatprep.subr.bf16.mxu1 %v15533_v53  ;;  %v15575_v53 = vld [vmem:[%s20282_s4 + $0x1594] ss:$12 sps:$4 sm:$0xff]  }
 0x614   : > { %11480 = vmatpush2.bf16.msra.mxu0 %v15528_v32  ;;  %v19156_v32 = vpack.c.bf16 %v5752_v16, %v5752_v16  ;;  %v15591_v16 = vld [vmem:[%s20282_s4 + $0x1548] ss:$12 sps:$4 sm:$0xff]  }
 0x615   : > { %11441 = vmatpush2.bf16.msra.mxu1 %v15531_v34  ;;  %11481 = vmatprep.subr.bf16.mxu0 %v15536_v42  ;;  %v15570_v42 = vld [vmem:[%s20282_s4 + $0x1728] ss:$12 sps:$4 sm:$0xff]  }
 0x616   : > { %11442 = vmatprep.subr.bf16.mxu1 %v15539_v23 }
 0x618   : > { %11482 = vmatpush2.bf16.msra.mxu0 %v15534_v35  ;;  %v15573_v35 = vld [vmem:[%s20282_s4 + $0x1590] ss:$12 sps:$4 sm:$0xff]  }
 0x619   : > { %11443 = vmatpush2.bf16.msra.mxu1 %v15537_v45  ;;  %11483 = vmatprep.subr.bf16.mxu0 %v15542_v59  ;;  %v15578_v45 = vld [vmem:[%s20282_s4 + $0x1714] ss:$12 sps:$4 sm:$0xff]  }
 0x61a   : > { %11444 = vmatprep.subr.bf16.mxu1 %v15545_v37  ;;  %v19172_v37 = vpack.c.bf16 %v5756_v38, %v5756_v38  ;;  %v15602_v38 = vld [vmem:[%s20282_s4 + $0x16b4] ss:$12 sps:$4 sm:$0xff]  }
 0x61c   : > { %11484 = vmatpush2.bf16.msra.mxu0 %v15540_v18 }
 0x61d   : > { %11445 = vmatpush2.bf16.msra.mxu1 %v15543_v22  ;;  %11485 = vmatprep.subr.bf16.mxu0 %v15548_v27 }
 0x61e   : > { %11446 = vmatprep.subr.bf16.mxu1 %v15551_v62 }
 0x620   : > { %11486 = vmatpush2.bf16.msra.mxu0 %v15546_v31  ;;  %v15576_v31 = vld [vmem:[%s20282_s4 + $0x1710] ss:$12 sps:$4 sm:$0xff]  }
 0x621   : > { %11447 = vmatpush2.bf16.msra.mxu1 %v15549_v33  ;;  %11487 = vmatprep.subr.bf16.mxu0 %v15554_v7  ;;  %v15584_v7 = vld [vmem:[%s20282_s4 + $0x16fc] ss:$12 sps:$4 sm:$0xff]  }
 0x622   : > { %11448 = vmatprep.subr.bf16.mxu1 %v15557_v26 }
 0x624   : > { %11488 = vmatpush2.bf16.msra.mxu0 %v15552_v17 }
 0x625   : > { %11449 = vmatpush2.bf16.msra.mxu1 %v15555_v9  ;;  %11489 = vmatprep.subr.bf16.mxu0 %v15560_v50  ;;  %v15582_v50 = vld [vmem:[%s20282_s4 + $0x16f8] ss:$12 sps:$4 sm:$0xff]  }
 0x626   : > { %11450 = vmatprep.subr.bf16.mxu1 %v15563_v55 }
 0x628   : > { %11490 = vmatpush2.bf16.msra.mxu0 %v15558_v28  ;;  %v15585_v28 = vld [vmem:[%s20282_s4 + $0x1560] ss:$12 sps:$4 sm:$0xff]  }
 0x629   : > { %11451 = vmatpush2.bf16.msra.mxu1 %v15561_v44  ;;  %11491 = vmatprep.subr.bf16.mxu0 %v15566_v24  ;;  %v15590_v44 = vld [vmem:[%s20282_s4 + $0x16e4] ss:$12 sps:$4 sm:$0xff]   ;;  %v15593_v24 = vld [vmem:[%s20282_s4 + $0x154c] ss:$12 sps:$4 sm:$0xff]  }
 0x62a   : > { %11502 = vmatprep.subr.bf16.mxu1 %v15569_v47  ;;  %v15588_v47 = vld [vmem:[%s20282_s4 + $0x16e0] ss:$12 sps:$4 sm:$0xff]  }
 0x62c   : > { %11492 = vmatpush2.bf16.msra.mxu0 %v15564_v39  ;;  %v11208_v34 = vpop.f32.mrf.mxu1  ;;  %11453 = vmatmul.mubr.bf16.vlgmr.msra.gmra.mxu1 %v19147_v12  ;;  %v15596_v39 = vld [vmem:[%s20282_s4 + $0x16cc] ss:$12 sps:$4 sm:$0xff]  }
 0x62d   : > { %v11209_v23 = vadd.f32 %v11208_v34, %v18960_v21  ;;  %11503 = vmatpush1.bf16.msra.mxu1 %v15567_v15  ;;  %11534 = vmatprep.mubr.bf16.mxu1 %v19156_v32  ;;  %v15581_v21 = vld [vmem:[%s20282_s4 + $0x157c] ss:$12 sps:$4 sm:$0xff]   ;;  %v15599_v15 = vld [vmem:[%s20282_s4 + $0x1534] ss:$12 sps:$4 sm:$0xff]  }
 0x62e   : > { %v11210_v59 = vpop.f32.mrf.mxu1  ;;  %11543 = vmatprep.subr.bf16.mxu0 %v15572_v56  ;;  %11504 = vmatprep.subr.bf16.mxu1 %v15575_v53  ;;  %v15597_v56 = vld [vmem:[%s20282_s4 + $0x1530] ss:$12 sps:$4 sm:$0xff]  }
 0x62f   : > { %v11211_v18 = vadd.f32 %v11210_v59, %v18972_v29  ;;  %v11249_v22 = vpop.f32.mrf.mxu0  ;;  %11494 = vmatmul.mubr.bf16.vlgmr.msra.gmra.mxu0 %v19164_v25  ;;  %v15579_v29 = vld [vmem:[%s20282_s4 + $0x1578] ss:$12 sps:$4 sm:$0xff]   ;;  %v15605_v53 = vld [vmem:[%s20282_s4 + $0x151c] ss:$12 sps:$4 sm:$0xff]   ;;  %v15609_v59 = vld [vmem:[%s20282_s4 + $0x1500] ss:$12 sps:$4 sm:$0xff]  }
 0x630   : > { %v19179_v27 = vadd.f32 %v11249_v22, %v11209_v23  ;;  %11544 = vmatpush1.bf16.msra.mxu0 %v15570_v42  ;;  %11575 = vmatprep.mubr.bf16.mxu0 %v19172_v37  ;;  %v11212_v62 = vpop.f32.mrf.mxu1  ;;  %v15600_v34 = vld [vmem:[%s20282_s4 + $0x16b0] ss:$12 sps:$4 sm:$0xff]   ;;  %v15603_v42 = vld [vmem:[%s20282_s4 + $0x1518] ss:$12 sps:$4 sm:$0xff]   ;;  %v15612_v22 = vld [vmem:[%s20282_s4 + $0x1680] ss:$12 sps:$4 sm:$0xff]  }
 0x631   : > { %v11251_v33 = vpop.f32.mrf.mxu0  ;;  %11505 = vmatpush1.bf16.msra.mxu1 %v15573_v35  ;;  %11545 = vmatprep.subr.bf16.mxu0 %v15578_v45  ;;  %v15608_v23 = vld [vmem:[%s20282_s4 + $0x169c] ss:$12 sps:$4 sm:$0xff]   ;;  %v15611_v35 = vld [vmem:[%s20282_s4 + $0x1504] ss:$12 sps:$4 sm:$0xff]  }
 0x632   : > { %v19191_v26 = vadd.f32 %v11251_v33, %v11211_v18  ;;  %v11213_v17 = vpop.f32.mrf.mxu1  ;;  %11506 = vmatprep.subr.bf16.mxu1 %v15581_v21  ;;  %v15606_v45 = vld [vmem:[%s20282_s4 + $0x1698] ss:$12 sps:$4 sm:$0xff]   ;;  %v15615_v62 = vld [vmem:[%s20282_s4 + $0x1668] ss:$12 sps:$4 sm:$0xff]  }
 0x633   : > { %v11253_v9 = vpop.f32.mrf.mxu0  ;;  %v15614_v21 = vld [vmem:[%s20282_s4 + $0x1684] ss:$12 sps:$4 sm:$0xff]   ;;  %v15617_v18 = vld [vmem:[%s20282_s4 + $0x166c] ss:$12 sps:$4 sm:$0xff]   ;;  %v15623_v33 = vld [vmem:[%s20282_s4 + $0x1654] ss:$12 sps:$4 sm:$0xff]  }
 0x634   : > { %11546 = vmatpush1.bf16.msra.mxu0 %v15576_v31  ;;  %v15620_v31 = vld [vmem:[%s20282_s4 + $0x17ec] ss:$12 sps:$4 sm:$0xff]   ;;  %v15626_v17 = vld [vmem:[%s20282_s4 + $0x17d4] ss:$12 sps:$4 sm:$0xff]   ;;  %v15624_v9 = vld [vmem:[%s20282_s4 + $0x17d0] ss:$12 sps:$4 sm:$0xff]  }
 0x635   : > { %v11254_v55 = vpop.f32.mrf.mxu0  ;;  %11507 = vmatpush1.bf16.msra.mxu1 %v15579_v29  ;;  %11547 = vmatprep.subr.bf16.mxu0 %v15584_v7  ;;  %v15618_v29 = vld [vmem:[%s20282_s4 + $0x17e8] ss:$12 sps:$4 sm:$0xff]   ;;  %v15621_v7 = vld [vmem:[%s20282_s4 + $0x1650] ss:$12 sps:$4 sm:$0xff]  }
 0x636   : > { %11508 = vmatprep.subr.bf16.mxu1 %v15587_v51  ;;  %v15629_v51 = vld [vmem:[%s20282_s4 + $0x163c] ss:$12 sps:$4 sm:$0xff]  }
 0x637   : > { %v15632_v55 = vld [vmem:[%s20282_s4 + $0x17bc] ss:$12 sps:$4 sm:$0xff]  }
 0x638   : > { %11548 = vmatpush1.bf16.msra.mxu0 %v15582_v50  ;;  %v15627_v50 = vld [vmem:[%s20282_s4 + $0x1638] ss:$12 sps:$4 sm:$0xff]  }
 0x639   : > { %11509 = vmatpush1.bf16.msra.mxu1 %v15585_v28  ;;  %11549 = vmatprep.subr.bf16.mxu0 %v15590_v44  ;;  %v15635_v28 = vld [vmem:[%s20282_s4 + $0x1624] ss:$12 sps:$4 sm:$0xff]  }
 0x63a   : > { %11510 = vmatprep.subr.bf16.mxu1 %v15593_v24  ;;  %v15630_v44 = vld [vmem:[%s20282_s4 + $0x17b8] ss:$12 sps:$4 sm:$0xff]   ;;  %v15633_v24 = vld [vmem:[%s20282_s4 + $0x1620] ss:$12 sps:$4 sm:$0xff]  }
 0x63c   : > { %11550 = vmatpush1.bf16.msra.mxu0 %v15588_v47  ;;  %v15638_v47 = vld [vmem:[%s20282_s4 + $0x17a4] ss:$12 sps:$4 sm:$0xff]  }
 0x63d   : > { %11511 = vmatpush1.bf16.msra.mxu1 %v15591_v16  ;;  %11551 = vmatprep.subr.bf16.mxu0 %v15596_v39  ;;  %v15641_v16 = vld [vmem:[%s20282_s4 + $0x160c] ss:$12 sps:$4 sm:$0xff]  }
 0x63e   : > { %11512 = vmatprep.subr.bf16.mxu1 %v15599_v15  ;;  %v15636_v39 = vld [vmem:[%s20282_s4 + $0x17a0] ss:$12 sps:$4 sm:$0xff]   ;;  %v15639_v15 = vld [vmem:[%s20282_s4 + $0x1608] ss:$12 sps:$4 sm:$0xff]  }
 0x640   : > { %11552 = vmatpush1.bf16.msra.mxu0 %v15594_v11  ;;  %v15644_v11 = vld [vmem:[%s20282_s4 + $0x178c] ss:$12 sps:$4 sm:$0xff]  }
 0x641   : > { %11513 = vmatpush1.bf16.msra.mxu1 %v15597_v56  ;;  %11553 = vmatprep.subr.bf16.mxu0 %v15602_v38  ;;  %v15647_v56 = vld [vmem:[%s20282_s4 + $0x15f4] ss:$12 sps:$4 sm:$0xff]  }
 0x642   : > { %11514 = vmatprep.subr.bf16.mxu1 %v15605_v53  ;;  %v15642_v38 = vld [vmem:[%s20282_s4 + $0x1788] ss:$12 sps:$4 sm:$0xff]   ;;  %v15645_v53 = vld [vmem:[%s20282_s4 + $0x15f0] ss:$12 sps:$4 sm:$0xff]  }
 0x644   : > { %11554 = vmatpush1.bf16.msra.mxu0 %v15600_v34  ;;  %v15650_v34 = vld [vmem:[%s20282_s4 + $0x1774] ss:$12 sps:$4 sm:$0xff]  }
 0x645   : > { %11515 = vmatpush1.bf16.msra.mxu1 %v15603_v42  ;;  %11555 = vmatprep.subr.bf16.mxu0 %v15608_v23  ;;  %v15653_v42 = vld [vmem:[%s20282_s4 + $0x15dc] ss:$12 sps:$4 sm:$0xff]  }
 0x646   : > { %11516 = vmatprep.subr.bf16.mxu1 %v15611_v35  ;;  %v15648_v23 = vld [vmem:[%s20282_s4 + $0x1770] ss:$12 sps:$4 sm:$0xff]   ;;  %v15651_v35 = vld [vmem:[%s20282_s4 + $0x15d8] ss:$12 sps:$4 sm:$0xff]  }
 0x648   : > { %11556 = vmatpush1.bf16.msra.mxu0 %v15606_v45  ;;  %v15656_v45 = vld [vmem:[%s20282_s4 + $0x175c] ss:$12 sps:$4 sm:$0xff]  }
 0x649   : > { %11517 = vmatpush1.bf16.msra.mxu1 %v15609_v59  ;;  %11557 = vmatprep.subr.bf16.mxu0 %v15614_v21  ;;  %v15659_v59 = vld [vmem:[%s20282_s4 + $0x15c4] ss:$12 sps:$4 sm:$0xff]  }
 0x64a   : > { %11518 = vmatprep.subr.bf16.mxu1 %v15617_v18  ;;  %v15654_v21 = vld [vmem:[%s20282_s4 + $0x1758] ss:$12 sps:$4 sm:$0xff]   ;;  %v15657_v18 = vld [vmem:[%s20282_s4 + $0x15c0] ss:$12 sps:$4 sm:$0xff]  }
 0x64c   : > { %11558 = vmatpush1.bf16.msra.mxu0 %v15612_v22  ;;  %v15662_v22 = vld [vmem:[%s20282_s4 + $0x1744] ss:$12 sps:$4 sm:$0xff]  }
 0x64d   : > { %11519 = vmatpush2.bf16.msra.mxu1 %v15615_v62  ;;  %11559 = vmatprep.subr.bf16.mxu0 %v15620_v31  ;;  %v5751_v62 = vrot.slane %v19126_v54, 4  ;;  %v15663_v31 = vld [vmem:[%s20282_s4 + $0x170] ss:$12 sps:$4 sm:$0xff]  }
 0x64e   : > { %11520 = vmatprep.subr.bf16.mxu1 %v15623_v33  ;;  %v15660_v33 = vld [vmem:[%s20282_s4 + $0x1740] ss:$12 sps:$4 sm:$0xff]  }
 0x650   : > { %11560 = vmatpush2.bf16.msra.mxu0 %v15618_v29  ;;  %v15664_v29 = vld [vmem:[%s20282_s4 + $0xb0] ss:$12 sps:$4 sm:$0xff]  }
 0x651   : > { %11521 = vmatpush2.bf16.msra.mxu1 %v15621_v7  ;;  %11561 = vmatprep.subr.bf16.mxu0 %v15626_v17  ;;  %v5755_v7 = vrot.slane %v19126_v54, 6  ;;  %v19360_v17 = vpack.c.bf16 %v5751_v62, %v5751_v62  ;;  %v15681_v62 = vld [vmem:[%s20282_s4 + $0x290] ss:$12 sps:$4 sm:$0xff]  }
 0x652   : > { %11522 = vmatprep.subr.bf16.mxu1 %v15629_v51  ;;  %v15665_v51 = vld [vmem:[%s20282_s4 + $0x2f0] ss:$12 sps:$4 sm:$0xff]  }
 0x654   : > { %11562 = vmatpush2.bf16.msra.mxu0 %v15624_v9  ;;  %v15667_v9 = vld [vmem:[%s20282_s4 + $0x158] ss:$12 sps:$4 sm:$0xff]  }
 0x655   : > { %11523 = vmatpush2.bf16.msra.mxu1 %v15627_v50  ;;  %11563 = vmatprep.subr.bf16.mxu0 %v15632_v55  ;;  %v15666_v55 = vld [vmem:[%s20282_s4 + $0x230] ss:$12 sps:$4 sm:$0xff]  }
 0x656   : > { %11524 = vmatprep.subr.bf16.mxu1 %v15635_v28  ;;  %v19374_v28 = vpack.c.bf16 %v5755_v7, %v5755_v7  ;;  %v15685_v7 = vld [vmem:[%s20282_s4 + $0x278] ss:$12 sps:$4 sm:$0xff]  }
 0x658   : > { %11564 = vmatpush2.bf16.msra.mxu0 %v15630_v44  ;;  %v15668_v44 = vld [vmem:[%s20282_s4 + $0x98] ss:$12 sps:$4 sm:$0xff]  }
 0x659   : > { %11525 = vmatpush2.bf16.msra.mxu1 %v15633_v24  ;;  %11565 = vmatprep.subr.bf16.mxu0 %v15638_v47  ;;  %v15669_v24 = vld [vmem:[%s20282_s4 + $0x2d8] ss:$12 sps:$4 sm:$0xff]  }
 0x65a   : > { %11526 = vmatprep.subr.bf16.mxu1 %v15641_v16 }
 0x65c   : > { %11566 = vmatpush2.bf16.msra.mxu0 %v15636_v39 }
 0x65d   : > { %11527 = vmatpush2.bf16.msra.mxu1 %v15639_v15  ;;  %11567 = vmatprep.subr.bf16.mxu0 %v15644_v11  ;;  %v15670_v11 = vld [vmem:[%s20282_s4 + $0x218] ss:$12 sps:$4 sm:$0xff]  }
 0x65e   : > { %11528 = vmatprep.subr.bf16.mxu1 %v15647_v56 }
 0x660   : > { %11568 = vmatpush2.bf16.msra.mxu0 %v15642_v38  ;;  %v15673_v38 = vld [vmem:[%s20282_s4 + $0x2c0] ss:$12 sps:$4 sm:$0xff]  }
 0x661   : > { %11529 = vmatpush2.bf16.msra.mxu1 %v15645_v53  ;;  %11569 = vmatprep.subr.bf16.mxu0 %v15650_v34 }
 0x662   : > { %11530 = vmatprep.subr.bf16.mxu1 %v15653_v42 }
 0x664   : > { %11570 = vmatpush2.bf16.msra.mxu0 %v15648_v23  ;;  %v15674_v23 = vld [vmem:[%s20282_s4 + $0x200] ss:$12 sps:$4 sm:$0xff]  }
 0x665   : > { %11531 = vmatpush2.bf16.msra.mxu1 %v15651_v35  ;;  %11571 = vmatprep.subr.bf16.mxu0 %v15656_v45  ;;  %v15676_v45 = vld [vmem:[%s20282_s4 + $0x68] ss:$12 sps:$4 sm:$0xff]  }
 0x666   : > { %11532 = vmatprep.subr.bf16.mxu1 %v15659_v59  ;;  %v15677_v59 = vld [vmem:[%s20282_s4 + $0x2a8] ss:$12 sps:$4 sm:$0xff]  }
 0x668   : > { %11572 = vmatpush2.bf16.msra.mxu0 %v15654_v21  ;;  %v15679_v21 = vld [vmem:[%s20282_s4 + $0x110] ss:$12 sps:$4 sm:$0xff]  }
 0x669   : > { %11533 = vmatpush2.bf16.msra.mxu1 %v15657_v18  ;;  %11573 = vmatprep.subr.bf16.mxu0 %v15662_v22  ;;  %v15678_v18 = vld [vmem:[%s20282_s4 + $0x1e8] ss:$12 sps:$4 sm:$0xff]   ;;  %v15680_v22 = vld [vmem:[%s20282_s4 + $0x50] ss:$12 sps:$4 sm:$0xff]  }
 0x66a   : > { %13990 = vmatprep.subr.bf16.mxu1 %v15663_v31  ;;  %v15683_v31 = vld [vmem:[%s20282_s4 + $0xf8] ss:$12 sps:$4 sm:$0xff]  }
 0x66c   : > { %11574 = vmatpush2.bf16.msra.mxu0 %v15660_v33  ;;  %v11290_v50 = vpop.f32.mrf.mxu1  ;;  %11535 = vmatmul.mubr.bf16.vlgmr.msra.gmra.mxu1 %v19360_v17  ;;  %v15682_v33 = vld [vmem:[%s20282_s4 + $0x1d0] ss:$12 sps:$4 sm:$0xff]  }
 0x66d   : > { %v11291_v54 = vadd.f32 %v11290_v50, %v19179_v27  ;;  %13991 = vmatpush3.bf16.msra.mxu1 %v15664_v29  ;;  %11616 = vmatprep.mubr.bf16.mxu1 %v17829_v13  ;;  %v15671_v27 = vld [vmem:[%s20282_s4 + $0x140] ss:$12 sps:$4 sm:$0xff]   ;;  %v15684_v29 = vld [vmem:[%s20282_s4 + $0x38] ss:$12 sps:$4 sm:$0xff]  }
 0x66e   : > { %v11292_v47 = vpop.f32.mrf.mxu1  ;;  %14012 = vmatprep.subr.bf16.mxu0 %v15665_v51  ;;  %13992 = vmatprep.subr.bf16.mxu1 %v15667_v9  ;;  %v15687_v51 = vld [vmem:[%s20282_s4 + $0xe0] ss:$12 sps:$4 sm:$0xff]   ;;  %v15686_v9 = vld [vmem:[%s20282_s4 + $0x1b8] ss:$12 sps:$4 sm:$0xff]  }
 0x66f   : > { %v11293_v16 = vadd.f32 %v11292_v47, %v19191_v26  ;;  %v11331_v13 = vpop.f32.mrf.mxu0  ;;  %11576 = vmatmul.mubr.bf16.vlgmr.msra.gmra.mxu0 %v19374_v28  ;;  %v15672_v26 = vld [vmem:[%s20282_s4 + $0x80] ss:$12 sps:$4 sm:$0xff]   ;;  %v15693_v47 = vld [vmem:[%s20282_s4 + $0x248] ss:$12 sps:$4 sm:$0xff]  }
 0x670   : > { %v19387_v39 = vadd.f32 %v11331_v13, %v11291_v54  ;;  %14013 = vmatpush3.bf16.msra.mxu0 %v15666_v55  ;;  %11656 = vmatprep.mubr.bf16.mxu0 %v17842_v48  ;;  %v11294_v15 = vpop.f32.mrf.mxu1  ;;  %v15675_v48 = vld [vmem:[%s20282_s4 + $0x128] ss:$12 sps:$4 sm:$0xff]   ;;  %v15688_v50 = vld [vmem:[%s20282_s4 + $0x20] ss:$12 sps:$4 sm:$0xff]   ;;  %v15696_v13 = vld [vmem:[%s20282_s4 + $0x3b0] ss:$12 sps:$4 sm:$0xff]  }
 0x671   : > { %v11333_v56 = vpop.f32.mrf.mxu0  ;;  %13993 = vmatpush3.bf16.msra.mxu1 %v15668_v44  ;;  %14014 = vmatprep.subr.bf16.mxu0 %v15669_v24  ;;  %v15689_v55 = vld [vmem:[%s20282_s4 + $0x260] ss:$12 sps:$4 sm:$0xff]   ;;  %v15691_v54 = vld [vmem:[%s20282_s4 + $0xc8] ss:$12 sps:$4 sm:$0xff]   ;;  %v15697_v15 = vld [vmem:[%s20282_s4 + $0x5f0] ss:$12 sps:$4 sm:$0xff]  }
 0x672   : > { %v19399_v53 = vadd.f32 %v11333_v56, %v11293_v16  ;;  %v11295_v34 = vpop.f32.mrf.mxu1  ;;  %13994 = vmatprep.subr.bf16.mxu1 %v15671_v27  ;;  %v15690_v44 = vld [vmem:[%s20282_s4 + $0x1a0] ss:$12 sps:$4 sm:$0xff]   ;;  %v15692_v24 = vld [vmem:[%s20282_s4 + $0x8] ss:$12 sps:$4 sm:$0xff]   ;;  %v15695_v27 = vld [vmem:[%s20282_s4 + $0x470] ss:$12 sps:$4 sm:$0xff]  }
 0x673   : > { %v11335_v42 = vpop.f32.mrf.mxu0  ;;  %v15694_v16 = vld [vmem:[%s20282_s4 + $0x188] ss:$12 sps:$4 sm:$0xff]   ;;  %v15698_v56 = vld [vmem:[%s20282_s4 + $0x530] ss:$12 sps:$4 sm:$0xff]   ;;  %v15704_v34 = vld [vmem:[%s20282_s4 + $0x380] ss:$12 sps:$4 sm:$0xff]  }
 0x674   : > { %14015 = vmatpush3.bf16.msra.mxu0 %v15670_v11  ;;  %v15699_v11 = vld [vmem:[%s20282_s4 + $0x458] ss:$12 sps:$4 sm:$0xff]   ;;  %v15708_v42 = vld [vmem:[%s20282_s4 + $0x368] ss:$12 sps:$4 sm:$0xff]  }
 0x675   : > { %v11336_v35 = vpop.f32.mrf.mxu0  ;;  %13995 = vmatpush3.bf16.msra.mxu1 %v15672_v26  ;;  %14016 = vmatprep.subr.bf16.mxu0 %v15673_v38  ;;  %v15700_v26 = vld [vmem:[%s20282_s4 + $0x398] ss:$12 sps:$4 sm:$0xff]  }
 0x676   : > { %13996 = vmatprep.subr.bf16.mxu1 %v15675_v48  ;;  %v15701_v38 = vld [vmem:[%s20282_s4 + $0x5d8] ss:$12 sps:$4 sm:$0xff]   ;;  %v15705_v48 = vld [vmem:[%s20282_s4 + $0x5c0] ss:$12 sps:$4 sm:$0xff]   ;;  %v15711_v35 = vld [vmem:[%s20282_s4 + $0x410] ss:$12 sps:$4 sm:$0xff]  }
 0x678   : > { %14017 = vmatpush3.bf16.msra.mxu0 %v15674_v23  ;;  %v15709_v23 = vld [vmem:[%s20282_s4 + $0x5a8] ss:$12 sps:$4 sm:$0xff]  }
 0x679   : > { %13997 = vmatpush3.bf16.msra.mxu1 %v15676_v45  ;;  %14018 = vmatprep.subr.bf16.mxu0 %v15677_v59  ;;  %v15710_v45 = vld [vmem:[%s20282_s4 + $0x4e8] ss:$12 sps:$4 sm:$0xff]   ;;  %v15712_v59 = vld [vmem:[%s20282_s4 + $0x350] ss:$12 sps:$4 sm:$0xff]  }
 0x67a   : > { %13998 = vmatprep.subr.bf16.mxu1 %v15679_v21  ;;  %v15713_v21 = vld [vmem:[%s20282_s4 + $0x590] ss:$12 sps:$4 sm:$0xff]  }
 0x67c   : > { %14019 = vmatpush3.bf16.msra.mxu0 %v15678_v18  ;;  %v15715_v18 = vld [vmem:[%s20282_s4 + $0x3f8] ss:$12 sps:$4 sm:$0xff]  }
 0x67d   : > { %13999 = vmatpush3.bf16.msra.mxu1 %v15680_v22  ;;  %14020 = vmatprep.subr.bf16.mxu0 %v15681_v62  ;;  %v15714_v22 = vld [vmem:[%s20282_s4 + $0x4d0] ss:$12 sps:$4 sm:$0xff]   ;;  %v15716_v62 = vld [vmem:[%s20282_s4 + $0x338] ss:$12 sps:$4 sm:$0xff]  }
 0x67e   : > { %14000 = vmatprep.subr.bf16.mxu1 %v15683_v31  ;;  %v15717_v31 = vld [vmem:[%s20282_s4 + $0x578] ss:$12 sps:$4 sm:$0xff]  }
 0x680   : > { %14021 = vmatpush3.bf16.msra.mxu0 %v15682_v33  ;;  %v15719_v33 = vld [vmem:[%s20282_s4 + $0x3e0] ss:$12 sps:$4 sm:$0xff]  }
 0x681   : > { %14001 = vmatpush3.bf16.msra.mxu1 %v15684_v29  ;;  %14022 = vmatprep.subr.bf16.mxu0 %v15685_v7  ;;  %v15718_v29 = vld [vmem:[%s20282_s4 + $0x4b8] ss:$12 sps:$4 sm:$0xff]   ;;  %v15720_v7 = vld [vmem:[%s20282_s4 + $0x320] ss:$12 sps:$4 sm:$0xff]  }
 0x682   : > { %14002 = vmatprep.subr.bf16.mxu1 %v15687_v51  ;;  %v15721_v51 = vld [vmem:[%s20282_s4 + $0x560] ss:$12 sps:$4 sm:$0xff]  }
 0x684   : > { %14023 = vmatpush3.bf16.msra.mxu0 %v15686_v9  ;;  %v15723_v9 = vld [vmem:[%s20282_s4 + $0x3c8] ss:$12 sps:$4 sm:$0xff]  }
 0x685   : > { %14003 = vmatpush3.bf16.msra.mxu1 %v15688_v50  ;;  %14024 = vmatprep.subr.bf16.mxu0 %v15689_v55  ;;  %v15722_v50 = vld [vmem:[%s20282_s4 + $0x4a0] ss:$12 sps:$4 sm:$0xff]   ;;  %v15724_v55 = vld [vmem:[%s20282_s4 + $0x308] ss:$12 sps:$4 sm:$0xff]  }
 0x686   : > { %14004 = vmatprep.subr.bf16.mxu1 %v15691_v54  ;;  %v15725_v54 = vld [vmem:[%s20282_s4 + $0x548] ss:$12 sps:$4 sm:$0xff]  }
 0x688   : > { %14025 = vmatpush3.bf16.msra.mxu0 %v15690_v44  ;;  %v15727_v44 = vld [vmem:[%s20282_s4 + $0x770] ss:$12 sps:$4 sm:$0xff]  }
 0x689   : > { %14005 = vmatpush3.bf16.msra.mxu1 %v15692_v24  ;;  %14026 = vmatprep.subr.bf16.mxu0 %v15693_v47  ;;  %v15726_v24 = vld [vmem:[%s20282_s4 + $0x488] ss:$12 sps:$4 sm:$0xff]   ;;  %v15728_v47 = vld [vmem:[%s20282_s4 + $0x6b0] ss:$12 sps:$4 sm:$0xff]  }
 0x68a   : > { %14034 = vmatprep.subr.bf16.mxu1 %v15695_v27  ;;  %v15729_v27 = vld [vmem:[%s20282_s4 + $0x8f0] ss:$12 sps:$4 sm:$0xff]  }
 0x68c   : > { %14027 = vmatpush3.bf16.msra.mxu0 %v15694_v16  ;;  %11617 = vmatmul.mubr.bf16.vlgmr.msra.gmra.mxu1 %v17825_v36  ;;  %v15703_v36 = vld [vmem:[%s20282_s4 + $0x440] ss:$12 sps:$4 sm:$0xff]   ;;  %v15731_v16 = vld [vmem:[%s20282_s4 + $0x758] ss:$12 sps:$4 sm:$0xff]  }
 0x68d   : > { %14035 = vmatpush3.bf16.msra.mxu1 %v15696_v13  ;;  %11696 = vmatprep.mubr.bf16.mxu1 %v17844_v5  ;;  %v15702_v5 = vld [vmem:[%s20282_s4 + $0x518] ss:$12 sps:$4 sm:$0xff]  }
 0x68e   : > { %14056 = vmatprep.subr.bf16.mxu0 %v15697_v15  ;;  %14036 = vmatprep.subr.bf16.mxu1 %v15699_v11  ;;  %v15730_v15 = vld [vmem:[%s20282_s4 + $0x830] ss:$12 sps:$4 sm:$0xff]  }
 0x68f   : > { %11657 = vmatmul.mubr.bf16.vlgmr.msra.gmra.mxu0 %v17850_v46  ;;  %v15707_v46 = vld [vmem:[%s20282_s4 + $0x428] ss:$12 sps:$4 sm:$0xff]  }
 0x690   : > { %14057 = vmatpush3.bf16.msra.mxu0 %v15698_v56  ;;  %11736 = vmatprep.mubr.bf16.mxu0 %v17860_v20  ;;  %v15706_v20 = vld [vmem:[%s20282_s4 + $0x500] ss:$12 sps:$4 sm:$0xff]   ;;  %v15732_v56 = vld [vmem:[%s20282_s4 + $0x698] ss:$12 sps:$4 sm:$0xff]  }
 0x691   : > { %14037 = vmatpush3.bf16.msra.mxu1 %v15700_v26  ;;  %14058 = vmatprep.subr.bf16.mxu0 %v15701_v38  ;;  %v15733_v26 = vld [vmem:[%s20282_s4 + $0x8d8] ss:$12 sps:$4 sm:$0xff]  }
 0x692   : > { %14038 = vmatprep.subr.bf16.mxu1 %v15703_v36 }
 0x694   : > { %14059 = vmatpush3.bf16.msra.mxu0 %v15702_v5 }
 0x695   : > { %14039 = vmatpush3.bf16.msra.mxu1 %v15704_v34  ;;  %14060 = vmatprep.subr.bf16.mxu0 %v15705_v48  ;;  %v15734_v34 = vld [vmem:[%s20282_s4 + $0x818] ss:$12 sps:$4 sm:$0xff]  }
 0x696   : > { %14040 = vmatprep.subr.bf16.mxu1 %v15707_v46 }
 0x698   : > { %14061 = vmatpush3.bf16.msra.mxu0 %v15706_v20 }
 0x699   : > { %14041 = vmatpush3.bf16.msra.mxu1 %v15708_v42  ;;  %14062 = vmatprep.subr.bf16.mxu0 %v15709_v23  ;;  %v15738_v23 = vld [vmem:[%s20282_s4 + $0x800] ss:$12 sps:$4 sm:$0xff]  }
 0x69a   : > { %14042 = vmatprep.subr.bf16.mxu1 %v15711_v35 }
 0x69c   : > { %14063 = vmatpush3.bf16.msra.mxu0 %v15710_v45  ;;  %v15740_v45 = vld [vmem:[%s20282_s4 + $0x668] ss:$12 sps:$4 sm:$0xff]  }
 0x69d   : > { %14043 = vmatpush3.bf16.msra.mxu1 %v15712_v59  ;;  %14064 = vmatprep.subr.bf16.mxu0 %v15713_v21  ;;  %v15741_v59 = vld [vmem:[%s20282_s4 + $0x8a8] ss:$12 sps:$4 sm:$0xff]   ;;  %v15743_v21 = vld [vmem:[%s20282_s4 + $0x710] ss:$12 sps:$4 sm:$0xff]  }
 0x69e   : > { %14044 = vmatprep.subr.bf16.mxu1 %v15715_v18  ;;  %v15742_v18 = vld [vmem:[%s20282_s4 + $0x7e8] ss:$12 sps:$4 sm:$0xff]  }
 0x6a0   : > { %14065 = vmatpush3.bf16.msra.mxu0 %v15714_v22  ;;  %v15744_v22 = vld [vmem:[%s20282_s4 + $0x650] ss:$12 sps:$4 sm:$0xff]  }
 0x6a1   : > { %14045 = vmatpush3.bf16.msra.mxu1 %v15716_v62  ;;  %14066 = vmatprep.subr.bf16.mxu0 %v15717_v31  ;;  %v15745_v62 = vld [vmem:[%s20282_s4 + $0x890] ss:$12 sps:$4 sm:$0xff]   ;;  %v15747_v31 = vld [vmem:[%s20282_s4 + $0x6f8] ss:$12 sps:$4 sm:$0xff]  }
 0x6a2   : > { %14046 = vmatprep.subr.bf16.mxu1 %v15719_v33  ;;  %v15746_v33 = vld [vmem:[%s20282_s4 + $0x7d0] ss:$12 sps:$4 sm:$0xff]  }
 0x6a4   : > { %14067 = vmatpush3.bf16.msra.mxu0 %v15718_v29  ;;  %v15748_v29 = vld [vmem:[%s20282_s4 + $0x638] ss:$12 sps:$4 sm:$0xff]  }
 0x6a5   : > { %14047 = vmatpush3.bf16.msra.mxu1 %v15720_v7  ;;  %14068 = vmatprep.subr.bf16.mxu0 %v15721_v51  ;;  %v15749_v7 = vld [vmem:[%s20282_s4 + $0x878] ss:$12 sps:$4 sm:$0xff]   ;;  %v15751_v51 = vld [vmem:[%s20282_s4 + $0x6e0] ss:$12 sps:$4 sm:$0xff]  }
 0x6a6   : > { %14048 = vmatprep.subr.bf16.mxu1 %v15723_v9  ;;  %v15750_v9 = vld [vmem:[%s20282_s4 + $0x7b8] ss:$12 sps:$4 sm:$0xff]  }
 0x6a8   : > { %14069 = vmatpush3.bf16.msra.mxu0 %v15722_v50  ;;  %v15752_v50 = vld [vmem:[%s20282_s4 + $0x620] ss:$12 sps:$4 sm:$0xff]  }
 0x6a9   : > { %14049 = vmatpush3.bf16.msra.mxu1 %v15724_v55  ;;  %14070 = vmatprep.subr.bf16.mxu0 %v15725_v54  ;;  %v15753_v55 = vld [vmem:[%s20282_s4 + $0x860] ss:$12 sps:$4 sm:$0xff]   ;;  %v15755_v54 = vld [vmem:[%s20282_s4 + $0x6c8] ss:$12 sps:$4 sm:$0xff]  }
 0x6aa   : > { %14078 = vmatprep.subr.bf16.mxu1 %v15727_v44  ;;  %v15754_v44 = vld [vmem:[%s20282_s4 + $0x7a0] ss:$12 sps:$4 sm:$0xff]  }
 0x6ac   : > { %14071 = vmatpush3.bf16.msra.mxu0 %v15726_v24  ;;  %v11372_v13 = vpop.f32.mrf.mxu1  ;;  %11697 = vmatmul.mubr.bf16.vlgmr.msra.gmra.mxu1 %v18059_v30  ;;  %v15735_v30 = vld [vmem:[%s20282_s4 + $0x740] ss:$12 sps:$4 sm:$0xff]   ;;  %v15756_v24 = vld [vmem:[%s20282_s4 + $0x608] ss:$12 sps:$4 sm:$0xff]  }
 0x6ad   : > { %v11373_v11 = vadd.f32 %v11372_v13, %v19387_v39  ;;  %14079 = vmatpush3.bf16.msra.mxu1 %v15728_v47  ;;  %11776 = vmatprep.mubr.bf16.mxu1 %v18070_v6  ;;  %v15757_v47 = vld [vmem:[%s20282_s4 + $0x848] ss:$12 sps:$4 sm:$0xff]   ;;  %v15760_v13 = vld [vmem:[%s20282_s4 + $0x9b0] ss:$12 sps:$4 sm:$0xff]  }
 0x6ae   : > { %v11374_v38 = vpop.f32.mrf.mxu1  ;;  %14100 = vmatprep.subr.bf16.mxu0 %v15729_v27  ;;  %14080 = vmatprep.subr.bf16.mxu1 %v15731_v16  ;;  %v15759_v27 = vld [vmem:[%s20282_s4 + $0xa70] ss:$12 sps:$4 sm:$0xff]   ;;  %v15758_v16 = vld [vmem:[%s20282_s4 + $0x788] ss:$12 sps:$4 sm:$0xff]  }
 0x6af   : > { %v11375_v39 = vadd.f32 %v11374_v38, %v19399_v53  ;;  %v11413_v36 = vpop.f32.mrf.mxu0  ;;  %11737 = vmatmul.mubr.bf16.vlgmr.msra.gmra.mxu0 %v18077_v3  ;;  %v15736_v53 = vld [vmem:[%s20282_s4 + $0x680] ss:$12 sps:$4 sm:$0xff]   ;;  %v15765_v38 = vld [vmem:[%s20282_s4 + $0xbd8] ss:$12 sps:$4 sm:$0xff]  }
 0x6b0   : > { %v19593_v6 = vadd.f32 %v11413_v36, %v11373_v11  ;;  %14101 = vmatpush3.bf16.msra.mxu0 %v15730_v15  ;;  %11816 = vmatprep.mubr.bf16.mxu0 %v18085_v63  ;;  %v11376_v5 = vpop.f32.mrf.mxu1  ;;  %v15737_v3 = vld [vmem:[%s20282_s4 + $0x8c0] ss:$12 sps:$4 sm:$0xff]   ;;  %v15739_v63 = vld [vmem:[%s20282_s4 + $0x728] ss:$12 sps:$4 sm:$0xff]   ;;  %v15761_v15 = vld [vmem:[%s20282_s4 + $0xbf0] ss:$12 sps:$4 sm:$0xff]  }
 0x6b1   : > { %v11415_v48 = vpop.f32.mrf.mxu0  ;;  %14081 = vmatpush3.bf16.msra.mxu1 %v15732_v56  ;;  %14102 = vmatprep.subr.bf16.mxu0 %v15733_v26  ;;  %v15763_v11 = vld [vmem:[%s20282_s4 + $0xa58] ss:$12 sps:$4 sm:$0xff]   ;;  %v15762_v56 = vld [vmem:[%s20282_s4 + $0xb30] ss:$12 sps:$4 sm:$0xff]   ;;  %v15772_v36 = vld [vmem:[%s20282_s4 + $0x968] ss:$12 sps:$4 sm:$0xff]  }
 0x6b2   : > { %v19605_v46 = vadd.f32 %v11415_v48, %v11375_v39  ;;  %v11377_v20 = vpop.f32.mrf.mxu1  ;;  %14082 = vmatprep.subr.bf16.mxu1 %v15735_v30  ;;  %v15764_v26 = vld [vmem:[%s20282_s4 + $0x998] ss:$12 sps:$4 sm:$0xff]   ;;  %v15768_v30 = vld [vmem:[%s20282_s4 + $0x980] ss:$12 sps:$4 sm:$0xff]   ;;  %v15773_v5 = vld [vmem:[%s20282_s4 + $0xba8] ss:$12 sps:$4 sm:$0xff]  }
 0x6b3   : > { %v11417_v42 = vpop.f32.mrf.mxu0  ;;  %v15769_v39 = vld [vmem:[%s20282_s4 + $0xbc0] ss:$12 sps:$4 sm:$0xff]   ;;  %v15774_v48 = vld [vmem:[%s20282_s4 + $0xae8] ss:$12 sps:$4 sm:$0xff]   ;;  %v15779_v20 = vld [vmem:[%s20282_s4 + $0x9f8] ss:$12 sps:$4 sm:$0xff]  }
 0x6b4   : > { %14103 = vmatpush3.bf16.msra.mxu0 %v15734_v34  ;;  %v15775_v34 = vld [vmem:[%s20282_s4 + $0xa10] ss:$12 sps:$4 sm:$0xff]   ;;  %v15780_v42 = vld [vmem:[%s20282_s4 + $0x938] ss:$12 sps:$4 sm:$0xff]  }
 0x6b5   : > { %v11418_v35 = vpop.f32.mrf.mxu0  ;;  %14083 = vmatpush3.bf16.msra.mxu1 %v15736_v53  ;;  %14104 = vmatprep.subr.bf16.mxu0 %v15737_v3  ;;  %v15776_v53 = vld [vmem:[%s20282_s4 + $0x950] ss:$12 sps:$4 sm:$0xff]  }
 0x6b6   : > { %14084 = vmatprep.subr.bf16.mxu1 %v15739_v63  ;;  %v15777_v3 = vld [vmem:[%s20282_s4 + $0xb90] ss:$12 sps:$4 sm:$0xff]   ;;  %v15783_v35 = vld [vmem:[%s20282_s4 + $0x9e0] ss:$12 sps:$4 sm:$0xff]  }
 0x6b7   : > { %v15778_v63 = vld [vmem:[%s20282_s4 + $0xad0] ss:$12 sps:$4 sm:$0xff]  }
 0x6b8   : > { %14105 = vmatpush3.bf16.msra.mxu0 %v15738_v23  ;;  %v15781_v23 = vld [vmem:[%s20282_s4 + $0xb78] ss:$12 sps:$4 sm:$0xff]  }
 0x6b9   : > { %14085 = vmatpush3.bf16.msra.mxu1 %v15740_v45  ;;  %14106 = vmatprep.subr.bf16.mxu0 %v15741_v59  ;;  %v15782_v45 = vld [vmem:[%s20282_s4 + $0xab8] ss:$12 sps:$4 sm:$0xff]   ;;  %v15784_v59 = vld [vmem:[%s20282_s4 + $0x920] ss:$12 sps:$4 sm:$0xff]  }
 0x6ba   : > { %14086 = vmatprep.subr.bf16.mxu1 %v15743_v21  ;;  %v15785_v21 = vld [vmem:[%s20282_s4 + $0xb60] ss:$12 sps:$4 sm:$0xff]  }
 0x6bc   : > { %14107 = vmatpush3.bf16.msra.mxu0 %v15742_v18  ;;  %v15787_v18 = vld [vmem:[%s20282_s4 + $0x9c8] ss:$12 sps:$4 sm:$0xff]  }
 0x6bd   : > { %14087 = vmatpush3.bf16.msra.mxu1 %v15744_v22  ;;  %14108 = vmatprep.subr.bf16.mxu0 %v15745_v62  ;;  %v15786_v22 = vld [vmem:[%s20282_s4 + $0xaa0] ss:$12 sps:$4 sm:$0xff]   ;;  %v15788_v62 = vld [vmem:[%s20282_s4 + $0x908] ss:$12 sps:$4 sm:$0xff]  }
 0x6be   : > { %14088 = vmatprep.subr.bf16.mxu1 %v15747_v31  ;;  %v15789_v31 = vld [vmem:[%s20282_s4 + $0xb48] ss:$12 sps:$4 sm:$0xff]  }
 0x6c0   : > { %14109 = vmatpush3.bf16.msra.mxu0 %v15746_v33  ;;  %v15791_v33 = vld [vmem:[%s20282_s4 + $0xd70] ss:$12 sps:$4 sm:$0xff]  }
 0x6c1   : > { %14089 = vmatpush3.bf16.msra.mxu1 %v15748_v29  ;;  %14110 = vmatprep.subr.bf16.mxu0 %v15749_v7  ;;  %v15790_v29 = vld [vmem:[%s20282_s4 + $0xa88] ss:$12 sps:$4 sm:$0xff]   ;;  %v15792_v7 = vld [vmem:[%s20282_s4 + $0xcb0] ss:$12 sps:$4 sm:$0xff]  }
 0x6c2   : > { %14090 = vmatprep.subr.bf16.mxu1 %v15751_v51  ;;  %v15793_v51 = vld [vmem:[%s20282_s4 + $0xef0] ss:$12 sps:$4 sm:$0xff]  }
 0x6c4   : > { %14111 = vmatpush3.bf16.msra.mxu0 %v15750_v9  ;;  %v15795_v9 = vld [vmem:[%s20282_s4 + $0xd58] ss:$12 sps:$4 sm:$0xff]  }
 0x6c5   : > { %14091 = vmatpush3.bf16.msra.mxu1 %v15752_v50  ;;  %14112 = vmatprep.subr.bf16.mxu0 %v15753_v55  ;;  %v15794_v55 = vld [vmem:[%s20282_s4 + $0xe30] ss:$12 sps:$4 sm:$0xff]  }
 0x6c6   : > { %14092 = vmatprep.subr.bf16.mxu1 %v15755_v54 }
 0x6c8   : > { %14113 = vmatpush3.bf16.msra.mxu0 %v15754_v44  ;;  %v15796_v44 = vld [vmem:[%s20282_s4 + $0xc98] ss:$12 sps:$4 sm:$0xff]  }
 0x6c9   : > { %14093 = vmatpush3.bf16.msra.mxu1 %v15756_v24  ;;  %14114 = vmatprep.subr.bf16.mxu0 %v15757_v47  ;;  %v15797_v24 = vld [vmem:[%s20282_s4 + $0xed8] ss:$12 sps:$4 sm:$0xff]  }
 0x6ca   : > { %14122 = vmatprep.subr.bf16.mxu1 %v15759_v27 }
 0x6cc   : > { %14115 = vmatpush3.bf16.msra.mxu0 %v15758_v16  ;;  %11777 = vmatmul.mubr.bf16.vlgmr.msra.gmra.mxu1 %v18274_v60  ;;  %v15767_v60 = vld [vmem:[%s20282_s4 + $0xa40] ss:$12 sps:$4 sm:$0xff]  }
 0x6cd   : > { %14123 = vmatpush3.bf16.msra.mxu1 %v15760_v13  ;;  %11856 = vmatprep.mubr.bf16.mxu1 %v18283_v1  ;;  %v15766_v1 = vld [vmem:[%s20282_s4 + $0xb18] ss:$12 sps:$4 sm:$0xff]  }
 0x6ce   : > { %14144 = vmatprep.subr.bf16.mxu0 %v15761_v15  ;;  %14124 = vmatprep.subr.bf16.mxu1 %v15763_v11  ;;  %v15798_v13 = vld [vmem:[%s20282_s4 + $0xe18] ss:$12 sps:$4 sm:$0xff]  }
 0x6cf   : > { %11817 = vmatmul.mubr.bf16.vlgmr.msra.gmra.mxu0 %v18290_v14  ;;  %v15771_v14 = vld [vmem:[%s20282_s4 + $0xa28] ss:$12 sps:$4 sm:$0xff]  }
 0x6d0   : > { %14145 = vmatpush3.bf16.msra.mxu0 %v15762_v56  ;;  %11896 = vmatprep.mubr.bf16.mxu0 %v18298_v58  ;;  %v15770_v58 = vld [vmem:[%s20282_s4 + $0xb00] ss:$12 sps:$4 sm:$0xff]  }
 0x6d1   : > { %14125 = vmatpush3.bf16.msra.mxu1 %v15764_v26  ;;  %14146 = vmatprep.subr.bf16.mxu0 %v15765_v38  ;;  %v15802_v38 = vld [vmem:[%s20282_s4 + $0xe00] ss:$12 sps:$4 sm:$0xff]  }
 0x6d2   : > { %14126 = vmatprep.subr.bf16.mxu1 %v15767_v60 }
 0x6d4   : > { %14147 = vmatpush3.bf16.msra.mxu0 %v15766_v1  ;;  %v15804_v1 = vld [vmem:[%s20282_s4 + $0xc68] ss:$12 sps:$4 sm:$0xff]  }
 0x6d5   : > { %14127 = vmatpush3.bf16.msra.mxu1 %v15768_v30  ;;  %14148 = vmatprep.subr.bf16.mxu0 %v15769_v39  ;;  %v15805_v30 = vld [vmem:[%s20282_s4 + $0xea8] ss:$12 sps:$4 sm:$0xff]   ;;  %v15807_v39 = vld [vmem:[%s20282_s4 + $0xd10] ss:$12 sps:$4 sm:$0xff]  }
 0x6d6   : > { %14128 = vmatprep.subr.bf16.mxu1 %v15771_v14  ;;  %v15806_v14 = vld [vmem:[%s20282_s4 + $0xde8] ss:$12 sps:$4 sm:$0xff]  }
 0x6d8   : > { %14149 = vmatpush3.bf16.msra.mxu0 %v15770_v58  ;;  %v15808_v58 = vld [vmem:[%s20282_s4 + $0xc50] ss:$12 sps:$4 sm:$0xff]  }
 0x6d9   : > { %14129 = vmatpush3.bf16.msra.mxu1 %v15772_v36  ;;  %14150 = vmatprep.subr.bf16.mxu0 %v15773_v5  ;;  %v15809_v36 = vld [vmem:[%s20282_s4 + $0xe90] ss:$12 sps:$4 sm:$0xff]   ;;  %v15811_v5 = vld [vmem:[%s20282_s4 + $0xcf8] ss:$12 sps:$4 sm:$0xff]  }
 0x6da   : > { %14130 = vmatprep.subr.bf16.mxu1 %v15775_v34  ;;  %v15810_v34 = vld [vmem:[%s20282_s4 + $0xdd0] ss:$12 sps:$4 sm:$0xff]  }
 0x6dc   : > { %14151 = vmatpush3.bf16.msra.mxu0 %v15774_v48  ;;  %v15812_v48 = vld [vmem:[%s20282_s4 + $0xc38] ss:$12 sps:$4 sm:$0xff]  }
 0x6dd   : > { %14131 = vmatpush3.bf16.msra.mxu1 %v15776_v53  ;;  %14152 = vmatprep.subr.bf16.mxu0 %v15777_v3  ;;  %v15813_v53 = vld [vmem:[%s20282_s4 + $0xe78] ss:$12 sps:$4 sm:$0xff]   ;;  %v15815_v3 = vld [vmem:[%s20282_s4 + $0xce0] ss:$12 sps:$4 sm:$0xff]  }
 0x6de   : > { %14132 = vmatprep.subr.bf16.mxu1 %v15779_v20  ;;  %v15814_v20 = vld [vmem:[%s20282_s4 + $0xdb8] ss:$12 sps:$4 sm:$0xff]  }
 0x6e0   : > { %14153 = vmatpush3.bf16.msra.mxu0 %v15778_v63  ;;  %v15816_v63 = vld [vmem:[%s20282_s4 + $0xc20] ss:$12 sps:$4 sm:$0xff]  }
 0x6e1   : > { %14133 = vmatpush3.bf16.msra.mxu1 %v15780_v42  ;;  %14154 = vmatprep.subr.bf16.mxu0 %v15781_v23  ;;  %v15817_v42 = vld [vmem:[%s20282_s4 + $0xe60] ss:$12 sps:$4 sm:$0xff]   ;;  %v15819_v23 = vld [vmem:[%s20282_s4 + $0xcc8] ss:$12 sps:$4 sm:$0xff]  }
 0x6e2   : > { %14134 = vmatprep.subr.bf16.mxu1 %v15783_v35  ;;  %v15818_v35 = vld [vmem:[%s20282_s4 + $0xda0] ss:$12 sps:$4 sm:$0xff]  }
 0x6e4   : > { %14155 = vmatpush3.bf16.msra.mxu0 %v15782_v45  ;;  %v15820_v45 = vld [vmem:[%s20282_s4 + $0xc08] ss:$12 sps:$4 sm:$0xff]  }
 0x6e5   : > { %14135 = vmatpush3.bf16.msra.mxu1 %v15784_v59  ;;  %14156 = vmatprep.subr.bf16.mxu0 %v15785_v21  ;;  %v15821_v59 = vld [vmem:[%s20282_s4 + $0xe48] ss:$12 sps:$4 sm:$0xff]   ;;  %v15823_v21 = vld [vmem:[%s20282_s4 + $0x1070] ss:$12 sps:$4 sm:$0xff]  }
 0x6e6   : > { %14136 = vmatprep.subr.bf16.mxu1 %v15787_v18  ;;  %v15822_v18 = vld [vmem:[%s20282_s4 + $0xd88] ss:$12 sps:$4 sm:$0xff]  }
 0x6e8   : > { %14157 = vmatpush3.bf16.msra.mxu0 %v15786_v22  ;;  %v15824_v22 = vld [vmem:[%s20282_s4 + $0xfb0] ss:$12 sps:$4 sm:$0xff]  }
 0x6e9   : > { %14137 = vmatpush3.bf16.msra.mxu1 %v15788_v62  ;;  %14158 = vmatprep.subr.bf16.mxu0 %v15789_v31  ;;  %v15825_v62 = vld [vmem:[%s20282_s4 + $0x11f0] ss:$12 sps:$4 sm:$0xff]   ;;  %v15827_v31 = vld [vmem:[%s20282_s4 + $0x1058] ss:$12 sps:$4 sm:$0xff]  }
 0x6ea   : > { %14166 = vmatprep.subr.bf16.mxu1 %v15791_v33  ;;  %v15826_v33 = vld [vmem:[%s20282_s4 + $0x1130] ss:$12 sps:$4 sm:$0xff]  }
 0x6ec   : > { %14159 = vmatpush3.bf16.msra.mxu0 %v15790_v29  ;;  %v11454_v50 = vpop.f32.mrf.mxu1  ;;  %11857 = vmatmul.mubr.bf16.vlgmr.msra.gmra.mxu1 %v18490_v40  ;;  %v15799_v40 = vld [vmem:[%s20282_s4 + $0xd40] ss:$12 sps:$4 sm:$0xff]   ;;  %v15828_v29 = vld [vmem:[%s20282_s4 + $0xf98] ss:$12 sps:$4 sm:$0xff]  }
 0x6ed   : > { %v11455_v54 = vadd.f32 %v11454_v50, %v19593_v6  ;;  %14167 = vmatpush3.bf16.msra.mxu1 %v15792_v7  ;;  %11936 = vmatprep.mubr.bf16.mxu1 %v18501_v61  ;;  %v15829_v7 = vld [vmem:[%s20282_s4 + $0x11d8] ss:$12 sps:$4 sm:$0xff]   ;;  %v15836_v50 = vld [vmem:[%s20282_s4 + $0xf68] ss:$12 sps:$4 sm:$0xff]  }
 0x6ee   : > { %v11456_v47 = vpop.f32.mrf.mxu1  ;;  %14188 = vmatprep.subr.bf16.mxu0 %v15793_v51  ;;  %14168 = vmatprep.subr.bf16.mxu1 %v15795_v9  ;;  %v15832_v51 = vld [vmem:[%s20282_s4 + $0xf80] ss:$12 sps:$4 sm:$0xff]  }
 0x6ef   : > { %v11457_v6 = vadd.f32 %v11456_v47, %v19605_v46  ;;  %v11495_v27 = vpop.f32.mrf.mxu0  ;;  %11897 = vmatmul.mubr.bf16.vlgmr.msra.gmra.mxu0 %v18508_v57  ;;  %v15800_v46 = vld [vmem:[%s20282_s4 + $0xc80] ss:$12 sps:$4 sm:$0xff]   ;;  %v15841_v47 = vld [vmem:[%s20282_s4 + $0x1190] ss:$12 sps:$4 sm:$0xff]  }
 0x6f0   : > { %v19799_v61 = vadd.f32 %v11495_v27, %v11455_v54  ;;  %14189 = vmatpush3.bf16.msra.mxu0 %v15794_v55  ;;  %11976 = vmatprep.mubr.bf16.mxu0 %v18516_v52  ;;  %v11458_v16 = vpop.f32.mrf.mxu1  ;;  %v15801_v57 = vld [vmem:[%s20282_s4 + $0xec0] ss:$12 sps:$4 sm:$0xff]   ;;  %v15803_v52 = vld [vmem:[%s20282_s4 + $0xd28] ss:$12 sps:$4 sm:$0xff]   ;;  %v15839_v54 = vld [vmem:[%s20282_s4 + $0x1010] ss:$12 sps:$4 sm:$0xff]  }
 0x6f1   : > { %v11497_v15 = vpop.f32.mrf.mxu0  ;;  %14169 = vmatpush3.bf16.msra.mxu1 %v15796_v44  ;;  %14190 = vmatprep.subr.bf16.mxu0 %v15797_v24  ;;  %v15833_v9 = vld [vmem:[%s20282_s4 + $0x11c0] ss:$12 sps:$4 sm:$0xff]   ;;  %v15837_v55 = vld [vmem:[%s20282_s4 + $0x11a8] ss:$12 sps:$4 sm:$0xff]   ;;  %v15840_v24 = vld [vmem:[%s20282_s4 + $0xf50] ss:$12 sps:$4 sm:$0xff]  }
 0x6f2   : > { %v19811_v11 = vadd.f32 %v11497_v15, %v11457_v6  ;;  %v11459_v56 = vpop.f32.mrf.mxu1  ;;  %14170 = vmatprep.subr.bf16.mxu1 %v15799_v40  ;;  %v15838_v44 = vld [vmem:[%s20282_s4 + $0x10e8] ss:$12 sps:$4 sm:$0xff]   ;;  %v15843_v40 = vld [vmem:[%s20282_s4 + $0xff8] ss:$12 sps:$4 sm:$0xff]   ;;  %v15842_v6 = vld [vmem:[%s20282_s4 + $0x10d0] ss:$12 sps:$4 sm:$0xff]  }
 0x6f3   : > { %v11499_v26 = vpop.f32.mrf.mxu0  ;;  %v15844_v27 = vld [vmem:[%s20282_s4 + $0xf38] ss:$12 sps:$4 sm:$0xff]   ;;  %v15851_v56 = vld [vmem:[%s20282_s4 + $0xfc8] ss:$12 sps:$4 sm:$0xff]  }
 0x6f4   : > { %14191 = vmatpush3.bf16.msra.mxu0 %v15798_v13  ;;  %v15845_v16 = vld [vmem:[%s20282_s4 + $0x1178] ss:$12 sps:$4 sm:$0xff]   ;;  %v15847_v13 = vld [vmem:[%s20282_s4 + $0xfe0] ss:$12 sps:$4 sm:$0xff]   ;;  %v15852_v26 = vld [vmem:[%s20282_s4 + $0xf08] ss:$12 sps:$4 sm:$0xff]  }
 0x6f5   : > { %v11500_v60 = vpop.f32.mrf.mxu0  ;;  %14171 = vmatpush3.bf16.msra.mxu1 %v15800_v46  ;;  %14192 = vmatprep.subr.bf16.mxu0 %v15801_v57  ;;  %v15846_v15 = vld [vmem:[%s20282_s4 + $0x10b8] ss:$12 sps:$4 sm:$0xff]   ;;  %v15848_v46 = vld [vmem:[%s20282_s4 + $0xf20] ss:$12 sps:$4 sm:$0xff]  }
 0x6f6   : > { %14172 = vmatprep.subr.bf16.mxu1 %v15803_v52  ;;  %v15849_v57 = vld [vmem:[%s20282_s4 + $0x1160] ss:$12 sps:$4 sm:$0xff]   ;;  %v15855_v60 = vld [vmem:[%s20282_s4 + $0x1370] ss:$12 sps:$4 sm:$0xff]  }
 0x6f7   : > { %v15850_v52 = vld [vmem:[%s20282_s4 + $0x10a0] ss:$12 sps:$4 sm:$0xff]  }
 0x6f8   : > { %14193 = vmatpush3.bf16.msra.mxu0 %v15802_v38  ;;  %v15853_v38 = vld [vmem:[%s20282_s4 + $0x1148] ss:$12 sps:$4 sm:$0xff]  }
 0x6f9   : > { %14173 = vmatpush3.bf16.msra.mxu1 %v15804_v1  ;;  %14194 = vmatprep.subr.bf16.mxu0 %v15805_v30  ;;  %v15854_v1 = vld [vmem:[%s20282_s4 + $0x1088] ss:$12 sps:$4 sm:$0xff]   ;;  %v15856_v30 = vld [vmem:[%s20282_s4 + $0x12b0] ss:$12 sps:$4 sm:$0xff]  }
 0x6fa   : > { %14174 = vmatprep.subr.bf16.mxu1 %v15807_v39  ;;  %v15857_v39 = vld [vmem:[%s20282_s4 + $0x14f0] ss:$12 sps:$4 sm:$0xff]  }
 0x6fc   : > { %14195 = vmatpush3.bf16.msra.mxu0 %v15806_v14  ;;  %v15859_v14 = vld [vmem:[%s20282_s4 + $0x1358] ss:$12 sps:$4 sm:$0xff]  }
 0x6fd   : > { %14175 = vmatpush3.bf16.msra.mxu1 %v15808_v58  ;;  %14196 = vmatprep.subr.bf16.mxu0 %v15809_v36  ;;  %v15858_v36 = vld [vmem:[%s20282_s4 + $0x1430] ss:$12 sps:$4 sm:$0xff]  }
 0x6fe   : > { %14176 = vmatprep.subr.bf16.mxu1 %v15811_v5 }
 0x700   : > { %14197 = vmatpush3.bf16.msra.mxu0 %v15810_v34  ;;  %v15860_v34 = vld [vmem:[%s20282_s4 + $0x1298] ss:$12 sps:$4 sm:$0xff]  }
 0x701   : > { %14177 = vmatpush3.bf16.msra.mxu1 %v15812_v48  ;;  %14198 = vmatprep.subr.bf16.mxu0 %v15813_v53  ;;  %v15861_v48 = vld [vmem:[%s20282_s4 + $0x14d8] ss:$12 sps:$4 sm:$0xff]  }
 0x702   : > { %14178 = vmatprep.subr.bf16.mxu1 %v15815_v3 }
 0x704   : > { %14199 = vmatpush3.bf16.msra.mxu0 %v15814_v20  ;;  %v15862_v20 = vld [vmem:[%s20282_s4 + $0x1418] ss:$12 sps:$4 sm:$0xff]  }
 0x705   : > { %14179 = vmatpush3.bf16.msra.mxu1 %v15816_v63  ;;  %14200 = vmatprep.subr.bf16.mxu0 %v15817_v42  ;;  %v15864_v42 = vld [vmem:[%s20282_s4 + $0x1280] ss:$12 sps:$4 sm:$0xff]  }
 0x706   : > { %14180 = vmatprep.subr.bf16.mxu1 %v15819_v23 }
 0x708   : > { %14201 = vmatpush3.bf16.msra.mxu0 %v15818_v35 }
 0x709   : > { %14181 = vmatpush3.bf16.msra.mxu1 %v15820_v45  ;;  %14202 = vmatprep.subr.bf16.mxu0 %v15821_v59  ;;  %v15866_v45 = vld [vmem:[%s20282_s4 + $0x1400] ss:$12 sps:$4 sm:$0xff]  }
 0x70a   : > { %14210 = vmatprep.subr.bf16.mxu1 %v15823_v21  ;;  %v15868_v21 = vld [vmem:[%s20282_s4 + $0x1268] ss:$12 sps:$4 sm:$0xff]  }
 0x70c   : > { %14203 = vmatpush3.bf16.msra.mxu0 %v15822_v18  ;;  %11937 = vmatmul.mubr.bf16.vlgmr.msra.gmra.mxu1 %v18709_v43  ;;  %v15831_v43 = vld [vmem:[%s20282_s4 + $0x1040] ss:$12 sps:$4 sm:$0xff]   ;;  %v15869_v18 = vld [vmem:[%s20282_s4 + $0x14a8] ss:$12 sps:$4 sm:$0xff]  }
 0x70d   : > { %14211 = vmatpush3.bf16.msra.mxu1 %v15824_v22  ;;  %12016 = vmatprep.mubr.bf16.mxu1 %v18718_v8  ;;  %v15830_v8 = vld [vmem:[%s20282_s4 + $0x1118] ss:$12 sps:$4 sm:$0xff]   ;;  %v15871_v22 = vld [vmem:[%s20282_s4 + $0x1310] ss:$12 sps:$4 sm:$0xff]  }
 0x70e   : > { %14232 = vmatprep.subr.bf16.mxu0 %v15825_v62  ;;  %14212 = vmatprep.subr.bf16.mxu1 %v15827_v31  ;;  %v15870_v62 = vld [vmem:[%s20282_s4 + $0x13e8] ss:$12 sps:$4 sm:$0xff]   ;;  %v15872_v31 = vld [vmem:[%s20282_s4 + $0x1250] ss:$12 sps:$4 sm:$0xff]  }
 0x70f   : > { %11977 = vmatmul.mubr.bf16.vlgmr.msra.gmra.mxu0 %v18726_v49  ;;  %v15835_v49 = vld [vmem:[%s20282_s4 + $0x1028] ss:$12 sps:$4 sm:$0xff]  }
 0x710   : > { %14233 = vmatpush3.bf16.msra.mxu0 %v15826_v33  ;;  %12056 = vmatprep.mubr.bf16.mxu0 %v18734_v0  ;;  %v15834_v0 = vld [vmem:[%s20282_s4 + $0x1100] ss:$12 sps:$4 sm:$0xff]   ;;  %v15873_v33 = vld [vmem:[%s20282_s4 + $0x1490] ss:$12 sps:$4 sm:$0xff]  }
 0x711   : > { %14213 = vmatpush3.bf16.msra.mxu1 %v15828_v29  ;;  %14234 = vmatprep.subr.bf16.mxu0 %v15829_v7  ;;  %v15875_v29 = vld [vmem:[%s20282_s4 + $0x12f8] ss:$12 sps:$4 sm:$0xff]   ;;  %v15874_v7 = vld [vmem:[%s20282_s4 + $0x13d0] ss:$12 sps:$4 sm:$0xff]  }
 0x712   : > { %14214 = vmatprep.subr.bf16.mxu1 %v15831_v43  ;;  %v15876_v43 = vld [vmem:[%s20282_s4 + $0x1238] ss:$12 sps:$4 sm:$0xff]  }
 0x714   : > { %14235 = vmatpush3.bf16.msra.mxu0 %v15830_v8  ;;  %v15877_v8 = vld [vmem:[%s20282_s4 + $0x1478] ss:$12 sps:$4 sm:$0xff]  }
 0x715   : > { %14215 = vmatpush3.bf16.msra.mxu1 %v15832_v51  ;;  %14236 = vmatprep.subr.bf16.mxu0 %v15833_v9  ;;  %v15879_v51 = vld [vmem:[%s20282_s4 + $0x12e0] ss:$12 sps:$4 sm:$0xff]   ;;  %v15878_v9 = vld [vmem:[%s20282_s4 + $0x13b8] ss:$12 sps:$4 sm:$0xff]  }
 0x716   : > { %14216 = vmatprep.subr.bf16.mxu1 %v15835_v49  ;;  %v15880_v49 = vld [vmem:[%s20282_s4 + $0x1220] ss:$12 sps:$4 sm:$0xff]  }
 0x718   : > { %14237 = vmatpush3.bf16.msra.mxu0 %v15834_v0  ;;  %v15881_v0 = vld [vmem:[%s20282_s4 + $0x1460] ss:$12 sps:$4 sm:$0xff]  }
 0x719   : > { %14217 = vmatpush3.bf16.msra.mxu1 %v15836_v50  ;;  %14238 = vmatprep.subr.bf16.mxu0 %v15837_v55  ;;  %v15883_v50 = vld [vmem:[%s20282_s4 + $0x12c8] ss:$12 sps:$4 sm:$0xff]   ;;  %v15882_v55 = vld [vmem:[%s20282_s4 + $0x13a0] ss:$12 sps:$4 sm:$0xff]  }
 0x71a   : > { %14218 = vmatprep.subr.bf16.mxu1 %v15839_v54  ;;  %v15884_v54 = vld [vmem:[%s20282_s4 + $0x1208] ss:$12 sps:$4 sm:$0xff]  }
 0x71c   : > { %14239 = vmatpush3.bf16.msra.mxu0 %v15838_v44  ;;  %v15885_v44 = vld [vmem:[%s20282_s4 + $0x1448] ss:$12 sps:$4 sm:$0xff]  }
 0x71d   : > { %14219 = vmatpush3.bf16.msra.mxu1 %v15840_v24  ;;  %14240 = vmatprep.subr.bf16.mxu0 %v15841_v47  ;;  %v15887_v24 = vld [vmem:[%s20282_s4 + $0x1670] ss:$12 sps:$4 sm:$0xff]   ;;  %v15886_v47 = vld [vmem:[%s20282_s4 + $0x1388] ss:$12 sps:$4 sm:$0xff]  }
 0x71e   : > { %14220 = vmatprep.subr.bf16.mxu1 %v15843_v40  ;;  %v15888_v40 = vld [vmem:[%s20282_s4 + $0x15b0] ss:$12 sps:$4 sm:$0xff]  }
 0x720   : > { %14241 = vmatpush3.bf16.msra.mxu0 %v15842_v6  ;;  %v10923_v6 = vsub.s32 2, %v20308_v4  ;;  %v15943_v4 = vld [vmem:[%s20283_s5] sm:$0x7] }
 0x721   : > { %14221 = vmatpush3.bf16.msra.mxu1 %v15844_v27  ;;  %14242 = vmatprep.subr.bf16.mxu0 %v15845_v16  ;;  %v15889_v27 = vld [vmem:[%s20282_s4 + $0x17f0] ss:$12 sps:$4 sm:$0xff]   ;;  %v15891_v16 = vld [vmem:[%s20282_s4 + $0x1658] ss:$12 sps:$4 sm:$0xff]  }
 0x722   : > { %14222 = vmatprep.subr.bf16.mxu1 %v15847_v13 }
 0x724   : > { %14243 = vmatpush3.bf16.msra.mxu0 %v15846_v15  ;;  %v15890_v15 = vld [vmem:[%s20282_s4 + $0x1730] ss:$12 sps:$4 sm:$0xff]  }
 0x725   : > { %14223 = vmatpush3.bf16.msra.mxu1 %v15848_v46  ;;  %14244 = vmatprep.subr.bf16.mxu0 %v15849_v57  ;;  %v10924_v46 = vrot.slane %v15943_v4, %v10923_v6  ;;  %v15892_v57 = vld [vmem:[%s20282_s4 + $0x1598] ss:$12 sps:$4 sm:$0xff]  }
 0x726   : > { %14224 = vmatprep.subr.bf16.mxu1 %v15851_v56 }
 0x728   : > { %14245 = vmatpush3.bf16.msra.mxu0 %v15850_v52 }
 0x729   : > { %14225 = vmatpush3.bf16.msra.mxu1 %v15852_v26  ;;  %14246 = vmatprep.subr.bf16.mxu0 %v15853_v38 }
 0x72a   : > { %14254 = vmatprep.subr.bf16.mxu1 %v15855_v60  ;;  %v15894_v60 = vld [vmem:[%s20282_s4 + $0x1718] ss:$12 sps:$4 sm:$0xff]  }
 0x72c   : > { %14247 = vmatpush3.bf16.msra.mxu0 %v15854_v1  ;;  %v11536_v58 = vpop.f32.mrf.mxu1  ;;  %12017 = vmatmul.mubr.bf16.vlgmr.msra.gmra.mxu1 %v18926_v41  ;;  %v15863_v41 = vld [vmem:[%s20282_s4 + $0x1340] ss:$12 sps:$4 sm:$0xff]  }
 0x72d   : > { %v11537_v5 = vadd.f32 %v11536_v58, %v19799_v61  ;;  %14255 = vmatpush3.bf16.msra.mxu1 %v15856_v30  ;;  %12096 = vmatprep.mubr.bf16.mxu1 %v18937_v10 }
 0x72e   : > { %v20000_v53 = vpop.f32.mrf.mxu1  ;;  %14276 = vmatprep.subr.bf16.mxu0 %v15857_v39  ;;  %14256 = vmatprep.subr.bf16.mxu1 %v15859_v14  ;;  %v15896_v39 = vld [vmem:[%s20282_s4 + $0x1580] ss:$12 sps:$4 sm:$0xff]  }
 0x72f   : > { %v11577_v61 = vpop.f32.mrf.mxu0  ;;  %12057 = vmatmul.mubr.bf16.vlgmr.msra.gmra.mxu0 %v18945_v19  ;;  %v15865_v19 = vld [vmem:[%s20282_s4 + $0x14c0] ss:$12 sps:$4 sm:$0xff]  }
 0x730   : > { %v20006_v10 = vadd.f32 %v11577_v61, %v11537_v5  ;;  %14277 = vmatpush3.bf16.msra.mxu0 %v15858_v36  ;;  %12136 = vmatprep.mubr.bf16.mxu0 %v18953_v2  ;;  %v11540_v3 = vpop.f32.mrf.mxu1  ;;  %v15867_v2 = vld [vmem:[%s20282_s4 + $0x1328] ss:$12 sps:$4 sm:$0xff]  }
 0x731   : > { %v20012_v63 = vpop.f32.mrf.mxu0  ;;  %14257 = vmatpush3.bf16.msra.mxu1 %v15860_v34  ;;  %14278 = vmatprep.subr.bf16.mxu0 %v15861_v48  ;;  %v15898_v34 = vld [vmem:[%s20282_s4 + $0x1700] ss:$12 sps:$4 sm:$0xff]   ;;  %v15901_v61 = vld [vmem:[%s20282_s4 + $0x17a8] ss:$12 sps:$4 sm:$0xff]   ;;  %v15903_v3 = vld [vmem:[%s20282_s4 + $0x1610] ss:$12 sps:$4 sm:$0xff]  }
 0x732   : > { %v11541_v23 = vpop.f32.mrf.mxu1  ;;  %14258 = vmatprep.subr.bf16.mxu1 %v15863_v41  ;;  %v15900_v41 = vld [vmem:[%s20282_s4 + $0x1568] ss:$12 sps:$4 sm:$0xff]  }
 0x733   : > { %v11581_v35 = vpop.f32.mrf.mxu0  ;;  %v15907_v23 = vld [vmem:[%s20282_s4 + $0x15f8] ss:$12 sps:$4 sm:$0xff]  }
 0x734   : > { %14279 = vmatpush3.bf16.msra.mxu0 %v15862_v20  ;;  %v15902_v20 = vld [vmem:[%s20282_s4 + $0x16e8] ss:$12 sps:$4 sm:$0xff]   ;;  %v15908_v35 = vld [vmem:[%s20282_s4 + $0x1538] ss:$12 sps:$4 sm:$0xff]  }
 0x735   : > { %v11582_v59 = vpop.f32.mrf.mxu0  ;;  %14259 = vmatpush3.bf16.msra.mxu1 %v15864_v42  ;;  %14280 = vmatprep.subr.bf16.mxu0 %v15865_v19  ;;  %v15904_v42 = vld [vmem:[%s20282_s4 + $0x1550] ss:$12 sps:$4 sm:$0xff]  }
 0x736   : > { %14260 = vmatprep.subr.bf16.mxu1 %v15867_v2  ;;  %v15905_v19 = vld [vmem:[%s20282_s4 + $0x1790] ss:$12 sps:$4 sm:$0xff]   ;;  %v15911_v59 = vld [vmem:[%s20282_s4 + $0x15e0] ss:$12 sps:$4 sm:$0xff]  }
 0x737   : > { %v15906_v2 = vld [vmem:[%s20282_s4 + $0x16d0] ss:$12 sps:$4 sm:$0xff]  }
 0x738   : > { %14281 = vmatpush3.bf16.msra.mxu0 %v15866_v45  ;;  %v15909_v45 = vld [vmem:[%s20282_s4 + $0x1778] ss:$12 sps:$4 sm:$0xff]  }
 0x739   : > { %14261 = vmatpush3.bf16.msra.mxu1 %v15868_v21  ;;  %14282 = vmatprep.subr.bf16.mxu0 %v15869_v18  ;;  %v11539_v21 = vadd.f32 %v20000_v53, %v19811_v11  ;;  %v15910_v18 = vld [vmem:[%s20282_s4 + $0x16b8] ss:$12 sps:$4 sm:$0xff]   ;;  %v15915_v11 = vld [vmem:[%s20282_s4 + $0x15c8] ss:$12 sps:$4 sm:$0xff]  }
 0x73a   : > { %14262 = vmatprep.subr.bf16.mxu1 %v15871_v22  ;;  %v15912_v22 = vld [vmem:[%s20282_s4 + $0x1520] ss:$12 sps:$4 sm:$0xff]  }
 0x73b   : > { %v11580_v53 = vadd.f32 %v20012_v63, %v11539_v21  ;;  %v15919_v63 = vld [vmem:[%s20284_s6 + $0x78] sm:$0xff]  }
 0x73c   : > { %14283 = vmatpush3.bf16.msra.mxu0 %v15870_v62  ;;  %v15913_v62 = vld [vmem:[%s20282_s4 + $0x1760] ss:$12 sps:$4 sm:$0xff]  }
 0x73d   : > { %14263 = vmatpush3.bf16.msra.mxu1 %v15872_v31  ;;  %14284 = vmatprep.subr.bf16.mxu0 %v15873_v33  ;;  %v15914_v31 = vld [vmem:[%s20282_s4 + $0x16a0] ss:$12 sps:$4 sm:$0xff]   ;;  %v15916_v33 = vld [vmem:[%s20282_s4 + $0x1508] ss:$12 sps:$4 sm:$0xff]  }
 0x73e   : > { %14264 = vmatprep.subr.bf16.mxu1 %v15875_v29  ;;  %v15917_v29 = vld [vmem:[%s20282_s4 + $0x1748] ss:$12 sps:$4 sm:$0xff]  }
 0x740   : > { %14285 = vmatpush3.bf16.msra.mxu0 %v15874_v7  ;;  %v12225_v7 = vmax.f32 %v11580_v53, 0.0 }
 0x741   : > { %14265 = vmatpush3.bf16.msra.mxu1 %v15876_v43  ;;  %14286 = vmatprep.subr.bf16.mxu0 %v15877_v8  ;;  %v15918_v43 = vld [vmem:[%s20282_s4 + $0x1688] ss:$12 sps:$4 sm:$0xff]   ;;  %v15920_v8 = vld [vmem:[%s20284_s6 + $0x38] sm:$0xff]  }
 0x742   : > { %14266 = vmatprep.subr.bf16.mxu1 %v15879_v51  ;;  %v15921_v51 = vld [vmem:[%s20284_s6 + $0x70] sm:$0xff]  }
 0x744   : > { %14287 = vmatpush3.bf16.msra.mxu0 %v15878_v9  ;;  %v12228_v9 = vpack.c.bf16 %v12225_v7, %v12225_v7  ;;  %v15942_v7 = vld [vmem:[%s20284_s6 + $0x80] sm:$0xff]  }
 0x745   : > { %14267 = vmatpush3.bf16.msra.mxu1 %v15880_v49  ;;  %14288 = vmatprep.subr.bf16.mxu0 %v15881_v0  ;;  %v15922_v0 = vld [vmem:[%s20284_s6 + $0x30] sm:$0xff]  }
 0x746   : > { %14268 = vmatprep.subr.bf16.mxu1 %v15883_v50 }
 0x748   : > { %14289 = vmatpush3.bf16.msra.mxu0 %v15882_v55  ;;  %v15923_v55 = vld [vmem:[%s20284_s6 + $0x68] sm:$0xff]  }
 0x749   : > { %14269 = vmatpush3.bf16.msra.mxu1 %v15884_v54  ;;  %14290 = vmatprep.subr.bf16.mxu0 %v15885_v44 }
 0x74a   : > { %14298 = vmatprep.subr.bf16.mxu1 %v15887_v24 }
 0x74c   : > { %14291 = vmatpush3.bf16.msra.mxu0 %v15886_v47  ;;  %v14006_v13 = vpop.f32.mrf.mxu1  ;;  %12097 = vmatmul.mubr.bf16.vlgmr.msra.gmra.mxu1 %v19147_v12  ;;  %v15893_v12 = vld [vmem:[%s20282_s4 + $0x17d8] ss:$12 sps:$4 sm:$0xff]  }
 0x74d   : > { %14299 = vmatpush3.bf16.msra.mxu1 %v15888_v40  ;;  %12176 = vmatprep.mubr.bf16.mxu1 %v19156_v32  ;;  %v15895_v32 = vld [vmem:[%s20282_s4 + $0x1640] ss:$12 sps:$4 sm:$0xff]  }
 0x74e   : > { %v14007_v56 = vpop.f32.mrf.mxu1  ;;  %14320 = vmatprep.subr.bf16.mxu0 %v15889_v27  ;;  %14300 = vmatprep.subr.bf16.mxu1 %v15891_v16  ;;  %v15924_v40 = vld [vmem:[%s20284_s6 + $0x28] sm:$0xff]   ;;  %v15925_v16 = vld [vmem:[%s20284_s6 + $0x60] sm:$0xff]  }
 0x74f   : > { %v14008_v52 = vadd.f32 %v14007_v56, %v14006_v13  ;;  %v14028_v26 = vpop.f32.mrf.mxu0  ;;  %12137 = vmatmul.mubr.bf16.vlgmr.msra.gmra.mxu0 %v19164_v25  ;;  %v15897_v25 = vld [vmem:[%s20282_s4 + $0x17c0] ss:$12 sps:$4 sm:$0xff]   ;;  %v15930_v56 = vld [vmem:[%s20284_s6 + $0x10] sm:$0xff]  }
 0x750   : > { %14321 = vmatpush3.bf16.msra.mxu0 %v15890_v15  ;;  %12216 = vmatprep.mubr.bf16.mxu0 %v19172_v37  ;;  %v14009_v38 = vpop.f32.mrf.mxu1  ;;  %v15899_v37 = vld [vmem:[%s20282_s4 + $0x1628] ss:$12 sps:$4 sm:$0xff]  }
 0x751   : > { %v11619_v1 = vadd.f32 %v14008_v52, %v10924_v46  ;;  %v14029_v30 = vpop.f32.mrf.mxu0  ;;  %14301 = vmatpush3.bf16.msra.mxu1 %v15892_v57  ;;  %14322 = vmatprep.subr.bf16.mxu0 %v15893_v12  ;;  %v15927_v46 = vld [vmem:[%s20284_s6 + $0x58] sm:$0xff]   ;;  %v15929_v12 = vld [vmem:[%s20284_s6 + $0x50] sm:$0xff]   ;;  %v15932_v52 = vld [vmem:[%s20284_s6 + $0x8] sm:$0xff]  }
 0x752   : > { %v14030_v14 = vadd.f32 %v14029_v30, %v14028_v26  ;;  %v14010_v58 = vpop.f32.mrf.mxu1  ;;  %14302 = vmatprep.subr.bf16.mxu1 %v15895_v32  ;;  %v15928_v57 = vld [vmem:[%s20284_s6 + $0x18] sm:$0xff]   ;;  %v15931_v32 = vld [vmem:[%s20284_s6 + $0x48] sm:$0xff]   ;;  %v15933_v26 = vld [vmem:[%s20284_s6 + $0x40] sm:$0xff]  }
 0x753   : > { %v14031_v36 = vpop.f32.mrf.mxu0  ;;  %v15934_v38 = vld [vmem:[%s20284_s6] sm:$0xff]  }
 0x754   : > { %v20127_v5 = vadd.f32 %v14030_v14, %v11619_v1  ;;  %14323 = vmatpush3.bf16.msra.mxu0 %v15894_v60  ;;  %v12224_v60 = vmax.f32 %v20006_v10, 0.0  ;;  %v15935_v10 = vld [vmem:[%s20284_s6 + $0xb8] sm:$0xff]  }
 0x755   : > { %v14032_v48 = vpop.f32.mrf.mxu0  ;;  %14303 = vmatpush3.bf16.msra.mxu1 %v15896_v39  ;;  %14324 = vmatprep.subr.bf16.mxu0 %v15897_v25 }
 0x756   : > { %14304 = vmatprep.subr.bf16.mxu1 %v15899_v37  ;;  %v12227_v1 = vpack.c.bf16 %v12224_v60, %v12224_v60 }
 0x758   : > { %14325 = vmatpush3.bf16.msra.mxu0 %v15898_v34 }
 0x759   : > { %14305 = vmatpush3.bf16.msra.mxu1 %v15900_v41  ;;  %14326 = vmatprep.subr.bf16.mxu0 %v15901_v61 }
 0x75a   : > { %14306 = vmatprep.subr.bf16.mxu1 %v15903_v3  ;;  %v15954_v3 = vmov 0.0  }
 0x75c   : > { %14327 = vmatpush3.bf16.msra.mxu0 %v15902_v20  ;;  %v15936_v20 = vld [vmem:[%s20284_s6 + $0xb0] sm:$0xff]  }
 0x75d   : > { %14307 = vmatpush3.bf16.msra.mxu1 %v15904_v42  ;;  %14328 = vmatprep.subr.bf16.mxu0 %v15905_v19  ;;  %v15937_v42 = vld [vmem:[%s20284_s6 + $0xa8] sm:$0xff]   ;;  %v15938_v19 = vld [vmem:[%s20284_s6 + $0xa0] sm:$0xff]  }
 0x75e   : > { %14308 = vmatprep.subr.bf16.mxu1 %v15907_v23  ;;  %v15939_v23 = vld [vmem:[%s20284_s6 + $0x98] sm:$0xff]  }
 0x760   : > { %14329 = vmatpush3.bf16.msra.mxu0 %v15906_v2 }
 0x761   : > { %14309 = vmatpush3.bf16.msra.mxu1 %v15908_v35  ;;  %14330 = vmatprep.subr.bf16.mxu0 %v15909_v45 }
 0x762   : > { %14310 = vmatprep.subr.bf16.mxu1 %v15911_v59 }
 0x764   : > { %14331 = vmatpush3.bf16.msra.mxu0 %v15910_v18  ;;  %v15940_v18 = vld [vmem:[%s20284_s6 + $0x90] sm:$0xff]  }
 0x765   : > { %14311 = vmatpush3.bf16.msra.mxu1 %v15912_v22  ;;  %14332 = vmatprep.subr.bf16.mxu0 %v15913_v62 }
 0x766   : > { %14312 = vmatprep.subr.bf16.mxu1 %v15915_v11 }
 0x768   : > { %14333 = vmatpush3.bf16.msra.mxu0 %v15914_v31 }
 0x769   : > { %14313 = vmatpush3.bf16.msra.mxu1 %v15916_v33  ;;  %14334 = vmatprep.subr.bf16.mxu0 %v15917_v29  ;;  %v15941_v29 = vld [vmem:[%s20284_s6 + $0x88] sm:$0xff]  }
 0x76a   : > { %14342 = vmatprep.subr.bf16.mxu1 %v15919_v63 }
 0x76c   : > { %14335 = vmatpush3.bf16.msra.mxu0 %v15918_v43  ;;  %v14050_v49 = vpop.f32.mrf.mxu1  ;;  %12177 = vmatmul.mubr.bf16.vlgmr.msra.gmra.mxu1 %v19360_v17 }
 0x76d   : > { %14343 = vmatpush3.bf16.msra.mxu1 %v15920_v8  ;;  %12455 = vmatprep.mubr.bf16.mxu1 %v12228_v9 }
 0x76e   : > { %v14051_v50 = vpop.f32.mrf.mxu1  ;;  %14344 = vmatprep.subr.bf16.mxu1 %v15921_v51  ;;  %14545 = vmatprep.subr.bf16.mxu0 %v15954_v3 }
 0x76f   : > { %v14052_v54 = vadd.f32 %v14051_v50, %v14050_v49  ;;  %v14072_v44 = vpop.f32.mrf.mxu0  ;;  %12217 = vmatmul.mubr.bf16.vlgmr.msra.gmra.mxu0 %v19374_v28  ;;  %v15926_v28 = vld [vmem:[%s20284_s6 + $0x20] sm:$0xff]  }
 0x770   : > { %v14053_v24 = vpop.f32.mrf.mxu1  ;;  %14546 = vmatpush3.bf16.msra.mxu0 %v15935_v10  ;;  %14561 = vmatprep.mubr.msk.bf16.mxu0 %vm15955_vm7, %v15954_v3 }
 0x771   : > { %v11699_v47 = vadd.f32 %v14052_v54, %v20127_v5  ;;  %v14073_v17 = vpop.f32.mrf.mxu0  ;;  %14345 = vmatpush3.bf16.msra.mxu1 %v15922_v0  ;;  %14547 = vmatprep.subr.bf16.mxu0 %v15954_v3 }
 0x772   : > { %v14074_v6 = vadd.f32 %v14073_v17, %v14072_v44  ;;  %v14054_v27 = vpop.f32.mrf.mxu1  ;;  %14346 = vmatprep.subr.bf16.mxu1 %v15923_v55 }
 0x773   : > { %v14075_v13 = vpop.f32.mrf.mxu0 }
 0x774   : > { %v11739_v15 = vadd.f32 %v14074_v6, %v11699_v47  ;;  %14548 = vmatpush3.bf16.msra.mxu0 %v15936_v20 }
 0x775   : > { %v14076_v4 = vpop.f32.mrf.mxu0  ;;  %14347 = vmatpush3.bf16.msra.mxu1 %v15924_v40  ;;  %14549 = vmatprep.subr.bf16.mxu0 %v15954_v3 }
 0x776   : > { %14348 = vmatprep.subr.bf16.mxu1 %v15925_v16 }
 0x778   : > { %14550 = vmatpush3.bf16.msra.mxu0 %v15937_v42 }
 0x779   : > { %14349 = vmatpush3.bf16.msra.mxu1 %v15926_v28  ;;  %14551 = vmatprep.subr.bf16.mxu0 %v15954_v3 }
 0x77a   : > { %14350 = vmatprep.subr.bf16.mxu1 %v15927_v46 }
 0x77c   : > { %14552 = vmatpush3.bf16.msra.mxu0 %v15938_v19 }
 0x77d   : > { %14351 = vmatpush3.bf16.msra.mxu1 %v15928_v57  ;;  %14553 = vmatprep.subr.bf16.mxu0 %v15954_v3 }
 0x77e   : > { %14352 = vmatprep.subr.bf16.mxu1 %v15929_v12 }
 0x780   : > { %14554 = vmatpush3.bf16.msra.mxu0 %v15939_v23 }
 0x781   : > { %14353 = vmatpush3.bf16.msra.mxu1 %v15930_v56  ;;  %14555 = vmatprep.subr.bf16.mxu0 %v15954_v3 }
 0x782   : > { %14354 = vmatprep.subr.bf16.mxu1 %v15931_v32 }
 0x784   : > { %14556 = vmatpush3.bf16.msra.mxu0 %v15940_v18 }
 0x785   : > { %14355 = vmatpush3.bf16.msra.mxu1 %v15932_v52  ;;  %14557 = vmatprep.subr.bf16.mxu0 %v15954_v3 }
 0x786   : > { %14356 = vmatprep.subr.bf16.mxu1 %v15933_v26 }
 0x788   : > { %14558 = vmatpush3.bf16.msra.mxu0 %v15941_v29 }
 0x789   : > { %14357 = vmatpush3.bf16.msra.mxu1 %v15934_v38  ;;  %14559 = vmatprep.subr.bf16.mxu0 %v15954_v3 }
 0x78c   : > { %v14094_v30 = vpop.f32.mrf.mxu1  ;;  %12456 = vmatmul.mubr.bf16.vlgmr.msra.gmra.mxu1 %v12227_v1  ;;  %14560 = vmatpush3.bf16.msra.mxu0 %v15942_v7 }
 0x78e   : > { %v14095_v39 = vpop.f32.mrf.mxu1 }
 0x78f   : > { %v14096_v25 = vadd.f32 %v14095_v39, %v14094_v30  ;;  %v14116_v14 = vpop.f32.mrf.mxu0 }
 0x790   : > { %v14097_v58 = vpop.f32.mrf.mxu1 }
 0x791   : > { %v11779_v37 = vadd.f32 %v14096_v25, %v11739_v15  ;;  %v14117_v36 = vpop.f32.mrf.mxu0 }
 0x792   : > { %v14118_v5 = vadd.f32 %v14117_v36, %v14116_v14  ;;  %v14098_v34 = vpop.f32.mrf.mxu1 }
 0x793   : > { %v14119_v48 = vpop.f32.mrf.mxu0 }
 0x794   : > { %v11819_v41 = vadd.f32 %v14118_v5, %v11779_v37 }
 0x795   : > { %v14120_v61 = vpop.f32.mrf.mxu0 }
 0x7ac   : > { %v14138_v2 = vpop.f32.mrf.mxu1 }
 0x7ae   : > { %v14139_v35 = vpop.f32.mrf.mxu1 }
 0x7af   : > { %v14140_v45 = vadd.f32 %v14139_v35, %v14138_v2  ;;  %v14160_v59 = vpop.f32.mrf.mxu0 }
 0x7b0   : > { %v14141_v21 = vpop.f32.mrf.mxu1 }
 0x7b1   : > { %v11859_v22 = vadd.f32 %v14140_v45, %v11819_v41  ;;  %v14161_v62 = vpop.f32.mrf.mxu0 }
 0x7b2   : > { %v14162_v11 = vadd.f32 %v14161_v62, %v14160_v59  ;;  %v14142_v53 = vpop.f32.mrf.mxu1 }
 0x7b3   : > { %v14163_v31 = vpop.f32.mrf.mxu0 }
 0x7b4   : > { %v11899_v33 = vadd.f32 %v14162_v11, %v11859_v22  ;;  %v12278_v22 = vld [vmem:[%s20285_s7] sm:$0x1] }
 0x7b5   : > { %v14164_v63 = vpop.f32.mrf.mxu0 }
 0x7cc   : > { %v14182_v43 = vpop.f32.mrf.mxu1 }
 0x7ce   : > { %v14183_v8 = vpop.f32.mrf.mxu1 }
 0x7cf   : > { %v14184_v51 = vadd.f32 %v14183_v8, %v14182_v43  ;;  %v14204_v9 = vpop.f32.mrf.mxu0 }
 0x7d0   : > { %v14185_v49 = vpop.f32.mrf.mxu1 }
 0x7d1   : > { %v11939_v0 = vadd.f32 %v14184_v51, %v11899_v33  ;;  %v14205_v50 = vpop.f32.mrf.mxu0 }
 0x7d2   : > { %v14206_v55 = vadd.f32 %v14205_v50, %v14204_v9  ;;  %v14186_v54 = vpop.f32.mrf.mxu1 }
 0x7d3   : > { %v14207_v44 = vpop.f32.mrf.mxu0 }
 0x7d4   : > { %v11979_v24 = vadd.f32 %v14206_v55, %v11939_v0 }
 0x7d5   : > { %v14208_v47 = vpop.f32.mrf.mxu0 }
 0x7ec   : > { %v14226_v17 = vpop.f32.mrf.mxu1 }
 0x7ee   : > { %v14227_v40 = vpop.f32.mrf.mxu1 }
 0x7ef   : > { %v14248_v6 = vpop.f32.mrf.mxu0  ;;  %v14228_v38 = vadd.f32 %v14227_v40, %v14226_v17 }
 0x7f0   : > { %v14229_v27 = vpop.f32.mrf.mxu1 }
 0x7f1   : > { %v14249_v16 = vpop.f32.mrf.mxu0  ;;  %v12019_v60 = vadd.f32 %v14228_v38, %v11979_v24 }
 0x7f2   : > { %v14230_v13 = vpop.f32.mrf.mxu1  ;;  %v14250_v1 = vadd.f32 %v14249_v16, %v14248_v6 }
 0x7f3   : > { %v14251_v15 = vpop.f32.mrf.mxu0 }
 0x7f4   : > { %v12059_v39 = vadd.f32 %v14250_v1, %v12019_v60 }
 0x7f5   : > { %v14252_v4 = vpop.f32.mrf.mxu0 }
 0x80c   : > { %v14270_v28 = vpop.f32.mrf.mxu1 }
 0x80e   : > { %v14271_v46 = vpop.f32.mrf.mxu1 }
 0x80f   : > { %v14292_v57 = vpop.f32.mrf.mxu0  ;;  %v14272_v30 = vadd.f32 %v14271_v46, %v14270_v28 }
 0x810   : > { %v14273_v12 = vpop.f32.mrf.mxu1 }
 0x811   : > { %v14293_v56 = vpop.f32.mrf.mxu0  ;;  %v12099_v25 = vadd.f32 %v14272_v30, %v12059_v39 }
 0x812   : > { %v14274_v32 = vpop.f32.mrf.mxu1  ;;  %v14294_v14 = vadd.f32 %v14293_v56, %v14292_v57 }
 0x813   : > { %v14295_v52 = vpop.f32.mrf.mxu0 }
 0x814   : > { %v12139_v36 = vadd.f32 %v14294_v14, %v12099_v25 }
 0x815   : > { %v14296_v26 = vpop.f32.mrf.mxu0 }
 0x82c   : > { %v14314_v58 = vpop.f32.mrf.mxu1 }
 0x82e   : > { %v14315_v37 = vpop.f32.mrf.mxu1 }
 0x82f   : > { %v14316_v5 = vadd.f32 %v14315_v37, %v14314_v58  ;;  %v14336_v34 = vpop.f32.mrf.mxu0 }
 0x830   : > { %v14317_v48 = vpop.f32.mrf.mxu1 }
 0x831   : > { %v12179_v41 = vadd.f32 %v14316_v5, %v12139_v36  ;;  %v14337_v61 = vpop.f32.mrf.mxu0 }
 0x832   : > { %v14338_v10 = vadd.f32 %v14337_v61, %v14336_v34  ;;  %v14318_v3 = vpop.f32.mrf.mxu1 }
 0x833   : > { %v14339_v20 = vpop.f32.mrf.mxu0 }
 0x834   : > { %v12219_v42 = vadd.f32 %v14338_v10, %v12179_v41 }
 0x835   : > { %v14340_v19 = vpop.f32.mrf.mxu0 }
 0x836   : > { %v12226_v23 = vmax.f32 %v12219_v42, 0.0 }
 0x838   : > { %v12229_v2 = vpack.c.bf16 %v12226_v23, %v12226_v23 }
 0x83a   : > { %14562 = vmatmul.mubr.bf16.vlgmr.msra.gmra.mxu0 %v12229_v2 }
 0x84c   : > { %v14358_v35 = vpop.f32.mrf.mxu1 }
 0x84e   : > { %v14359_v45 = vpop.f32.mrf.mxu1 }
 0x84f   : > { %v14360_v59 = vadd.f32 %v14359_v45, %v14358_v35 }
 0x850   : > { %v14361_v21 = vpop.f32.mrf.mxu1 }
 0x851   : > { %v12458_v62 = vadd.f32 %v14360_v59, %v12278_v22 }
 0x852   : > { %v14362_v18 = vpop.f32.mrf.mxu1 }
 0x8fa   : > { %v12497_v11 = vpop.f32.mrf.mxu0 }
 0x8fb   : > { %v12498_v53 = vadd.f32 %v12497_v11, %v12458_v62 }
 0x8fc   : > { %v14563_v31 = vpop.f32.mrf.mxu0 }
 0x8fd   : > { %12504 = vst.msk [vmem:[%s301_s17] sm:$0x1] %vm12503_vm8, %v12498_v53 }
 0x8fe   : > { %v12500_v33 = vpop.f32.mrf.mxu0 }
 0x900   : > { %v14564_v29 = vpop.f32.mrf.mxu0 }
 0x901 PF: > { %s18_s27 = sadd.s32 1, %s15950_s27  }
 0x902   : > { %p15_p4 = scmp.ge.s32.totalorder %s18_s27, 4  }
 0x904   :  { %17 = sbr.rel (!%p15_p4) target bundleno = 1 (0x1), region = 90 }

</bundles_post_ra>
